<compile_context>
chip_gen: v5e
topology: v5e:2x2
jax: 0.10.0
libtpu: 0.0.40
codegen_flags: <defaults>
</compile_context>

<pallas_src>
import functools

import jax
import jax.numpy as jnp
from jax.experimental import pallas as pl
from jax.experimental.pallas import tpu as pltpu

VMEM_SPEC = pl.BlockSpec(memory_space=pltpu.MemorySpace.VMEM)
VMEM_LIMIT = 48 * 1024 * 1024          # fits v7x's 64 MiB physical VMEM

# ------------------------------ model config --------------------------------

IN_CH = [3, 96, 128, 192]
OUT_CH = [96, 128, 192, 256]
KS = [3, 3, 3, 3]
STRIDES = [2, 1, 1, 1]
PADS = [1, 1, 1, 1]
POOLING = (0, 2)
LATENT_CH = 4
COND_DIM = 256
HEADS = 8
HEAD_DIM = COND_DIM // HEADS          # 32
INNER_DIM = HEADS * HEAD_DIM          # 256
LANE = 128
OUT_PAD = LANE                        # padded latent-channel width
BN_EPS = 1e-5
TILE_M_TARGET = 512                   # ~85% of HBM roofline per tiling data


def _round_up(x, m):
    return (x + m - 1) // m * m


CP = [_round_up(c, LANE) for c in OUT_CH]                  # padded Cout / stage
CIN_P = [IN_CH[0]] + CP[:-1]                               # padded Cin / stage


def _pick_tile_m(m):
    """Largest power-of-two tile <= TILE_M_TARGET that divides m (else full)."""
    for t in (TILE_M_TARGET, 256, 128, 64, 32, 16, 8):
        if t <= m and m % t == 0:
            return t
    return m


# ------------------------------ Pallas kernels -------------------------------

def _stage_kernel(p_ref, w_ref, b_ref, y_ref, mom_ref):
    """conv(as ONE merged matmul over pool phases) + maxpool + bias + ReLU,
    plus per-tile BatchNorm partial moments (sum, sum-of-squares)."""
    pw, tm, kdim = p_ref.shape
    cp = y_ref.shape[-1]
    # single MXU weight push: (pw*tm, K) x (K, CP) with f32 accumulation.
    p = p_ref[...].reshape(pw * tm, kdim)
    a = jnp.dot(p, w_ref[...], preferred_element_type=jnp.float32)
    if pw > 1:
        # 2x2 max-pool: phases live on the leading axis -> elementwise max.
        a = jnp.max(a.reshape(pw, tm, cp), axis=0)
    # max commutes with the monotonic (+bias, ReLU), so apply them once.
    y = jnp.maximum(a + b_ref[...], 0.0)                       # (tm, cp) f32
    y_ref[...] = y.astype(y_ref.dtype)
    # per-tile BN partial moments (rows 0/1 of an 8-row lane-dense block).
    s = jnp.sum(y, axis=0, keepdims=True)
    sq = jnp.sum(y * y, axis=0, keepdims=True)
    rows = jax.lax.broadcasted_iota(jnp.int32, (8, cp), 0)
    mom_ref[...] = jnp.where(rows == 0, s, 0.0) + jnp.where(rows == 1, sq, 0.0)


def _bn_apply_kernel(y_ref, scale_ref, shift_ref, o_ref):
    """Second BatchNorm pass: y * scale + shift (scale/shift precomputed)."""
    o_ref[...] = (y_ref[...].astype(jnp.float32) * scale_ref[...]
                  + shift_ref[...]).astype(o_ref.dtype)


def _tail_kernel(feat_ref, sc_ref, sh_ref, cond_ref, eps_ref, wml_ref, bml_ref,
                 wq_ref, wk_ref, wv_ref, wo_ref, bo_ref, o_ref,
                 *, n_batch, n_tok, n_seq):
    """Stage-3 BN + fused mu/logvar + reparameterize + cross attention + residual."""
    # fused stage-3 BatchNorm normalize (scale/shift from batch statistics).
    f = feat_ref[...].astype(jnp.float32) * sc_ref[...] + sh_ref[...]
    # fused mu/logvar 1x1-conv matmul: mu in lanes [0:4] of the first OUT_PAD
    # block, logvar in lanes [0:4] of the second.
    ml = jnp.dot(f.astype(jnp.bfloat16), wml_ref[...],
                 preferred_element_type=jnp.float32) + bml_ref[...]
    mu = ml[:, :OUT_PAD]
    logvar = ml[:, OUT_PAD:]
    std = jnp.exp(0.5 * logvar)
    z = mu + eps_ref[...] * std                       # (N*T, OUT_PAD); pads = 0

    # Q/K/V projections (bf16 operands, f32 accumulation). 1/sqrt(d) is folded
    # into wq in pack_params().
    q = jnp.dot(z.astype(jnp.bfloat16), wq_ref[...],
                preferred_element_type=jnp.float32)
    cond = cond_ref[...]
    k = jnp.dot(cond, wk_ref[...], preferred_element_type=jnp.float32)
    v = jnp.dot(cond, wv_ref[...], preferred_element_type=jnp.float32)

    q3 = q.reshape(n_batch, n_tok, INNER_DIM).astype(jnp.bfloat16)
    k3 = k.reshape(n_batch, n_seq, INNER_DIM).astype(jnp.bfloat16)
    v3 = v.reshape(n_batch, n_seq, INNER_DIM).astype(jnp.bfloat16)

    # Per-head attention on 32-lane blocks; head outputs concatenated once so a
    # single 256-deep out-projection dot follows (no 8x 32-deep contractions).
    heads_out = []
    for h in range(HEADS):
        lo = h * HEAD_DIM
        qh = q3[:, :, lo:lo + HEAD_DIM]
        kh = k3[:, :, lo:lo + HEAD_DIM]
        vh = v3[:, :, lo:lo + HEAD_DIM]
        s = jnp.einsum('ntd,nsd->nts', qh, kh,
                       preferred_element_type=jnp.float32)
        s = s - jnp.max(s, axis=-1, keepdims=True)
        e = jnp.exp(s)
        p = e / jnp.sum(e, axis=-1, keepdims=True)     # exact softmax
        oh = jnp.einsum('nts,nsd->ntd', p.astype(jnp.bfloat16), vh,
                        preferred_element_type=jnp.float32)
        heads_out.append(oh.reshape(n_batch * n_tok, HEAD_DIM))
    o_all = jnp.concatenate(heads_out, axis=-1).astype(jnp.bfloat16)  # (NT,256)
    attn = jnp.dot(o_all, wo_ref[...], preferred_element_type=jnp.float32)

    # out-projection bias + residual with z; padded lanes stay exactly zero.
    o_ref[...] = z + attn + bo_ref[...]


# ------------------------------ layer wrappers -------------------------------

def _extract_patches(x, k, stride, pad, pool):
    """Host-side im2col with direct pool-phase strided slicing (no 6-D transpose).
    Returns (pw, N*Hn*Wn, k*k*C) with pw = 4 for pooled stages else 1."""
    N, H, W, C = x.shape
    Ho = (H + 2 * pad - k) // stride + 1
    Wo = (W + 2 * pad - k) // stride + 1
    xp = jnp.pad(x, ((0, 0), (pad, pad), (pad, pad), (0, 0)))
    if pool:
        phases = ((0, 0), (0, 1), (1, 0), (1, 1))
        Hn, Wn, s2 = Ho // 2, Wo // 2, 2 * stride
    else:
        phases = ((0, 0),)
        Hn, Wn, s2 = Ho, Wo, stride
    slabs = []
    for (py, px) in phases:
        cols = []
        for dy in range(k):
            for dx in range(k):
                r0 = py * stride + dy
                c0 = px * stride + dx
                cols.append(xp[:, r0:r0 + s2 * (Hn - 1) + 1:s2,
                                  c0:c0 + s2 * (Wn - 1) + 1:s2, :])
        slabs.append(jnp.concatenate(cols, axis=-1))
    patches = jnp.stack(slabs, axis=0).reshape(len(phases), N * Hn * Wn,
                                               k * k * C)
    return patches, Hn, Wn


def _bn_stats(mom, m_rows, gamma, beta):
    """Reduce per-tile moments -> per-channel scale/shift (training-mode BN)."""
    grid_m = mom.shape[0] // 8
    momr = mom.reshape(grid_m, 8, -1)
    s = jnp.sum(momr[:, 0, :], axis=0)
    sq = jnp.sum(momr[:, 1, :], axis=0)
    mean = s / m_rows
    var = jnp.maximum(sq / m_rows - mean * mean, 0.0)   # biased batch variance
    inv = jax.lax.rsqrt(var + BN_EPS)
    scale = (gamma[0] * inv)[None, :]
    shift = (beta[0] - mean * gamma[0] * inv)[None, :]
    return scale.astype(jnp.float32), shift.astype(jnp.float32)


def _conv_stage(x, w_mat, b, i):
    """One encoder stage: im2col glue + gridded fused Pallas conv kernel.
    Returns pre-BN activations, per-tile moments, and output spatial dims."""
    N = x.shape[0]
    pool = i in POOLING
    patches, Hn, Wn = _extract_patches(x, KS[i], STRIDES[i], PADS[i], pool)
    pw, Mo, K = patches.shape
    patches = patches.astype(jnp.bfloat16)
    cp = CP[i]
    tile_m = _pick_tile_m(Mo)
    grid_m = Mo // tile_m

    flops = 2 * pw * Mo * K * cp
    bytes_acc = (pw * Mo * K * 2 + K * cp * 2 + cp * 4
                 + Mo * cp * 2 + grid_m * 8 * cp * 4)

    y, mom = pl.pallas_call(
        _stage_kernel,
        grid=(grid_m,),
        in_specs=[
            pl.BlockSpec((pw, tile_m, K), lambda m: (0, m, 0)),   # patches tile
            pl.BlockSpec((K, cp), lambda m: (0, 0)),              # weights
            pl.BlockSpec((1, cp), lambda m: (0, 0)),              # bias
        ],
        out_specs=[
            pl.BlockSpec((tile_m, cp), lambda m: (m, 0)),         # pre-BN y
            pl.BlockSpec((8, cp), lambda m: (m, 0)),              # moments
        ],
        out_shape=[
            jax.ShapeDtypeStruct((Mo, cp), jnp.bfloat16),
            jax.ShapeDtypeStruct((grid_m * 8, cp), jnp.float32),
        ],
        compiler_params=pltpu.CompilerParams(
            dimension_semantics=("parallel",),
            vmem_limit_bytes=VMEM_LIMIT),
        cost_estimate=pl.CostEstimate(flops=flops, transcendentals=0,
                                      bytes_accessed=bytes_acc),
    )(patches, w_mat, b)
    return y, mom, (N, Hn, Wn)


def _bn_apply(y, scale, shift):
    Mo, cp = y.shape
    tile_m = _pick_tile_m(Mo)
    grid_m = Mo // tile_m
    return pl.pallas_call(
        _bn_apply_kernel,
        grid=(grid_m,),
        in_specs=[
            pl.BlockSpec((tile_m, cp), lambda m: (m, 0)),
            pl.BlockSpec((1, cp), lambda m: (0, 0)),
            pl.BlockSpec((1, cp), lambda m: (0, 0)),
        ],
        out_specs=pl.BlockSpec((tile_m, cp), lambda m: (m, 0)),
        out_shape=jax.ShapeDtypeStruct((Mo, cp), jnp.bfloat16),
        compiler_params=pltpu.CompilerParams(
            dimension_semantics=("parallel",),
            vmem_limit_bytes=VMEM_LIMIT),
    )(y, scale, shift)


# -------------------------------- parameters ---------------------------------

def init_params(key):
    params = {}
    keys = iter(jax.random.split(key, 64))
    for i in range(len(OUT_CH)):
        params[f'conv{i}_w'] = 0.05 * jax.random.normal(
            next(keys), (OUT_CH[i], IN_CH[i], KS[i], KS[i]), jnp.float32)
        params[f'conv{i}_b'] = 0.05 * jax.random.normal(
            next(keys), (OUT_CH[i],), jnp.float32)
        params[f'bn{i}_g'] = jnp.ones((OUT_CH[i],), jnp.float32)
        params[f'bn{i}_b'] = jnp.zeros((OUT_CH[i],), jnp.float32)
    params['conv_mu_w'] = 0.05 * jax.random.normal(
        next(keys), (LATENT_CH, OUT_CH[-1], 1, 1), jnp.float32)
    params['conv_mu_b'] = 0.05 * jax.random.normal(
        next(keys), (LATENT_CH,), jnp.float32)
    params['conv_logvar_w'] = 0.05 * jax.random.normal(
        next(keys), (LATENT_CH, OUT_CH[-1], 1, 1), jnp.float32)
    params['conv_logvar_b'] = 0.05 * jax.random.normal(
        next(keys), (LATENT_CH,), jnp.float32)
    params['attn_wq'] = 0.05 * jax.random.normal(
        next(keys), (LATENT_CH, INNER_DIM), jnp.float32)
    params['attn_wk'] = 0.05 * jax.random.normal(
        next(keys), (COND_DIM, INNER_DIM), jnp.float32)
    params['attn_wv'] = 0.05 * jax.random.normal(
        next(keys), (COND_DIM, INNER_DIM), jnp.float32)
    params['attn_wo'] = 0.05 * jax.random.normal(
        next(keys), (INNER_DIM, LATENT_CH), jnp.float32)
    params['attn_bo'] = jnp.zeros((LATENT_CH,), jnp.float32)
    return params


def pack_params(params):
    """One-time weight prepacking: im2col layout, zero-padding to lane-dense
    channel widths, bf16 casts, attention scale folding."""
    packed = {}
    for i in range(len(OUT_CH)):
        k = KS[i]
        w4 = jnp.zeros((k, k, CIN_P[i], CP[i]), jnp.float32)
        w4 = w4.at[:, :, :IN_CH[i], :OUT_CH[i]].set(
            jnp.transpose(params[f'conv{i}_w'], (2, 3, 1, 0)))
        packed[f'w{i}'] = w4.reshape(k * k * CIN_P[i], CP[i]).astype(jnp.bfloat16)
        packed[f'b{i}'] = jnp.zeros((1, CP[i]), jnp.float32).at[
            0, :OUT_CH[i]].set(params[f'conv{i}_b'])
        packed[f'g{i}'] = jnp.zeros((1, CP[i]), jnp.float32).at[
            0, :OUT_CH[i]].set(params[f'bn{i}_g'])
        packed[f'bt{i}'] = jnp.zeros((1, CP[i]), jnp.float32).at[
            0, :OUT_CH[i]].set(params[f'bn{i}_b'])

    cf = CP[-1]
    wml = jnp.zeros((cf, 2 * OUT_PAD), jnp.float32)
    wml = wml.at[:OUT_CH[-1], :LATENT_CH].set(params['conv_mu_w'][:, :, 0, 0].T)
    wml = wml.at[:OUT_CH[-1], OUT_PAD:OUT_PAD + LATENT_CH].set(
        params['conv_logvar_w'][:, :, 0, 0].T)
    packed['wml'] = wml.astype(jnp.bfloat16)
    bml = jnp.zeros((1, 2 * OUT_PAD), jnp.float32)
    bml = bml.at[0, :LATENT_CH].set(params['conv_mu_b'])
    bml = bml.at[0, OUT_PAD:OUT_PAD + LATENT_CH].set(params['conv_logvar_b'])
    packed['bml'] = bml

    scale = 1.0 / (HEAD_DIM ** 0.5)                 # folded into Q projection
    wq = jnp.zeros((OUT_PAD, INNER_DIM), jnp.float32)
    wq = wq.at[:LATENT_CH, :].set(params['attn_wq'] * scale)
    packed['wq'] = wq.astype(jnp.bfloat16)
    packed['wk'] = params['attn_wk'].astype(jnp.bfloat16)
    packed['wv'] = params['attn_wv'].astype(jnp.bfloat16)
    wo = jnp.zeros((INNER_DIM, OUT_PAD), jnp.float32)
    wo = wo.at[:, :LATENT_CH].set(params['attn_wo'])
    packed['wo'] = wo.astype(jnp.bfloat16)
    packed['bo'] = jnp.zeros((1, OUT_PAD), jnp.float32).at[
        0, :LATENT_CH].set(params['attn_bo'])
    return packed


# -------------------------------- full module --------------------------------

def conditioned_vae_encoder(packed, x_nchw, condition_embedding, eps):
    # --- VAEncoder: 4 conv+ReLU(+pool) stages with two-pass BatchNorm ---
    x = jnp.transpose(x_nchw, (0, 2, 3, 1)).astype(jnp.float32)   # NCHW -> NHWC
    feat = f_scale = f_shift = None
    Nb = Hl = Wl = None
    for i in range(len(OUT_CH)):
        y, mom, (N, Hn, Wn) = _conv_stage(x, packed[f'w{i}'], packed[f'b{i}'], i)
        scale, shift = _bn_stats(mom, y.shape[0], packed[f'g{i}'],
                                 packed[f'bt{i}'])
        if i < len(OUT_CH) - 1:
            x = _bn_apply(y, scale, shift).reshape(N, Hn, Wn, CP[i])
        else:
            # stage-3 BN normalize is fused into the tail kernel.
            feat, f_scale, f_shift = y, scale, shift
            Nb, Hl, Wl = N, Hn, Wn

    T = Hl * Wl
    S = condition_embedding.shape[1]
    cond = condition_embedding.reshape(Nb * S, COND_DIM).astype(jnp.bfloat16)
    eps_p = jnp.zeros((Nb * T, OUT_PAD), jnp.float32)
    eps_p = eps_p.at[:, :LATENT_CH].set(eps.reshape(Nb * T, LATENT_CH))

    # --- fused BN + mu/logvar + reparam + cross-attention conditioning ---
    out = pl.pallas_call(
        functools.partial(_tail_kernel, n_batch=Nb, n_tok=T, n_seq=S),
        out_shape=jax.ShapeDtypeStruct((Nb * T, OUT_PAD), jnp.float32),
        in_specs=[VMEM_SPEC] * 12,
        out_specs=VMEM_SPEC,
        compiler_params=pltpu.CompilerParams(vmem_limit_bytes=VMEM_LIMIT),
    )(feat, f_scale, f_shift, cond, eps_p, packed['wml'], packed['bml'],
      packed['wq'], packed['wk'], packed['wv'], packed['wo'], packed['bo'])

    conditioned_z = out[:, :LATENT_CH].reshape(Nb, Hl, Wl, LATENT_CH)
    return jnp.transpose(conditioned_z, (0, 3, 1, 2))              # NHWC -> NCHW


def _latent_hw(h, w):
    for i in range(len(OUT_CH)):
        h = (h + 2 * PADS[i] - KS[i]) // STRIDES[i] + 1
        w = (w + 2 * PADS[i] - KS[i]) // STRIDES[i] + 1
        if i in POOLING:
            h //= 2
            w //= 2
    return h, w


# ------------------------------------ main ------------------------------------

if __name__ == "__main__":
    key = jax.random.PRNGKey(0)
    k_params, k_x, k_cond, k_eps = jax.random.split(key, 4)

    params = init_params(k_params)
    packed = pack_params(params)

    B, H, W = 2, 32, 32
    SEQ = 8
    x = jax.random.normal(k_x, (B, 3, H, W), jnp.float32)               # NCHW
    condition_embedding = jax.random.normal(k_cond, (B, SEQ, COND_DIM),
                                            jnp.float32)

    Hl, Wl = _latent_hw(H, W)          # 32 -> conv(s2) 16 -> pool 8 -> 8 -> pool 4 -> 4
    eps = jax.random.normal(k_eps, (B, Hl, Wl, LATENT_CH), jnp.float32)  # NHWC

    fwd = jax.jit(conditioned_vae_encoder)
    out = jax.block_until_ready(fwd(packed, x, condition_embedding, eps))
    assert out.shape == (B, LATENT_CH, Hl, Wl), out.shape
    assert bool(jnp.all(jnp.isfinite(out)))
    print("KERNEL_OK")
</pallas_src>

<mosaic_0001>
module attributes {stable_mosaic.version = 11 : i64} {
  func.func @_bn_apply_kernel(%arg0: i32, %arg1: memref<128x128xbf16, #tpu.memory_space<vmem>>, %arg2: memref<1x128xf32, #tpu.memory_space<vmem>>, %arg3: memref<1x128xf32, #tpu.memory_space<vmem>>, %arg4: memref<128x128xbf16, #tpu.memory_space<vmem>>) attributes {dimension_semantics = [#tpu.dimension_semantics<parallel>], iteration_bounds = array<i64: 1>, scalar_prefetch = 0 : i64, scratch_operands = 0 : i64, tpu.core_type = #tpu.core_type<tc>, window_params = [{transform_indices = @transform_0, window_bounds = array<i64: 128, 128>}, {pipeline_mode = #tpu.pipeline_mode<synchronous>, transform_indices = @transform_1, window_bounds = array<i64: 1, 128>}, {pipeline_mode = #tpu.pipeline_mode<synchronous>, transform_indices = @transform_2, window_bounds = array<i64: 1, 128>}, {transform_indices = @transform_3, window_bounds = array<i64: 128, 128>}]} {
    %c0 = arith.constant 0 : index
    %c0_0 = arith.constant 0 : index
    %0 = vector.load %arg1[%c0, %c0_0] : memref<128x128xbf16, #tpu.memory_space<vmem>>, vector<128x128xbf16>
    %1 = arith.extf %0 : vector<128x128xbf16> to vector<128x128xf32>
    %c0_1 = arith.constant 0 : index
    %c0_2 = arith.constant 0 : index
    %2 = vector.load %arg2[%c0_1, %c0_2] : memref<1x128xf32, #tpu.memory_space<vmem>>, vector<1x128xf32>
    %3 = vector.broadcast %2 : vector<1x128xf32> to vector<128x128xf32>
    %4 = arith.mulf %1, %3 : vector<128x128xf32>
    %c0_3 = arith.constant 0 : index
    %c0_4 = arith.constant 0 : index
    %5 = vector.load %arg3[%c0_3, %c0_4] : memref<1x128xf32, #tpu.memory_space<vmem>>, vector<1x128xf32>
    %6 = vector.broadcast %5 : vector<1x128xf32> to vector<128x128xf32>
    %7 = arith.addf %4, %6 : vector<128x128xf32>
    %8 = arith.truncf %7 : vector<128x128xf32> to vector<128x128xbf16>
    %c0_5 = arith.constant 0 : index
    %c0_6 = arith.constant 0 : index
    %9 = vector.load %arg4[%c0_5, %c0_6] : memref<128x128xbf16, #tpu.memory_space<vmem>>, vector<128x128xbf16>
    tpu.vector_store %arg4[%c0_5, %c0_6], %8 {strides = array<i32>} : memref<128x128xbf16, #tpu.memory_space<vmem>>, vector<128x128xbf16>,
    return
  }
  func.func @transform_0(%arg0: i32) -> (i32, i32) {
    %c0_i32 = arith.constant 0 : i32
    %c0_i32_0 = arith.constant 0 : i32
    return %arg0, %c0_i32 : i32, i32
  }
  func.func @transform_1(%arg0: i32) -> (i32, i32) {
    %c0_i32 = arith.constant 0 : i32
    %c0_i32_0 = arith.constant 0 : i32
    %c0_i32_1 = arith.constant 0 : i32
    return %c0_i32, %c0_i32_0 : i32, i32
  }
  func.func @transform_2(%arg0: i32) -> (i32, i32) {
    %c0_i32 = arith.constant 0 : i32
    %c0_i32_0 = arith.constant 0 : i32
    %c0_i32_1 = arith.constant 0 : i32
    return %c0_i32, %c0_i32_0 : i32, i32
  }
  func.func @transform_3(%arg0: i32) -> (i32, i32) {
    %c0_i32 = arith.constant 0 : i32
    %c0_i32_0 = arith.constant 0 : i32
    return %arg0, %c0_i32 : i32, i32
  }
}

module attributes {stable_mosaic.version = 11 : i64} {
  func.func @_stage_kernel(%arg0: i32, %arg1: memref<4x128x27xbf16, #tpu.memory_space<vmem>>, %arg2: memref<27x128xbf16, #tpu.memory_space<vmem>>, %arg3: memref<1x128xf32, #tpu.memory_space<vmem>>, %arg4: memref<128x128xbf16, #tpu.memory_space<vmem>>, %arg5: memref<8x128xf32, #tpu.memory_space<vmem>>) attributes {dimension_semantics = [#tpu.dimension_semantics<parallel>], iteration_bounds = array<i64: 1>, scalar_prefetch = 0 : i64, scratch_operands = 0 : i64, tpu.core_type = #tpu.core_type<tc>, window_params = [{transform_indices = @transform_0, window_bounds = array<i64: 4, 128, 27>}, {pipeline_mode = #tpu.pipeline_mode<synchronous>, transform_indices = @transform_1, window_bounds = array<i64: 27, 128>}, {pipeline_mode = #tpu.pipeline_mode<synchronous>, transform_indices = @transform_2, window_bounds = array<i64: 1, 128>}, {transform_indices = @transform_3, window_bounds = array<i64: 128, 128>}, {transform_indices = @transform_4, window_bounds = array<i64: 8, 128>}]} {
    %c0 = arith.constant 0 : index
    %c0_0 = arith.constant 0 : index
    %c0_1 = arith.constant 0 : index
    %0 = vector.load %arg1[%c0, %c0_0, %c0_1] : memref<4x128x27xbf16, #tpu.memory_space<vmem>>, vector<4x128x27xbf16>
    %1 = vector.shape_cast %0 : vector<4x128x27xbf16> to vector<512x27xbf16>
    %c0_2 = arith.constant 0 : index
    %c0_3 = arith.constant 0 : index
    %2 = vector.load %arg2[%c0_2, %c0_3] : memref<27x128xbf16, #tpu.memory_space<vmem>>, vector<27x128xbf16>
    %cst = arith.constant dense<0.000000e+00> : vector<512x128xf32>
    %3 = tpu.matmul %1, %2, %cst {dimension_numbers = #tpu.dot_dimension_numbers<[1], [0], [0], [1], [0, 0, 1, 1], [], []>} : vector<512x27xbf16>, vector<27x128xbf16>, vector<512x128xf32> -> vector<512x128xf32>
    %4 = vector.shape_cast %3 : vector<512x128xf32> to vector<4x128x128xf32>
    %cst_4 = arith.constant dense<0xFF800000> : vector<128x128xf32>
    %5 = vector.multi_reduction <maximumf>, %4, %cst_4 [0] : vector<4x128x128xf32> to vector<128x128xf32>
    %c0_5 = arith.constant 0 : index
    %c0_6 = arith.constant 0 : index
    %6 = vector.load %arg3[%c0_5, %c0_6] : memref<1x128xf32, #tpu.memory_space<vmem>>, vector<1x128xf32>
    %7 = vector.broadcast %6 : vector<1x128xf32> to vector<128x128xf32>
    %8 = arith.addf %5, %7 : vector<128x128xf32>
    %cst_7 = arith.constant 0.000000e+00 : f32
    %9 = vector.broadcast %cst_7 : f32 to vector<128x128xf32>
    %10 = arith.maximumf %8, %9 : vector<128x128xf32>
    %11 = arith.truncf %10 : vector<128x128xf32> to vector<128x128xbf16>
    %c0_8 = arith.constant 0 : index
    %c0_9 = arith.constant 0 : index
    %12 = vector.load %arg4[%c0_8, %c0_9] : memref<128x128xbf16, #tpu.memory_space<vmem>>, vector<128x128xbf16>
    tpu.vector_store %arg4[%c0_8, %c0_9], %11 {strides = array<i32>} : memref<128x128xbf16, #tpu.memory_space<vmem>>, vector<128x128xbf16>,
    %cst_10 = arith.constant dense<0.000000e+00> : vector<128xf32>
    %13 = vector.multi_reduction <add>, %10, %cst_10 [0] : vector<128x128xf32> to vector<128xf32>
    %14 = vector.shape_cast %13 : vector<128xf32> to vector<1x128xf32>
    %15 = arith.mulf %10, %10 : vector<128x128xf32>
    %cst_11 = arith.constant dense<0.000000e+00> : vector<128xf32>
    %16 = vector.multi_reduction <add>, %15, %cst_11 [0] : vector<128x128xf32> to vector<128xf32>
    %17 = vector.shape_cast %16 : vector<128xf32> to vector<1x128xf32>
    %18 = tpu.iota {dimensions = array<i32: 0>} : vector<8x128xi32>
    %c0_i32 = arith.constant 0 : i32
    %19 = vector.broadcast %c0_i32 : i32 to vector<8x128xi32>
    %20 = arith.cmpi eq, %18, %19 : vector<8x128xi32>
    %cst_12 = arith.constant 0.000000e+00 : f32
    %21 = vector.shape_cast %14 : vector<1x128xf32> to vector<1x128xf32>
    %22 = vector.broadcast %21 : vector<1x128xf32> to vector<8x128xf32>
    %23 = vector.broadcast %cst_12 : f32 to vector<8x128xf32>
    %24 = arith.select %20, %22, %23 : vector<8x128xi1>, vector<8x128xf32>
    %c1_i32 = arith.constant 1 : i32
    %25 = vector.broadcast %c1_i32 : i32 to vector<8x128xi32>
    %26 = arith.cmpi eq, %18, %25 : vector<8x128xi32>
    %cst_13 = arith.constant 0.000000e+00 : f32
    %27 = vector.shape_cast %17 : vector<1x128xf32> to vector<1x128xf32>
    %28 = vector.broadcast %27 : vector<1x128xf32> to vector<8x128xf32>
    %29 = vector.broadcast %cst_13 : f32 to vector<8x128xf32>
    %30 = arith.select %26, %28, %29 : vector<8x128xi1>, vector<8x128xf32>
    %31 = arith.addf %24, %30 : vector<8x128xf32>
    %c0_14 = arith.constant 0 : index
    %c0_15 = arith.constant 0 : index
    %32 = vector.load %arg5[%c0_14, %c0_15] : memref<8x128xf32, #tpu.memory_space<vmem>>, vector<8x128xf32>
    tpu.vector_store %arg5[%c0_14, %c0_15], %31 {strides = array<i32>} : memref<8x128xf32, #tpu.memory_space<vmem>>, vector<8x128xf32>,
    return
  }
  func.func @transform_0(%arg0: i32) -> (i32, i32, i32) {
    %c0_i32 = arith.constant 0 : i32
    %c0_i32_0 = arith.constant 0 : i32
    %c0_i32_1 = arith.constant 0 : i32
    return %c0_i32, %arg0, %c0_i32_0 : i32, i32, i32
  }
  func.func @transform_1(%arg0: i32) -> (i32, i32) {
    %c0_i32 = arith.constant 0 : i32
    %c0_i32_0 = arith.constant 0 : i32
    %c0_i32_1 = arith.constant 0 : i32
    return %c0_i32, %c0_i32_0 : i32, i32
  }
  func.func @transform_2(%arg0: i32) -> (i32, i32) {
    %c0_i32 = arith.constant 0 : i32
    %c0_i32_0 = arith.constant 0 : i32
    %c0_i32_1 = arith.constant 0 : i32
    return %c0_i32, %c0_i32_0 : i32, i32
  }
  func.func @transform_3(%arg0: i32) -> (i32, i32) {
    %c0_i32 = arith.constant 0 : i32
    %c0_i32_0 = arith.constant 0 : i32
    return %arg0, %c0_i32 : i32, i32
  }
  func.func @transform_4(%arg0: i32) -> (i32, i32) {
    %c0_i32 = arith.constant 0 : i32
    %c0_i32_0 = arith.constant 0 : i32
    return %arg0, %c0_i32 : i32, i32
  }
}

module attributes {stable_mosaic.version = 11 : i64} {
  func.func @_stage_kernel(%arg0: i32, %arg1: memref<1x128x1152xbf16, #tpu.memory_space<vmem>>, %arg2: memref<1152x128xbf16, #tpu.memory_space<vmem>>, %arg3: memref<1x128xf32, #tpu.memory_space<vmem>>, %arg4: memref<128x128xbf16, #tpu.memory_space<vmem>>, %arg5: memref<8x128xf32, #tpu.memory_space<vmem>>) attributes {dimension_semantics = [#tpu.dimension_semantics<parallel>], iteration_bounds = array<i64: 1>, scalar_prefetch = 0 : i64, scratch_operands = 0 : i64, tpu.core_type = #tpu.core_type<tc>, window_params = [{transform_indices = @transform_0, window_bounds = array<i64: 1, 128, 1152>}, {pipeline_mode = #tpu.pipeline_mode<synchronous>, transform_indices = @transform_1, window_bounds = array<i64: 1152, 128>}, {pipeline_mode = #tpu.pipeline_mode<synchronous>, transform_indices = @transform_2, window_bounds = array<i64: 1, 128>}, {transform_indices = @transform_3, window_bounds = array<i64: 128, 128>}, {transform_indices = @transform_4, window_bounds = array<i64: 8, 128>}]} {
    %c0 = arith.constant 0 : index
    %c0_0 = arith.constant 0 : index
    %c0_1 = arith.constant 0 : index
    %0 = vector.load %arg1[%c0, %c0_0, %c0_1] : memref<1x128x1152xbf16, #tpu.memory_space<vmem>>, vector<1x128x1152xbf16>
    %1 = vector.shape_cast %0 : vector<1x128x1152xbf16> to vector<128x1152xbf16>
    %c0_2 = arith.constant 0 : index
    %c0_3 = arith.constant 0 : index
    %2 = vector.load %arg2[%c0_2, %c0_3] : memref<1152x128xbf16, #tpu.memory_space<vmem>>, vector<1152x128xbf16>
    %cst = arith.constant dense<0.000000e+00> : vector<128x128xf32>
    %3 = tpu.matmul %1, %2, %cst {dimension_numbers = #tpu.dot_dimension_numbers<[1], [0], [0], [1], [0, 0, 1, 1], [], []>} : vector<128x1152xbf16>, vector<1152x128xbf16>, vector<128x128xf32> -> vector<128x128xf32>
    %c0_4 = arith.constant 0 : index
    %c0_5 = arith.constant 0 : index
    %4 = vector.load %arg3[%c0_4, %c0_5] : memref<1x128xf32, #tpu.memory_space<vmem>>, vector<1x128xf32>
    %5 = vector.broadcast %4 : vector<1x128xf32> to vector<128x128xf32>
    %6 = arith.addf %3, %5 : vector<128x128xf32>
    %cst_6 = arith.constant 0.000000e+00 : f32
    %7 = vector.broadcast %cst_6 : f32 to vector<128x128xf32>
    %8 = arith.maximumf %6, %7 : vector<128x128xf32>
    %9 = arith.truncf %8 : vector<128x128xf32> to vector<128x128xbf16>
    %c0_7 = arith.constant 0 : index
    %c0_8 = arith.constant 0 : index
    %10 = vector.load %arg4[%c0_7, %c0_8] : memref<128x128xbf16, #tpu.memory_space<vmem>>, vector<128x128xbf16>
    tpu.vector_store %arg4[%c0_7, %c0_8], %9 {strides = array<i32>} : memref<128x128xbf16, #tpu.memory_space<vmem>>, vector<128x128xbf16>,
    %cst_9 = arith.constant dense<0.000000e+00> : vector<128xf32>
    %11 = vector.multi_reduction <add>, %8, %cst_9 [0] : vector<128x128xf32> to vector<128xf32>
    %12 = vector.shape_cast %11 : vector<128xf32> to vector<1x128xf32>
    %13 = arith.mulf %8, %8 : vector<128x128xf32>
    %cst_10 = arith.constant dense<0.000000e+00> : vector<128xf32>
    %14 = vector.multi_reduction <add>, %13, %cst_10 [0] : vector<128x128xf32> to vector<128xf32>
    %15 = vector.shape_cast %14 : vector<128xf32> to vector<1x128xf32>
    %16 = tpu.iota {dimensions = array<i32: 0>} : vector<8x128xi32>
    %c0_i32 = arith.constant 0 : i32
    %17 = vector.broadcast %c0_i32 : i32 to vector<8x128xi32>
    %18 = arith.cmpi eq, %16, %17 : vector<8x128xi32>
    %cst_11 = arith.constant 0.000000e+00 : f32
    %19 = vector.shape_cast %12 : vector<1x128xf32> to vector<1x128xf32>
    %20 = vector.broadcast %19 : vector<1x128xf32> to vector<8x128xf32>
    %21 = vector.broadcast %cst_11 : f32 to vector<8x128xf32>
    %22 = arith.select %18, %20, %21 : vector<8x128xi1>, vector<8x128xf32>
    %c1_i32 = arith.constant 1 : i32
    %23 = vector.broadcast %c1_i32 : i32 to vector<8x128xi32>
    %24 = arith.cmpi eq, %16, %23 : vector<8x128xi32>
    %cst_12 = arith.constant 0.000000e+00 : f32
    %25 = vector.shape_cast %15 : vector<1x128xf32> to vector<1x128xf32>
    %26 = vector.broadcast %25 : vector<1x128xf32> to vector<8x128xf32>
    %27 = vector.broadcast %cst_12 : f32 to vector<8x128xf32>
    %28 = arith.select %24, %26, %27 : vector<8x128xi1>, vector<8x128xf32>
    %29 = arith.addf %22, %28 : vector<8x128xf32>
    %c0_13 = arith.constant 0 : index
    %c0_14 = arith.constant 0 : index
    %30 = vector.load %arg5[%c0_13, %c0_14] : memref<8x128xf32, #tpu.memory_space<vmem>>, vector<8x128xf32>
    tpu.vector_store %arg5[%c0_13, %c0_14], %29 {strides = array<i32>} : memref<8x128xf32, #tpu.memory_space<vmem>>, vector<8x128xf32>,
    return
  }
  func.func @transform_0(%arg0: i32) -> (i32, i32, i32) {
    %c0_i32 = arith.constant 0 : i32
    %c0_i32_0 = arith.constant 0 : i32
    %c0_i32_1 = arith.constant 0 : i32
    return %c0_i32, %arg0, %c0_i32_0 : i32, i32, i32
  }
  func.func @transform_1(%arg0: i32) -> (i32, i32) {
    %c0_i32 = arith.constant 0 : i32
    %c0_i32_0 = arith.constant 0 : i32
    %c0_i32_1 = arith.constant 0 : i32
    return %c0_i32, %c0_i32_0 : i32, i32
  }
  func.func @transform_2(%arg0: i32) -> (i32, i32) {
    %c0_i32 = arith.constant 0 : i32
    %c0_i32_0 = arith.constant 0 : i32
    %c0_i32_1 = arith.constant 0 : i32
    return %c0_i32, %c0_i32_0 : i32, i32
  }
  func.func @transform_3(%arg0: i32) -> (i32, i32) {
    %c0_i32 = arith.constant 0 : i32
    %c0_i32_0 = arith.constant 0 : i32
    return %arg0, %c0_i32 : i32, i32
  }
  func.func @transform_4(%arg0: i32) -> (i32, i32) {
    %c0_i32 = arith.constant 0 : i32
    %c0_i32_0 = arith.constant 0 : i32
    return %arg0, %c0_i32 : i32, i32
  }
}

module attributes {stable_mosaic.version = 11 : i64} {
  func.func @_stage_kernel(%arg0: i32, %arg1: memref<4x32x1152xbf16, #tpu.memory_space<vmem>>, %arg2: memref<1152x256xbf16, #tpu.memory_space<vmem>>, %arg3: memref<1x256xf32, #tpu.memory_space<vmem>>, %arg4: memref<32x256xbf16, #tpu.memory_space<vmem>>, %arg5: memref<8x256xf32, #tpu.memory_space<vmem>>) attributes {dimension_semantics = [#tpu.dimension_semantics<parallel>], iteration_bounds = array<i64: 1>, scalar_prefetch = 0 : i64, scratch_operands = 0 : i64, tpu.core_type = #tpu.core_type<tc>, window_params = [{transform_indices = @transform_0, window_bounds = array<i64: 4, 32, 1152>}, {pipeline_mode = #tpu.pipeline_mode<synchronous>, transform_indices = @transform_1, window_bounds = array<i64: 1152, 256>}, {pipeline_mode = #tpu.pipeline_mode<synchronous>, transform_indices = @transform_2, window_bounds = array<i64: 1, 256>}, {transform_indices = @transform_3, window_bounds = array<i64: 32, 256>}, {transform_indices = @transform_4, window_bounds = array<i64: 8, 256>}]} {
    %c0 = arith.constant 0 : index
    %c0_0 = arith.constant 0 : index
    %c0_1 = arith.constant 0 : index
    %0 = vector.load %arg1[%c0, %c0_0, %c0_1] : memref<4x32x1152xbf16, #tpu.memory_space<vmem>>, vector<4x32x1152xbf16>
    %1 = vector.shape_cast %0 : vector<4x32x1152xbf16> to vector<128x1152xbf16>
    %c0_2 = arith.constant 0 : index
    %c0_3 = arith.constant 0 : index
    %2 = vector.load %arg2[%c0_2, %c0_3] : memref<1152x256xbf16, #tpu.memory_space<vmem>>, vector<1152x256xbf16>
    %cst = arith.constant dense<0.000000e+00> : vector<128x256xf32>
    %3 = tpu.matmul %1, %2, %cst {dimension_numbers = #tpu.dot_dimension_numbers<[1], [0], [0], [1], [0, 0, 1, 1], [], []>} : vector<128x1152xbf16>, vector<1152x256xbf16>, vector<128x256xf32> -> vector<128x256xf32>
    %4 = vector.shape_cast %3 : vector<128x256xf32> to vector<4x32x256xf32>
    %cst_4 = arith.constant dense<0xFF800000> : vector<32x256xf32>
    %5 = vector.multi_reduction <maximumf>, %4, %cst_4 [0] : vector<4x32x256xf32> to vector<32x256xf32>
    %c0_5 = arith.constant 0 : index
    %c0_6 = arith.constant 0 : index
    %6 = vector.load %arg3[%c0_5, %c0_6] : memref<1x256xf32, #tpu.memory_space<vmem>>, vector<1x256xf32>
    %7 = vector.broadcast %6 : vector<1x256xf32> to vector<32x256xf32>
    %8 = arith.addf %5, %7 : vector<32x256xf32>
    %cst_7 = arith.constant 0.000000e+00 : f32
    %9 = vector.broadcast %cst_7 : f32 to vector<32x256xf32>
    %10 = arith.maximumf %8, %9 : vector<32x256xf32>
    %11 = arith.truncf %10 : vector<32x256xf32> to vector<32x256xbf16>
    %c0_8 = arith.constant 0 : index
    %c0_9 = arith.constant 0 : index
    %12 = vector.load %arg4[%c0_8, %c0_9] : memref<32x256xbf16, #tpu.memory_space<vmem>>, vector<32x256xbf16>
    tpu.vector_store %arg4[%c0_8, %c0_9], %11 {strides = array<i32>} : memref<32x256xbf16, #tpu.memory_space<vmem>>, vector<32x256xbf16>,
    %cst_10 = arith.constant dense<0.000000e+00> : vector<256xf32>
    %13 = vector.multi_reduction <add>, %10, %cst_10 [0] : vector<32x256xf32> to vector<256xf32>
    %14 = vector.shape_cast %13 : vector<256xf32> to vector<1x256xf32>
    %15 = arith.mulf %10, %10 : vector<32x256xf32>
    %cst_11 = arith.constant dense<0.000000e+00> : vector<256xf32>
    %16 = vector.multi_reduction <add>, %15, %cst_11 [0] : vector<32x256xf32> to vector<256xf32>
    %17 = vector.shape_cast %16 : vector<256xf32> to vector<1x256xf32>
    %18 = tpu.iota {dimensions = array<i32: 0>} : vector<8x256xi32>
    %c0_i32 = arith.constant 0 : i32
    %19 = vector.broadcast %c0_i32 : i32 to vector<8x256xi32>
    %20 = arith.cmpi eq, %18, %19 : vector<8x256xi32>
    %cst_12 = arith.constant 0.000000e+00 : f32
    %21 = vector.shape_cast %14 : vector<1x256xf32> to vector<1x256xf32>
    %22 = vector.broadcast %21 : vector<1x256xf32> to vector<8x256xf32>
    %23 = vector.broadcast %cst_12 : f32 to vector<8x256xf32>
    %24 = arith.select %20, %22, %23 : vector<8x256xi1>, vector<8x256xf32>
    %c1_i32 = arith.constant 1 : i32
    %25 = vector.broadcast %c1_i32 : i32 to vector<8x256xi32>
    %26 = arith.cmpi eq, %18, %25 : vector<8x256xi32>
    %cst_13 = arith.constant 0.000000e+00 : f32
    %27 = vector.shape_cast %17 : vector<1x256xf32> to vector<1x256xf32>
    %28 = vector.broadcast %27 : vector<1x256xf32> to vector<8x256xf32>
    %29 = vector.broadcast %cst_13 : f32 to vector<8x256xf32>
    %30 = arith.select %26, %28, %29 : vector<8x256xi1>, vector<8x256xf32>
    %31 = arith.addf %24, %30 : vector<8x256xf32>
    %c0_14 = arith.constant 0 : index
    %c0_15 = arith.constant 0 : index
    %32 = vector.load %arg5[%c0_14, %c0_15] : memref<8x256xf32, #tpu.memory_space<vmem>>, vector<8x256xf32>
    tpu.vector_store %arg5[%c0_14, %c0_15], %31 {strides = array<i32>} : memref<8x256xf32, #tpu.memory_space<vmem>>, vector<8x256xf32>,
    return
  }
  func.func @transform_0(%arg0: i32) -> (i32, i32, i32) {
    %c0_i32 = arith.constant 0 : i32
    %c0_i32_0 = arith.constant 0 : i32
    %c0_i32_1 = arith.constant 0 : i32
    return %c0_i32, %arg0, %c0_i32_0 : i32, i32, i32
  }
  func.func @transform_1(%arg0: i32) -> (i32, i32) {
    %c0_i32 = arith.constant 0 : i32
    %c0_i32_0 = arith.constant 0 : i32
    %c0_i32_1 = arith.constant 0 : i32
    return %c0_i32, %c0_i32_0 : i32, i32
  }
  func.func @transform_2(%arg0: i32) -> (i32, i32) {
    %c0_i32 = arith.constant 0 : i32
    %c0_i32_0 = arith.constant 0 : i32
    %c0_i32_1 = arith.constant 0 : i32
    return %c0_i32, %c0_i32_0 : i32, i32
  }
  func.func @transform_3(%arg0: i32) -> (i32, i32) {
    %c0_i32 = arith.constant 0 : i32
    %c0_i32_0 = arith.constant 0 : i32
    return %arg0, %c0_i32 : i32, i32
  }
  func.func @transform_4(%arg0: i32) -> (i32, i32) {
    %c0_i32 = arith.constant 0 : i32
    %c0_i32_0 = arith.constant 0 : i32
    return %arg0, %c0_i32 : i32, i32
  }
}

module attributes {stable_mosaic.version = 11 : i64} {
  func.func @_bn_apply_kernel(%arg0: i32, %arg1: memref<32x256xbf16, #tpu.memory_space<vmem>>, %arg2: memref<1x256xf32, #tpu.memory_space<vmem>>, %arg3: memref<1x256xf32, #tpu.memory_space<vmem>>, %arg4: memref<32x256xbf16, #tpu.memory_space<vmem>>) attributes {dimension_semantics = [#tpu.dimension_semantics<parallel>], iteration_bounds = array<i64: 1>, scalar_prefetch = 0 : i64, scratch_operands = 0 : i64, tpu.core_type = #tpu.core_type<tc>, window_params = [{transform_indices = @transform_0, window_bounds = array<i64: 32, 256>}, {pipeline_mode = #tpu.pipeline_mode<synchronous>, transform_indices = @transform_1, window_bounds = array<i64: 1, 256>}, {pipeline_mode = #tpu.pipeline_mode<synchronous>, transform_indices = @transform_2, window_bounds = array<i64: 1, 256>}, {transform_indices = @transform_3, window_bounds = array<i64: 32, 256>}]} {
    %c0 = arith.constant 0 : index
    %c0_0 = arith.constant 0 : index
    %0 = vector.load %arg1[%c0, %c0_0] : memref<32x256xbf16, #tpu.memory_space<vmem>>, vector<32x256xbf16>
    %1 = arith.extf %0 : vector<32x256xbf16> to vector<32x256xf32>
    %c0_1 = arith.constant 0 : index
    %c0_2 = arith.constant 0 : index
    %2 = vector.load %arg2[%c0_1, %c0_2] : memref<1x256xf32, #tpu.memory_space<vmem>>, vector<1x256xf32>
    %3 = vector.broadcast %2 : vector<1x256xf32> to vector<32x256xf32>
    %4 = arith.mulf %1, %3 : vector<32x256xf32>
    %c0_3 = arith.constant 0 : index
    %c0_4 = arith.constant 0 : index
    %5 = vector.load %arg3[%c0_3, %c0_4] : memref<1x256xf32, #tpu.memory_space<vmem>>, vector<1x256xf32>
    %6 = vector.broadcast %5 : vector<1x256xf32> to vector<32x256xf32>
    %7 = arith.addf %4, %6 : vector<32x256xf32>
    %8 = arith.truncf %7 : vector<32x256xf32> to vector<32x256xbf16>
    %c0_5 = arith.constant 0 : index
    %c0_6 = arith.constant 0 : index
    %9 = vector.load %arg4[%c0_5, %c0_6] : memref<32x256xbf16, #tpu.memory_space<vmem>>, vector<32x256xbf16>
    tpu.vector_store %arg4[%c0_5, %c0_6], %8 {strides = array<i32>} : memref<32x256xbf16, #tpu.memory_space<vmem>>, vector<32x256xbf16>,
    return
  }
  func.func @transform_0(%arg0: i32) -> (i32, i32) {
    %c0_i32 = arith.constant 0 : i32
    %c0_i32_0 = arith.constant 0 : i32
    return %arg0, %c0_i32 : i32, i32
  }
  func.func @transform_1(%arg0: i32) -> (i32, i32) {
    %c0_i32 = arith.constant 0 : i32
    %c0_i32_0 = arith.constant 0 : i32
    %c0_i32_1 = arith.constant 0 : i32
    return %c0_i32, %c0_i32_0 : i32, i32
  }
  func.func @transform_2(%arg0: i32) -> (i32, i32) {
    %c0_i32 = arith.constant 0 : i32
    %c0_i32_0 = arith.constant 0 : i32
    %c0_i32_1 = arith.constant 0 : i32
    return %c0_i32, %c0_i32_0 : i32, i32
  }
  func.func @transform_3(%arg0: i32) -> (i32, i32) {
    %c0_i32 = arith.constant 0 : i32
    %c0_i32_0 = arith.constant 0 : i32
    return %arg0, %c0_i32 : i32, i32
  }
}

module attributes {stable_mosaic.version = 11 : i64} {
  func.func @_stage_kernel(%arg0: i32, %arg1: memref<1x32x2304xbf16, #tpu.memory_space<vmem>>, %arg2: memref<2304x256xbf16, #tpu.memory_space<vmem>>, %arg3: memref<1x256xf32, #tpu.memory_space<vmem>>, %arg4: memref<32x256xbf16, #tpu.memory_space<vmem>>, %arg5: memref<8x256xf32, #tpu.memory_space<vmem>>) attributes {dimension_semantics = [#tpu.dimension_semantics<parallel>], iteration_bounds = array<i64: 1>, scalar_prefetch = 0 : i64, scratch_operands = 0 : i64, tpu.core_type = #tpu.core_type<tc>, window_params = [{transform_indices = @transform_0, window_bounds = array<i64: 1, 32, 2304>}, {pipeline_mode = #tpu.pipeline_mode<synchronous>, transform_indices = @transform_1, window_bounds = array<i64: 2304, 256>}, {pipeline_mode = #tpu.pipeline_mode<synchronous>, transform_indices = @transform_2, window_bounds = array<i64: 1, 256>}, {transform_indices = @transform_3, window_bounds = array<i64: 32, 256>}, {transform_indices = @transform_4, window_bounds = array<i64: 8, 256>}]} {
    %c0 = arith.constant 0 : index
    %c0_0 = arith.constant 0 : index
    %c0_1 = arith.constant 0 : index
    %0 = vector.load %arg1[%c0, %c0_0, %c0_1] : memref<1x32x2304xbf16, #tpu.memory_space<vmem>>, vector<1x32x2304xbf16>
    %1 = vector.shape_cast %0 : vector<1x32x2304xbf16> to vector<32x2304xbf16>
    %c0_2 = arith.constant 0 : index
    %c0_3 = arith.constant 0 : index
    %2 = vector.load %arg2[%c0_2, %c0_3] : memref<2304x256xbf16, #tpu.memory_space<vmem>>, vector<2304x256xbf16>
    %cst = arith.constant dense<0.000000e+00> : vector<32x256xf32>
    %3 = tpu.matmul %1, %2, %cst {dimension_numbers = #tpu.dot_dimension_numbers<[1], [0], [0], [1], [0, 0, 1, 1], [], []>} : vector<32x2304xbf16>, vector<2304x256xbf16>, vector<32x256xf32> -> vector<32x256xf32>
    %c0_4 = arith.constant 0 : index
    %c0_5 = arith.constant 0 : index
    %4 = vector.load %arg3[%c0_4, %c0_5] : memref<1x256xf32, #tpu.memory_space<vmem>>, vector<1x256xf32>
    %5 = vector.broadcast %4 : vector<1x256xf32> to vector<32x256xf32>
    %6 = arith.addf %3, %5 : vector<32x256xf32>
    %cst_6 = arith.constant 0.000000e+00 : f32
    %7 = vector.broadcast %cst_6 : f32 to vector<32x256xf32>
    %8 = arith.maximumf %6, %7 : vector<32x256xf32>
    %9 = arith.truncf %8 : vector<32x256xf32> to vector<32x256xbf16>
    %c0_7 = arith.constant 0 : index
    %c0_8 = arith.constant 0 : index
    %10 = vector.load %arg4[%c0_7, %c0_8] : memref<32x256xbf16, #tpu.memory_space<vmem>>, vector<32x256xbf16>
    tpu.vector_store %arg4[%c0_7, %c0_8], %9 {strides = array<i32>} : memref<32x256xbf16, #tpu.memory_space<vmem>>, vector<32x256xbf16>,
    %cst_9 = arith.constant dense<0.000000e+00> : vector<256xf32>
    %11 = vector.multi_reduction <add>, %8, %cst_9 [0] : vector<32x256xf32> to vector<256xf32>
    %12 = vector.shape_cast %11 : vector<256xf32> to vector<1x256xf32>
    %13 = arith.mulf %8, %8 : vector<32x256xf32>
    %cst_10 = arith.constant dense<0.000000e+00> : vector<256xf32>
    %14 = vector.multi_reduction <add>, %13, %cst_10 [0] : vector<32x256xf32> to vector<256xf32>
    %15 = vector.shape_cast %14 : vector<256xf32> to vector<1x256xf32>
    %16 = tpu.iota {dimensions = array<i32: 0>} : vector<8x256xi32>
    %c0_i32 = arith.constant 0 : i32
    %17 = vector.broadcast %c0_i32 : i32 to vector<8x256xi32>
    %18 = arith.cmpi eq, %16, %17 : vector<8x256xi32>
    %cst_11 = arith.constant 0.000000e+00 : f32
    %19 = vector.shape_cast %12 : vector<1x256xf32> to vector<1x256xf32>
    %20 = vector.broadcast %19 : vector<1x256xf32> to vector<8x256xf32>
    %21 = vector.broadcast %cst_11 : f32 to vector<8x256xf32>
    %22 = arith.select %18, %20, %21 : vector<8x256xi1>, vector<8x256xf32>
    %c1_i32 = arith.constant 1 : i32
    %23 = vector.broadcast %c1_i32 : i32 to vector<8x256xi32>
    %24 = arith.cmpi eq, %16, %23 : vector<8x256xi32>
    %cst_12 = arith.constant 0.000000e+00 : f32
    %25 = vector.shape_cast %15 : vector<1x256xf32> to vector<1x256xf32>
    %26 = vector.broadcast %25 : vector<1x256xf32> to vector<8x256xf32>
    %27 = vector.broadcast %cst_12 : f32 to vector<8x256xf32>
    %28 = arith.select %24, %26, %27 : vector<8x256xi1>, vector<8x256xf32>
    %29 = arith.addf %22, %28 : vector<8x256xf32>
    %c0_13 = arith.constant 0 : index
    %c0_14 = arith.constant 0 : index
    %30 = vector.load %arg5[%c0_13, %c0_14] : memref<8x256xf32, #tpu.memory_space<vmem>>, vector<8x256xf32>
    tpu.vector_store %arg5[%c0_13, %c0_14], %29 {strides = array<i32>} : memref<8x256xf32, #tpu.memory_space<vmem>>, vector<8x256xf32>,
    return
  }
  func.func @transform_0(%arg0: i32) -> (i32, i32, i32) {
    %c0_i32 = arith.constant 0 : i32
    %c0_i32_0 = arith.constant 0 : i32
    %c0_i32_1 = arith.constant 0 : i32
    return %c0_i32, %arg0, %c0_i32_0 : i32, i32, i32
  }
  func.func @transform_1(%arg0: i32) -> (i32, i32) {
    %c0_i32 = arith.constant 0 : i32
    %c0_i32_0 = arith.constant 0 : i32
    %c0_i32_1 = arith.constant 0 : i32
    return %c0_i32, %c0_i32_0 : i32, i32
  }
  func.func @transform_2(%arg0: i32) -> (i32, i32) {
    %c0_i32 = arith.constant 0 : i32
    %c0_i32_0 = arith.constant 0 : i32
    %c0_i32_1 = arith.constant 0 : i32
    return %c0_i32, %c0_i32_0 : i32, i32
  }
  func.func @transform_3(%arg0: i32) -> (i32, i32) {
    %c0_i32 = arith.constant 0 : i32
    %c0_i32_0 = arith.constant 0 : i32
    return %arg0, %c0_i32 : i32, i32
  }
  func.func @transform_4(%arg0: i32) -> (i32, i32) {
    %c0_i32 = arith.constant 0 : i32
    %c0_i32_0 = arith.constant 0 : i32
    return %arg0, %c0_i32 : i32, i32
  }
}

module attributes {stable_mosaic.version = 11 : i64} {
  func.func @_tail_kernel(%arg0: memref<32x256xbf16, #tpu.memory_space<vmem>>, %arg1: memref<1x256xf32, #tpu.memory_space<vmem>>, %arg2: memref<1x256xf32, #tpu.memory_space<vmem>>, %arg3: memref<16x256xbf16, #tpu.memory_space<vmem>>, %arg4: memref<32x128xf32, #tpu.memory_space<vmem>>, %arg5: memref<256x256xbf16, #tpu.memory_space<vmem>>, %arg6: memref<1x256xf32, #tpu.memory_space<vmem>>, %arg7: memref<128x256xbf16, #tpu.memory_space<vmem>>, %arg8: memref<256x256xbf16, #tpu.memory_space<vmem>>, %arg9: memref<256x256xbf16, #tpu.memory_space<vmem>>, %arg10: memref<256x128xbf16, #tpu.memory_space<vmem>>, %arg11: memref<1x128xf32, #tpu.memory_space<vmem>>, %arg12: memref<32x128xf32, #tpu.memory_space<vmem>>) attributes {dimension_semantics = [], scalar_prefetch = 0 : i64, scratch_operands = 0 : i64, tpu.core_type = #tpu.core_type<tc>} {
    %c0 = arith.constant 0 : index
    %c0_0 = arith.constant 0 : index
    %0 = vector.load %arg0[%c0, %c0_0] : memref<32x256xbf16, #tpu.memory_space<vmem>>, vector<32x256xbf16>
    %1 = arith.extf %0 : vector<32x256xbf16> to vector<32x256xf32>
    %c0_1 = arith.constant 0 : index
    %c0_2 = arith.constant 0 : index
    %2 = vector.load %arg1[%c0_1, %c0_2] : memref<1x256xf32, #tpu.memory_space<vmem>>, vector<1x256xf32>
    %3 = vector.broadcast %2 : vector<1x256xf32> to vector<32x256xf32>
    %4 = arith.mulf %1, %3 : vector<32x256xf32>
    %c0_3 = arith.constant 0 : index
    %c0_4 = arith.constant 0 : index
    %5 = vector.load %arg2[%c0_3, %c0_4] : memref<1x256xf32, #tpu.memory_space<vmem>>, vector<1x256xf32>
    %6 = vector.broadcast %5 : vector<1x256xf32> to vector<32x256xf32>
    %7 = arith.addf %4, %6 : vector<32x256xf32>
    %8 = arith.truncf %7 : vector<32x256xf32> to vector<32x256xbf16>
    %c0_5 = arith.constant 0 : index
    %c0_6 = arith.constant 0 : index
    %9 = vector.load %arg5[%c0_5, %c0_6] : memref<256x256xbf16, #tpu.memory_space<vmem>>, vector<256x256xbf16>
    %cst = arith.constant dense<0.000000e+00> : vector<32x256xf32>
    %10 = tpu.matmul %8, %9, %cst {dimension_numbers = #tpu.dot_dimension_numbers<[1], [0], [0], [1], [0, 0, 1, 1], [], []>} : vector<32x256xbf16>, vector<256x256xbf16>, vector<32x256xf32> -> vector<32x256xf32>
    %c0_7 = arith.constant 0 : index
    %c0_8 = arith.constant 0 : index
    %11 = vector.load %arg6[%c0_7, %c0_8] : memref<1x256xf32, #tpu.memory_space<vmem>>, vector<1x256xf32>
    %12 = vector.broadcast %11 : vector<1x256xf32> to vector<32x256xf32>
    %13 = arith.addf %10, %12 : vector<32x256xf32>
    %14 = vector.extract_strided_slice %13 {offsets = [0, 0], sizes = [32, 128], strides = [1, 1]} : vector<32x256xf32> to vector<32x128xf32>
    %15 = vector.extract_strided_slice %13 {offsets = [0, 128], sizes = [32, 128], strides = [1, 1]} : vector<32x256xf32> to vector<32x128xf32>
    %cst_9 = arith.constant 5.000000e-01 : f32
    %16 = vector.broadcast %cst_9 : f32 to vector<32x128xf32>
    %17 = arith.mulf %16, %15 : vector<32x128xf32>
    %18 = math.exp %17 : vector<32x128xf32>
    %c0_10 = arith.constant 0 : index
    %c0_11 = arith.constant 0 : index
    %19 = vector.load %arg4[%c0_10, %c0_11] : memref<32x128xf32, #tpu.memory_space<vmem>>, vector<32x128xf32>
    %20 = arith.mulf %19, %18 : vector<32x128xf32>
    %21 = arith.addf %14, %20 : vector<32x128xf32>
    %22 = arith.truncf %21 : vector<32x128xf32> to vector<32x128xbf16>
    %c0_12 = arith.constant 0 : index
    %c0_13 = arith.constant 0 : index
    %23 = vector.load %arg7[%c0_12, %c0_13] : memref<128x256xbf16, #tpu.memory_space<vmem>>, vector<128x256xbf16>
    %cst_14 = arith.constant dense<0.000000e+00> : vector<32x256xf32>
    %24 = tpu.matmul %22, %23, %cst_14 {dimension_numbers = #tpu.dot_dimension_numbers<[1], [0], [0], [1], [0, 0, 1, 1], [], []>} : vector<32x128xbf16>, vector<128x256xbf16>, vector<32x256xf32> -> vector<32x256xf32>
    %c0_15 = arith.constant 0 : index
    %c0_16 = arith.constant 0 : index
    %25 = vector.load %arg3[%c0_15, %c0_16] : memref<16x256xbf16, #tpu.memory_space<vmem>>, vector<16x256xbf16>
    %c0_17 = arith.constant 0 : index
    %c0_18 = arith.constant 0 : index
    %26 = vector.load %arg8[%c0_17, %c0_18] : memref<256x256xbf16, #tpu.memory_space<vmem>>, vector<256x256xbf16>
    %cst_19 = arith.constant dense<0.000000e+00> : vector<16x256xf32>
    %27 = tpu.matmul %25, %26, %cst_19 {dimension_numbers = #tpu.dot_dimension_numbers<[1], [0], [0], [1], [0, 0, 1, 1], [], []>} : vector<16x256xbf16>, vector<256x256xbf16>, vector<16x256xf32> -> vector<16x256xf32>
    %c0_20 = arith.constant 0 : index
    %c0_21 = arith.constant 0 : index
    %28 = vector.load %arg9[%c0_20, %c0_21] : memref<256x256xbf16, #tpu.memory_space<vmem>>, vector<256x256xbf16>
    %cst_22 = arith.constant dense<0.000000e+00> : vector<16x256xf32>
    %29 = tpu.matmul %25, %28, %cst_22 {dimension_numbers = #tpu.dot_dimension_numbers<[1], [0], [0], [1], [0, 0, 1, 1], [], []>} : vector<16x256xbf16>, vector<256x256xbf16>, vector<16x256xf32> -> vector<16x256xf32>
    %30 = vector.shape_cast %24 : vector<32x256xf32> to vector<2x16x256xf32>
    %31 = arith.truncf %30 : vector<2x16x256xf32> to vector<2x16x256xbf16>
    %32 = vector.shape_cast %27 : vector<16x256xf32> to vector<2x8x256xf32>
    %33 = arith.truncf %32 : vector<2x8x256xf32> to vector<2x8x256xbf16>
    %34 = vector.shape_cast %29 : vector<16x256xf32> to vector<2x8x256xf32>
    %35 = arith.truncf %34 : vector<2x8x256xf32> to vector<2x8x256xbf16>
    %36 = vector.extract_strided_slice %31 {offsets = [0, 0, 0], sizes = [2, 16, 32], strides = [1, 1, 1]} : vector<2x16x256xbf16> to vector<2x16x32xbf16>
    %37 = vector.extract_strided_slice %33 {offsets = [0, 0, 0], sizes = [2, 8, 32], strides = [1, 1, 1]} : vector<2x8x256xbf16> to vector<2x8x32xbf16>
    %38 = vector.extract_strided_slice %35 {offsets = [0, 0, 0], sizes = [2, 8, 32], strides = [1, 1, 1]} : vector<2x8x256xbf16> to vector<2x8x32xbf16>
    "tpu.trace_start"() <{level = 10 : i32, message = "ntd,nsd->nts"}> : () -> ()
    %cst_23 = arith.constant dense<0.000000e+00> : vector<2x16x8xf32>
    %39 = tpu.matmul %36, %37, %cst_23 {dimension_numbers = #tpu.dot_dimension_numbers<[2], [2], [1], [1], [0, 0, 0, 1, 1, 1], [0], [0]>} : vector<2x16x32xbf16>, vector<2x8x32xbf16>, vector<2x16x8xf32> -> vector<2x16x8xf32>
    "tpu.trace_stop"() : () -> ()
    %cst_24 = arith.constant dense<0xFF800000> : vector<2x16xf32>
    %40 = vector.multi_reduction <maximumf>, %39, %cst_24 [2] : vector<2x16x8xf32> to vector<2x16xf32>
    %41 = vector.shape_cast %40 : vector<2x16xf32> to vector<2x16x1xf32>
    %42 = vector.broadcast %41 : vector<2x16x1xf32> to vector<2x16x8xf32>
    %43 = arith.subf %39, %42 : vector<2x16x8xf32>
    %44 = math.exp %43 : vector<2x16x8xf32>
    %cst_25 = arith.constant dense<0.000000e+00> : vector<2x16xf32>
    %45 = vector.multi_reduction <add>, %44, %cst_25 [2] : vector<2x16x8xf32> to vector<2x16xf32>
    %46 = vector.shape_cast %45 : vector<2x16xf32> to vector<2x16x1xf32>
    %47 = vector.broadcast %46 : vector<2x16x1xf32> to vector<2x16x8xf32>
    %48 = arith.divf %44, %47 : vector<2x16x8xf32>
    %49 = arith.truncf %48 : vector<2x16x8xf32> to vector<2x16x8xbf16>
    "tpu.trace_start"() <{level = 10 : i32, message = "nts,nsd->ntd"}> : () -> ()
    %cst_26 = arith.constant dense<0.000000e+00> : vector<2x16x32xf32>
    %50 = tpu.matmul %49, %38, %cst_26 {dimension_numbers = #tpu.dot_dimension_numbers<[2], [1], [1], [2], [0, 0, 0, 1, 1, 2], [0], [0]>} : vector<2x16x8xbf16>, vector<2x8x32xbf16>, vector<2x16x32xf32> -> vector<2x16x32xf32>
    "tpu.trace_stop"() : () -> ()
    %51 = vector.shape_cast %50 : vector<2x16x32xf32> to vector<32x32xf32>
    %52 = vector.extract_strided_slice %31 {offsets = [0, 0, 32], sizes = [2, 16, 32], strides = [1, 1, 1]} : vector<2x16x256xbf16> to vector<2x16x32xbf16>
    %53 = vector.extract_strided_slice %33 {offsets = [0, 0, 32], sizes = [2, 8, 32], strides = [1, 1, 1]} : vector<2x8x256xbf16> to vector<2x8x32xbf16>
    %54 = vector.extract_strided_slice %35 {offsets = [0, 0, 32], sizes = [2, 8, 32], strides = [1, 1, 1]} : vector<2x8x256xbf16> to vector<2x8x32xbf16>
    "tpu.trace_start"() <{level = 10 : i32, message = "ntd,nsd->nts"}> : () -> ()
    %cst_27 = arith.constant dense<0.000000e+00> : vector<2x16x8xf32>
    %55 = tpu.matmul %52, %53, %cst_27 {dimension_numbers = #tpu.dot_dimension_numbers<[2], [2], [1], [1], [0, 0, 0, 1, 1, 1], [0], [0]>} : vector<2x16x32xbf16>, vector<2x8x32xbf16>, vector<2x16x8xf32> -> vector<2x16x8xf32>
    "tpu.trace_stop"() : () -> ()
    %cst_28 = arith.constant dense<0xFF800000> : vector<2x16xf32>
    %56 = vector.multi_reduction <maximumf>, %55, %cst_28 [2] : vector<2x16x8xf32> to vector<2x16xf32>
    %57 = vector.shape_cast %56 : vector<2x16xf32> to vector<2x16x1xf32>
    %58 = vector.broadcast %57 : vector<2x16x1xf32> to vector<2x16x8xf32>
    %59 = arith.subf %55, %58 : vector<2x16x8xf32>
    %60 = math.exp %59 : vector<2x16x8xf32>
    %cst_29 = arith.constant dense<0.000000e+00> : vector<2x16xf32>
    %61 = vector.multi_reduction <add>, %60, %cst_29 [2] : vector<2x16x8xf32> to vector<2x16xf32>
    %62 = vector.shape_cast %61 : vector<2x16xf32> to vector<2x16x1xf32>
    %63 = vector.broadcast %62 : vector<2x16x1xf32> to vector<2x16x8xf32>
    %64 = arith.divf %60, %63 : vector<2x16x8xf32>
    %65 = arith.truncf %64 : vector<2x16x8xf32> to vector<2x16x8xbf16>
    "tpu.trace_start"() <{level = 10 : i32, message = "nts,nsd->ntd"}> : () -> ()
    %cst_30 = arith.constant dense<0.000000e+00> : vector<2x16x32xf32>
    %66 = tpu.matmul %65, %54, %cst_30 {dimension_numbers = #tpu.dot_dimension_numbers<[2], [1], [1], [2], [0, 0, 0, 1, 1, 2], [0], [0]>} : vector<2x16x8xbf16>, vector<2x8x32xbf16>, vector<2x16x32xf32> -> vector<2x16x32xf32>
    "tpu.trace_stop"() : () -> ()
    %67 = vector.shape_cast %66 : vector<2x16x32xf32> to vector<32x32xf32>
    %68 = vector.extract_strided_slice %31 {offsets = [0, 0, 64], sizes = [2, 16, 32], strides = [1, 1, 1]} : vector<2x16x256xbf16> to vector<2x16x32xbf16>
    %69 = vector.extract_strided_slice %33 {offsets = [0, 0, 64], sizes = [2, 8, 32], strides = [1, 1, 1]} : vector<2x8x256xbf16> to vector<2x8x32xbf16>
    %70 = vector.extract_strided_slice %35 {offsets = [0, 0, 64], sizes = [2, 8, 32], strides = [1, 1, 1]} : vector<2x8x256xbf16> to vector<2x8x32xbf16>
    "tpu.trace_start"() <{level = 10 : i32, message = "ntd,nsd->nts"}> : () -> ()
    %cst_31 = arith.constant dense<0.000000e+00> : vector<2x16x8xf32>
    %71 = tpu.matmul %68, %69, %cst_31 {dimension_numbers = #tpu.dot_dimension_numbers<[2], [2], [1], [1], [0, 0, 0, 1, 1, 1], [0], [0]>} : vector<2x16x32xbf16>, vector<2x8x32xbf16>, vector<2x16x8xf32> -> vector<2x16x8xf32>
    "tpu.trace_stop"() : () -> ()
    %cst_32 = arith.constant dense<0xFF800000> : vector<2x16xf32>
    %72 = vector.multi_reduction <maximumf>, %71, %cst_32 [2] : vector<2x16x8xf32> to vector<2x16xf32>
    %73 = vector.shape_cast %72 : vector<2x16xf32> to vector<2x16x1xf32>
    %74 = vector.broadcast %73 : vector<2x16x1xf32> to vector<2x16x8xf32>
    %75 = arith.subf %71, %74 : vector<2x16x8xf32>
    %76 = math.exp %75 : vector<2x16x8xf32>
    %cst_33 = arith.constant dense<0.000000e+00> : vector<2x16xf32>
    %77 = vector.multi_reduction <add>, %76, %cst_33 [2] : vector<2x16x8xf32> to vector<2x16xf32>
    %78 = vector.shape_cast %77 : vector<2x16xf32> to vector<2x16x1xf32>
    %79 = vector.broadcast %78 : vector<2x16x1xf32> to vector<2x16x8xf32>
    %80 = arith.divf %76, %79 : vector<2x16x8xf32>
    %81 = arith.truncf %80 : vector<2x16x8xf32> to vector<2x16x8xbf16>
    "tpu.trace_start"() <{level = 10 : i32, message = "nts,nsd->ntd"}> : () -> ()
    %cst_34 = arith.constant dense<0.000000e+00> : vector<2x16x32xf32>
    %82 = tpu.matmul %81, %70, %cst_34 {dimension_numbers = #tpu.dot_dimension_numbers<[2], [1], [1], [2], [0, 0, 0, 1, 1, 2], [0], [0]>} : vector<2x16x8xbf16>, vector<2x8x32xbf16>, vector<2x16x32xf32> -> vector<2x16x32xf32>
    "tpu.trace_stop"() : () -> ()
    %83 = vector.shape_cast %82 : vector<2x16x32xf32> to vector<32x32xf32>
    %84 = vector.extract_strided_slice %31 {offsets = [0, 0, 96], sizes = [2, 16, 32], strides = [1, 1, 1]} : vector<2x16x256xbf16> to vector<2x16x32xbf16>
    %85 = vector.extract_strided_slice %33 {offsets = [0, 0, 96], sizes = [2, 8, 32], strides = [1, 1, 1]} : vector<2x8x256xbf16> to vector<2x8x32xbf16>
    %86 = vector.extract_strided_slice %35 {offsets = [0, 0, 96], sizes = [2, 8, 32], strides = [1, 1, 1]} : vector<2x8x256xbf16> to vector<2x8x32xbf16>
    "tpu.trace_start"() <{level = 10 : i32, message = "ntd,nsd->nts"}> : () -> ()
    %cst_35 = arith.constant dense<0.000000e+00> : vector<2x16x8xf32>
    %87 = tpu.matmul %84, %85, %cst_35 {dimension_numbers = #tpu.dot_dimension_numbers<[2], [2], [1], [1], [0, 0, 0, 1, 1, 1], [0], [0]>} : vector<2x16x32xbf16>, vector<2x8x32xbf16>, vector<2x16x8xf32> -> vector<2x16x8xf32>
    "tpu.trace_stop"() : () -> ()
    %cst_36 = arith.constant dense<0xFF800000> : vector<2x16xf32>
    %88 = vector.multi_reduction <maximumf>, %87, %cst_36 [2] : vector<2x16x8xf32> to vector<2x16xf32>
    %89 = vector.shape_cast %88 : vector<2x16xf32> to vector<2x16x1xf32>
    %90 = vector.broadcast %89 : vector<2x16x1xf32> to vector<2x16x8xf32>
    %91 = arith.subf %87, %90 : vector<2x16x8xf32>
    %92 = math.exp %91 : vector<2x16x8xf32>
    %cst_37 = arith.constant dense<0.000000e+00> : vector<2x16xf32>
    %93 = vector.multi_reduction <add>, %92, %cst_37 [2] : vector<2x16x8xf32> to vector<2x16xf32>
    %94 = vector.shape_cast %93 : vector<2x16xf32> to vector<2x16x1xf32>
    %95 = vector.broadcast %94 : vector<2x16x1xf32> to vector<2x16x8xf32>
    %96 = arith.divf %92, %95 : vector<2x16x8xf32>
    %97 = arith.truncf %96 : vector<2x16x8xf32> to vector<2x16x8xbf16>
    "tpu.trace_start"() <{level = 10 : i32, message = "nts,nsd->ntd"}> : () -> ()
    %cst_38 = arith.constant dense<0.000000e+00> : vector<2x16x32xf32>
    %98 = tpu.matmul %97, %86, %cst_38 {dimension_numbers = #tpu.dot_dimension_numbers<[2], [1], [1], [2], [0, 0, 0, 1, 1, 2], [0], [0]>} : vector<2x16x8xbf16>, vector<2x8x32xbf16>, vector<2x16x32xf32> -> vector<2x16x32xf32>
    "tpu.trace_stop"() : () -> ()
    %99 = vector.shape_cast %98 : vector<2x16x32xf32> to vector<32x32xf32>
    %100 = vector.extract_strided_slice %31 {offsets = [0, 0, 128], sizes = [2, 16, 32], strides = [1, 1, 1]} : vector<2x16x256xbf16> to vector<2x16x32xbf16>
    %101 = vector.extract_strided_slice %33 {offsets = [0, 0, 128], sizes = [2, 8, 32], strides = [1, 1, 1]} : vector<2x8x256xbf16> to vector<2x8x32xbf16>
    %102 = vector.extract_strided_slice %35 {offsets = [0, 0, 128], sizes = [2, 8, 32], strides = [1, 1, 1]} : vector<2x8x256xbf16> to vector<2x8x32xbf16>
    "tpu.trace_start"() <{level = 10 : i32, message = "ntd,nsd->nts"}> : () -> ()
    %cst_39 = arith.constant dense<0.000000e+00> : vector<2x16x8xf32>
    %103 = tpu.matmul %100, %101, %cst_39 {dimension_numbers = #tpu.dot_dimension_numbers<[2], [2], [1], [1], [0, 0, 0, 1, 1, 1], [0], [0]>} : vector<2x16x32xbf16>, vector<2x8x32xbf16>, vector<2x16x8xf32> -> vector<2x16x8xf32>
    "tpu.trace_stop"() : () -> ()
    %cst_40 = arith.constant dense<0xFF800000> : vector<2x16xf32>
    %104 = vector.multi_reduction <maximumf>, %103, %cst_40 [2] : vector<2x16x8xf32> to vector<2x16xf32>
    %105 = vector.shape_cast %104 : vector<2x16xf32> to vector<2x16x1xf32>
    %106 = vector.broadcast %105 : vector<2x16x1xf32> to vector<2x16x8xf32>
    %107 = arith.subf %103, %106 : vector<2x16x8xf32>
    %108 = math.exp %107 : vector<2x16x8xf32>
    %cst_41 = arith.constant dense<0.000000e+00> : vector<2x16xf32>
    %109 = vector.multi_reduction <add>, %108, %cst_41 [2] : vector<2x16x8xf32> to vector<2x16xf32>
    %110 = vector.shape_cast %109 : vector<2x16xf32> to vector<2x16x1xf32>
    %111 = vector.broadcast %110 : vector<2x16x1xf32> to vector<2x16x8xf32>
    %112 = arith.divf %108, %111 : vector<2x16x8xf32>
    %113 = arith.truncf %112 : vector<2x16x8xf32> to vector<2x16x8xbf16>
    "tpu.trace_start"() <{level = 10 : i32, message = "nts,nsd->ntd"}> : () -> ()
    %cst_42 = arith.constant dense<0.000000e+00> : vector<2x16x32xf32>
    %114 = tpu.matmul %113, %102, %cst_42 {dimension_numbers = #tpu.dot_dimension_numbers<[2], [1], [1], [2], [0, 0, 0, 1, 1, 2], [0], [0]>} : vector<2x16x8xbf16>, vector<2x8x32xbf16>, vector<2x16x32xf32> -> vector<2x16x32xf32>
    "tpu.trace_stop"() : () -> ()
    %115 = vector.shape_cast %114 : vector<2x16x32xf32> to vector<32x32xf32>
    %116 = vector.extract_strided_slice %31 {offsets = [0, 0, 160], sizes = [2, 16, 32], strides = [1, 1, 1]} : vector<2x16x256xbf16> to vector<2x16x32xbf16>
    %117 = vector.extract_strided_slice %33 {offsets = [0, 0, 160], sizes = [2, 8, 32], strides = [1, 1, 1]} : vector<2x8x256xbf16> to vector<2x8x32xbf16>
    %118 = vector.extract_strided_slice %35 {offsets = [0, 0, 160], sizes = [2, 8, 32], strides = [1, 1, 1]} : vector<2x8x256xbf16> to vector<2x8x32xbf16>
    "tpu.trace_start"() <{level = 10 : i32, message = "ntd,nsd->nts"}> : () -> ()
    %cst_43 = arith.constant dense<0.000000e+00> : vector<2x16x8xf32>
    %119 = tpu.matmul %116, %117, %cst_43 {dimension_numbers = #tpu.dot_dimension_numbers<[2], [2], [1], [1], [0, 0, 0, 1, 1, 1], [0], [0]>} : vector<2x16x32xbf16>, vector<2x8x32xbf16>, vector<2x16x8xf32> -> vector<2x16x8xf32>
    "tpu.trace_stop"() : () -> ()
    %cst_44 = arith.constant dense<0xFF800000> : vector<2x16xf32>
    %120 = vector.multi_reduction <maximumf>, %119, %cst_44 [2] : vector<2x16x8xf32> to vector<2x16xf32>
    %121 = vector.shape_cast %120 : vector<2x16xf32> to vector<2x16x1xf32>
    %122 = vector.broadcast %121 : vector<2x16x1xf32> to vector<2x16x8xf32>
    %123 = arith.subf %119, %122 : vector<2x16x8xf32>
    %124 = math.exp %123 : vector<2x16x8xf32>
    %cst_45 = arith.constant dense<0.000000e+00> : vector<2x16xf32>
    %125 = vector.multi_reduction <add>, %124, %cst_45 [2] : vector<2x16x8xf32> to vector<2x16xf32>
    %126 = vector.shape_cast %125 : vector<2x16xf32> to vector<2x16x1xf32>
    %127 = vector.broadcast %126 : vector<2x16x1xf32> to vector<2x16x8xf32>
    %128 = arith.divf %124, %127 : vector<2x16x8xf32>
    %129 = arith.truncf %128 : vector<2x16x8xf32> to vector<2x16x8xbf16>
    "tpu.trace_start"() <{level = 10 : i32, message = "nts,nsd->ntd"}> : () -> ()
    %cst_46 = arith.constant dense<0.000000e+00> : vector<2x16x32xf32>
    %130 = tpu.matmul %129, %118, %cst_46 {dimension_numbers = #tpu.dot_dimension_numbers<[2], [1], [1], [2], [0, 0, 0, 1, 1, 2], [0], [0]>} : vector<2x16x8xbf16>, vector<2x8x32xbf16>, vector<2x16x32xf32> -> vector<2x16x32xf32>
    "tpu.trace_stop"() : () -> ()
    %131 = vector.shape_cast %130 : vector<2x16x32xf32> to vector<32x32xf32>
    %132 = vector.extract_strided_slice %31 {offsets = [0, 0, 192], sizes = [2, 16, 32], strides = [1, 1, 1]} : vector<2x16x256xbf16> to vector<2x16x32xbf16>
    %133 = vector.extract_strided_slice %33 {offsets = [0, 0, 192], sizes = [2, 8, 32], strides = [1, 1, 1]} : vector<2x8x256xbf16> to vector<2x8x32xbf16>
    %134 = vector.extract_strided_slice %35 {offsets = [0, 0, 192], sizes = [2, 8, 32], strides = [1, 1, 1]} : vector<2x8x256xbf16> to vector<2x8x32xbf16>
    "tpu.trace_start"() <{level = 10 : i32, message = "ntd,nsd->nts"}> : () -> ()
    %cst_47 = arith.constant dense<0.000000e+00> : vector<2x16x8xf32>
    %135 = tpu.matmul %132, %133, %cst_47 {dimension_numbers = #tpu.dot_dimension_numbers<[2], [2], [1], [1], [0, 0, 0, 1, 1, 1], [0], [0]>} : vector<2x16x32xbf16>, vector<2x8x32xbf16>, vector<2x16x8xf32> -> vector<2x16x8xf32>
    "tpu.trace_stop"() : () -> ()
    %cst_48 = arith.constant dense<0xFF800000> : vector<2x16xf32>
    %136 = vector.multi_reduction <maximumf>, %135, %cst_48 [2] : vector<2x16x8xf32> to vector<2x16xf32>
    %137 = vector.shape_cast %136 : vector<2x16xf32> to vector<2x16x1xf32>
    %138 = vector.broadcast %137 : vector<2x16x1xf32> to vector<2x16x8xf32>
    %139 = arith.subf %135, %138 : vector<2x16x8xf32>
    %140 = math.exp %139 : vector<2x16x8xf32>
    %cst_49 = arith.constant dense<0.000000e+00> : vector<2x16xf32>
    %141 = vector.multi_reduction <add>, %140, %cst_49 [2] : vector<2x16x8xf32> to vector<2x16xf32>
    %142 = vector.shape_cast %141 : vector<2x16xf32> to vector<2x16x1xf32>
    %143 = vector.broadcast %142 : vector<2x16x1xf32> to vector<2x16x8xf32>
    %144 = arith.divf %140, %143 : vector<2x16x8xf32>
    %145 = arith.truncf %144 : vector<2x16x8xf32> to vector<2x16x8xbf16>
    "tpu.trace_start"() <{level = 10 : i32, message = "nts,nsd->ntd"}> : () -> ()
    %cst_50 = arith.constant dense<0.000000e+00> : vector<2x16x32xf32>
    %146 = tpu.matmul %145, %134, %cst_50 {dimension_numbers = #tpu.dot_dimension_numbers<[2], [1], [1], [2], [0, 0, 0, 1, 1, 2], [0], [0]>} : vector<2x16x8xbf16>, vector<2x8x32xbf16>, vector<2x16x32xf32> -> vector<2x16x32xf32>
    "tpu.trace_stop"() : () -> ()
    %147 = vector.shape_cast %146 : vector<2x16x32xf32> to vector<32x32xf32>
    %148 = vector.extract_strided_slice %31 {offsets = [0, 0, 224], sizes = [2, 16, 32], strides = [1, 1, 1]} : vector<2x16x256xbf16> to vector<2x16x32xbf16>
    %149 = vector.extract_strided_slice %33 {offsets = [0, 0, 224], sizes = [2, 8, 32], strides = [1, 1, 1]} : vector<2x8x256xbf16> to vector<2x8x32xbf16>
    %150 = vector.extract_strided_slice %35 {offsets = [0, 0, 224], sizes = [2, 8, 32], strides = [1, 1, 1]} : vector<2x8x256xbf16> to vector<2x8x32xbf16>
    "tpu.trace_start"() <{level = 10 : i32, message = "ntd,nsd->nts"}> : () -> ()
    %cst_51 = arith.constant dense<0.000000e+00> : vector<2x16x8xf32>
    %151 = tpu.matmul %148, %149, %cst_51 {dimension_numbers = #tpu.dot_dimension_numbers<[2], [2], [1], [1], [0, 0, 0, 1, 1, 1], [0], [0]>} : vector<2x16x32xbf16>, vector<2x8x32xbf16>, vector<2x16x8xf32> -> vector<2x16x8xf32>
    "tpu.trace_stop"() : () -> ()
    %cst_52 = arith.constant dense<0xFF800000> : vector<2x16xf32>
    %152 = vector.multi_reduction <maximumf>, %151, %cst_52 [2] : vector<2x16x8xf32> to vector<2x16xf32>
    %153 = vector.shape_cast %152 : vector<2x16xf32> to vector<2x16x1xf32>
    %154 = vector.broadcast %153 : vector<2x16x1xf32> to vector<2x16x8xf32>
    %155 = arith.subf %151, %154 : vector<2x16x8xf32>
    %156 = math.exp %155 : vector<2x16x8xf32>
    %cst_53 = arith.constant dense<0.000000e+00> : vector<2x16xf32>
    %157 = vector.multi_reduction <add>, %156, %cst_53 [2] : vector<2x16x8xf32> to vector<2x16xf32>
    %158 = vector.shape_cast %157 : vector<2x16xf32> to vector<2x16x1xf32>
    %159 = vector.broadcast %158 : vector<2x16x1xf32> to vector<2x16x8xf32>
    %160 = arith.divf %156, %159 : vector<2x16x8xf32>
    %161 = arith.truncf %160 : vector<2x16x8xf32> to vector<2x16x8xbf16>
    "tpu.trace_start"() <{level = 10 : i32, message = "nts,nsd->ntd"}> : () -> ()
    %cst_54 = arith.constant dense<0.000000e+00> : vector<2x16x32xf32>
    %162 = tpu.matmul %161, %150, %cst_54 {dimension_numbers = #tpu.dot_dimension_numbers<[2], [1], [1], [2], [0, 0, 0, 1, 1, 2], [0], [0]>} : vector<2x16x8xbf16>, vector<2x8x32xbf16>, vector<2x16x32xf32> -> vector<2x16x32xf32>
    "tpu.trace_stop"() : () -> ()
    %163 = vector.shape_cast %162 : vector<2x16x32xf32> to vector<32x32xf32>
    %164 = tpu.concatenate %51, %67, %83, %99, %115, %131, %147, %163 in 1 : vector<32x32xf32>, vector<32x32xf32>, vector<32x32xf32>, vector<32x32xf32>, vector<32x32xf32>, vector<32x32xf32>, vector<32x32xf32>, vector<32x32xf32> -> vector<32x256xf32>
    %165 = arith.truncf %164 : vector<32x256xf32> to vector<32x256xbf16>
    %c0_55 = arith.constant 0 : index
    %c0_56 = arith.constant 0 : index
    %166 = vector.load %arg10[%c0_55, %c0_56] : memref<256x128xbf16, #tpu.memory_space<vmem>>, vector<256x128xbf16>
    %cst_57 = arith.constant dense<0.000000e+00> : vector<32x128xf32>
    %167 = tpu.matmul %165, %166, %cst_57 {dimension_numbers = #tpu.dot_dimension_numbers<[1], [0], [0], [1], [0, 0, 1, 1], [], []>} : vector<32x256xbf16>, vector<256x128xbf16>, vector<32x128xf32> -> vector<32x128xf32>
    %168 = arith.addf %21, %167 : vector<32x128xf32>
    %c0_58 = arith.constant 0 : index
    %c0_59 = arith.constant 0 : index
    %169 = vector.load %arg11[%c0_58, %c0_59] : memref<1x128xf32, #tpu.memory_space<vmem>>, vector<1x128xf32>
    %170 = vector.broadcast %169 : vector<1x128xf32> to vector<32x128xf32>
    %171 = arith.addf %168, %170 : vector<32x128xf32>
    %c0_60 = arith.constant 0 : index
    %c0_61 = arith.constant 0 : index
    %172 = vector.load %arg12[%c0_60, %c0_61] : memref<32x128xf32, #tpu.memory_space<vmem>>, vector<32x128xf32>
    tpu.vector_store %arg12[%c0_60, %c0_61], %171 {strides = array<i32>} : memref<32x128xf32, #tpu.memory_space<vmem>>, vector<32x128xf32>,
    return
  }
}

</mosaic_0001>

<bundles_post_ra>
// kernel: conditioned_vae_encoder.9
= control target key start
LH: loop header
LB: loop body
LE: loop exit
PB: predicated region body
PF: predicated region fallthrough
CT: control target
= control target key end

     0   :  { %s320_s0 = inlined_call_operand.vmem [shape: bf16[128,128], index: 0, kind: input, shape index: {}]   ;;  %s321_s1 = inlined_call_operand.vmem [shape: f32[1,128], index: 1, kind: input, shape index: {}]   ;;  %s322_s2 = inlined_call_operand.vmem [shape: f32[1,128], index: 2, kind: input, shape index: {}]   ;;  %s323_s3 = inlined_call_operand.vmem [shape: bf16[128,128], index: 3, kind: output, shape index: {}]  }
   0x1   :  { %v123_v0 = vld [vmem:[%s320_s0] sm:$0xff]   ;;  %v194_v5 = vld [vmem:[%s320_s0 + $0x8] sm:$0xff]   ;;  %v195_v8 = vld [vmem:[%s320_s0 + $0x10] sm:$0xff]  }
   0x2   :  { %v236_v1 = vld [vmem:[%s321_s1] ss:$0 sm:$0xff]  ;;  %v124_v2 = vunpack.c.l.bf16 %v123_v0  ;;  %v125_v3 = vunpack.c.h.bf16 %v123_v0  ;;  %v128_v6 = vunpack.c.l.bf16 %v194_v5  ;;  %v129_v7 = vunpack.c.h.bf16 %v194_v5  ;;  %v196_v9 = vld [vmem:[%s320_s0 + $0x18] sm:$0xff]   ;;  %v198_v27 = vld [vmem:[%s320_s0 + $0x28] sm:$0xff]  }
   0x3   :  { %v241_v4 = vld [vmem:[%s322_s2] ss:$0 sm:$0xff]  ;;  %v132_v12 = vunpack.c.l.bf16 %v195_v8  ;;  %v133_v13 = vunpack.c.h.bf16 %v195_v8  ;;  %v136_v16 = vunpack.c.l.bf16 %v196_v9  ;;  %v137_v17 = vunpack.c.h.bf16 %v196_v9  ;;  %v199_v32 = vld [vmem:[%s320_s0 + $0x30] sm:$0xff]   ;;  %v200_v37 = vld [vmem:[%s320_s0 + $0x38] sm:$0xff]  }
   0x4   :  { %v50_v10 = vmul.f32 %v236_v1, %v124_v2  ;;  %v51_v11 = vmul.f32 %v236_v1, %v125_v3  ;;  %v52_v14 = vmul.f32 %v236_v1, %v128_v6  ;;  %v53_v15 = vmul.f32 %v236_v1, %v129_v7  ;;  %v197_v18 = vld [vmem:[%s320_s0 + $0x20] sm:$0xff]  }
   0x5   :  { %v54_v21 = vmul.f32 %v236_v1, %v132_v12  ;;  %v55_v22 = vmul.f32 %v236_v1, %v133_v13  ;;  %v56_v25 = vmul.f32 %v236_v1, %v136_v16  ;;  %v57_v26 = vmul.f32 %v236_v1, %v137_v17 }
   0x6   :  { %v70_v19 = vadd.f32 %v241_v4, %v50_v10  ;;  %v71_v20 = vadd.f32 %v241_v4, %v51_v11  ;;  %v72_v23 = vadd.f32 %v241_v4, %v52_v14  ;;  %v73_v24 = vadd.f32 %v241_v4, %v53_v15 }
   0x7   :  { %v74_v29 = vadd.f32 %v241_v4, %v54_v21  ;;  %v75_v30 = vadd.f32 %v241_v4, %v55_v22  ;;  %v140_v31 = vunpack.c.l.bf16 %v197_v18  ;;  %v76_v34 = vadd.f32 %v241_v4, %v56_v25 }
   0x8   :  { %v157_v28 = vpack.c.bf16 %v71_v20, %v70_v19  ;;  %v162_v33 = vpack.c.bf16 %v73_v24, %v72_v23  ;;  %v77_v35 = vadd.f32 %v241_v4, %v57_v26  ;;  %v141_v36 = vunpack.c.h.bf16 %v197_v18 }
   0x9   :  { %v167_v38 = vpack.c.bf16 %v75_v30, %v74_v29  ;;  %v58_v39 = vmul.f32 %v236_v1, %v140_v31  ;;  %v144_v40 = vunpack.c.l.bf16 %v198_v27  ;;  %v145_v41 = vunpack.c.h.bf16 %v198_v27 }
   0xa   :  { %158 = vst [vmem:[%s323_s3] sm:$0xff] %v157_v28   ;;  %v172_v42 = vpack.c.bf16 %v77_v35, %v76_v34  ;;  %v59_v43 = vmul.f32 %v236_v1, %v141_v36  ;;  %v148_v44 = vunpack.c.l.bf16 %v199_v32  ;;  %v149_v45 = vunpack.c.h.bf16 %v199_v32 }
   0xb   :  { %201 = vst [vmem:[%s323_s3 + $0x8] sm:$0xff] %v162_v33   ;;  %v78_v46 = vadd.f32 %v241_v4, %v58_v39  ;;  %v60_v47 = vmul.f32 %v236_v1, %v144_v40  ;;  %v61_v48 = vmul.f32 %v236_v1, %v145_v41  ;;  %v152_v49 = vunpack.c.l.bf16 %v200_v37 }
   0xc   :  { %202 = vst [vmem:[%s323_s3 + $0x10] sm:$0xff] %v167_v38   ;;  %v79_v50 = vadd.f32 %v241_v4, %v59_v43  ;;  %v62_v51 = vmul.f32 %v236_v1, %v148_v44  ;;  %v63_v52 = vmul.f32 %v236_v1, %v149_v45  ;;  %v153_v53 = vunpack.c.h.bf16 %v200_v37 }
   0xd   :  { %203 = vst [vmem:[%s323_s3 + $0x18] sm:$0xff] %v172_v42   ;;  %v80_v54 = vadd.f32 %v241_v4, %v60_v47  ;;  %v81_v55 = vadd.f32 %v241_v4, %v61_v48  ;;  %v64_v56 = vmul.f32 %v236_v1, %v152_v49 }
   0xe   :  { %v177_v57 = vpack.c.bf16 %v79_v50, %v78_v46  ;;  %v82_v58 = vadd.f32 %v241_v4, %v62_v51  ;;  %v83_v59 = vadd.f32 %v241_v4, %v63_v52  ;;  %v65_v60 = vmul.f32 %v236_v1, %v153_v53 }
   0xf   :  { %v182_v61 = vpack.c.bf16 %v81_v55, %v80_v54  ;;  %v84_v62 = vadd.f32 %v241_v4, %v64_v56 }
  0x10   :  { %204 = vst [vmem:[%s323_s3 + $0x20] sm:$0xff] %v177_v57   ;;  %v187_v63 = vpack.c.bf16 %v83_v59, %v82_v58  ;;  %v85_v0 = vadd.f32 %v241_v4, %v65_v60 }
  0x11   :  { %205 = vst [vmem:[%s323_s3 + $0x28] sm:$0xff] %v182_v61  }
  0x12   :  { %206 = vst [vmem:[%s323_s3 + $0x30] sm:$0xff] %v187_v63   ;;  %v192_v2 = vpack.c.bf16 %v85_v0, %v84_v62 }
  0x14   :  { %207 = vst [vmem:[%s323_s3 + $0x38] sm:$0xff] %v192_v2  }

// kernel: conditioned_vae_encoder.8
= control target key start
LH: loop header
LB: loop body
LE: loop exit
PB: predicated region body
PF: predicated region fallthrough
CT: control target
= control target key end

     0   :  { %vm353_vm0 = vcmask 1044480   ;;  %vm354_vm1 = vcmask 1045504   ;;  %v976_v2 = vmov 65535   ;;  %vm256_vm2 = vcmask 220160   ;;  %s1223_s1 = inlined_call_operand.vmem [shape: bf16[27,128], index: 1, kind: input, shape index: {}]   ;;  %s1224_s0 = inlined_call_operand.vmem [shape: bf16[4,128,27], index: 0, kind: input, shape index: {}]   ;;  %s1225_s2 = inlined_call_operand.vmem [shape: f32[1,128], index: 2, kind: input, shape index: {}]   ;;  %s1226_s3 = inlined_call_operand.vmem [shape: bf16[128,128], index: 3, kind: output, shape index: {0}]   ;;  %s1227_s4 = inlined_call_operand.vmem [shape: f32[8,128], index: 4, kind: output, shape index: {1}]  }
   0x1   :  { %v853_v0 = vld [vmem:[%s1223_s1 + $0x8] sm:$0xf]  ;;  %v920_v1 = vld [vmem:[%s1223_s1 + $0x8] sm:$0x30]  ;;  %v355_v3 = vsel %vm353_vm0, 4294967295, %v976_v2  ;;  %v919_v7 = vld [vmem:[%s1223_s1] sm:$0xff] }
   0x2   :  { %v854_v4 = vor.u32 %v920_v1, %v853_v0  ;;  %v356_v5 = vsel %vm354_vm1, %v355_v3, 0  ;;  %v887_v8 = vld [vmem:[%s1224_s0] sm:$0xff]  ;;  %v888_v12 = vld [vmem:[%s1224_s0 + $0x8] sm:$0xff]  ;;  %v889_v16 = vld [vmem:[%s1224_s0 + $0x10] sm:$0xff] }
   0x3   :  { %v895_v9 = vld [vmem:[%s1224_s0 + $0x40] sm:$0xff]  ;;  %v896_v13 = vld [vmem:[%s1224_s0 + $0x48] sm:$0xff]  ;;  %v897_v17 = vld [vmem:[%s1224_s0 + $0x50] sm:$0xff] }
   0x4   :  { %v358_v6 = vand.u32 %v854_v4, %v356_v5  ;;  %v903_v10 = vld [vmem:[%s1224_s0 + $0x80] sm:$0xff]  ;;  %v904_v14 = vld [vmem:[%s1224_s0 + $0x88] sm:$0xff]  ;;  %v905_v18 = vld [vmem:[%s1224_s0 + $0x90] sm:$0xff] }
   0x5   :  { %v911_v11 = vld [vmem:[%s1224_s0 + $0xc0] sm:$0xff]  ;;  %v912_v15 = vld [vmem:[%s1224_s0 + $0xc8] sm:$0xff]  ;;  %v913_v19 = vld [vmem:[%s1224_s0 + $0xd0] sm:$0xff] }
   0x6   :  { %366 = vmatpush.bf16.msra.mxu0 %v358_v6  ;;  %968 = vmatpush.bf16.msra.mxu1 %v358_v6  ;;  %v890_v20 = vld [vmem:[%s1224_s0 + $0x18] sm:$0xff]  ;;  %v891_v24 = vld [vmem:[%s1224_s0 + $0x20] sm:$0xff]  ;;  %v892_v28 = vld [vmem:[%s1224_s0 + $0x28] sm:$0xff] }
   0x7   :  { %969 = vmatpush.bf16.msra.mxu2 %v358_v6  ;;  %970 = vmatpush.bf16.msra.mxu3 %v358_v6  ;;  %v898_v21 = vld [vmem:[%s1224_s0 + $0x58] sm:$0xff]  ;;  %v899_v25 = vld [vmem:[%s1224_s0 + $0x60] sm:$0xff]  ;;  %v900_v29 = vld [vmem:[%s1224_s0 + $0x68] sm:$0xff] }
   0x8   :  { %v906_v22 = vld [vmem:[%s1224_s0 + $0x98] sm:$0xff]  ;;  %v907_v26 = vld [vmem:[%s1224_s0 + $0xa0] sm:$0xff]  ;;  %v908_v30 = vld [vmem:[%s1224_s0 + $0xa8] sm:$0xff] }
   0x9   :  { %v914_v23 = vld [vmem:[%s1224_s0 + $0xd8] sm:$0xff]  ;;  %v915_v27 = vld [vmem:[%s1224_s0 + $0xe0] sm:$0xff]  ;;  %v916_v31 = vld [vmem:[%s1224_s0 + $0xe8] sm:$0xff] }
   0xa   :  { %367 = vmatpush.bf16.msra.mxu0 %v919_v7  ;;  %971 = vmatpush.bf16.msra.mxu1 %v919_v7  ;;  %v893_v32 = vld [vmem:[%s1224_s0 + $0x30] sm:$0xff]  ;;  %v894_v36 = vld [vmem:[%s1224_s0 + $0x38] sm:$0xff]  ;;  %v1142_v49 = vld [vmem:[%s1225_s2] ss:$0 sm:$0xff] }
   0xb   :  { %972 = vmatpush.bf16.msra.mxu2 %v919_v7  ;;  %973 = vmatpush.bf16.msra.mxu3 %v919_v7  ;;  %v901_v33 = vld [vmem:[%s1224_s0 + $0x70] sm:$0xff]  ;;  %v902_v37 = vld [vmem:[%s1224_s0 + $0x78] sm:$0xff] }
   0xc   :  { %v909_v34 = vld [vmem:[%s1224_s0 + $0xb0] sm:$0xff]  ;;  %v910_v38 = vld [vmem:[%s1224_s0 + $0xb8] sm:$0xff] }
   0xd   :  { %855 = vmatmul.msk.bf16.vlgmr.msra.gmra.mxu0 %vm256_vm2, %v887_v8  ;;  %863 = vmatmul.msk.bf16.vlgmr.msra.gmra.mxu1 %vm256_vm2, %v895_v9  ;;  %v917_v35 = vld [vmem:[%s1224_s0 + $0xf0] sm:$0xff]  ;;  %v918_v39 = vld [vmem:[%s1224_s0 + $0xf8] sm:$0xff] }
   0xe   :  { %871 = vmatmul.msk.bf16.vlgmr.msra.gmra.mxu2 %vm256_vm2, %v903_v10  ;;  %879 = vmatmul.msk.bf16.vlgmr.msra.gmra.mxu3 %vm256_vm2, %v911_v11 }
  0x1d   :  { %856 = vmatmul.msk.bf16.gmra.mxu0 %vm256_vm2, %v888_v12  ;;  %864 = vmatmul.msk.bf16.gmra.mxu1 %vm256_vm2, %v896_v13 }
  0x1e   :  { %872 = vmatmul.msk.bf16.gmra.mxu2 %vm256_vm2, %v904_v14  ;;  %880 = vmatmul.msk.bf16.gmra.mxu3 %vm256_vm2, %v912_v15 }
  0x2d   :  { %857 = vmatmul.msk.bf16.gmra.mxu0 %vm256_vm2, %v889_v16  ;;  %865 = vmatmul.msk.bf16.gmra.mxu1 %vm256_vm2, %v897_v17 }
  0x2e   :  { %873 = vmatmul.msk.bf16.gmra.mxu2 %vm256_vm2, %v905_v18  ;;  %881 = vmatmul.msk.bf16.gmra.mxu3 %vm256_vm2, %v913_v19 }
  0x3d   :  { %858 = vmatmul.msk.bf16.gmra.mxu0 %vm256_vm2, %v890_v20  ;;  %866 = vmatmul.msk.bf16.gmra.mxu1 %vm256_vm2, %v898_v21 }
  0x3e   :  { %874 = vmatmul.msk.bf16.gmra.mxu2 %vm256_vm2, %v906_v22  ;;  %882 = vmatmul.msk.bf16.gmra.mxu3 %vm256_vm2, %v914_v23 }
  0x4d   :  { %859 = vmatmul.msk.bf16.gmra.mxu0 %vm256_vm2, %v891_v24  ;;  %867 = vmatmul.msk.bf16.gmra.mxu1 %vm256_vm2, %v899_v25 }
  0x4e   :  { %875 = vmatmul.msk.bf16.gmra.mxu2 %vm256_vm2, %v907_v26  ;;  %883 = vmatmul.msk.bf16.gmra.mxu3 %vm256_vm2, %v915_v27 }
  0x5d   :  { %860 = vmatmul.msk.bf16.gmra.mxu0 %vm256_vm2, %v892_v28  ;;  %868 = vmatmul.msk.bf16.gmra.mxu1 %vm256_vm2, %v900_v29 }
  0x5e   :  { %876 = vmatmul.msk.bf16.gmra.mxu2 %vm256_vm2, %v908_v30  ;;  %884 = vmatmul.msk.bf16.gmra.mxu3 %vm256_vm2, %v916_v31 }
  0x6d   :  { %861 = vmatmul.msk.bf16.gmra.mxu0 %vm256_vm2, %v893_v32  ;;  %869 = vmatmul.msk.bf16.gmra.mxu1 %vm256_vm2, %v901_v33 }
  0x6e   :  { %877 = vmatmul.msk.bf16.gmra.mxu2 %vm256_vm2, %v909_v34  ;;  %885 = vmatmul.msk.bf16.gmra.mxu3 %vm256_vm2, %v917_v35 }
  0x7d   :  { %862 = vmatmul.msk.bf16.gmra.mxu0 %vm256_vm2, %v894_v36  ;;  %870 = vmatmul.msk.bf16.gmra.mxu1 %vm256_vm2, %v902_v37 }
  0x7e   :  { %878 = vmatmul.msk.bf16.gmra.mxu2 %vm256_vm2, %v910_v38  ;;  %886 = vmatmul.msk.bf16.gmra.mxu3 %vm256_vm2, %v918_v39 }
  0x8a   :  { %v369_v40 = vpop.f32.mrf.mxu0  ;;  %v409_v41 = vpop.f32.mrf.mxu1 }
  0x8b   :  { %v529_v42 = vmax.f32 %v369_v40, %v409_v41 }
  0x91   :  { %v449_v43 = vpop.f32.mrf.mxu2  ;;  %v489_v44 = vpop.f32.mrf.mxu3 }
  0x92   :  { %v530_v45 = vmax.f32 %v529_v42, %v449_v43  ;;  %v371_v46 = vpop.f32.mrf.mxu0  ;;  %v411_v47 = vpop.f32.mrf.mxu1 }
  0x93   :  { %v532_v50 = vmax.f32 %v371_v46, %v411_v47 }
  0x94   :  { %v531_v48 = vmax.f32 %v530_v45, %v489_v44 }
  0x96   :  { %v581_v51 = vadd.f32 %v1142_v49, %v531_v48 }
  0x98   :  { %v597_v58 = vmax.f32 %v581_v51, 0.0 }
  0x99   :  { %v451_v52 = vpop.f32.mrf.mxu2  ;;  %v491_v53 = vpop.f32.mrf.mxu3 }
  0x9a   :  { %v533_v54 = vmax.f32 %v532_v50, %v451_v52  ;;  %v374_v55 = vpop.f32.mrf.mxu0  ;;  %v414_v56 = vpop.f32.mrf.mxu1  ;;  %v666_v62 = vmul.f32 %v597_v58, %v597_v58 }
  0x9b   :  { %v535_v60 = vmax.f32 %v374_v55, %v414_v56 }
  0x9c   :  { %v534_v57 = vmax.f32 %v533_v54, %v491_v53 }
  0x9e   :  { %v582_v59 = vadd.f32 %v1142_v49, %v534_v57 }
  0xa0   :  { %v598_v61 = vmax.f32 %v582_v59, 0.0 }
  0xa1   :  { %v454_v63 = vpop.f32.mrf.mxu2  ;;  %v494_v0 = vpop.f32.mrf.mxu3 }
  0xa2   :  { %v924_v1 = vpack.c.bf16 %v598_v61, %v597_v58  ;;  %v645_v2 = vadd.f32 %v598_v61, %v597_v58  ;;  %v667_v3 = vmul.f32 %v598_v61, %v598_v61  ;;  %v536_v4 = vmax.f32 %v535_v60, %v454_v63  ;;  %v376_v5 = vpop.f32.mrf.mxu0  ;;  %v416_v6 = vpop.f32.mrf.mxu1 }
  0xa3   :  { %v538_v11 = vmax.f32 %v376_v5, %v416_v6 }
  0xa4   :  { %925 = vst [vmem:[%s1226_s3] sm:$0xff] %v924_v1   ;;  %v682_v7 = vadd.f32 %v667_v3, %v666_v62  ;;  %v537_v8 = vmax.f32 %v536_v4, %v494_v0 }
  0xa6   :  { %v583_v9 = vadd.f32 %v1142_v49, %v537_v8 }
  0xa8   :  { %v599_v10 = vmax.f32 %v583_v9, 0.0 }
  0xa9   :  { %v456_v12 = vpop.f32.mrf.mxu2  ;;  %v496_v13 = vpop.f32.mrf.mxu3 }
  0xaa   :  { %v646_v14 = vadd.f32 %v645_v2, %v599_v10  ;;  %v668_v15 = vmul.f32 %v599_v10, %v599_v10  ;;  %v539_v16 = vmax.f32 %v538_v11, %v456_v12  ;;  %v379_v17 = vpop.f32.mrf.mxu0  ;;  %v419_v18 = vpop.f32.mrf.mxu1 }
  0xab   :  { %v541_v23 = vmax.f32 %v379_v17, %v419_v18 }
  0xac   :  { %v683_v19 = vadd.f32 %v682_v7, %v668_v15  ;;  %v540_v20 = vmax.f32 %v539_v16, %v496_v13 }
  0xae   :  { %v584_v21 = vadd.f32 %v1142_v49, %v540_v20 }
  0xb0   :  { %v600_v22 = vmax.f32 %v584_v21, 0.0 }
  0xb1   :  { %v459_v24 = vpop.f32.mrf.mxu2  ;;  %v499_v25 = vpop.f32.mrf.mxu3 }
  0xb2   :  { %v929_v26 = vpack.c.bf16 %v600_v22, %v599_v10  ;;  %v1151_v27 = vadd.f32 %v646_v14, %v600_v22  ;;  %v669_v28 = vmul.f32 %v600_v22, %v600_v22  ;;  %v381_v29 = vpop.f32.mrf.mxu0  ;;  %v421_v30 = vpop.f32.mrf.mxu1  ;;  %v542_v32 = vmax.f32 %v541_v23, %v459_v24 }
  0xb3   :  { %v544_v34 = vmax.f32 %v381_v29, %v421_v30 }
  0xb4   :  { %961 = vst [vmem:[%s1226_s3 + $0x8] sm:$0xff] %v929_v26   ;;  %v1156_v31 = vadd.f32 %v683_v19, %v669_v28  ;;  %v543_v33 = vmax.f32 %v542_v32, %v499_v25 }
  0xb6   :  { %v585_v40 = vadd.f32 %v1142_v49, %v543_v33 }
  0xb8   :  { %v1160_v43 = vmax.f32 %v585_v40, 0.0 }
  0xb9   :  { %v461_v35 = vpop.f32.mrf.mxu2  ;;  %v501_v36 = vpop.f32.mrf.mxu3 }
  0xba   :  { %v545_v37 = vmax.f32 %v544_v34, %v461_v35  ;;  %v384_v38 = vpop.f32.mrf.mxu0  ;;  %v424_v39 = vpop.f32.mrf.mxu1 }
  0xbb   :  { %v547_v45 = vmax.f32 %v384_v38, %v424_v39 }
  0xbc   :  { %v546_v41 = vmax.f32 %v545_v37, %v501_v36 }
  0xbe   :  { %v586_v42 = vadd.f32 %v1142_v49, %v546_v41 }
  0xc0   :  { %v1162_v44 = vmax.f32 %v586_v42, 0.0 }
  0xc1   :  { %v464_v46 = vpop.f32.mrf.mxu2  ;;  %v504_v47 = vpop.f32.mrf.mxu3 }
  0xc2   :  { %v934_v48 = vpack.c.bf16 %v1162_v44, %v1160_v43  ;;  %v386_v50 = vpop.f32.mrf.mxu0  ;;  %v426_v51 = vpop.f32.mrf.mxu1  ;;  %v548_v52 = vmax.f32 %v547_v45, %v464_v46 }
  0xc3   :  { %v550_v54 = vmax.f32 %v386_v50, %v426_v51 }
  0xc4   :  { %962 = vst [vmem:[%s1226_s3 + $0x10] sm:$0xff] %v934_v48   ;;  %v549_v53 = vmax.f32 %v548_v52, %v504_v47 }
  0xc6   :  { %v587_v60 = vadd.f32 %v1142_v49, %v549_v53  ;;  %v670_v53 = vmul.f32 %v1160_v43, %v1160_v43 }
  0xc8   :  { %v1171_v63 = vmax.f32 %v587_v60, 0.0  ;;  %v648_v60 = vadd.f32 %v1151_v27, %v1160_v43 }
  0xc9   :  { %v466_v55 = vpop.f32.mrf.mxu2  ;;  %v506_v56 = vpop.f32.mrf.mxu3 }
  0xca   :  { %v551_v57 = vmax.f32 %v550_v54, %v466_v55  ;;  %v389_v58 = vpop.f32.mrf.mxu0  ;;  %v429_v59 = vpop.f32.mrf.mxu1 }
  0xcb   :  { %v553_v1 = vmax.f32 %v389_v58, %v429_v59 }
  0xcc   :  { %v552_v61 = vmax.f32 %v551_v57, %v506_v56  ;;  %v671_v57 = vmul.f32 %v1162_v44, %v1162_v44 }
  0xce   :  { %v588_v62 = vadd.f32 %v1142_v49, %v552_v61 }
  0xd0   :  { %v1173_v0 = vmax.f32 %v588_v62, 0.0 }
  0xd1   :  { %v469_v2 = vpop.f32.mrf.mxu2  ;;  %v509_v3 = vpop.f32.mrf.mxu3 }
  0xd2   :  { %v939_v4 = vpack.c.bf16 %v1173_v0, %v1171_v63  ;;  %v391_v5 = vpop.f32.mrf.mxu0  ;;  %v431_v6 = vpop.f32.mrf.mxu1  ;;  %v554_v7 = vmax.f32 %v553_v1, %v469_v2  ;;  %v685_v1 = vadd.f32 %v1156_v31, %v670_v53  ;;  %v672_v2 = vmul.f32 %v1171_v63, %v1171_v63 }
  0xd3   :  { %v556_v9 = vmax.f32 %v391_v5, %v431_v6 }
  0xd4   :  { %963 = vst [vmem:[%s1226_s3 + $0x18] sm:$0xff] %v939_v4   ;;  %v555_v8 = vmax.f32 %v554_v7, %v509_v3  ;;  %v649_v3 = vadd.f32 %v648_v60, %v1162_v44  ;;  %v686_v6 = vadd.f32 %v685_v1, %v671_v57  ;;  %v673_v7 = vmul.f32 %v1173_v0, %v1173_v0 }
  0xd5   :  { %v703_v57 = vlaneseq }
  0xd6   :  { %v589_v15 = vadd.f32 %v1142_v49, %v555_v8  ;;  %v650_v8 = vadd.f32 %v649_v3, %v1171_v63 }
  0xd8   :  { %v605_v18 = vmax.f32 %v589_v15, 0.0 }
  0xd9   :  { %v471_v10 = vpop.f32.mrf.mxu2  ;;  %v511_v11 = vpop.f32.mrf.mxu3 }
  0xda   :  { %v557_v12 = vmax.f32 %v556_v9, %v471_v10  ;;  %v394_v13 = vpop.f32.mrf.mxu0  ;;  %v434_v14 = vpop.f32.mrf.mxu1  ;;  %v687_v9 = vadd.f32 %v686_v6, %v672_v2  ;;  %v674_v10 = vmul.f32 %v605_v18, %v605_v18 }
  0xdb   :  { %v559_v20 = vmax.f32 %v394_v13, %v434_v14 }
  0xdc   :  { %v558_v16 = vmax.f32 %v557_v12, %v511_v11  ;;  %v651_v12 = vadd.f32 %v650_v8, %v1173_v0  ;;  %v688_v44 = vadd.f32 %v687_v9, %v673_v7 }
  0xde   :  { %v590_v17 = vadd.f32 %v1142_v49, %v558_v16  ;;  %v652_v16 = vadd.f32 %v651_v12, %v605_v18 }
  0xe0   :  { %v1182_v19 = vmax.f32 %v590_v17, 0.0  ;;  %v689_v17 = vadd.f32 %v688_v44, %v674_v10 }
  0xe1   :  { %v474_v21 = vpop.f32.mrf.mxu2  ;;  %v514_v22 = vpop.f32.mrf.mxu3 }
  0xe2   :  { %v944_v23 = vpack.c.bf16 %v1182_v19, %v605_v18  ;;  %v396_v24 = vpop.f32.mrf.mxu0  ;;  %v436_v25 = vpop.f32.mrf.mxu1  ;;  %v560_v26 = vmax.f32 %v559_v20, %v474_v21  ;;  %v675_v15 = vmul.f32 %v1182_v19, %v1182_v19 }
  0xe3   :  { %v562_v29 = vmax.f32 %v396_v24, %v436_v25 }
  0xe4   :  { %964 = vst [vmem:[%s1226_s3 + $0x20] sm:$0xff] %v944_v23   ;;  %v561_v28 = vmax.f32 %v560_v26, %v514_v22  ;;  %v653_v23 = vadd.f32 %v652_v16, %v1182_v19  ;;  %v690_v24 = vadd.f32 %v689_v17, %v675_v15 }
  0xe6   :  { %v591_v36 = vadd.f32 %v1142_v49, %v561_v28 }
  0xe8   :  { %v607_v39 = vmax.f32 %v591_v36, 0.0 }
  0xe9   :  { %v476_v30 = vpop.f32.mrf.mxu2  ;;  %v516_v32 = vpop.f32.mrf.mxu3 }
  0xea   :  { %v563_v33 = vmax.f32 %v562_v29, %v476_v30  ;;  %v399_v34 = vpop.f32.mrf.mxu0  ;;  %v439_v35 = vpop.f32.mrf.mxu1  ;;  %v676_v20 = vmul.f32 %v607_v39, %v607_v39  ;;  %v654_v25 = vadd.f32 %v653_v23, %v607_v39 }
  0xeb   :  { %v565_v41 = vmax.f32 %v399_v34, %v439_v35 }
  0xec   :  { %v564_v37 = vmax.f32 %v563_v33, %v516_v32  ;;  %v691_v29 = vadd.f32 %v690_v24, %v676_v20 }
  0xee   :  { %v592_v38 = vadd.f32 %v1142_v49, %v564_v37 }
  0xf0   :  { %v608_v40 = vmax.f32 %v592_v38, 0.0 }
  0xf1   :  { %v479_v42 = vpop.f32.mrf.mxu2  ;;  %v519_v45 = vpop.f32.mrf.mxu3 }
  0xf2   :  { %v949_v46 = vpack.c.bf16 %v608_v40, %v607_v39  ;;  %v401_v47 = vpop.f32.mrf.mxu0  ;;  %v441_v48 = vpop.f32.mrf.mxu1  ;;  %v566_v50 = vmax.f32 %v565_v41, %v479_v42  ;;  %v677_v26 = vmul.f32 %v608_v40, %v608_v40  ;;  %v655_v18 = vadd.f32 %v654_v25, %v608_v40 }
  0xf3   :  { %v568_v52 = vmax.f32 %v401_v47, %v441_v48 }
  0xf4   :  { %965 = vst [vmem:[%s1226_s3 + $0x28] sm:$0xff] %v949_v46   ;;  %v567_v51 = vmax.f32 %v566_v50, %v519_v45  ;;  %v692_v36 = vadd.f32 %v691_v29, %v677_v26 }
  0xf6   :  { %v593_v61 = vadd.f32 %v1142_v49, %v567_v51 }
  0xf8   :  { %v609_v27 = vmax.f32 %v593_v61, 0.0  ;;  %v704_v61 = vshrl.u32 %v703_v57, 7 }
  0xf9   :  { %v481_v54 = vpop.f32.mrf.mxu2  ;;  %v521_v55 = vpop.f32.mrf.mxu3 }
  0xfa   :  { %v569_v56 = vmax.f32 %v568_v52, %v481_v54  ;;  %v404_v58 = vpop.f32.mrf.mxu0  ;;  %v444_v59 = vpop.f32.mrf.mxu1  ;;  %v678_v32 = vmul.f32 %v609_v27, %v609_v27  ;;  %v656_v37 = vadd.f32 %v655_v18, %v609_v27  ;;  %vm705_vm3 = vcmp.eq.s32.totalorder %v704_v61, 0 }
  0xfb   :  { %v571_v5 = vmax.f32 %v404_v58, %v444_v59  ;;  %vm707_vm4 = vcmp.eq.s32.totalorder %v704_v61, 1 }
  0xfc   :  { %v570_v62 = vmax.f32 %v569_v56, %v521_v55  ;;  %v693_v42 = vadd.f32 %v692_v36, %v678_v32 }
  0xfe   :  { %v594_v4 = vadd.f32 %v1142_v49, %v570_v62 }
 0x100   :  { %v610_v43 = vmax.f32 %v594_v4, 0.0 }
 0x101   :  { %v484_v11 = vpop.f32.mrf.mxu2  ;;  %v524_v31 = vpop.f32.mrf.mxu3 }
 0x102   :  { %v954_v13 = vpack.c.bf16 %v610_v43, %v609_v27  ;;  %v572_v14 = vmax.f32 %v571_v5, %v484_v11  ;;  %v406_v21 = vpop.f32.mrf.mxu0  ;;  %v446_v22 = vpop.f32.mrf.mxu1  ;;  %v679_v38 = vmul.f32 %v610_v43, %v610_v43  ;;  %v657_v45 = vadd.f32 %v656_v37, %v610_v43 }
 0x103   :  { %v574_v28 = vmax.f32 %v406_v21, %v446_v22 }
 0x104   :  { %966 = vst [vmem:[%s1226_s3 + $0x30] sm:$0xff] %v954_v13   ;;  %v573_v63 = vmax.f32 %v572_v14, %v524_v31  ;;  %v694_v47 = vadd.f32 %v693_v42, %v679_v38 }
 0x106   :  { %v595_v0 = vadd.f32 %v1142_v49, %v573_v63 }
 0x108   :  { %v611_v33 = vmax.f32 %v595_v0, 0.0 }
 0x109   :  { %v486_v30 = vpop.f32.mrf.mxu2  ;;  %v526_v35 = vpop.f32.mrf.mxu3 }
 0x10a   :  { %v575_v34 = vmax.f32 %v574_v28, %v486_v30  ;;  %v680_v19 = vmul.f32 %v611_v33, %v611_v33  ;;  %v658_v39 = vadd.f32 %v657_v45, %v611_v33 }
 0x10c   :  { %v576_v41 = vmax.f32 %v575_v34, %v526_v35  ;;  %v695_v50 = vadd.f32 %v694_v47, %v680_v19 }
 0x10e   :  { %v596_v46 = vadd.f32 %v1142_v49, %v576_v41 }
 0x110   :  { %v612_v48 = vmax.f32 %v596_v46, 0.0 }
 0x112   :  { %v959_v51 = vpack.c.bf16 %v612_v48, %v611_v33  ;;  %v659_v52 = vadd.f32 %v658_v39, %v612_v48  ;;  %v681_v40 = vmul.f32 %v612_v48, %v612_v48 }
 0x114   :  { %967 = vst [vmem:[%s1226_s3 + $0x38] sm:$0xff] %v959_v51   ;;  %v660_v53 = vrot.slane %v659_v52, 4  ;;  %v696_v54 = vadd.f32 %v695_v50, %v681_v40 }
 0x116   :  { %v661_v55 = vadd.f32 %v660_v53, %v659_v52  ;;  %v697_v56 = vrot.slane %v696_v54, 4 }
 0x118   :  { %v662_v58 = vrot.slane %v661_v55, 2  ;;  %v698_v59 = vadd.f32 %v697_v56, %v696_v54 }
 0x11a   :  { %v663_v60 = vadd.f32 %v662_v58, %v661_v55  ;;  %v699_v49 = vrot.slane %v698_v59, 2 }
 0x11c   :  { %v664_v62 = vrot.slane %v663_v60, 1  ;;  %v700_v1 = vadd.f32 %v699_v49, %v698_v59 }
 0x11e   :  { %v665_v2 = vadd.f32 %v664_v62, %v663_v60  ;;  %v701_v3 = vrot.slane %v700_v1, 1 }
 0x120   :  { %v702_v4 = vadd.f32 %v701_v3, %v700_v1  ;;  %v706_v5 = vsel %vm705_vm3, %v665_v2, 0.0 }
 0x122   :  { %v708_v6 = vsel %vm707_vm4, %v702_v4, 0.0 }
 0x123   :  { %v709_v7 = vadd.f32 %v708_v6, %v706_v5 }
 0x125   :  { %710 = vst [vmem:[%s1227_s4] sm:$0xff] %v709_v7 }

// kernel: conditioned_vae_encoder.10
= control target key start
LH: loop header
LB: loop body
LE: loop exit
PB: predicated region body
PF: predicated region fallthrough
CT: control target
= control target key end

     0   :  { %s3204_s1 = inlined_call_operand.vmem [shape: bf16[1152,128], index: 1, kind: input, shape index: {}]   ;;  %s3205_s2 = inlined_call_operand.vmem [shape: f32[1,128], index: 2, kind: input, shape index: {}]   ;;  %s3206_s0 = inlined_call_operand.vmem [shape: bf16[1,128,1152], index: 0, kind: input, shape index: {}]   ;;  %s3207_s3 = inlined_call_operand.vmem [shape: bf16[128,128], index: 3, kind: output, shape index: {0}]   ;;  %s3208_s4 = inlined_call_operand.vmem [shape: f32[8,128], index: 4, kind: output, shape index: {1}]  }
   0x1   :  { %v2262_v0 = vld [vmem:[%s3204_s1 + $0x38] sm:$0xff]  ;;  %v2261_v1 = vld [vmem:[%s3204_s1 + $0x30] sm:$0xff]  ;;  %v2260_v2 = vld [vmem:[%s3204_s1 + $0x28] sm:$0xff] }
   0x2   :  { %2374 = vmatpush.bf16.msra.mxu1 %v2262_v0  ;;  %2375 = vmatpush.bf16.msra.mxu2 %v2262_v0  ;;  %v2259_v3 = vld [vmem:[%s3204_s1 + $0x20] sm:$0xff]  ;;  %v2258_v4 = vld [vmem:[%s3204_s1 + $0x18] sm:$0xff]  ;;  %v2257_v5 = vld [vmem:[%s3204_s1 + $0x10] sm:$0xff] }
   0x3   :  { %2376 = vmatpush.bf16.msra.mxu3 %v2262_v0  ;;  %1044 = vmatpush.bf16.msra.mxu0 %v2262_v0  ;;  %v2256_v6 = vld [vmem:[%s3204_s1 + $0x8] sm:$0xff]  ;;  %v2255_v7 = vld [vmem:[%s3204_s1] sm:$0xff]  ;;  %v1681_v8 = vld [vmem:[%s3206_s0 + $0x90] sm:$0xf] }
   0x4   :  { %v2205_v9 = vld [vmem:[%s3206_s0 + $0xb0] sm:$0xf0]  ;;  %v1753_v10 = vld [vmem:[%s3206_s0 + $0x120] sm:$0xf]  ;;  %v2223_v11 = vld [vmem:[%s3206_s0 + $0x140] sm:$0xf0] }
   0x5   :  { %v1825_v12 = vld [vmem:[%s3206_s0 + $0x1b0] sm:$0xf]  ;;  %v2241_v13 = vld [vmem:[%s3206_s0 + $0x1d0] sm:$0xf0]  ;;  %v1609_v14 = vld [vmem:[%s3206_s0] sm:$0xf]  ;;  %v1682_v18 = vor.u32 %v2205_v9, %v1681_v8  ;;  %v1754_v19 = vor.u32 %v2223_v11, %v1753_v10 }
   0x6   :  { %2377 = vmatpush.bf16.msra.mxu1 %v2261_v1  ;;  %2378 = vmatpush.bf16.msra.mxu2 %v2261_v1  ;;  %v2187_v15 = vld [vmem:[%s3206_s0 + $0x20] sm:$0xf0]  ;;  %v2278_v16 = vld [vmem:[%s3204_s1 + $0xb8] sm:$0xff]  ;;  %v1826_v20 = vor.u32 %v2241_v13, %v1825_v12  ;;  %v2277_v24 = vld [vmem:[%s3204_s1 + $0xb0] sm:$0xff] }
   0x7   :  { %2379 = vmatpush.bf16.msra.mxu3 %v2261_v1  ;;  %1045 = vmatpush.bf16.msra.mxu0 %v2261_v1  ;;  %v2270_v17 = vld [vmem:[%s3204_s1 + $0x78] sm:$0xff]  ;;  %v1610_v21 = vor.u32 %v2187_v15, %v1609_v14  ;;  %v2269_v25 = vld [vmem:[%s3204_s1 + $0x70] sm:$0xff]  ;;  %v2276_v28 = vld [vmem:[%s3204_s1 + $0xa8] sm:$0xff] }
   0x8   :  { %v2286_v22 = vld [vmem:[%s3204_s1 + $0xf8] sm:$0xff]  ;;  %v2285_v26 = vld [vmem:[%s3204_s1 + $0xf0] sm:$0xff]  ;;  %v2268_v29 = vld [vmem:[%s3204_s1 + $0x68] sm:$0xff] }
   0x9   :  { %v2294_v23 = vld [vmem:[%s3204_s1 + $0x138] sm:$0xff]  ;;  %v2293_v27 = vld [vmem:[%s3204_s1 + $0x130] sm:$0xff]  ;;  %v2284_v30 = vld [vmem:[%s3204_s1 + $0xe8] sm:$0xff] }
   0xa   :  { %2380 = vmatpush.bf16.msra.mxu1 %v2260_v2  ;;  %2381 = vmatpush.bf16.msra.mxu2 %v2260_v2  ;;  %v2292_v31 = vld [vmem:[%s3204_s1 + $0x128] sm:$0xff]  ;;  %v2275_v32 = vld [vmem:[%s3204_s1 + $0xa0] sm:$0xff]  ;;  %v1717_v36 = vld [vmem:[%s3206_s0 + $0xd8] sm:$0xf] }
   0xb   :  { %2382 = vmatpush.bf16.msra.mxu3 %v2260_v2  ;;  %1046 = vmatpush.bf16.msra.mxu0 %v2260_v2  ;;  %v2267_v33 = vld [vmem:[%s3204_s1 + $0x60] sm:$0xff]  ;;  %v2214_v37 = vld [vmem:[%s3206_s0 + $0xf8] sm:$0xf0]  ;;  %v1789_v38 = vld [vmem:[%s3206_s0 + $0x168] sm:$0xf] }
   0xc   :  { %v2283_v34 = vld [vmem:[%s3204_s1 + $0xe0] sm:$0xff]  ;;  %v2232_v39 = vld [vmem:[%s3206_s0 + $0x188] sm:$0xf0]  ;;  %v1861_v40 = vld [vmem:[%s3206_s0 + $0x1f8] sm:$0xf]  ;;  %v1718_v46 = vor.u32 %v2214_v37, %v1717_v36 }
   0xd   :  { %v2291_v35 = vld [vmem:[%s3204_s1 + $0x120] sm:$0xff]  ;;  %v2250_v41 = vld [vmem:[%s3206_s0 + $0x218] sm:$0xf0]  ;;  %v1645_v42 = vld [vmem:[%s3206_s0 + $0x48] sm:$0xf]  ;;  %v1790_v47 = vor.u32 %v2232_v39, %v1789_v38 }
   0xe   :  { %2383 = vmatpush.bf16.msra.mxu1 %v2259_v3  ;;  %2384 = vmatpush.bf16.msra.mxu2 %v2259_v3  ;;  %v2196_v43 = vld [vmem:[%s3206_s0 + $0x68] sm:$0xf0]  ;;  %v2274_v44 = vld [vmem:[%s3204_s1 + $0x98] sm:$0xff]  ;;  %v1862_v48 = vor.u32 %v2250_v41, %v1861_v40  ;;  %v2273_v52 = vld [vmem:[%s3204_s1 + $0x90] sm:$0xff] }
   0xf   :  { %2385 = vmatpush.bf16.msra.mxu3 %v2259_v3  ;;  %1047 = vmatpush.bf16.msra.mxu0 %v2259_v3  ;;  %v2266_v45 = vld [vmem:[%s3204_s1 + $0x58] sm:$0xff]  ;;  %v1646_v49 = vor.u32 %v2196_v43, %v1645_v42  ;;  %v2265_v53 = vld [vmem:[%s3204_s1 + $0x50] sm:$0xff]  ;;  %v2272_v56 = vld [vmem:[%s3204_s1 + $0x88] sm:$0xff] }
  0x10   :  { %v2282_v50 = vld [vmem:[%s3204_s1 + $0xd8] sm:$0xff]  ;;  %v2281_v54 = vld [vmem:[%s3204_s1 + $0xd0] sm:$0xff]  ;;  %v2264_v57 = vld [vmem:[%s3204_s1 + $0x48] sm:$0xff] }
  0x11   :  { %v2290_v51 = vld [vmem:[%s3204_s1 + $0x118] sm:$0xff]  ;;  %v2289_v55 = vld [vmem:[%s3204_s1 + $0x110] sm:$0xff]  ;;  %v2280_v58 = vld [vmem:[%s3204_s1 + $0xc8] sm:$0xff] }
  0x12   :  { %2386 = vmatpush.bf16.msra.mxu1 %v2258_v4  ;;  %2387 = vmatpush.bf16.msra.mxu2 %v2258_v4  ;;  %v2288_v59 = vld [vmem:[%s3204_s1 + $0x108] sm:$0xff]  ;;  %v2271_v60 = vld [vmem:[%s3204_s1 + $0x80] sm:$0xff]  ;;  %v2310_v2 = vld [vmem:[%s3204_s1 + $0x1b8] sm:$0xff] }
  0x13   :  { %2388 = vmatpush.bf16.msra.mxu3 %v2258_v4  ;;  %1048 = vmatpush.bf16.msra.mxu0 %v2258_v4  ;;  %v2263_v61 = vld [vmem:[%s3204_s1 + $0x40] sm:$0xff]  ;;  %v1611_v1 = vld [vmem:[%s3206_s0 + $0x24] sm:$0xf0]  ;;  %v2302_v3 = vld [vmem:[%s3204_s1 + $0x178] sm:$0xff] }
  0x14   :  { %v2183_v62 = vld [vmem:[%s3206_s0 + $0x4] sm:$0xf]  ;;  %v1617_v4 = vld [vmem:[%s3206_s0 + $0x8] sm:$0xf]  ;;  %v1625_v8 = vld [vmem:[%s3206_s0 + $0x10] sm:$0xf] }
  0x15   :  { %v2279_v63 = vld [vmem:[%s3204_s1 + $0xc0] sm:$0xff]  ;;  %v2189_v9 = vld [vmem:[%s3206_s0 + $0x30] sm:$0xf0]  ;;  %v2318_v10 = vld [vmem:[%s3204_s1 + $0x1f8] sm:$0xff]  ;;  %v1614_v12 = vor.u32 %v2183_v62, %v1611_v1 }
  0x16   :  { %2389 = vmatpush.bf16.msra.mxu1 %v2257_v5  ;;  %2390 = vmatpush.bf16.msra.mxu2 %v2257_v5  ;;  %v2287_v0 = vld [vmem:[%s3204_s1 + $0x100] sm:$0xff]  ;;  %v2326_v11 = vld [vmem:[%s3204_s1 + $0x238] sm:$0xff]  ;;  %v1626_v15 = vor.u32 %v2189_v9, %v1625_v8  ;;  %v2201_v40 = vld [vmem:[%s3206_s0 + $0x94] sm:$0xf] }
  0x17   :  { %2391 = vmatpush.bf16.msra.mxu3 %v2257_v5  ;;  %1049 = vmatpush.bf16.msra.mxu0 %v2257_v5  ;;  %v2188_v5 = vld [vmem:[%s3206_s0 + $0x28] sm:$0xf0]  ;;  %v2307_v36 = vld [vmem:[%s3204_s1 + $0x1a0] sm:$0xff]  ;;  %v1683_v41 = vld [vmem:[%s3206_s0 + $0xb4] sm:$0xf0] }
  0x18   :  { %v1618_v13 = vor.u32 %v2188_v5, %v1617_v4  ;;  %v2315_v37 = vld [vmem:[%s3204_s1 + $0x1e0] sm:$0xff]  ;;  %v1689_v42 = vld [vmem:[%s3206_s0 + $0x98] sm:$0xf]  ;;  %v2206_v43 = vld [vmem:[%s3206_s0 + $0xb8] sm:$0xf0] }
  0x19   :  { %v2299_v38 = vld [vmem:[%s3204_s1 + $0x160] sm:$0xff]  ;;  %v1733_v62 = vld [vmem:[%s3206_s0 + $0xe8] sm:$0xf]  ;;  %v2305_v4 = vld [vmem:[%s3204_s1 + $0x190] sm:$0xff] }
  0x1a   :  { %2392 = vmatpush.bf16.msra.mxu1 %v2256_v6  ;;  %2393 = vmatpush.bf16.msra.mxu2 %v2256_v6  ;;  %v2323_v39 = vld [vmem:[%s3204_s1 + $0x220] sm:$0xff]  ;;  %v2313_v5 = vld [vmem:[%s3204_s1 + $0x1d0] sm:$0xff]  ;;  %v1755_v9 = vld [vmem:[%s3206_s0 + $0x144] sm:$0xf0] }
  0x1b   :  { %2394 = vmatpush.bf16.msra.mxu3 %v2256_v6  ;;  %1050 = vmatpush.bf16.msra.mxu0 %v2256_v6  ;;  %v2184_v6 = vld [vmem:[%s3206_s0 + $0xc] sm:$0xf]  ;;  %v2219_v8 = vld [vmem:[%s3206_s0 + $0x124] sm:$0xf] }
  0x1e   :  { %2395 = vmatpush.bf16.msra.mxu1 %v2255_v7  ;;  %2396 = vmatpush.bf16.msra.mxu2 %v2255_v7 }
  0x1f   :  { %2397 = vmatpush.bf16.msra.mxu3 %v2255_v7  ;;  %1051 = vmatpush.bf16.msra.mxu0 %v2255_v7  ;;  %v1619_v7 = vld [vmem:[%s3206_s0 + $0x2c] sm:$0xf0] }
  0x20   :  { %v1622_v14 = vor.u32 %v2184_v6, %v1619_v7  ;;  %v2297_v6 = vld [vmem:[%s3204_s1 + $0x150] sm:$0xff] }
  0x21   :  { %1062 = vmatmul.bf16.vlgmr.msra.gmra.mxu1 %v1682_v18  ;;  %1072 = vmatmul.bf16.vlgmr.msra.gmra.mxu2 %v1754_v19  ;;  %v2317_v18 = vld [vmem:[%s3204_s1 + $0x1f0] sm:$0xff] }
  0x22   :  { %1142 = vmatpush.bf16.msrb.mxu2 %v2278_v16  ;;  %1093 = vmatpush.bf16.msrb.mxu1 %v2270_v17  ;;  %v2309_v16 = vld [vmem:[%s3204_s1 + $0x1b0] sm:$0xff] }
  0x23   :  { %1082 = vmatmul.bf16.vlgmr.msra.gmra.mxu3 %v1826_v20  ;;  %1052 = vmatmul.bf16.vlgmr.msra.gmra.mxu0 %v1610_v21  ;;  %v2301_v17 = vld [vmem:[%s3204_s1 + $0x170] sm:$0xff]  ;;  %v2308_v20 = vld [vmem:[%s3204_s1 + $0x1a8] sm:$0xff] }
  0x24   :  { %1191 = vmatpush.bf16.msrb.mxu3 %v2286_v22  ;;  %1240 = vmatpush.bf16.msrb.mxu0 %v2294_v23  ;;  %v2325_v19 = vld [vmem:[%s3204_s1 + $0x230] sm:$0xff]  ;;  %v2300_v21 = vld [vmem:[%s3204_s1 + $0x168] sm:$0xff] }
  0x25   :  { %v2316_v22 = vld [vmem:[%s3204_s1 + $0x1e8] sm:$0xff]  ;;  %v2321_v7 = vld [vmem:[%s3204_s1 + $0x210] sm:$0xff] }
  0x26   :  { %1143 = vmatpush.bf16.msrb.mxu2 %v2277_v24  ;;  %1094 = vmatpush.bf16.msrb.mxu1 %v2269_v25  ;;  %v2324_v23 = vld [vmem:[%s3204_s1 + $0x228] sm:$0xff]  ;;  %v1647_v25 = vld [vmem:[%s3206_s0 + $0x6c] sm:$0xf0] }
  0x27   :  { %v2192_v24 = vld [vmem:[%s3206_s0 + $0x4c] sm:$0xf] }
  0x28   :  { %1192 = vmatpush.bf16.msrb.mxu3 %v2285_v26  ;;  %1241 = vmatpush.bf16.msrb.mxu0 %v2293_v27  ;;  %v1653_v26 = vld [vmem:[%s3206_s0 + $0x50] sm:$0xf]  ;;  %v2197_v27 = vld [vmem:[%s3206_s0 + $0x70] sm:$0xf0] }
  0x2a   :  { %1144 = vmatpush.bf16.msrb.mxu2 %v2276_v28  ;;  %1095 = vmatpush.bf16.msrb.mxu1 %v2268_v29  ;;  %v2193_v28 = vld [vmem:[%s3206_s0 + $0x54] sm:$0xf]  ;;  %v1655_v29 = vld [vmem:[%s3206_s0 + $0x74] sm:$0xf0] }
  0x2c   :  { %1193 = vmatpush.bf16.msrb.mxu3 %v2284_v30  ;;  %1242 = vmatpush.bf16.msrb.mxu0 %v2292_v31  ;;  %v1661_v30 = vld [vmem:[%s3206_s0 + $0x58] sm:$0xf]  ;;  %v2198_v31 = vld [vmem:[%s3206_s0 + $0x78] sm:$0xf0] }
  0x2e   :  { %1145 = vmatpush.bf16.msrb.mxu2 %v2275_v32  ;;  %1096 = vmatpush.bf16.msrb.mxu1 %v2267_v33  ;;  %v1650_v32 = vor.u32 %v2192_v24, %v1647_v25  ;;  %v1654_v33 = vor.u32 %v2197_v27, %v1653_v26  ;;  %v2228_v24 = vld [vmem:[%s3206_s0 + $0x16c] sm:$0xf]  ;;  %v1791_v25 = vld [vmem:[%s3206_s0 + $0x18c] sm:$0xf0]  ;;  %v2233_v27 = vld [vmem:[%s3206_s0 + $0x190] sm:$0xf0] }
  0x2f   :  { %v1797_v26 = vld [vmem:[%s3206_s0 + $0x170] sm:$0xf] }
  0x30   :  { %1194 = vmatpush.bf16.msrb.mxu3 %v2283_v34  ;;  %1243 = vmatpush.bf16.msrb.mxu0 %v2291_v35  ;;  %v1658_v34 = vor.u32 %v2193_v28, %v1655_v29  ;;  %v1662_v35 = vor.u32 %v2198_v31, %v1661_v30  ;;  %v2229_v28 = vld [vmem:[%s3206_s0 + $0x174] sm:$0xf]  ;;  %v1799_v29 = vld [vmem:[%s3206_s0 + $0x194] sm:$0xf0]  ;;  %v2234_v31 = vld [vmem:[%s3206_s0 + $0x198] sm:$0xf0] }
  0x31   :  { %1067 = vmatmul.bf16.gmra.mxu1 %v1718_v46  ;;  %1077 = vmatmul.bf16.gmra.mxu2 %v1790_v47  ;;  %v1697_v46 = vld [vmem:[%s3206_s0 + $0xa0] sm:$0xf]  ;;  %v2207_v47 = vld [vmem:[%s3206_s0 + $0xc0] sm:$0xf0]  ;;  %v1805_v30 = vld [vmem:[%s3206_s0 + $0x178] sm:$0xf] }
  0x32   :  { %1146 = vmatpush.bf16.msrb.mxu2 %v2274_v44  ;;  %1097 = vmatpush.bf16.msrb.mxu1 %v2266_v45  ;;  %v2202_v44 = vld [vmem:[%s3206_s0 + $0x9c] sm:$0xf]  ;;  %v1691_v45 = vld [vmem:[%s3206_s0 + $0xbc] sm:$0xf0] }
  0x33   :  { %1087 = vmatmul.bf16.gmra.mxu3 %v1862_v48  ;;  %1057 = vmatmul.bf16.gmra.mxu0 %v1646_v49  ;;  %v1686_v48 = vor.u32 %v2201_v40, %v1683_v41  ;;  %v1690_v49 = vor.u32 %v2206_v43, %v1689_v42  ;;  %v2237_v40 = vld [vmem:[%s3206_s0 + $0x1b4] sm:$0xf]  ;;  %v1827_v41 = vld [vmem:[%s3206_s0 + $0x1d4] sm:$0xf0]  ;;  %v2242_v43 = vld [vmem:[%s3206_s0 + $0x1d8] sm:$0xf0] }
  0x34   :  { %1195 = vmatpush.bf16.msrb.mxu3 %v2282_v50  ;;  %1244 = vmatpush.bf16.msrb.mxu0 %v2290_v51  ;;  %v1694_v50 = vor.u32 %v2202_v44, %v1691_v45  ;;  %v1698_v51 = vor.u32 %v2207_v47, %v1697_v46  ;;  %v1833_v42 = vld [vmem:[%s3206_s0 + $0x1b8] sm:$0xf]  ;;  %v2238_v44 = vld [vmem:[%s3206_s0 + $0x1bc] sm:$0xf]  ;;  %v1835_v45 = vld [vmem:[%s3206_s0 + $0x1dc] sm:$0xf0] }
  0x35   :  { %v1841_v46 = vld [vmem:[%s3206_s0 + $0x1c0] sm:$0xf]  ;;  %v2243_v47 = vld [vmem:[%s3206_s0 + $0x1e0] sm:$0xf0] }
  0x36   :  { %1147 = vmatpush.bf16.msrb.mxu2 %v2273_v52  ;;  %1098 = vmatpush.bf16.msrb.mxu1 %v2265_v53  ;;  %v2306_v52 = vld [vmem:[%s3204_s1 + $0x198] sm:$0xff] }
  0x37   :  { %v2314_v53 = vld [vmem:[%s3204_s1 + $0x1d8] sm:$0xff] }
  0x38   :  { %1196 = vmatpush.bf16.msrb.mxu3 %v2281_v54  ;;  %1245 = vmatpush.bf16.msrb.mxu0 %v2289_v55  ;;  %v2298_v54 = vld [vmem:[%s3204_s1 + $0x158] sm:$0xff] }
  0x39   :  { %v2322_v55 = vld [vmem:[%s3204_s1 + $0x218] sm:$0xff] }
  0x3a   :  { %1148 = vmatpush.bf16.msrb.mxu2 %v2272_v56  ;;  %1099 = vmatpush.bf16.msrb.mxu1 %v2264_v57  ;;  %v2210_v56 = vld [vmem:[%s3206_s0 + $0xdc] sm:$0xf]  ;;  %v1719_v57 = vld [vmem:[%s3206_s0 + $0xfc] sm:$0xf0] }
  0x3c   :  { %1197 = vmatpush.bf16.msrb.mxu3 %v2280_v58  ;;  %1246 = vmatpush.bf16.msrb.mxu0 %v2288_v59  ;;  %v1725_v58 = vld [vmem:[%s3206_s0 + $0xe0] sm:$0xf]  ;;  %v2215_v59 = vld [vmem:[%s3206_s0 + $0x100] sm:$0xf0] }
  0x3d   :  { %v1726_v1 = vor.u32 %v2215_v59, %v1725_v58 }
  0x3e   :  { %1149 = vmatpush.bf16.msrb.mxu2 %v2271_v60  ;;  %1100 = vmatpush.bf16.msrb.mxu1 %v2263_v61  ;;  %v2211_v60 = vld [vmem:[%s3206_s0 + $0xe4] sm:$0xf]  ;;  %v1727_v61 = vld [vmem:[%s3206_s0 + $0x104] sm:$0xf0] }
  0x40   :  { %1198 = vmatpush.bf16.msrb.mxu3 %v2279_v63  ;;  %1247 = vmatpush.bf16.msrb.mxu0 %v2287_v0  ;;  %v2216_v63 = vld [vmem:[%s3206_s0 + $0x108] sm:$0xf0]  ;;  %v1722_v0 = vor.u32 %v2210_v56, %v1719_v57 }
  0x41   :  { %1101 = vmatmul.bf16.vlgmr.msrb.gmra.mxu1 %v1614_v12  ;;  %1150 = vmatmul.bf16.vlgmr.msrb.gmra.mxu2 %v1618_v13  ;;  %v2220_v12 = vld [vmem:[%s3206_s0 + $0x12c] sm:$0xf]  ;;  %v1763_v13 = vld [vmem:[%s3206_s0 + $0x14c] sm:$0xf0] }
  0x42   :  { %1338 = vmatpush.bf16.msra.mxu2 %v2310_v2  ;;  %1289 = vmatpush.bf16.msra.mxu1 %v2302_v3  ;;  %v1730_v2 = vor.u32 %v2211_v60, %v1727_v61  ;;  %v1734_v3 = vor.u32 %v2216_v63, %v1733_v62  ;;  %v2246_v61 = vld [vmem:[%s3206_s0 + $0x1fc] sm:$0xf]  ;;  %v1863_v62 = vld [vmem:[%s3206_s0 + $0x21c] sm:$0xf0] }
  0x43   :  { %1199 = vmatmul.bf16.vlgmr.msrb.gmra.mxu3 %v1622_v14  ;;  %1248 = vmatmul.bf16.vlgmr.msrb.gmra.mxu0 %v1626_v15  ;;  %v1769_v14 = vld [vmem:[%s3206_s0 + $0x130] sm:$0xf]  ;;  %v2225_v15 = vld [vmem:[%s3206_s0 + $0x150] sm:$0xf0]  ;;  %v1869_v63 = vld [vmem:[%s3206_s0 + $0x200] sm:$0xf] }
  0x44   :  { %1387 = vmatpush.bf16.msra.mxu3 %v2318_v10  ;;  %1436 = vmatpush.bf16.msra.mxu0 %v2326_v11  ;;  %v1761_v10 = vld [vmem:[%s3206_s0 + $0x128] sm:$0xf]  ;;  %v2224_v11 = vld [vmem:[%s3206_s0 + $0x148] sm:$0xf0] }
  0x46   :  { %1339 = vmatpush.bf16.msra.mxu2 %v2309_v16  ;;  %1290 = vmatpush.bf16.msra.mxu1 %v2301_v17  ;;  %v1758_v16 = vor.u32 %v2219_v8, %v1755_v9  ;;  %v1762_v17 = vor.u32 %v2224_v11, %v1761_v10  ;;  %v1866_v8 = vor.u32 %v2246_v61, %v1863_v62  ;;  %v1677_v61 = vld [vmem:[%s3206_s0 + $0x68] sm:$0xf]  ;;  %v2200_v62 = vld [vmem:[%s3206_s0 + $0x88] sm:$0xf0] }
  0x48   :  { %1388 = vmatpush.bf16.msra.mxu3 %v2317_v18  ;;  %1437 = vmatpush.bf16.msra.mxu0 %v2325_v19  ;;  %v1766_v18 = vor.u32 %v2220_v12, %v1763_v13  ;;  %v1770_v19 = vor.u32 %v2225_v15, %v1769_v14 }
  0x4a   :  { %1340 = vmatpush.bf16.msra.mxu2 %v2308_v20  ;;  %1291 = vmatpush.bf16.msra.mxu1 %v2300_v21  ;;  %v2304_v20 = vld [vmem:[%s3204_s1 + $0x188] sm:$0xff] }
  0x4b   :  { %v2312_v21 = vld [vmem:[%s3204_s1 + $0x1c8] sm:$0xff] }
  0x4c   :  { %1389 = vmatpush.bf16.msra.mxu3 %v2316_v22  ;;  %1438 = vmatpush.bf16.msra.mxu0 %v2324_v23  ;;  %v2296_v22 = vld [vmem:[%s3204_s1 + $0x148] sm:$0xff] }
  0x4d   :  { %v2320_v23 = vld [vmem:[%s3204_s1 + $0x208] sm:$0xff] }
  0x4e   :  { %1341 = vmatpush.bf16.msra.mxu2 %v2307_v36  ;;  %1292 = vmatpush.bf16.msra.mxu1 %v2299_v38  ;;  %v2303_v36 = vld [vmem:[%s3204_s1 + $0x180] sm:$0xff] }
  0x4f   :  { %v2295_v38 = vld [vmem:[%s3204_s1 + $0x140] sm:$0xff] }
  0x50   :  { %1390 = vmatpush.bf16.msra.mxu3 %v2315_v37  ;;  %1439 = vmatpush.bf16.msra.mxu0 %v2323_v39  ;;  %v2311_v37 = vld [vmem:[%s3204_s1 + $0x1c0] sm:$0xff] }
  0x51   :  { %1106 = vmatmul.bf16.gmra.mxu1 %v1650_v32  ;;  %1155 = vmatmul.bf16.gmra.mxu2 %v1654_v33  ;;  %v1794_v32 = vor.u32 %v2228_v24, %v1791_v25  ;;  %v1798_v33 = vor.u32 %v2233_v27, %v1797_v26  ;;  %v2319_v39 = vld [vmem:[%s3204_s1 + $0x200] sm:$0xff]  ;;  %v2190_v24 = vld [vmem:[%s3206_s0 + $0x38] sm:$0xf0] }
  0x52   :  { %1342 = vmatpush.bf16.msra.mxu2 %v2306_v52  ;;  %1293 = vmatpush.bf16.msra.mxu1 %v2298_v54  ;;  %v1842_v52 = vor.u32 %v2243_v47, %v1841_v46  ;;  %v2861_v54 = vld [vmem:[%s3205_s2] ss:$0 sm:$0xff]  ;;  %v2186_v25 = vld [vmem:[%s3206_s0 + $0x1c] sm:$0xf] }
  0x53   :  { %1204 = vmatmul.bf16.gmra.mxu3 %v1658_v34  ;;  %1253 = vmatmul.bf16.gmra.mxu0 %v1662_v35  ;;  %v1802_v34 = vor.u32 %v2229_v28, %v1799_v29  ;;  %v1806_v35 = vor.u32 %v2234_v31, %v1805_v30  ;;  %v1635_v26 = vld [vmem:[%s3206_s0 + $0x3c] sm:$0xf0]  ;;  %v2191_v28 = vld [vmem:[%s3206_s0 + $0x40] sm:$0xf0] }
  0x54   :  { %1391 = vmatpush.bf16.msra.mxu3 %v2314_v53  ;;  %1440 = vmatpush.bf16.msra.mxu0 %v2322_v55  ;;  %v1641_v27 = vld [vmem:[%s3206_s0 + $0x20] sm:$0xf] }
  0x56   :  { %1343 = vmatpush.bf16.msra.mxu2 %v2305_v4  ;;  %1294 = vmatpush.bf16.msra.mxu1 %v2297_v6  ;;  %v2252_v4 = vld [vmem:[%s3206_s0 + $0x228] sm:$0xf0] }
  0x58   :  { %1392 = vmatpush.bf16.msra.mxu3 %v2313_v5  ;;  %1441 = vmatpush.bf16.msra.mxu0 %v2321_v7 }
  0x5a   :  { %1344 = vmatpush.bf16.msra.mxu2 %v2304_v20  ;;  %1295 = vmatpush.bf16.msra.mxu1 %v2296_v22  ;;  %v1627_v22 = vld [vmem:[%s3206_s0 + $0x34] sm:$0xf0] }
  0x5c   :  { %1393 = vmatpush.bf16.msra.mxu3 %v2312_v21  ;;  %1442 = vmatpush.bf16.msra.mxu0 %v2320_v23  ;;  %v2185_v21 = vld [vmem:[%s3206_s0 + $0x14] sm:$0xf]  ;;  %v1633_v23 = vld [vmem:[%s3206_s0 + $0x18] sm:$0xf] }
  0x5e   :  { %1345 = vmatpush.bf16.msra.mxu2 %v2303_v36  ;;  %1296 = vmatpush.bf16.msra.mxu1 %v2295_v38  ;;  %v1642_v38 = vor.u32 %v2191_v28, %v1641_v27  ;;  %v2203_v27 = vld [vmem:[%s3206_s0 + $0xa4] sm:$0xf]  ;;  %v1699_v28 = vld [vmem:[%s3206_s0 + $0xc4] sm:$0xf0] }
  0x60   :  { %1394 = vmatpush.bf16.msra.mxu3 %v2311_v37  ;;  %1443 = vmatpush.bf16.msra.mxu0 %v2319_v39  ;;  %v1638_v37 = vor.u32 %v2186_v25, %v1635_v26 }
  0x61   :  { %1111 = vmatmul.bf16.gmra.mxu1 %v1686_v48  ;;  %1160 = vmatmul.bf16.gmra.mxu2 %v1690_v49  ;;  %v1830_v48 = vor.u32 %v2237_v40, %v1827_v41  ;;  %v1834_v49 = vor.u32 %v2242_v43, %v1833_v42 }
  0x63   :  { %1209 = vmatmul.bf16.gmra.mxu3 %v1694_v50  ;;  %1258 = vmatmul.bf16.gmra.mxu0 %v1698_v51  ;;  %v1838_v51 = vor.u32 %v2238_v44, %v1835_v45 }
  0x71   :  { %1116 = vmatmul.bf16.gmra.mxu1 %v1722_v0  ;;  %1165 = vmatmul.bf16.gmra.mxu2 %v1726_v1  ;;  %v2251_v0 = vld [vmem:[%s3206_s0 + $0x220] sm:$0xf0] }
  0x72   :  { %v2247_v1 = vld [vmem:[%s3206_s0 + $0x204] sm:$0xf]  ;;  %v1870_v9 = vor.u32 %v2251_v0, %v1869_v63 }
  0x73   :  { %1214 = vmatmul.bf16.gmra.mxu3 %v1730_v2  ;;  %1263 = vmatmul.bf16.gmra.mxu0 %v1734_v3  ;;  %v1871_v2 = vld [vmem:[%s3206_s0 + $0x224] sm:$0xf0] }
  0x74   :  { %v1877_v3 = vld [vmem:[%s3206_s0 + $0x208] sm:$0xf]  ;;  %v1874_v12 = vor.u32 %v2247_v1, %v1871_v2 }
  0x75   :  { %v1878_v13 = vor.u32 %v2252_v4, %v1877_v3 }
  0x81   :  { %1121 = vmatmul.bf16.gmra.mxu1 %v1758_v16  ;;  %1170 = vmatmul.bf16.gmra.mxu2 %v1762_v17 }
  0x83   :  { %1219 = vmatmul.bf16.gmra.mxu3 %v1766_v18  ;;  %1268 = vmatmul.bf16.gmra.mxu0 %v1770_v19 }
  0x91   :  { %1126 = vmatmul.bf16.gmra.mxu1 %v1794_v32  ;;  %1175 = vmatmul.bf16.gmra.mxu2 %v1798_v33  ;;  %v1630_v33 = vor.u32 %v2185_v21, %v1627_v22 }
  0x93   :  { %1224 = vmatmul.bf16.gmra.mxu3 %v1802_v34  ;;  %1273 = vmatmul.bf16.gmra.mxu0 %v1806_v35  ;;  %v1634_v34 = vor.u32 %v2190_v24, %v1633_v23 }
  0x9e   :  { %v2856_v50 = vpop.f32.mrf.mxu1 }
  0xa0   :  { %v1053_v53 = vpop.f32.mrf.mxu0 }
  0xa1   :  { %1131 = vmatmul.bf16.gmra.mxu1 %v1830_v48  ;;  %1180 = vmatmul.bf16.gmra.mxu2 %v1834_v49  ;;  %v1054_v30 = vadd.f32 %v2861_v54, %v1053_v53  ;;  %v2194_v49 = vld [vmem:[%s3206_s0 + $0x5c] sm:$0xf]  ;;  %v1669_v53 = vld [vmem:[%s3206_s0 + $0x60] sm:$0xf] }
  0xa3   :  { %1229 = vmatmul.bf16.gmra.mxu3 %v1838_v51  ;;  %1278 = vmatmul.bf16.gmra.mxu0 %v1842_v52  ;;  %v1663_v51 = vld [vmem:[%s3206_s0 + $0x7c] sm:$0xf0] }
  0xa4   :  { %v1073_v55 = vpop.f32.mrf.mxu2  ;;  %v1666_v3 = vor.u32 %v2194_v49, %v1663_v51 }
  0xa5   :  { %v2864_v56 = vadd.f32 %v2861_v54, %v1073_v55  ;;  %v2199_v55 = vld [vmem:[%s3206_s0 + $0x80] sm:$0xf0] }
  0xa6   :  { %v1083_v57 = vpop.f32.mrf.mxu3  ;;  %v2869_v59 = vpop.f32.mrf.mxu1  ;;  %v1670_v4 = vor.u32 %v2199_v55, %v1669_v53 }
  0xa7   :  { %v2867_v58 = vadd.f32 %v2861_v54, %v1083_v57  ;;  %v2195_v57 = vld [vmem:[%s3206_s0 + $0x64] sm:$0xf] }
  0xa8   :  { %v1055_v60 = vpop.f32.mrf.mxu0 }
  0xa9   :  { %v1056_v42 = vadd.f32 %v2861_v54, %v1055_v60  ;;  %v1671_v60 = vld [vmem:[%s3206_s0 + $0x84] sm:$0xf0] }
  0xac   :  { %v1075_v5 = vpop.f32.mrf.mxu2 }
  0xad   :  { %v2896_v6 = vadd.f32 %v2861_v54, %v1075_v5 }
  0xae   :  { %v1085_v7 = vpop.f32.mrf.mxu3  ;;  %v2901_v11 = vpop.f32.mrf.mxu1 }
  0xaf   :  { %v2899_v10 = vadd.f32 %v2861_v54, %v1085_v7  ;;  %v1674_v7 = vor.u32 %v2195_v57, %v1671_v60 }
  0xb0   :  { %v1058_v14 = vpop.f32.mrf.mxu0 }
  0xb1   :  { %1136 = vmatmul.bf16.gmra.mxu1 %v1866_v8  ;;  %1185 = vmatmul.bf16.gmra.mxu2 %v1870_v9  ;;  %v1059_v0 = vadd.f32 %v2861_v54, %v1058_v14  ;;  %v1678_v8 = vor.u32 %v2200_v62, %v1677_v61 }
  0xb3   :  { %1234 = vmatmul.bf16.gmra.mxu3 %v1874_v12  ;;  %1283 = vmatmul.bf16.gmra.mxu0 %v1878_v13 }
  0xb4   :  { %v1078_v15 = vpop.f32.mrf.mxu2 }
  0xb5   :  { %v2904_v16 = vadd.f32 %v2861_v54, %v1078_v15 }
  0xb6   :  { %v1088_v17 = vpop.f32.mrf.mxu3  ;;  %v2909_v19 = vpop.f32.mrf.mxu1 }
  0xb7   :  { %v2907_v18 = vadd.f32 %v2861_v54, %v1088_v17 }
  0xb8   :  { %v1060_v20 = vpop.f32.mrf.mxu0 }
  0xb9   :  { %v1061_v21 = vadd.f32 %v2861_v54, %v1060_v20  ;;  %v1705_v20 = vld [vmem:[%s3206_s0 + $0xa8] sm:$0xf] }
  0xbc   :  { %v1080_v29 = vpop.f32.mrf.mxu2 }
  0xbd   :  { %v2937_v31 = vadd.f32 %v2861_v54, %v1080_v29 }
  0xbe   :  { %v1090_v32 = vpop.f32.mrf.mxu3  ;;  %v1102_v36 = vpop.f32.mrf.mxu1 }
  0xbf   :  { %v2940_v35 = vadd.f32 %v2861_v54, %v1090_v32  ;;  %v1103_v39 = vadd.f32 %v1102_v36, %v1054_v30  ;;  %v2208_v30 = vld [vmem:[%s3206_s0 + $0xc8] sm:$0xf0]  ;;  %v2209_v36 = vld [vmem:[%s3206_s0 + $0xd0] sm:$0xf0] }
  0xc0   :  { %v1249_v40 = vpop.f32.mrf.mxu0  ;;  %v2204_v32 = vld [vmem:[%s3206_s0 + $0xac] sm:$0xf] }
  0xc1   :  { %1297 = vmatmul.bf16.vlgmr.msra.gmra.mxu1 %v1630_v33  ;;  %1346 = vmatmul.bf16.vlgmr.msra.gmra.mxu2 %v1634_v34  ;;  %v1707_v33 = vld [vmem:[%s3206_s0 + $0xcc] sm:$0xf0] }
  0xc2   :  { %v1713_v34 = vld [vmem:[%s3206_s0 + $0xb0] sm:$0xf] }
  0xc3   :  { %1395 = vmatmul.bf16.vlgmr.msra.gmra.mxu3 %v1638_v37  ;;  %1444 = vmatmul.bf16.vlgmr.msra.gmra.mxu0 %v1642_v38  ;;  %v1064_v38 = vadd.f32 %v2861_v54, %v2856_v50  ;;  %v1066_v50 = vadd.f32 %v2861_v54, %v2869_v59  ;;  %v1741_v59 = vld [vmem:[%s3206_s0 + $0xf0] sm:$0xf] }
  0xc4   :  { %v1151_v41 = vpop.f32.mrf.mxu2 }
  0xc5   :  { %v1152_v43 = vadd.f32 %v1151_v41, %v1103_v39  ;;  %v1702_v41 = vor.u32 %v2203_v27, %v1699_v28 }
  0xc6   :  { %v1200_v44 = vpop.f32.mrf.mxu3  ;;  %v1104_v45 = vpop.f32.mrf.mxu1 }
  0xc7   :  { %v1201_v46 = vadd.f32 %v1200_v44, %v1152_v43  ;;  %v1105_v47 = vadd.f32 %v1104_v45, %v1056_v42  ;;  %v1706_v42 = vor.u32 %v2208_v30, %v1705_v20  ;;  %v1710_v44 = vor.u32 %v2204_v32, %v1707_v33 }
  0xc8   :  { %v1251_v48 = vpop.f32.mrf.mxu0  ;;  %v1714_v45 = vor.u32 %v2209_v36, %v1713_v34 }
  0xc9   :  { %v2949_v52 = vadd.f32 %v1249_v40, %v1201_v46 }
  0xcc   :  { %v1153_v63 = vpop.f32.mrf.mxu2 }
  0xcd   :  { %v1154_v1 = vadd.f32 %v1153_v63, %v1105_v47  ;;  %v2212_v63 = vld [vmem:[%s3206_s0 + $0xec] sm:$0xf] }
  0xce   :  { %v1202_v2 = vpop.f32.mrf.mxu3  ;;  %v1107_v5 = vpop.f32.mrf.mxu1 }
  0xcf   :  { %v1203_v9 = vadd.f32 %v1202_v2, %v1154_v1  ;;  %v1108_v12 = vadd.f32 %v1107_v5, %v1059_v0  ;;  %v1735_v0 = vld [vmem:[%s3206_s0 + $0x10c] sm:$0xf0]  ;;  %v2217_v2 = vld [vmem:[%s3206_s0 + $0x110] sm:$0xf0]  ;;  %v1749_v5 = vld [vmem:[%s3206_s0 + $0xf8] sm:$0xf] }
  0xd0   :  { %v1254_v13 = vpop.f32.mrf.mxu0 }
  0xd1   :  { %1302 = vmatmul.bf16.gmra.mxu1 %v1666_v3  ;;  %1351 = vmatmul.bf16.gmra.mxu2 %v1670_v4  ;;  %v2970_v15 = vadd.f32 %v1251_v48, %v1203_v9  ;;  %v2213_v3 = vld [vmem:[%s3206_s0 + $0xf4] sm:$0xf]  ;;  %v1743_v4 = vld [vmem:[%s3206_s0 + $0x114] sm:$0xf0]  ;;  %v1069_v9 = vadd.f32 %v2861_v54, %v2901_v11  ;;  %v1071_v11 = vadd.f32 %v2861_v54, %v2909_v19  ;;  %v2226_v19 = vld [vmem:[%s3206_s0 + $0x158] sm:$0xf0] }
  0xd2   :  { %v1777_v54 = vld [vmem:[%s3206_s0 + $0x138] sm:$0xf] }
  0xd3   :  { %1400 = vmatmul.bf16.gmra.mxu3 %v1674_v7  ;;  %1449 = vmatmul.bf16.gmra.mxu0 %v1678_v8  ;;  %v2218_v7 = vld [vmem:[%s3206_s0 + $0x118] sm:$0xf0] }
  0xd4   :  { %v1156_v17 = vpop.f32.mrf.mxu2 }
  0xd5   :  { %v1157_v14 = vadd.f32 %v1156_v17, %v1108_v12  ;;  %v1738_v17 = vor.u32 %v2212_v63, %v1735_v0 }
  0xd6   :  { %v1205_v22 = vpop.f32.mrf.mxu3  ;;  %v1109_v23 = vpop.f32.mrf.mxu1 }
  0xd7   :  { %v1206_v24 = vadd.f32 %v1205_v22, %v1157_v14  ;;  %v1110_v25 = vadd.f32 %v1109_v23, %v1061_v21  ;;  %v1742_v21 = vor.u32 %v2217_v2, %v1741_v59  ;;  %v1746_v22 = vor.u32 %v2213_v3, %v1743_v4 }
  0xd8   :  { %v1256_v26 = vpop.f32.mrf.mxu0  ;;  %v1750_v23 = vor.u32 %v2218_v7, %v1749_v5  ;;  %v2230_v5 = vld [vmem:[%s3206_s0 + $0x17c] sm:$0xf] }
  0xd9   :  { %v2979_v29 = vadd.f32 %v1254_v13, %v1206_v24 }
  0xdc   :  { %v1158_v37 = vpop.f32.mrf.mxu2 }
  0xdd   :  { %v1159_v39 = vadd.f32 %v1158_v37, %v1110_v25  ;;  %v2221_v37 = vld [vmem:[%s3206_s0 + $0x134] sm:$0xf] }
  0xde   :  { %v1207_v40 = vpop.f32.mrf.mxu3  ;;  %v1112_v43 = vpop.f32.mrf.mxu1 }
  0xdf   :  { %v1208_v46 = vadd.f32 %v1207_v40, %v1159_v39  ;;  %v1113_v47 = vadd.f32 %v1112_v43, %v1064_v38  ;;  %v1771_v38 = vld [vmem:[%s3206_s0 + $0x154] sm:$0xf0]  ;;  %v2222_v40 = vld [vmem:[%s3206_s0 + $0x13c] sm:$0xf]  ;;  %v2227_v43 = vld [vmem:[%s3206_s0 + $0x160] sm:$0xf0] }
  0xe0   :  { %v1259_v48 = vpop.f32.mrf.mxu0 }
  0xe1   :  { %1307 = vmatmul.bf16.gmra.mxu1 %v1702_v41  ;;  %1356 = vmatmul.bf16.gmra.mxu2 %v1706_v42  ;;  %v3001_v49 = vadd.f32 %v1256_v26, %v1208_v46  ;;  %v1779_v41 = vld [vmem:[%s3206_s0 + $0x15c] sm:$0xf0] }
  0xe2   :  { %v1785_v42 = vld [vmem:[%s3206_s0 + $0x140] sm:$0xf] }
  0xe3   :  { %1405 = vmatmul.bf16.gmra.mxu3 %v1710_v44  ;;  %1454 = vmatmul.bf16.gmra.mxu0 %v1714_v45 }
  0xe4   :  { %v1161_v51 = vpop.f32.mrf.mxu2 }
  0xe5   :  { %v1162_v53 = vadd.f32 %v1161_v51, %v1113_v47  ;;  %v1774_v47 = vor.u32 %v2221_v37, %v1771_v38 }
  0xe6   :  { %v1210_v55 = vpop.f32.mrf.mxu3  ;;  %v1114_v57 = vpop.f32.mrf.mxu1 }
  0xe7   :  { %v1211_v60 = vadd.f32 %v1210_v55, %v1162_v53  ;;  %v1115_v61 = vadd.f32 %v1114_v57, %v1066_v50  ;;  %v1782_v50 = vor.u32 %v2222_v40, %v1779_v41  ;;  %v1786_v53 = vor.u32 %v2227_v43, %v1785_v42  ;;  %v2239_v40 = vld [vmem:[%s3206_s0 + $0x1c4] sm:$0xf]  ;;  %v1849_v42 = vld [vmem:[%s3206_s0 + $0x1c8] sm:$0xf]  ;;  %v2244_v43 = vld [vmem:[%s3206_s0 + $0x1e8] sm:$0xf0] }
  0xe8   :  { %v1261_v62 = vpop.f32.mrf.mxu0 }
  0xe9   :  { %v3011_v1 = vadd.f32 %v1259_v48, %v1211_v60  ;;  %v1778_v48 = vor.u32 %v2226_v19, %v1777_v54 }
  0xec   :  { %v1163_v8 = vpop.f32.mrf.mxu2 }
  0xed   :  { %v1164_v12 = vadd.f32 %v1163_v8, %v1115_v61  ;;  %v1813_v8 = vld [vmem:[%s3206_s0 + $0x180] sm:$0xf] }
  0xee   :  { %v1212_v13 = vpop.f32.mrf.mxu3  ;;  %v1117_v14 = vpop.f32.mrf.mxu1 }
  0xef   :  { %v1213_v24 = vadd.f32 %v1212_v13, %v1164_v12  ;;  %v1118_v25 = vadd.f32 %v1117_v14, %v1069_v9  ;;  %v2235_v9 = vld [vmem:[%s3206_s0 + $0x1a0] sm:$0xf0]  ;;  %v1815_v12 = vld [vmem:[%s3206_s0 + $0x1a4] sm:$0xf0] }
  0xf0   :  { %v1264_v26 = vpop.f32.mrf.mxu0  ;;  %v1821_v13 = vld [vmem:[%s3206_s0 + $0x188] sm:$0xf] }
  0xf1   :  { %1312 = vmatmul.bf16.gmra.mxu1 %v1738_v17  ;;  %1361 = vmatmul.bf16.gmra.mxu2 %v1742_v21  ;;  %v3033_v27 = vadd.f32 %v1261_v62, %v1213_v24  ;;  %v2236_v17 = vld [vmem:[%s3206_s0 + $0x1a8] sm:$0xf0]  ;;  %v1814_v24 = vor.u32 %v2235_v9, %v1813_v8 }
  0xf3   :  { %1410 = vmatmul.bf16.gmra.mxu3 %v1746_v22  ;;  %1459 = vmatmul.bf16.gmra.mxu0 %v1750_v23 }
  0xf4   :  { %v1166_v28 = vpop.f32.mrf.mxu2 }
  0xf5   :  { %v1167_v20 = vadd.f32 %v1166_v28, %v1118_v25  ;;  %v1822_v28 = vor.u32 %v2236_v17, %v1821_v13  ;;  %v1885_v13 = vld [vmem:[%s3206_s0 + $0x210] sm:$0xf]  ;;  %v2253_v17 = vld [vmem:[%s3206_s0 + $0x230] sm:$0xf0] }
  0xf6   :  { %v1215_v30 = vpop.f32.mrf.mxu3  ;;  %v1119_v32 = vpop.f32.mrf.mxu1 }
  0xf7   :  { %v1216_v33 = vadd.f32 %v1215_v30, %v1167_v20  ;;  %v1120_v34 = vadd.f32 %v1119_v32, %v1071_v11 }
  0xf8   :  { %v1266_v36 = vpop.f32.mrf.mxu0 }
  0xf9   :  { %v3043_v39 = vadd.f32 %v1264_v26, %v1216_v33 }
  0xfc   :  { %v1168_v44 = vpop.f32.mrf.mxu2 }
  0xfd   :  { %v1169_v45 = vadd.f32 %v1168_v44, %v1120_v34  ;;  %v1851_v44 = vld [vmem:[%s3206_s0 + $0x1ec] sm:$0xf0] }
  0xfe   :  { %v1217_v46 = vpop.f32.mrf.mxu3  ;;  %v1122_v51 = vpop.f32.mrf.mxu1 }
  0xff   :  { %v1218_v55 = vadd.f32 %v1217_v46, %v1169_v45  ;;  %v1123_v57 = vadd.f32 %v1122_v51, %v2864_v56  ;;  %v1807_v56 = vld [vmem:[%s3206_s0 + $0x19c] sm:$0xf0]  ;;  %v1857_v45 = vld [vmem:[%s3206_s0 + $0x1d0] sm:$0xf]  ;;  %v2245_v46 = vld [vmem:[%s3206_s0 + $0x1f0] sm:$0xf0] }
 0x100   :  { %v1269_v60 = vpop.f32.mrf.mxu0  ;;  %v1810_v23 = vor.u32 %v2230_v5, %v1807_v56 }
 0x101   :  { %1317 = vmatmul.bf16.gmra.mxu1 %v1774_v47  ;;  %1366 = vmatmul.bf16.gmra.mxu2 %v1778_v48  ;;  %v3064_v61 = vadd.f32 %v1266_v36, %v1218_v55 }
 0x103   :  { %1415 = vmatmul.bf16.gmra.mxu3 %v1782_v50  ;;  %1464 = vmatmul.bf16.gmra.mxu0 %v1786_v53  ;;  %v1850_v53 = vor.u32 %v2244_v43, %v1849_v42 }
 0x104   :  { %v1171_v62 = vpop.f32.mrf.mxu2 }
 0x105   :  { %v1172_v63 = vadd.f32 %v1171_v62, %v1123_v57 }
 0x106   :  { %v1220_v0 = vpop.f32.mrf.mxu3  ;;  %v1124_v59 = vpop.f32.mrf.mxu1 }
 0x107   :  { %v1221_v2 = vadd.f32 %v1220_v0, %v1172_v63  ;;  %v1125_v3 = vadd.f32 %v1124_v59, %v2896_v6  ;;  %v2231_v6 = vld [vmem:[%s3206_s0 + $0x184] sm:$0xf] }
 0x108   :  { %v1271_v4 = vpop.f32.mrf.mxu0  ;;  %v1818_v26 = vor.u32 %v2231_v6, %v1815_v12  ;;  %v2248_v6 = vld [vmem:[%s3206_s0 + $0x20c] sm:$0xf] }
 0x109   :  { %v3073_v7 = vadd.f32 %v1269_v60, %v1221_v2  ;;  %v1858_v60 = vor.u32 %v2245_v46, %v1857_v45 }
 0x10c   :  { %v1173_v21 = vpop.f32.mrf.mxu2 }
 0x10d   :  { %v1174_v14 = vadd.f32 %v1173_v21, %v1125_v3  ;;  %v1887_v21 = vld [vmem:[%s3206_s0 + $0x234] sm:$0xf0] }
 0x10e   :  { %v1222_v22 = vpop.f32.mrf.mxu3  ;;  %v1127_v25 = vpop.f32.mrf.mxu1 }
 0x10f   :  { %v1223_v11 = vadd.f32 %v1222_v22, %v1174_v14  ;;  %v1128_v20 = vadd.f32 %v1127_v25, %v2904_v16  ;;  %v1843_v16 = vld [vmem:[%s3206_s0 + $0x1e4] sm:$0xf0]  ;;  %v1893_v14 = vld [vmem:[%s3206_s0 + $0x218] sm:$0xf]  ;;  %v2254_v22 = vld [vmem:[%s3206_s0 + $0x238] sm:$0xf0] }
 0x110   :  { %v1274_v30 = vpop.f32.mrf.mxu0  ;;  %v1846_v50 = vor.u32 %v2239_v40, %v1843_v16 }
 0x111   :  { %1322 = vmatmul.bf16.gmra.mxu1 %v1810_v23  ;;  %1371 = vmatmul.bf16.gmra.mxu2 %v1814_v24  ;;  %v3094_v32 = vadd.f32 %v1271_v4, %v1223_v11 }
 0x113   :  { %1420 = vmatmul.bf16.gmra.mxu3 %v1818_v26  ;;  %1469 = vmatmul.bf16.gmra.mxu0 %v1822_v28  ;;  %v1886_v28 = vor.u32 %v2253_v17, %v1885_v13 }
 0x114   :  { %v1176_v33 = vpop.f32.mrf.mxu2 }
 0x115   :  { %v1177_v34 = vadd.f32 %v1176_v33, %v1128_v20 }
 0x116   :  { %v1225_v36 = vpop.f32.mrf.mxu3  ;;  %v1129_v37 = vpop.f32.mrf.mxu1 }
 0x117   :  { %v1226_v38 = vadd.f32 %v1225_v36, %v1177_v34  ;;  %v1130_v54 = vadd.f32 %v1129_v37, %v2937_v31  ;;  %v2240_v31 = vld [vmem:[%s3206_s0 + $0x1cc] sm:$0xf] }
 0x118   :  { %v1276_v19 = vpop.f32.mrf.mxu0  ;;  %v1854_v57 = vor.u32 %v2240_v31, %v1851_v44 }
 0x119   :  { %v3103_v41 = vadd.f32 %v1274_v30, %v1226_v38  ;;  %v1894_v30 = vor.u32 %v2254_v22, %v1893_v14 }
 0x11c   :  { %v1178_v47 = vpop.f32.mrf.mxu2 }
 0x11d   :  { %v1179_v48 = vadd.f32 %v1178_v47, %v1130_v54 }
 0x11e   :  { %v1227_v51 = vpop.f32.mrf.mxu3  ;;  %v1132_v55 = vpop.f32.mrf.mxu1 }
 0x11f   :  { %v1228_v62 = vadd.f32 %v1227_v51, %v1179_v48  ;;  %v1133_v63 = vadd.f32 %v1132_v55, %v2867_v58  ;;  %v1879_v58 = vld [vmem:[%s3206_s0 + $0x22c] sm:$0xf0] }
 0x120   :  { %v1279_v0 = vpop.f32.mrf.mxu0  ;;  %v1882_v26 = vor.u32 %v2248_v6, %v1879_v58 }
 0x121   :  { %1327 = vmatmul.bf16.gmra.mxu1 %v1846_v50  ;;  %1376 = vmatmul.bf16.gmra.mxu2 %v1850_v53  ;;  %v3124_v59 = vadd.f32 %v1276_v19, %v1228_v62 }
 0x123   :  { %1425 = vmatmul.bf16.gmra.mxu3 %v1854_v57  ;;  %1474 = vmatmul.bf16.gmra.mxu0 %v1858_v60 }
 0x124   :  { %v1181_v2 = vpop.f32.mrf.mxu2 }
 0x125   :  { %v1182_v3 = vadd.f32 %v1181_v2, %v1133_v63 }
 0x126   :  { %v1230_v4 = vpop.f32.mrf.mxu3  ;;  %v1134_v5 = vpop.f32.mrf.mxu1 }
 0x127   :  { %v1231_v56 = vadd.f32 %v1230_v4, %v1182_v3  ;;  %v1135_v8 = vadd.f32 %v1134_v5, %v2899_v10  ;;  %v2249_v10 = vld [vmem:[%s3206_s0 + $0x214] sm:$0xf] }
 0x128   :  { %v1281_v9 = vpop.f32.mrf.mxu0  ;;  %v1890_v20 = vor.u32 %v2249_v10, %v1887_v21 }
 0x129   :  { %v3133_v12 = vadd.f32 %v1279_v0, %v1231_v56 }
 0x12c   :  { %v1183_v23 = vpop.f32.mrf.mxu2 }
 0x12d   :  { %v1184_v24 = vadd.f32 %v1183_v23, %v1135_v8 }
 0x12e   :  { %v1232_v25 = vpop.f32.mrf.mxu3  ;;  %v1137_v11 = vpop.f32.mrf.mxu1 }
 0x12f   :  { %v1233_v33 = vadd.f32 %v1232_v25, %v1184_v24  ;;  %v1138_v34 = vadd.f32 %v1137_v11, %v2907_v18 }
 0x130   :  { %v1284_v36 = vpop.f32.mrf.mxu0 }
 0x131   :  { %1332 = vmatmul.bf16.gmra.mxu1 %v1882_v26  ;;  %1381 = vmatmul.bf16.gmra.mxu2 %v1886_v28  ;;  %v3154_v37 = vadd.f32 %v1281_v9, %v1233_v33 }
 0x133   :  { %1430 = vmatmul.bf16.gmra.mxu3 %v1890_v20  ;;  %1479 = vmatmul.bf16.gmra.mxu0 %v1894_v30 }
 0x134   :  { %v1186_v38 = vpop.f32.mrf.mxu2 }
 0x135   :  { %v1187_v54 = vadd.f32 %v1186_v38, %v1138_v34 }
 0x136   :  { %v1235_v19 = vpop.f32.mrf.mxu3  ;;  %v1139_v40 = vpop.f32.mrf.mxu1 }
 0x137   :  { %v1236_v16 = vadd.f32 %v1235_v19, %v1187_v54  ;;  %v1140_v42 = vadd.f32 %v1139_v40, %v2940_v35 }
 0x138   :  { %v1286_v43 = vpop.f32.mrf.mxu0 }
 0x139   :  { %v3157_v31 = vadd.f32 %v1284_v36, %v1236_v16 }
 0x13c   :  { %v1188_v44 = vpop.f32.mrf.mxu2 }
 0x13d   :  { %v1189_v45 = vadd.f32 %v1188_v44, %v1140_v42 }
 0x13e   :  { %v1237_v18 = vpop.f32.mrf.mxu3  ;;  %v1298_v46 = vpop.f32.mrf.mxu1 }
 0x13f   :  { %v1238_v47 = vadd.f32 %v1237_v18, %v1189_v45  ;;  %v1299_v50 = vadd.f32 %v1298_v46, %v2949_v52 }
 0x140   :  { %v1445_v48 = vpop.f32.mrf.mxu0 }
 0x141   :  { %v3159_v51 = vadd.f32 %v1286_v43, %v1238_v47 }
 0x144   :  { %v1347_v53 = vpop.f32.mrf.mxu2 }
 0x145   :  { %v1348_v55 = vadd.f32 %v1347_v53, %v1299_v50 }
 0x146   :  { %v1396_v57 = vpop.f32.mrf.mxu3  ;;  %v1300_v60 = vpop.f32.mrf.mxu1 }
 0x147   :  { %v1397_v63 = vadd.f32 %v1396_v57, %v1348_v55  ;;  %v1301_v35 = vadd.f32 %v1300_v60, %v2970_v15 }
 0x148   :  { %v1447_v62 = vpop.f32.mrf.mxu0 }
 0x149   :  { %v1446_v0 = vadd.f32 %v1445_v48, %v1397_v63 }
 0x14b   :  { %v1485_v9 = vmax.f32 %v1446_v0, 0.0 }
 0x14c   :  { %v1349_v2 = vpop.f32.mrf.mxu2 }
 0x14d   :  { %v1350_v3 = vadd.f32 %v1349_v2, %v1301_v35  ;;  %v1554_v13 = vmul.f32 %v1485_v9, %v1485_v9 }
 0x14e   :  { %v1398_v4 = vpop.f32.mrf.mxu3  ;;  %v1303_v5 = vpop.f32.mrf.mxu1 }
 0x14f   :  { %v1399_v56 = vadd.f32 %v1398_v4, %v1350_v3  ;;  %v1304_v52 = vadd.f32 %v1303_v5, %v2979_v29 }
 0x150   :  { %v1450_v8 = vpop.f32.mrf.mxu0 }
 0x151   :  { %v1448_v6 = vadd.f32 %v1447_v62, %v1399_v56 }
 0x153   :  { %v1486_v58 = vmax.f32 %v1448_v6, 0.0 }
 0x154   :  { %v1352_v17 = vpop.f32.mrf.mxu2 }
 0x155   :  { %v2330_v10 = vpack.c.bf16 %v1486_v58, %v1485_v9  ;;  %v1533_v21 = vadd.f32 %v1486_v58, %v1485_v9  ;;  %v1555_v14 = vmul.f32 %v1486_v58, %v1486_v58  ;;  %v1353_v22 = vadd.f32 %v1352_v17, %v1304_v52 }
 0x156   :  { %v1401_v23 = vpop.f32.mrf.mxu3  ;;  %v1305_v15 = vpop.f32.mrf.mxu1 }
 0x157   :  { %2331 = vst [vmem:[%s3207_s3] sm:$0xff] %v2330_v10   ;;  %v1570_v24 = vadd.f32 %v1555_v14, %v1554_v13  ;;  %v1402_v25 = vadd.f32 %v1401_v23, %v1353_v22  ;;  %v1306_v20 = vadd.f32 %v1305_v15, %v3001_v49 }
 0x158   :  { %v1452_v26 = vpop.f32.mrf.mxu0 }
 0x159   :  { %v1451_v28 = vadd.f32 %v1450_v8, %v1402_v25 }
 0x15b   :  { %v1487_v11 = vmax.f32 %v1451_v28, 0.0 }
 0x15c   :  { %v1354_v29 = vpop.f32.mrf.mxu2 }
 0x15d   :  { %v1534_v30 = vadd.f32 %v1533_v21, %v1487_v11  ;;  %v1556_v33 = vmul.f32 %v1487_v11, %v1487_v11  ;;  %v1355_v34 = vadd.f32 %v1354_v29, %v1306_v20 }
 0x15e   :  { %v1403_v36 = vpop.f32.mrf.mxu3  ;;  %v1308_v38 = vpop.f32.mrf.mxu1 }
 0x15f   :  { %v1571_v54 = vadd.f32 %v1570_v24, %v1556_v33  ;;  %v1404_v19 = vadd.f32 %v1403_v36, %v1355_v34  ;;  %v1309_v43 = vadd.f32 %v1308_v38, %v3011_v1 }
 0x160   :  { %v1455_v40 = vpop.f32.mrf.mxu0 }
 0x161   :  { %v1453_v16 = vadd.f32 %v1452_v26, %v1404_v19 }
 0x163   :  { %v1488_v42 = vmax.f32 %v1453_v16, 0.0 }
 0x164   :  { %v1357_v44 = vpop.f32.mrf.mxu2 }
 0x165   :  { %v2335_v45 = vpack.c.bf16 %v1488_v42, %v1487_v11  ;;  %v1535_v18 = vadd.f32 %v1534_v30, %v1488_v42  ;;  %v1557_v46 = vmul.f32 %v1488_v42, %v1488_v42  ;;  %v1358_v47 = vadd.f32 %v1357_v44, %v1309_v43 }
 0x166   :  { %v1406_v48 = vpop.f32.mrf.mxu3  ;;  %v1310_v49 = vpop.f32.mrf.mxu1 }
 0x167   :  { %2367 = vst [vmem:[%s3207_s3 + $0x8] sm:$0xff] %v2335_v45   ;;  %v1572_v50 = vadd.f32 %v1571_v54, %v1557_v46  ;;  %v1407_v53 = vadd.f32 %v1406_v48, %v1358_v47  ;;  %v1311_v62 = vadd.f32 %v1310_v49, %v3033_v27 }
 0x168   :  { %v1457_v55 = vpop.f32.mrf.mxu0 }
 0x169   :  { %v1456_v57 = vadd.f32 %v1455_v40, %v1407_v53 }
 0x16b   :  { %v1489_v60 = vmax.f32 %v1456_v57, 0.0 }
 0x16c   :  { %v1359_v63 = vpop.f32.mrf.mxu2 }
 0x16d   :  { %v1536_v1 = vadd.f32 %v1535_v18, %v1489_v60  ;;  %v1558_v35 = vmul.f32 %v1489_v60, %v1489_v60  ;;  %v1360_v0 = vadd.f32 %v1359_v63, %v1311_v62 }
 0x16e   :  { %v1408_v2 = vpop.f32.mrf.mxu3  ;;  %v1313_v3 = vpop.f32.mrf.mxu1 }
 0x16f   :  { %v1573_v4 = vadd.f32 %v1572_v50, %v1558_v35  ;;  %v1409_v5 = vadd.f32 %v1408_v2, %v1360_v0  ;;  %v1314_v6 = vadd.f32 %v1313_v3, %v3043_v39 }
 0x170   :  { %v1460_v56 = vpop.f32.mrf.mxu0 }
 0x171   :  { %v1458_v8 = vadd.f32 %v1457_v55, %v1409_v5 }
 0x173   :  { %v1490_v9 = vmax.f32 %v1458_v8, 0.0 }
 0x174   :  { %v1362_v58 = vpop.f32.mrf.mxu2 }
 0x175   :  { %v2340_v52 = vpack.c.bf16 %v1490_v9, %v1489_v60  ;;  %v1537_v13 = vadd.f32 %v1536_v1, %v1490_v9  ;;  %v1559_v17 = vmul.f32 %v1490_v9, %v1490_v9  ;;  %v1363_v10 = vadd.f32 %v1362_v58, %v1314_v6 }
 0x176   :  { %v1411_v21 = vpop.f32.mrf.mxu3  ;;  %v1315_v27 = vpop.f32.mrf.mxu1 }
 0x177   :  { %2368 = vst [vmem:[%s3207_s3 + $0x10] sm:$0xff] %v2340_v52   ;;  %v1574_v14 = vadd.f32 %v1573_v4, %v1559_v17  ;;  %v1412_v22 = vadd.f32 %v1411_v21, %v1363_v10  ;;  %v1316_v25 = vadd.f32 %v1315_v27, %v3064_v61 }
 0x178   :  { %v1462_v23 = vpop.f32.mrf.mxu0 }
 0x179   :  { %v1461_v15 = vadd.f32 %v1460_v56, %v1412_v22 }
 0x17b   :  { %v1491_v24 = vmax.f32 %v1461_v15, 0.0 }
 0x17c   :  { %v1364_v26 = vpop.f32.mrf.mxu2 }
 0x17d   :  { %v1538_v39 = vadd.f32 %v1537_v13, %v1491_v24  ;;  %v1560_v28 = vmul.f32 %v1491_v24, %v1491_v24  ;;  %v1365_v11 = vadd.f32 %v1364_v26, %v1316_v25 }
 0x17e   :  { %v1413_v20 = vpop.f32.mrf.mxu3  ;;  %v1318_v29 = vpop.f32.mrf.mxu1 }
 0x17f   :  { %v1575_v30 = vadd.f32 %v1574_v14, %v1560_v28  ;;  %v1414_v33 = vadd.f32 %v1413_v20, %v1365_v11  ;;  %v1319_v54 = vadd.f32 %v1318_v29, %v3073_v7 }
 0x180   :  { %v1465_v34 = vpop.f32.mrf.mxu0 }
 0x181   :  { %v1463_v36 = vadd.f32 %v1462_v23, %v1414_v33 }
 0x183   :  { %v1492_v38 = vmax.f32 %v1463_v36, 0.0 }
 0x184   :  { %v1367_v19 = vpop.f32.mrf.mxu2 }
 0x185   :  { %v2345_v40 = vpack.c.bf16 %v1492_v38, %v1491_v24  ;;  %v1539_v16 = vadd.f32 %v1538_v39, %v1492_v38  ;;  %v1561_v42 = vmul.f32 %v1492_v38, %v1492_v38  ;;  %v1368_v43 = vadd.f32 %v1367_v19, %v1319_v54 }
 0x186   :  { %v1416_v44 = vpop.f32.mrf.mxu3  ;;  %v1320_v61 = vpop.f32.mrf.mxu1 }
 0x187   :  { %2369 = vst [vmem:[%s3207_s3 + $0x18] sm:$0xff] %v2345_v40   ;;  %v1576_v45 = vadd.f32 %v1575_v30, %v1561_v42  ;;  %v1417_v18 = vadd.f32 %v1416_v44, %v1368_v43  ;;  %v1321_v49 = vadd.f32 %v1320_v61, %v3094_v32 }
 0x188   :  { %v1467_v46 = vpop.f32.mrf.mxu0 }
 0x189   :  { %v1466_v47 = vadd.f32 %v1465_v34, %v1417_v18 }
 0x18b   :  { %v1493_v48 = vmax.f32 %v1466_v47, 0.0 }
 0x18c   :  { %v1369_v50 = vpop.f32.mrf.mxu2 }
 0x18d   :  { %v1540_v7 = vadd.f32 %v1539_v16, %v1493_v48  ;;  %v1562_v53 = vmul.f32 %v1493_v48, %v1493_v48  ;;  %v1370_v55 = vadd.f32 %v1369_v50, %v1321_v49 }
 0x18e   :  { %v1418_v57 = vpop.f32.mrf.mxu3  ;;  %v1323_v60 = vpop.f32.mrf.mxu1 }
 0x18f   :  { %v1577_v62 = vadd.f32 %v1576_v45, %v1562_v53  ;;  %v1419_v63 = vadd.f32 %v1418_v57, %v1370_v55  ;;  %v1324_v2 = vadd.f32 %v1323_v60, %v3103_v41 }
 0x190   :  { %v1470_v1 = vpop.f32.mrf.mxu0 }
 0x191   :  { %v1468_v35 = vadd.f32 %v1467_v46, %v1419_v63 }
 0x193   :  { %v1494_v0 = vmax.f32 %v1468_v35, 0.0 }
 0x194   :  { %v1372_v3 = vpop.f32.mrf.mxu2 }
 0x195   :  { %v2350_v4 = vpack.c.bf16 %v1494_v0, %v1493_v48  ;;  %v1541_v5 = vadd.f32 %v1540_v7, %v1494_v0  ;;  %v1563_v56 = vmul.f32 %v1494_v0, %v1494_v0  ;;  %v1373_v8 = vadd.f32 %v1372_v3, %v1324_v2 }
 0x196   :  { %v1421_v9 = vpop.f32.mrf.mxu3  ;;  %v1325_v32 = vpop.f32.mrf.mxu1 }
 0x197   :  { %2370 = vst [vmem:[%s3207_s3 + $0x20] sm:$0xff] %v2350_v4   ;;  %v1578_v6 = vadd.f32 %v1577_v62, %v1563_v56  ;;  %v1422_v58 = vadd.f32 %v1421_v9, %v1373_v8  ;;  %v1326_v10 = vadd.f32 %v1325_v32, %v3124_v59 }
 0x198   :  { %v1472_v52 = vpop.f32.mrf.mxu0 }
 0x199   :  { %v1471_v13 = vadd.f32 %v1470_v1, %v1422_v58 }
 0x19b   :  { %v1495_v17 = vmax.f32 %v1471_v13, 0.0 }
 0x19c   :  { %v1374_v21 = vpop.f32.mrf.mxu2 }
 0x19d   :  { %v1542_v41 = vadd.f32 %v1541_v5, %v1495_v17  ;;  %v1564_v27 = vmul.f32 %v1495_v17, %v1495_v17  ;;  %v1375_v14 = vadd.f32 %v1374_v21, %v1326_v10 }
 0x19e   :  { %v1423_v22 = vpop.f32.mrf.mxu3  ;;  %v1328_v23 = vpop.f32.mrf.mxu1 }
 0x19f   :  { %v1579_v15 = vadd.f32 %v1578_v6, %v1564_v27  ;;  %v1424_v24 = vadd.f32 %v1423_v22, %v1375_v14  ;;  %v1329_v28 = vadd.f32 %v1328_v23, %v3133_v12  ;;  %v1591_v27 = vlaneseq }
 0x1a0   :  { %v1475_v26 = vpop.f32.mrf.mxu0 }
 0x1a1   :  { %v1473_v25 = vadd.f32 %v1472_v52, %v1424_v24  ;;  %v1592_v24 = vshrl.u32 %v1591_v27, 7 }
 0x1a3   :  { %v1496_v39 = vmax.f32 %v1473_v25, 0.0  ;;  %vm1593_vm0 = vcmp.eq.s32.totalorder %v1592_v24, 0  ;;  %vm1595_vm1 = vcmp.eq.s32.totalorder %v1592_v24, 1 }
 0x1a4   :  { %v1377_v11 = vpop.f32.mrf.mxu2 }
 0x1a5   :  { %v2355_v20 = vpack.c.bf16 %v1496_v39, %v1495_v17  ;;  %v1543_v29 = vadd.f32 %v1542_v41, %v1496_v39  ;;  %v1565_v30 = vmul.f32 %v1496_v39, %v1496_v39  ;;  %v1378_v33 = vadd.f32 %v1377_v11, %v1329_v28 }
 0x1a6   :  { %v1426_v34 = vpop.f32.mrf.mxu3  ;;  %v1330_v59 = vpop.f32.mrf.mxu1 }
 0x1a7   :  { %2371 = vst [vmem:[%s3207_s3 + $0x28] sm:$0xff] %v2355_v20   ;;  %v1580_v36 = vadd.f32 %v1579_v15, %v1565_v30  ;;  %v1427_v38 = vadd.f32 %v1426_v34, %v1378_v33  ;;  %v1331_v40 = vadd.f32 %v1330_v59, %v3154_v37 }
 0x1a8   :  { %v1477_v16 = vpop.f32.mrf.mxu0 }
 0x1a9   :  { %v1476_v54 = vadd.f32 %v1475_v26, %v1427_v38 }
 0x1ab   :  { %v1497_v19 = vmax.f32 %v1476_v54, 0.0 }
 0x1ac   :  { %v1379_v42 = vpop.f32.mrf.mxu2 }
 0x1ad   :  { %v1544_v12 = vadd.f32 %v1543_v29, %v1497_v19  ;;  %v1566_v43 = vmul.f32 %v1497_v19, %v1497_v19  ;;  %v1380_v44 = vadd.f32 %v1379_v42, %v1331_v40 }
 0x1ae   :  { %v1428_v61 = vpop.f32.mrf.mxu3  ;;  %v1333_v45 = vpop.f32.mrf.mxu1 }
 0x1af   :  { %v1581_v18 = vadd.f32 %v1580_v36, %v1566_v43  ;;  %v1429_v46 = vadd.f32 %v1428_v61, %v1380_v44  ;;  %v1334_v49 = vadd.f32 %v1333_v45, %v3157_v31 }
 0x1b0   :  { %v1480_v37 = vpop.f32.mrf.mxu0 }
 0x1b1   :  { %v1478_v47 = vadd.f32 %v1477_v16, %v1429_v46 }
 0x1b3   :  { %v1498_v48 = vmax.f32 %v1478_v47, 0.0 }
 0x1b4   :  { %v1382_v50 = vpop.f32.mrf.mxu2 }
 0x1b5   :  { %v2360_v7 = vpack.c.bf16 %v1498_v48, %v1497_v19  ;;  %v1545_v53 = vadd.f32 %v1544_v12, %v1498_v48  ;;  %v1567_v55 = vmul.f32 %v1498_v48, %v1498_v48  ;;  %v1383_v57 = vadd.f32 %v1382_v50, %v1334_v49 }
 0x1b6   :  { %v1431_v60 = vpop.f32.mrf.mxu3  ;;  %v1335_v1 = vpop.f32.mrf.mxu1 }
 0x1b7   :  { %2372 = vst [vmem:[%s3207_s3 + $0x30] sm:$0xff] %v2360_v7   ;;  %v1582_v62 = vadd.f32 %v1581_v18, %v1567_v55  ;;  %v1432_v63 = vadd.f32 %v1431_v60, %v1383_v57  ;;  %v1336_v2 = vadd.f32 %v1335_v1, %v3159_v51 }
 0x1b8   :  { %v1482_v32 = vpop.f32.mrf.mxu0 }
 0x1b9   :  { %v1481_v35 = vadd.f32 %v1480_v37, %v1432_v63 }
 0x1bb   :  { %v1499_v0 = vmax.f32 %v1481_v35, 0.0 }
 0x1bc   :  { %v1384_v3 = vpop.f32.mrf.mxu2 }
 0x1bd   :  { %v1546_v31 = vadd.f32 %v1545_v53, %v1499_v0  ;;  %v1568_v4 = vmul.f32 %v1499_v0, %v1499_v0  ;;  %v1385_v5 = vadd.f32 %v1384_v3, %v1336_v2 }
 0x1be   :  { %v1433_v56 = vpop.f32.mrf.mxu3 }
 0x1bf   :  { %v1583_v8 = vadd.f32 %v1582_v62, %v1568_v4  ;;  %v1434_v9 = vadd.f32 %v1433_v56, %v1385_v5 }
 0x1c1   :  { %v1483_v6 = vadd.f32 %v1482_v32, %v1434_v9 }
 0x1c3   :  { %v1500_v58 = vmax.f32 %v1483_v6, 0.0 }
 0x1c5   :  { %v2365_v52 = vpack.c.bf16 %v1500_v58, %v1499_v0  ;;  %v1547_v13 = vadd.f32 %v1546_v31, %v1500_v58  ;;  %v1569_v17 = vmul.f32 %v1500_v58, %v1500_v58 }
 0x1c7   :  { %2373 = vst [vmem:[%s3207_s3 + $0x38] sm:$0xff] %v2365_v52   ;;  %v1548_v10 = vrot.slane %v1547_v13, 4  ;;  %v1584_v21 = vadd.f32 %v1583_v8, %v1569_v17 }
 0x1c9   :  { %v1549_v51 = vadd.f32 %v1548_v10, %v1547_v13  ;;  %v1585_v41 = vrot.slane %v1584_v21, 4 }
 0x1cb   :  { %v1550_v14 = vrot.slane %v1549_v51, 2  ;;  %v1586_v22 = vadd.f32 %v1585_v41, %v1584_v21 }
 0x1cd   :  { %v1551_v23 = vadd.f32 %v1550_v14, %v1549_v51  ;;  %v1587_v15 = vrot.slane %v1586_v22, 2 }
 0x1cf   :  { %v1552_v25 = vrot.slane %v1551_v23, 1  ;;  %v1588_v26 = vadd.f32 %v1587_v15, %v1586_v22 }
 0x1d1   :  { %v1553_v39 = vadd.f32 %v1552_v25, %v1551_v23  ;;  %v1589_v28 = vrot.slane %v1588_v26, 1 }
 0x1d3   :  { %v1590_v11 = vadd.f32 %v1589_v28, %v1588_v26  ;;  %v1594_v20 = vsel %vm1593_vm0, %v1553_v39, 0.0 }
 0x1d5   :  { %v1596_v29 = vsel %vm1595_vm1, %v1590_v11, 0.0 }
 0x1d6   :  { %v1597_v30 = vadd.f32 %v1596_v29, %v1594_v20 }
 0x1d8   :  { %1598 = vst [vmem:[%s3208_s4] sm:$0xff] %v1597_v30 }

// kernel: conditioned_vae_encoder.13
= control target key start
LH: loop header
LB: loop body
LE: loop exit
PB: predicated region body
PF: predicated region fallthrough
CT: control target
= control target key end

     0   :  { %s116_s0 = inlined_call_operand.vmem [shape: bf16[32,256], index: 0, kind: input, shape index: {}]   ;;  %s117_s1 = inlined_call_operand.vmem [shape: f32[1,256], index: 1, kind: input, shape index: {}]   ;;  %s118_s2 = inlined_call_operand.vmem [shape: f32[1,256], index: 2, kind: input, shape index: {}]   ;;  %s119_s3 = inlined_call_operand.vmem [shape: bf16[32,256], index: 3, kind: output, shape index: {}]  }
   0x1   :  { %v14_v0 = vld [vmem:[%s116_s0] sm:$0xff]  ;;  %v15_v7 = vld [vmem:[%s116_s0 + $0x8] sm:$0xff]  ;;  %v16_v8 = vld [vmem:[%s116_s0 + $0x10] sm:$0xff] }
   0x2   :  { %v26_v1 = vld [vmem:[%s117_s1] sm:$0x3]  ;;  %v18_v3 = vunpack.c.l.bf16 %v14_v0  ;;  %v19_v4 = vunpack.c.h.bf16 %v14_v0  ;;  %v17_v9 = vld [vmem:[%s116_s0 + $0x18] sm:$0xff]  ;;  %v20_v12 = vunpack.c.l.bf16 %v15_v7  ;;  %v21_v13 = vunpack.c.h.bf16 %v15_v7 }
   0x3   :  { %v40_v2 = vld [vmem:[%s118_s2] sm:$0x3]  ;;  %v28_v5 = vperm.slane %v26_v1, 0  ;;  %v29_v6 = vperm.slane %v26_v1, 1  ;;  %v22_v16 = vunpack.c.l.bf16 %v16_v8  ;;  %v23_v17 = vunpack.c.h.bf16 %v16_v8 }
   0x4   :  { %v42_v10 = vperm.slane %v40_v2, 0  ;;  %v43_v11 = vperm.slane %v40_v2, 1  ;;  %v24_v20 = vunpack.c.l.bf16 %v17_v9  ;;  %v25_v21 = vunpack.c.h.bf16 %v17_v9 }
   0x5   :  { %v32_v14 = vmul.f32 %v28_v5, %v18_v3  ;;  %v33_v15 = vmul.f32 %v29_v6, %v19_v4  ;;  %v34_v18 = vmul.f32 %v28_v5, %v20_v12  ;;  %v35_v19 = vmul.f32 %v29_v6, %v21_v13 }
   0x6   :  { %v36_v24 = vmul.f32 %v28_v5, %v22_v16  ;;  %v37_v25 = vmul.f32 %v29_v6, %v23_v17  ;;  %v38_v28 = vmul.f32 %v28_v5, %v24_v20  ;;  %v39_v29 = vmul.f32 %v29_v6, %v25_v21 }
   0x7   :  { %v46_v22 = vadd.f32 %v42_v10, %v32_v14  ;;  %v47_v23 = vadd.f32 %v43_v11, %v33_v15  ;;  %v48_v26 = vadd.f32 %v42_v10, %v34_v18  ;;  %v49_v27 = vadd.f32 %v43_v11, %v35_v19 }
   0x8   :  { %v50_v31 = vadd.f32 %v42_v10, %v36_v24  ;;  %v51_v32 = vadd.f32 %v43_v11, %v37_v25  ;;  %v52_v34 = vadd.f32 %v42_v10, %v38_v28  ;;  %v53_v35 = vadd.f32 %v43_v11, %v39_v29 }
   0x9   :  { %v54_v30 = vpack.c.bf16 %v47_v23, %v46_v22  ;;  %v55_v33 = vpack.c.bf16 %v49_v27, %v48_v26 }
   0xa   :  { %v56_v36 = vpack.c.bf16 %v51_v32, %v50_v31  ;;  %v57_v37 = vpack.c.bf16 %v53_v35, %v52_v34 }
   0xb   :  { %58 = vst [vmem:[%s119_s3] sm:$0xff] %v54_v30 }
   0xc   :  { %59 = vst [vmem:[%s119_s3 + $0x8] sm:$0xff] %v55_v33 }
   0xd   :  { %60 = vst [vmem:[%s119_s3 + $0x10] sm:$0xff] %v56_v36 }
   0xe   :  { %61 = vst [vmem:[%s119_s3 + $0x18] sm:$0xff] %v57_v37 }

// kernel: conditioned_vae_encoder.12
= control target key start
LH: loop header
LB: loop body
LE: loop exit
PB: predicated region body
PF: predicated region fallthrough
CT: control target
= control target key end

     0   :  { %s5337_s1 = inlined_call_operand.vmem [shape: bf16[1152,256], index: 1, kind: input, shape index: {}]   ;;  %s5338_s0 = inlined_call_operand.vmem [shape: bf16[4,32,1152], index: 0, kind: input, shape index: {}]   ;;  %s5339_s2 = inlined_call_operand.vmem [shape: f32[1,256], index: 2, kind: input, shape index: {}]   ;;  %s5340_s4 = inlined_call_operand.vmem [shape: f32[8,256], index: 4, kind: output, shape index: {1}]   ;;  %s5341_s3 = inlined_call_operand.vmem [shape: bf16[32,256], index: 3, kind: output, shape index: {0}]  }
   0x1   :  { %v2674_v0 = vld [vmem:[%s5337_s1 + $0x70] sm:$0xf]  ;;  %v3279_v1 = vld [vmem:[%s5337_s1 + $0x74] sm:$0xf0]  ;;  %v2666_v5 = vld [vmem:[%s5337_s1 + $0x60] sm:$0xf] }
   0x2   :  { %v2738_v2 = vld [vmem:[%s5337_s1 + $0xf0] sm:$0xf]  ;;  %v2675_v3 = vor.u32 %v3279_v1, %v2674_v0  ;;  %v3295_v4 = vld [vmem:[%s5337_s1 + $0xf4] sm:$0xf0]  ;;  %v3277_v6 = vld [vmem:[%s5337_s1 + $0x64] sm:$0xf0] }
   0x3   :  { %v2739_v7 = vor.u32 %v3295_v4, %v2738_v2  ;;  %v2730_v8 = vld [vmem:[%s5337_s1 + $0xe0] sm:$0xf]  ;;  %v3293_v9 = vld [vmem:[%s5337_s1 + $0xe4] sm:$0xf0]  ;;  %v2667_v10 = vor.u32 %v3277_v6, %v2666_v5  ;;  %v2658_v12 = vld [vmem:[%s5337_s1 + $0x50] sm:$0xf] }
   0x4   :  { %3408 = vmatpush.bf16.msra.mxu2 %v2675_v3  ;;  %1328 = vmatpush.bf16.msra.mxu0 %v2675_v3  ;;  %v2731_v11 = vor.u32 %v3293_v9, %v2730_v8  ;;  %v3275_v13 = vld [vmem:[%s5337_s1 + $0x54] sm:$0xf0]  ;;  %v2722_v14 = vld [vmem:[%s5337_s1 + $0xd0] sm:$0xf]  ;;  %v2650_v18 = vld [vmem:[%s5337_s1 + $0x40] sm:$0xf] }
   0x5   :  { %3416 = vmatpush.bf16.msra.mxu3 %v2739_v7  ;;  %1377 = vmatpush.bf16.msra.mxu1 %v2739_v7  ;;  %v3291_v15 = vld [vmem:[%s5337_s1 + $0xd4] sm:$0xf0]  ;;  %v2659_v16 = vor.u32 %v3275_v13, %v2658_v12  ;;  %v3273_v19 = vld [vmem:[%s5337_s1 + $0x44] sm:$0xf0]  ;;  %v2714_v20 = vld [vmem:[%s5337_s1 + $0xc0] sm:$0xf] }
   0x6   :  { %v2723_v17 = vor.u32 %v3291_v15, %v2722_v14  ;;  %v3289_v21 = vld [vmem:[%s5337_s1 + $0xc4] sm:$0xf0]  ;;  %v2651_v22 = vor.u32 %v3273_v19, %v2650_v18  ;;  %v2642_v24 = vld [vmem:[%s5337_s1 + $0x30] sm:$0xf]  ;;  %v3271_v25 = vld [vmem:[%s5337_s1 + $0x34] sm:$0xf0] }
   0x7   :  { %v2715_v23 = vor.u32 %v3289_v21, %v2714_v20  ;;  %v2706_v26 = vld [vmem:[%s5337_s1 + $0xb0] sm:$0xf]  ;;  %v3287_v27 = vld [vmem:[%s5337_s1 + $0xb4] sm:$0xf0]  ;;  %v2643_v28 = vor.u32 %v3271_v25, %v2642_v24  ;;  %v2634_v30 = vld [vmem:[%s5337_s1 + $0x20] sm:$0xf] }
   0x8   :  { %3409 = vmatpush.bf16.msra.mxu2 %v2667_v10  ;;  %1329 = vmatpush.bf16.msra.mxu0 %v2667_v10  ;;  %v2707_v29 = vor.u32 %v3287_v27, %v2706_v26  ;;  %v3269_v31 = vld [vmem:[%s5337_s1 + $0x24] sm:$0xf0]  ;;  %v2698_v32 = vld [vmem:[%s5337_s1 + $0xa0] sm:$0xf]  ;;  %v2626_v36 = vld [vmem:[%s5337_s1 + $0x10] sm:$0xf] }
   0x9   :  { %3417 = vmatpush.bf16.msra.mxu3 %v2731_v11  ;;  %1378 = vmatpush.bf16.msra.mxu1 %v2731_v11  ;;  %v3285_v33 = vld [vmem:[%s5337_s1 + $0xa4] sm:$0xf0]  ;;  %v2635_v34 = vor.u32 %v3269_v31, %v2634_v30  ;;  %v3267_v37 = vld [vmem:[%s5337_s1 + $0x14] sm:$0xf0]  ;;  %v2690_v38 = vld [vmem:[%s5337_s1 + $0x90] sm:$0xf] }
   0xa   :  { %v2699_v35 = vor.u32 %v3285_v33, %v2698_v32  ;;  %v3283_v39 = vld [vmem:[%s5337_s1 + $0x94] sm:$0xf0]  ;;  %v2627_v40 = vor.u32 %v3267_v37, %v2626_v36  ;;  %v2618_v41 = vld [vmem:[%s5337_s1] sm:$0xf]  ;;  %v3265_v43 = vld [vmem:[%s5337_s1 + $0x4] sm:$0xf0] }
   0xb   :  { %v2691_v42 = vor.u32 %v3283_v39, %v2690_v38  ;;  %v2682_v44 = vld [vmem:[%s5337_s1 + $0x80] sm:$0xf]  ;;  %v3281_v45 = vld [vmem:[%s5337_s1 + $0x84] sm:$0xf0]  ;;  %v3232_v47 = vld [vmem:[%s5338_s0 + $0x140] sm:$0xf0]  ;;  %v2619_v54 = vor.u32 %v3265_v43, %v2618_v41 }
   0xc   :  { %3410 = vmatpush.bf16.msra.mxu2 %v2659_v16  ;;  %1330 = vmatpush.bf16.msra.mxu0 %v2659_v16  ;;  %v2474_v46 = vld [vmem:[%s5338_s0 + $0x120] sm:$0xf]  ;;  %v2802_v48 = vld [vmem:[%s5337_s1 + $0x170] sm:$0xf]  ;;  %v3228_v49 = vld [vmem:[%s5338_s0 + $0x124] sm:$0xf]  ;;  %v2683_v58 = vor.u32 %v3281_v45, %v2682_v44 }
   0xd   :  { %3418 = vmatpush.bf16.msra.mxu3 %v2723_v17  ;;  %1379 = vmatpush.bf16.msra.mxu1 %v2723_v17  ;;  %v2476_v50 = vld [vmem:[%s5338_s0 + $0x144] sm:$0xf0]  ;;  %v3311_v51 = vld [vmem:[%s5337_s1 + $0x174] sm:$0xf0]  ;;  %v2866_v52 = vld [vmem:[%s5337_s1 + $0x1f0] sm:$0xf]  ;;  %v3596_v3 = vor.u32 %v3232_v47, %v2474_v46 }
   0xe   :  { %v3327_v53 = vld [vmem:[%s5337_s1 + $0x1f4] sm:$0xf0]  ;;  %v2330_v55 = vld [vmem:[%s5338_s0] sm:$0xf]  ;;  %v3196_v56 = vld [vmem:[%s5338_s0 + $0x20] sm:$0xf0]  ;;  %v2803_v62 = vor.u32 %v3311_v51, %v2802_v48  ;;  %v3609_v8 = vor.u32 %v3228_v49, %v2476_v50 }
   0xf   :  { %v3192_v57 = vld [vmem:[%s5338_s0 + $0x4] sm:$0xf]  ;;  %v2332_v59 = vld [vmem:[%s5338_s0 + $0x24] sm:$0xf0]  ;;  %v2794_v60 = vld [vmem:[%s5337_s1 + $0x160] sm:$0xf]  ;;  %v2867_v63 = vor.u32 %v3327_v53, %v2866_v52  ;;  %v3598_v4 = vor.u32 %v3196_v56, %v2330_v55 }
  0x10   :  { %3411 = vmatpush.bf16.msra.mxu2 %v2651_v22  ;;  %1331 = vmatpush.bf16.msra.mxu0 %v2651_v22  ;;  %v2930_v61 = vld [vmem:[%s5337_s1 + $0x270] sm:$0xf]  ;;  %v3343_v0 = vld [vmem:[%s5337_s1 + $0x274] sm:$0xf0]  ;;  %v3309_v5 = vld [vmem:[%s5337_s1 + $0x164] sm:$0xf0]  ;;  %v3611_v9 = vor.u32 %v3192_v57, %v2332_v59 }
  0x11   :  { %3419 = vmatpush.bf16.msra.mxu3 %v2715_v23  ;;  %1380 = vmatpush.bf16.msra.mxu1 %v2715_v23  ;;  %v2994_v1 = vld [vmem:[%s5337_s1 + $0x2f0] sm:$0xf]  ;;  %v3359_v2 = vld [vmem:[%s5337_s1 + $0x2f4] sm:$0xf0]  ;;  %v2858_v6 = vld [vmem:[%s5337_s1 + $0x1e0] sm:$0xf]  ;;  %v2931_v10 = vor.u32 %v3343_v0, %v2930_v61  ;;  %v2795_v14 = vor.u32 %v3309_v5, %v2794_v60 }
  0x12   :  { %v3325_v7 = vld [vmem:[%s5337_s1 + $0x1e4] sm:$0xf0]  ;;  %v2995_v11 = vor.u32 %v3359_v2, %v2994_v1  ;;  %v2786_v12 = vld [vmem:[%s5337_s1 + $0x150] sm:$0xf]  ;;  %v2922_v13 = vld [vmem:[%s5337_s1 + $0x260] sm:$0xf] }
  0x13   :  { %v2859_v15 = vor.u32 %v3325_v7, %v2858_v6  ;;  %v3341_v16 = vld [vmem:[%s5337_s1 + $0x264] sm:$0xf0]  ;;  %v2986_v17 = vld [vmem:[%s5337_s1 + $0x2e0] sm:$0xf]  ;;  %v3307_v19 = vld [vmem:[%s5337_s1 + $0x154] sm:$0xf0] }
  0x14   :  { %3412 = vmatpush.bf16.msra.mxu2 %v2643_v28  ;;  %1332 = vmatpush.bf16.msra.mxu0 %v2643_v28  ;;  %v3357_v18 = vld [vmem:[%s5337_s1 + $0x2e4] sm:$0xf0]  ;;  %v2850_v20 = vld [vmem:[%s5337_s1 + $0x1d0] sm:$0xf]  ;;  %v3323_v21 = vld [vmem:[%s5337_s1 + $0x1d4] sm:$0xf0]  ;;  %v2923_v22 = vor.u32 %v3341_v16, %v2922_v13  ;;  %v2787_v26 = vor.u32 %v3307_v19, %v2786_v12 }
  0x15   :  { %3420 = vmatpush.bf16.msra.mxu3 %v2707_v29  ;;  %1381 = vmatpush.bf16.msra.mxu1 %v2707_v29  ;;  %v2987_v23 = vor.u32 %v3357_v18, %v2986_v17  ;;  %v2778_v24 = vld [vmem:[%s5337_s1 + $0x140] sm:$0xf]  ;;  %v2914_v25 = vld [vmem:[%s5337_s1 + $0x250] sm:$0xf]  ;;  %v2851_v27 = vor.u32 %v3323_v21, %v2850_v20  ;;  %v3339_v28 = vld [vmem:[%s5337_s1 + $0x254] sm:$0xf0] }
  0x16   :  { %v2978_v29 = vld [vmem:[%s5337_s1 + $0x2d0] sm:$0xf]  ;;  %v3355_v30 = vld [vmem:[%s5337_s1 + $0x2d4] sm:$0xf0]  ;;  %v3305_v31 = vld [vmem:[%s5337_s1 + $0x144] sm:$0xf0] }
  0x17   :  { %v2842_v32 = vld [vmem:[%s5337_s1 + $0x1c0] sm:$0xf]  ;;  %v3321_v33 = vld [vmem:[%s5337_s1 + $0x1c4] sm:$0xf0]  ;;  %v2770_v36 = vld [vmem:[%s5337_s1 + $0x130] sm:$0xf] }
  0x18   :  { %3413 = vmatpush.bf16.msra.mxu2 %v2635_v34  ;;  %1333 = vmatpush.bf16.msra.mxu0 %v2635_v34  ;;  %v2915_v34 = vor.u32 %v3339_v28, %v2914_v25  ;;  %v2906_v37 = vld [vmem:[%s5337_s1 + $0x240] sm:$0xf]  ;;  %v2510_v38 = vld [vmem:[%s5338_s0 + $0x168] sm:$0xf]  ;;  %v3241_v39 = vld [vmem:[%s5338_s0 + $0x188] sm:$0xf0]  ;;  %v2843_v41 = vor.u32 %v3321_v33, %v2842_v32 }
  0x19   :  { %3421 = vmatpush.bf16.msra.mxu3 %v2699_v35  ;;  %1382 = vmatpush.bf16.msra.mxu1 %v2699_v35  ;;  %v2979_v35 = vor.u32 %v3355_v30, %v2978_v29  ;;  %v2970_v43 = vld [vmem:[%s5337_s1 + $0x2c0] sm:$0xf]  ;;  %v3353_v44 = vld [vmem:[%s5337_s1 + $0x2c4] sm:$0xf0]  ;;  %v3237_v45 = vld [vmem:[%s5338_s0 + $0x16c] sm:$0xf] }
  0x1a   :  { %v2512_v46 = vld [vmem:[%s5338_s0 + $0x18c] sm:$0xf0]  ;;  %v3303_v47 = vld [vmem:[%s5337_s1 + $0x134] sm:$0xf0]  ;;  %v2366_v50 = vld [vmem:[%s5338_s0 + $0x48] sm:$0xf]  ;;  %v2971_v55 = vor.u32 %v3353_v44, %v2970_v43 }
  0x1b   :  { %v2834_v48 = vld [vmem:[%s5337_s1 + $0x1b0] sm:$0xf]  ;;  %v3319_v49 = vld [vmem:[%s5337_s1 + $0x1b4] sm:$0xf0]  ;;  %v3205_v51 = vld [vmem:[%s5338_s0 + $0x68] sm:$0xf0]  ;;  %v3741_v6 = vor.u32 %v3237_v45, %v2512_v46 }
  0x1c   :  { %3414 = vmatpush.bf16.msra.mxu2 %v2627_v40  ;;  %1334 = vmatpush.bf16.msra.mxu0 %v2627_v40  ;;  %v2779_v40 = vor.u32 %v3305_v31, %v2778_v24  ;;  %v3201_v52 = vld [vmem:[%s5338_s0 + $0x4c] sm:$0xf]  ;;  %v2368_v53 = vld [vmem:[%s5338_s0 + $0x6c] sm:$0xf0]  ;;  %v2762_v56 = vld [vmem:[%s5337_s1 + $0x120] sm:$0xf]  ;;  %v2835_v59 = vor.u32 %v3319_v49, %v2834_v48  ;;  %v3730_v0 = vor.u32 %v3205_v51, %v2366_v50 }
  0x1d   :  { %3422 = vmatpush.bf16.msra.mxu3 %v2691_v42  ;;  %1383 = vmatpush.bf16.msra.mxu1 %v2691_v42  ;;  %v3337_v42 = vld [vmem:[%s5337_s1 + $0x244] sm:$0xf0]  ;;  %v2898_v57 = vld [vmem:[%s5337_s1 + $0x230] sm:$0xf]  ;;  %v3335_v60 = vld [vmem:[%s5337_s1 + $0x234] sm:$0xf0]  ;;  %v3743_v7 = vor.u32 %v3201_v52, %v2368_v53 }
  0x1e   :  { %v2962_v61 = vld [vmem:[%s5337_s1 + $0x2b0] sm:$0xf]  ;;  %v3301_v1 = vld [vmem:[%s5337_s1 + $0x124] sm:$0xf0]  ;;  %v2826_v2 = vld [vmem:[%s5337_s1 + $0x1a0] sm:$0xf] }
  0x1f   :  { %v3317_v5 = vld [vmem:[%s5337_s1 + $0x1a4] sm:$0xf0]  ;;  %5377 = vst [vmem:[#allocation2_spill] sm:$0xff] %v3741_v6  ;;  %v2763_v12 = vor.u32 %v3301_v1, %v2762_v56  ;;  %v2818_v16 = vld [vmem:[%s5337_s1 + $0x190] sm:$0xf] }
  0x20   :  { %3415 = vmatpush.bf16.msra.mxu2 %v2619_v54  ;;  %1335 = vmatpush.bf16.msra.mxu0 %v2619_v54  ;;  %v2907_v54 = vor.u32 %v3337_v42, %v2906_v37  ;;  %v2827_v13 = vor.u32 %v3317_v5, %v2826_v2  ;;  %v3315_v17 = vld [vmem:[%s5337_s1 + $0x194] sm:$0xf0]  ;;  %v2890_v18 = vld [vmem:[%s5337_s1 + $0x220] sm:$0xf]  ;;  %v3333_v21 = vld [vmem:[%s5337_s1 + $0x224] sm:$0xf0] }
  0x21   :  { %3423 = vmatpush.bf16.msra.mxu3 %v2683_v58  ;;  %1384 = vmatpush.bf16.msra.mxu1 %v2683_v58  ;;  %v2771_v58 = vor.u32 %v3303_v47, %v2770_v36  ;;  %v2819_v20 = vor.u32 %v3315_v17, %v2818_v16  ;;  %v2891_v24 = vor.u32 %v3333_v21, %v2890_v18  ;;  %v2810_v28 = vld [vmem:[%s5337_s1 + $0x180] sm:$0xf]  ;;  %v3313_v29 = vld [vmem:[%s5337_s1 + $0x184] sm:$0xf0]  ;;  %v2882_v30 = vld [vmem:[%s5337_s1 + $0x210] sm:$0xf] }
  0x22   :  { %v3331_v31 = vld [vmem:[%s5337_s1 + $0x214] sm:$0xf0]  ;;  %v2946_v33 = vld [vmem:[%s5337_s1 + $0x290] sm:$0xf]  ;;  %v2811_v36 = vor.u32 %v3313_v29, %v2810_v28  ;;  %v3246_v42 = vld [vmem:[%s5338_s0 + $0x1b4] sm:$0xf] }
  0x23   :  { %1356 = vmatmul.bf16.vlgmr.msra.gmra.mxu2 %v3596_v3  ;;  %1336 = vmatmul.bf16.vlgmr.msra.gmra.mxu0 %v3598_v4  ;;  %v2883_v32 = vor.u32 %v3331_v31, %v2882_v30  ;;  %v2402_v43 = vld [vmem:[%s5338_s0 + $0x90] sm:$0xf]  ;;  %v3214_v44 = vld [vmem:[%s5338_s0 + $0xb0] sm:$0xf0]  ;;  %v2548_v45 = vld [vmem:[%s5338_s0 + $0x1d4] sm:$0xf0] }
  0x24   :  { %1426 = vmatpush.bf16.msrb.mxu2 %v2803_v62  ;;  %1405 = vmatmul.bf16.vlgmr.msra.gmra.mxu3 %v3609_v8  ;;  %v3351_v62 = vld [vmem:[%s5337_s1 + $0x2b4] sm:$0xf0]  ;;  %v3210_v46 = vld [vmem:[%s5338_s0 + $0x94] sm:$0xf]  ;;  %v3829_v50 = vor.u32 %v3214_v44, %v2402_v43  ;;  %v3831_v51 = vor.u32 %v3246_v42, %v2548_v45  ;;  %v2938_v53 = vld [vmem:[%s5337_s1 + $0x280] sm:$0xf] }
  0x25   :  { %1475 = vmatpush.bf16.msrb.mxu3 %v2867_v63  ;;  %1385 = vmatmul.bf16.vlgmr.msra.gmra.mxu1 %v3611_v9  ;;  %v3728_v63 = vor.u32 %v3241_v39, %v2510_v38  ;;  %v2874_v38 = vld [vmem:[%s5337_s1 + $0x200] sm:$0xf]  ;;  %v3329_v39 = vld [vmem:[%s5337_s1 + $0x204] sm:$0xf0]  ;;  %v2404_v47 = vld [vmem:[%s5338_s0 + $0xb4] sm:$0xf0] }
  0x26   :  { %1524 = vmatpush.bf16.msrb.mxu0 %v2931_v10  ;;  %1573 = vmatpush.bf16.msrb.mxu1 %v2995_v11  ;;  %v2899_v10 = vor.u32 %v3335_v60, %v2898_v57  ;;  %v2963_v11 = vor.u32 %v3351_v62, %v2962_v61  ;;  %v2875_v48 = vor.u32 %v3329_v39, %v2874_v38  ;;  %v3058_v56 = vld [vmem:[%s5337_s1 + $0x370] sm:$0xf]  ;;  %v3375_v57 = vld [vmem:[%s5337_s1 + $0x374] sm:$0xf0]  ;;  %v3278_v2 = vld [vmem:[%s5337_s1 + $0x74] sm:$0xf] }
  0x27   :  { %5378 = vst [vmem:[#allocation3_spill] sm:$0xff] %v3831_v51  ;;  %v3833_v52 = vor.u32 %v3210_v46, %v2404_v47  ;;  %v3391_v60 = vld [vmem:[%s5337_s1 + $0x3f4] sm:$0xf0]  ;;  %v3186_v62 = vld [vmem:[%s5337_s1 + $0x470] sm:$0xf] }
  0x28   :  { %1427 = vmatpush.bf16.msrb.mxu2 %v2795_v14  ;;  %v2754_v14 = vld [vmem:[%s5337_s1 + $0x110] sm:$0xf]  ;;  %v3407_v1 = vld [vmem:[%s5337_s1 + $0x474] sm:$0xf0]  ;;  %v3223_v16 = vld [vmem:[%s5338_s0 + $0xf8] sm:$0xf0] }
  0x29   :  { %1476 = vmatpush.bf16.msrb.mxu3 %v2859_v15  ;;  %v3299_v15 = vld [vmem:[%s5337_s1 + $0x114] sm:$0xf0]  ;;  %v3187_v5 = vor.u32 %v3407_v1, %v3186_v62  ;;  %v2584_v17 = vld [vmem:[%s5338_s0 + $0x21c] sm:$0xf0]  ;;  %v3219_v18 = vld [vmem:[%s5338_s0 + $0xdc] sm:$0xf] }
  0x2a   :  { %1525 = vmatpush.bf16.msrb.mxu0 %v2923_v22  ;;  %1574 = vmatpush.bf16.msrb.mxu1 %v2987_v23  ;;  %v2755_v19 = vor.u32 %v3299_v15, %v2754_v14  ;;  %v2954_v22 = vld [vmem:[%s5337_s1 + $0x2a0] sm:$0xf]  ;;  %v3349_v23 = vld [vmem:[%s5337_s1 + $0x2a4] sm:$0xf0]  ;;  %v3255_v14 = vld [vmem:[%s5338_s0 + $0x1fc] sm:$0xf] }
  0x2b   :  { %v2955_v25 = vor.u32 %v3349_v23, %v2954_v22  ;;  %v2438_v15 = vld [vmem:[%s5338_s0 + $0xd8] sm:$0xf]  ;;  %v3897_v22 = vor.u32 %v3255_v14, %v2584_v17  ;;  %v3389_v28 = vld [vmem:[%s5337_s1 + $0x3e4] sm:$0xf0]  ;;  %v3178_v30 = vld [vmem:[%s5337_s1 + $0x460] sm:$0xf] }
  0x2c   :  { %1428 = vmatpush.bf16.msrb.mxu2 %v2787_v26  ;;  %v2746_v26 = vld [vmem:[%s5337_s1 + $0x100] sm:$0xf]  ;;  %v3895_v21 = vor.u32 %v3223_v16, %v2438_v15  ;;  %v3405_v31 = vld [vmem:[%s5337_s1 + $0x464] sm:$0xf0]  ;;  %v3193_v38 = vld [vmem:[%s5338_s0 + $0xc] sm:$0xf] }
  0x2d   :  { %1477 = vmatpush.bf16.msrb.mxu3 %v2851_v27  ;;  %v3297_v27 = vld [vmem:[%s5337_s1 + $0x104] sm:$0xf0]  ;;  %5379 = vst [vmem:[#allocation4_spill] sm:$0xff] %v3897_v22  ;;  %v2346_v39 = vld [vmem:[%s5338_s0 + $0x10] sm:$0xf] }
  0x2e   :  { %1526 = vmatpush.bf16.msrb.mxu0 %v2915_v34  ;;  %1575 = vmatpush.bf16.msrb.mxu1 %v2979_v35  ;;  %v3347_v34 = vld [vmem:[%s5337_s1 + $0x294] sm:$0xf0]  ;;  %v2747_v35 = vor.u32 %v3297_v27, %v2746_v26  ;;  %v3114_v26 = vld [vmem:[%s5337_s1 + $0x3e0] sm:$0xf]  ;;  %v3194_v42 = vld [vmem:[%s5338_s0 + $0x14] sm:$0xf] }
  0x2f   :  { %v2947_v37 = vor.u32 %v3347_v34, %v2946_v33  ;;  %v3115_v29 = vor.u32 %v3389_v28, %v3114_v26  ;;  %v3179_v33 = vor.u32 %v3405_v31, %v3178_v30  ;;  %v2668_v34 = vld [vmem:[%s5337_s1 + $0x68] sm:$0xf0]  ;;  %v2348_v43 = vld [vmem:[%s5338_s0 + $0x34] sm:$0xf0]  ;;  %v2660_v62 = vld [vmem:[%s5337_s1 + $0x58] sm:$0xf0] }
  0x30   :  { %1429 = vmatpush.bf16.msrb.mxu2 %v2779_v40  ;;  %v2546_v40 = vld [vmem:[%s5338_s0 + $0x1b0] sm:$0xf]  ;;  %v3959_v47 = vor.u32 %v3194_v42, %v2348_v43  ;;  %v3203_v14 = vld [vmem:[%s5338_s0 + $0x5c] sm:$0xf]  ;;  %v2384_v15 = vld [vmem:[%s5338_s0 + $0x7c] sm:$0xf0] }
  0x31   :  { %1478 = vmatpush.bf16.msrb.mxu3 %v2843_v41  ;;  %v3250_v41 = vld [vmem:[%s5338_s0 + $0x1d0] sm:$0xf0]  ;;  %v3098_v26 = vld [vmem:[%s5337_s1 + $0x3c0] sm:$0xf]  ;;  %v3385_v28 = vld [vmem:[%s5337_s1 + $0x3c4] sm:$0xf0] }
  0x32   :  { %1527 = vmatpush.bf16.msrb.mxu0 %v2907_v54  ;;  %1576 = vmatpush.bf16.msrb.mxu1 %v2971_v55  ;;  %v3827_v49 = vor.u32 %v3250_v41, %v2546_v40  ;;  %v3345_v54 = vld [vmem:[%s5337_s1 + $0x284] sm:$0xf0]  ;;  %v3198_v40 = vld [vmem:[%s5338_s0 + $0x30] sm:$0xf0]  ;;  %v2340_v41 = vld [vmem:[%s5338_s0 + $0x2c] sm:$0xf0] }
  0x33   :  { %1361 = vmatmul.bf16.gmra.mxu2 %v3728_v63  ;;  %1341 = vmatmul.bf16.gmra.mxu0 %v3730_v0  ;;  %v2939_v55 = vor.u32 %v3345_v54, %v2938_v53  ;;  %v3955_v45 = vor.u32 %v3198_v40, %v2346_v39  ;;  %v3957_v46 = vor.u32 %v3193_v38, %v2340_v41  ;;  %v3371_v53 = vld [vmem:[%s5337_s1 + $0x354] sm:$0xf0]  ;;  %v3106_v54 = vld [vmem:[%s5337_s1 + $0x3d0] sm:$0xf]  ;;  %v3162_v30 = vld [vmem:[%s5337_s1 + $0x440] sm:$0xf] }
  0x34   :  { %1430 = vmatpush.bf16.msrb.mxu2 %v2771_v58  ;;  %1410 = vmatmul.bf16.gmra.mxu3 %v3741_v6  ;;  %v3122_v58 = vld [vmem:[%s5337_s1 + $0x3f0] sm:$0xf]  ;;  %5380 = vst [vmem:[#allocation5_spill] sm:$0xff] %v3959_v47  ;;  %v3401_v31 = vld [vmem:[%s5337_s1 + $0x444] sm:$0xf0] }
  0x35   :  { %1479 = vmatpush.bf16.msrb.mxu3 %v2835_v59  ;;  %1390 = vmatmul.bf16.gmra.mxu1 %v3743_v7  ;;  %v3059_v59 = vor.u32 %v3375_v57, %v3058_v56  ;;  %v3123_v61 = vor.u32 %v3391_v60, %v3122_v58  ;;  %v3387_v56 = vld [vmem:[%s5337_s1 + $0x3d4] sm:$0xf0]  ;;  %v3170_v58 = vld [vmem:[%s5337_s1 + $0x450] sm:$0xf]  ;;  %v3274_v60 = vld [vmem:[%s5337_s1 + $0x54] sm:$0xf] }
  0x36   :  { %1528 = vmatpush.bf16.msrb.mxu0 %v2899_v10  ;;  %1577 = vmatpush.bf16.msrb.mxu1 %v2963_v11  ;;  %v2676_v10 = vld [vmem:[%s5337_s1 + $0x78] sm:$0xf0]  ;;  %v3107_v57 = vor.u32 %v3387_v56, %v3106_v54  ;;  %v2663_v1 = vor.u32 %v3274_v60, %v2660_v62  ;;  %v2418_v39 = vld [vmem:[%s5338_s0 + $0xa0] sm:$0xf]  ;;  %v3216_v40 = vld [vmem:[%s5338_s0 + $0xc0] sm:$0xf0] }
  0x37   :  { %v2679_v11 = vor.u32 %v3278_v2, %v2676_v10  ;;  %v2374_v2 = vld [vmem:[%s5338_s0 + $0x50] sm:$0xf]  ;;  %v3202_v10 = vld [vmem:[%s5338_s0 + $0x54] sm:$0xf]  ;;  %v3211_v38 = vld [vmem:[%s5338_s0 + $0x9c] sm:$0xf] }
  0x38   :  { %1431 = vmatpush.bf16.msrb.mxu2 %v2763_v12  ;;  %v2582_v12 = vld [vmem:[%s5338_s0 + $0x1f8] sm:$0xf]  ;;  %v2412_v41 = vld [vmem:[%s5338_s0 + $0xbc] sm:$0xf0]  ;;  %v3212_v42 = vld [vmem:[%s5338_s0 + $0xa4] sm:$0xf] }
  0x39   :  { %1480 = vmatpush.bf16.msrb.mxu3 %v2827_v13  ;;  %v3259_v13 = vld [vmem:[%s5338_s0 + $0x218] sm:$0xf0]  ;;  %v2420_v43 = vld [vmem:[%s5338_s0 + $0xc4] sm:$0xf0]  ;;  %v4077_v54 = vor.u32 %v3211_v38, %v2412_v41  ;;  %v3026_v56 = vld [vmem:[%s5337_s1 + $0x330] sm:$0xf] }
  0x3a   :  { %1529 = vmatpush.bf16.msrb.mxu0 %v2891_v24  ;;  %1578 = vmatpush.bf16.msrb.mxu1 %v2955_v25  ;;  %v3050_v24 = vld [vmem:[%s5337_s1 + $0x360] sm:$0xf]  ;;  %v3373_v25 = vld [vmem:[%s5337_s1 + $0x364] sm:$0xf0]  ;;  %v3383_v60 = vld [vmem:[%s5337_s1 + $0x3b4] sm:$0xf0] }
  0x3b   :  { %v3051_v27 = vor.u32 %v3373_v25, %v3050_v24  ;;  %v3034_v24 = vld [vmem:[%s5337_s1 + $0x340] sm:$0xf]  ;;  %v3369_v25 = vld [vmem:[%s5337_s1 + $0x344] sm:$0xf0]  ;;  %v3154_v62 = vld [vmem:[%s5337_s1 + $0x430] sm:$0xf] }
  0x3c   :  { %1432 = vmatpush.bf16.msrb.mxu2 %v2755_v19  ;;  %v2440_v19 = vld [vmem:[%s5338_s0 + $0xfc] sm:$0xf0]  ;;  %v3233_v41 = vld [vmem:[%s5338_s0 + $0x148] sm:$0xf0] }
  0x3d   :  { %1481 = vmatpush.bf16.msrb.mxu3 %v2819_v20  ;;  %v3893_v20 = vor.u32 %v3259_v13, %v2582_v12  ;;  %v3899_v23 = vor.u32 %v3219_v18, %v2440_v19  ;;  %v3207_v12 = vld [vmem:[%s5338_s0 + $0x78] sm:$0xf0]  ;;  %v2376_v13 = vld [vmem:[%s5338_s0 + $0x74] sm:$0xf0]  ;;  %v4019_v19 = vor.u32 %v3203_v14, %v2384_v15  ;;  %v2448_v14 = vld [vmem:[%s5338_s0 + $0x104] sm:$0xf0] }
  0x3e   :  { %1530 = vmatpush.bf16.msrb.mxu0 %v2883_v32  ;;  %1579 = vmatpush.bf16.msrb.mxu1 %v2947_v37  ;;  %v3276_v32 = vld [vmem:[%s5337_s1 + $0x64] sm:$0xf]  ;;  %v3197_v37 = vld [vmem:[%s5338_s0 + $0x28] sm:$0xf0]  ;;  %v4017_v18 = vor.u32 %v3202_v10, %v2376_v13  ;;  %v3146_v38 = vld [vmem:[%s5337_s1 + $0x420] sm:$0xf] }
  0x3f   :  { %5381 = vst [vmem:[#allocation6_spill] sm:$0xff] %v4019_v19  ;;  %v3225_v13 = vld [vmem:[%s5338_s0 + $0x108] sm:$0xf0] }
  0x40   :  { %1433 = vmatpush.bf16.msrb.mxu2 %v2747_v35  ;;  %v2671_v35 = vor.u32 %v3276_v32, %v2668_v34  ;;  %v3272_v32 = vld [vmem:[%s5337_s1 + $0x44] sm:$0xf]  ;;  %v2652_v34 = vld [vmem:[%s5337_s1 + $0x48] sm:$0xf0] }
  0x41   :  { %1482 = vmatpush.bf16.msrb.mxu3 %v2811_v36  ;;  %v2338_v36 = vld [vmem:[%s5338_s0 + $0x8] sm:$0xf]  ;;  %v3221_v15 = vld [vmem:[%s5338_s0 + $0xec] sm:$0xf] }
  0x42   :  { %1531 = vmatpush.bf16.msrb.mxu0 %v2875_v48  ;;  %1580 = vmatpush.bf16.msrb.mxu1 %v2939_v55  ;;  %v3953_v44 = vor.u32 %v3197_v37, %v2338_v36  ;;  %v3042_v48 = vld [vmem:[%s5337_s1 + $0x350] sm:$0xf]  ;;  %v2410_v36 = vld [vmem:[%s5338_s0 + $0x98] sm:$0xf]  ;;  %v3215_v37 = vld [vmem:[%s5338_s0 + $0xb8] sm:$0xf0] }
  0x43   :  { %1366 = vmatmul.bf16.gmra.mxu2 %v3827_v49  ;;  %1346 = vmatmul.bf16.gmra.mxu0 %v3829_v50  ;;  %v3043_v55 = vor.u32 %v3371_v53, %v3042_v48  ;;  %v4073_v48 = vor.u32 %v3215_v37, %v2410_v36  ;;  %v4075_v53 = vor.u32 %v3216_v40, %v2418_v39  ;;  %v3381_v36 = vld [vmem:[%s5337_s1 + $0x3a4] sm:$0xf0] }
  0x44   :  { %1415 = vmatmul.bf16.gmra.mxu3 %v3831_v51  ;;  %1622 = vmatpush.bf16.msra.mxu2 %v3059_v59  ;;  %v3403_v59 = vld [vmem:[%s5337_s1 + $0x454] sm:$0xf0]  ;;  %v3397_v39 = vld [vmem:[%s5337_s1 + $0x424] sm:$0xf0] }
  0x45   :  { %1395 = vmatmul.bf16.gmra.mxu1 %v3833_v52  ;;  %1671 = vmatpush.bf16.msra.mxu3 %v3123_v61  ;;  %v3171_v61 = vor.u32 %v3403_v59, %v3170_v58  ;;  %v3090_v58 = vld [vmem:[%s5337_s1 + $0x3b0] sm:$0xf]  ;;  %v2482_v40 = vld [vmem:[%s5338_s0 + $0x128] sm:$0xf] }
  0x46   :  { %1720 = vmatpush.bf16.msra.mxu0 %v3187_v5  ;;  %1769 = vmatpush.bf16.msra.mxu1 %v2679_v11  ;;  %v3206_v5 = vld [vmem:[%s5338_s0 + $0x70] sm:$0xf0]  ;;  %v2382_v11 = vld [vmem:[%s5338_s0 + $0x58] sm:$0xf] }
  0x47   :  { %v4013_v16 = vor.u32 %v3206_v5, %v2374_v2  ;;  %v4015_v17 = vor.u32 %v3207_v12, %v2382_v11  ;;  %v2446_v2 = vld [vmem:[%s5338_s0 + $0xe0] sm:$0xf]  ;;  %v3224_v5 = vld [vmem:[%s5338_s0 + $0x100] sm:$0xf0]  ;;  %v2454_v12 = vld [vmem:[%s5338_s0 + $0xe8] sm:$0xf] }
  0x48   :  { %1623 = vmatpush.bf16.msra.mxu2 %v3051_v27  ;;  %v3035_v27 = vor.u32 %v3369_v25, %v3034_v24  ;;  %v3220_v11 = vld [vmem:[%s5338_s0 + $0xe4] sm:$0xf]  ;;  %v2456_v24 = vld [vmem:[%s5338_s0 + $0x10c] sm:$0xf0]  ;;  %v4127_v25 = vor.u32 %v3224_v5, %v2446_v2 }
  0x49   :  { %1672 = vmatpush.bf16.msra.mxu3 %v3115_v29  ;;  %v3099_v29 = vor.u32 %v3385_v28, %v3098_v26  ;;  %v4129_v26 = vor.u32 %v3225_v13, %v2454_v12  ;;  %v4133_v28 = vor.u32 %v3221_v15, %v2456_v24  ;;  %v3010_v15 = vld [vmem:[%s5337_s1 + $0x310] sm:$0xf]  ;;  %v3363_v24 = vld [vmem:[%s5337_s1 + $0x314] sm:$0xf0] }
  0x4a   :  { %1721 = vmatpush.bf16.msra.mxu0 %v3179_v33  ;;  %1770 = vmatpush.bf16.msra.mxu1 %v2671_v35  ;;  %v3163_v33 = vor.u32 %v3401_v31, %v3162_v30  ;;  %v2655_v35 = vor.u32 %v3272_v32, %v2652_v34  ;;  %v2644_v30 = vld [vmem:[%s5337_s1 + $0x38] sm:$0xf0]  ;;  %v3018_v32 = vld [vmem:[%s5337_s1 + $0x320] sm:$0xf] }
  0x4b   :  { %5383 = vst [vmem:[#allocation8_spill] sm:$0xff] %v4133_v28  ;;  %v3082_v34 = vld [vmem:[%s5337_s1 + $0x3a0] sm:$0xf] }
  0x4c   :  { %1624 = vmatpush.bf16.msra.mxu2 %v3043_v55  ;;  %v4079_v55 = vor.u32 %v3212_v42, %v2420_v43  ;;  %v3083_v37 = vor.u32 %v3381_v36, %v3082_v34  ;;  %v3147_v42 = vor.u32 %v3397_v39, %v3146_v38  ;;  %v3229_v43 = vld [vmem:[%s5338_s0 + $0x12c] sm:$0xf]  ;;  %v3138_v39 = vld [vmem:[%s5337_s1 + $0x410] sm:$0xf] }
  0x4d   :  { %1673 = vmatpush.bf16.msra.mxu3 %v3107_v57  ;;  %v3367_v57 = vld [vmem:[%s5337_s1 + $0x334] sm:$0xf0] }
  0x4e   :  { %1722 = vmatpush.bf16.msra.mxu0 %v3171_v61  ;;  %1771 = vmatpush.bf16.msra.mxu1 %v2663_v1  ;;  %5382 = vst [vmem:[#allocation7_spill] sm:$0xff] %v4079_v55  ;;  %v3027_v59 = vor.u32 %v3367_v57, %v3026_v56  ;;  %v3091_v61 = vor.u32 %v3383_v60, %v3090_v58  ;;  %v3399_v1 = vld [vmem:[%s5337_s1 + $0x434] sm:$0xf0]  ;;  %v2490_v56 = vld [vmem:[%s5338_s0 + $0x130] sm:$0xf] }
  0x4f   :  { %v3155_v10 = vor.u32 %v3399_v1, %v3154_v62  ;;  %v3234_v57 = vld [vmem:[%s5338_s0 + $0x150] sm:$0xf0]  ;;  %v2484_v58 = vld [vmem:[%s5338_s0 + $0x14c] sm:$0xf0]  ;;  %v2492_v60 = vld [vmem:[%s5338_s0 + $0x154] sm:$0xf0] }
  0x50   :  { %1625 = vmatpush.bf16.msra.mxu2 %v3035_v27  ;;  %v4131_v27 = vor.u32 %v3220_v11, %v2448_v14  ;;  %v4189_v62 = vor.u32 %v3234_v57, %v2490_v56  ;;  %v4191_v2 = vor.u32 %v3229_v43, %v2484_v58  ;;  %v2636_v11 = vld [vmem:[%s5337_s1 + $0x28] sm:$0xf0]  ;;  %v3238_v56 = vld [vmem:[%s5338_s0 + $0x174] sm:$0xf]  ;;  %v2526_v57 = vld [vmem:[%s5338_s0 + $0x178] sm:$0xf] }
  0x51   :  { %1674 = vmatpush.bf16.msra.mxu3 %v3099_v29  ;;  %v3270_v29 = vld [vmem:[%s5337_s1 + $0x34] sm:$0xf]  ;;  %v3243_v58 = vld [vmem:[%s5338_s0 + $0x198] sm:$0xf0] }
  0x52   :  { %1723 = vmatpush.bf16.msra.mxu0 %v3163_v33  ;;  %1772 = vmatpush.bf16.msra.mxu1 %v2655_v35  ;;  %v2647_v31 = vor.u32 %v3270_v29, %v2644_v30  ;;  %v3365_v33 = vld [vmem:[%s5337_s1 + $0x324] sm:$0xf0]  ;;  %v3074_v29 = vld [vmem:[%s5337_s1 + $0x390] sm:$0xf]  ;;  %v3011_v30 = vor.u32 %v3363_v24, %v3010_v15 }
  0x53   :  { %1371 = vmatmul.bf16.gmra.mxu2 %v3893_v20  ;;  %1351 = vmatmul.bf16.gmra.mxu0 %v3895_v21  ;;  %v3019_v35 = vor.u32 %v3365_v33, %v3018_v32 }
  0x54   :  { %1420 = vmatmul.bf16.gmra.mxu3 %v3897_v22  ;;  %1626 = vmatpush.bf16.msra.mxu2 %v3027_v59  ;;  %v3230_v59 = vld [vmem:[%s5338_s0 + $0x134] sm:$0xf] }
  0x55   :  { %1400 = vmatmul.bf16.gmra.mxu1 %v3899_v23  ;;  %1675 = vmatpush.bf16.msra.mxu3 %v3091_v61  ;;  %v4187_v61 = vor.u32 %v3233_v41, %v2482_v40  ;;  %v4193_v5 = vor.u32 %v3230_v59, %v2492_v60  ;;  %v3395_v40 = vld [vmem:[%s5337_s1 + $0x414] sm:$0xf0]  ;;  %v2518_v41 = vld [vmem:[%s5338_s0 + $0x170] sm:$0xf]  ;;  %v3239_v60 = vld [vmem:[%s5338_s0 + $0x17c] sm:$0xf] }
  0x56   :  { %1724 = vmatpush.bf16.msra.mxu0 %v3155_v10  ;;  %1773 = vmatpush.bf16.msra.mxu1 %v2647_v31  ;;  %v3268_v10 = vld [vmem:[%s5337_s1 + $0x24] sm:$0xf]  ;;  %v3379_v31 = vld [vmem:[%s5337_s1 + $0x394] sm:$0xf0]  ;;  %v3139_v43 = vor.u32 %v3395_v40, %v3138_v39  ;;  %v3361_v39 = vld [vmem:[%s5337_s1 + $0x304] sm:$0xf0] }
  0x57   :  { %5384 = vst [vmem:[#allocation9_spill] sm:$0xff] %v4193_v5  ;;  %v2639_v13 = vor.u32 %v3268_v10, %v2636_v11  ;;  %v3075_v33 = vor.u32 %v3379_v31, %v3074_v29  ;;  %v2520_v59 = vld [vmem:[%s5338_s0 + $0x194] sm:$0xf0]  ;;  %v3266_v31 = vld [vmem:[%s5337_s1 + $0x14] sm:$0xf] }
  0x58   :  { %1627 = vmatpush.bf16.msra.mxu2 %v3019_v35  ;;  %v4259_v29 = vor.u32 %v3238_v56, %v2520_v59  ;;  %v3066_v40 = vld [vmem:[%s5337_s1 + $0x380] sm:$0xf] }
  0x59   :  { %1676 = vmatpush.bf16.msra.mxu3 %v3083_v37 }
  0x5a   :  { %1725 = vmatpush.bf16.msra.mxu0 %v3147_v42  ;;  %1774 = vmatpush.bf16.msra.mxu1 %v2639_v13  ;;  %v3242_v42 = vld [vmem:[%s5338_s0 + $0x190] sm:$0xf0]  ;;  %v4255_v13 = vor.u32 %v3243_v58, %v2526_v57  ;;  %5387 = vst [vmem:[#allocation12_spill] sm:$0xff] %v4259_v29 }
  0x5c   :  { %1628 = vmatpush.bf16.msra.mxu2 %v3011_v30  ;;  %5386 = vst [vmem:[#allocation11_spill] sm:$0xff] %v4255_v13 }
  0x5d   :  { %1677 = vmatpush.bf16.msra.mxu3 %v3075_v33 }
  0x5e   :  { %1726 = vmatpush.bf16.msra.mxu0 %v3139_v43 }
  0x63   :  { %1434 = vmatmul.bf16.vlgmr.msrb.gmra.mxu2 %v3953_v44  ;;  %1532 = vmatmul.bf16.vlgmr.msrb.gmra.mxu0 %v3955_v45 }
  0x64   :  { %1483 = vmatmul.bf16.vlgmr.msrb.gmra.mxu3 %v3957_v46 }
  0x65   :  { %1581 = vmatmul.bf16.vlgmr.msrb.gmra.mxu1 %v3959_v47 }
  0x73   :  { %1439 = vmatmul.bf16.gmra.mxu2 %v4013_v16  ;;  %1537 = vmatmul.bf16.gmra.mxu0 %v4015_v17 }
  0x74   :  { %1488 = vmatmul.bf16.gmra.mxu3 %v4017_v18 }
  0x75   :  { %1586 = vmatmul.bf16.gmra.mxu1 %v4019_v19 }
  0x83   :  { %1444 = vmatmul.bf16.gmra.mxu2 %v4073_v48  ;;  %1542 = vmatmul.bf16.gmra.mxu0 %v4075_v53 }
  0x84   :  { %1493 = vmatmul.bf16.gmra.mxu3 %v4077_v54 }
  0x85   :  { %1591 = vmatmul.bf16.gmra.mxu1 %v4079_v55 }
  0x93   :  { %1449 = vmatmul.bf16.gmra.mxu2 %v4127_v25  ;;  %1547 = vmatmul.bf16.gmra.mxu0 %v4129_v26 }
  0x94   :  { %1498 = vmatmul.bf16.gmra.mxu3 %v4131_v27 }
  0x95   :  { %1596 = vmatmul.bf16.gmra.mxu1 %v4133_v28 }
  0xa0   :  { %v1337_v1 = vpop.f32.mrf.mxu0 }
  0xa2   :  { %v1386_v12 = vpop.f32.mrf.mxu1 }
  0xa3   :  { %v4201_v14 = vadd.f32 %v1386_v12, %v1337_v1  ;;  %1454 = vmatmul.bf16.gmra.mxu2 %v4187_v61  ;;  %1552 = vmatmul.bf16.gmra.mxu0 %v4189_v62  ;;  %v2528_v1 = vld [vmem:[%s5338_s0 + $0x19c] sm:$0xf0]  ;;  %v4253_v12 = vor.u32 %v3242_v42, %v2518_v41  ;;  %v3377_v42 = vld [vmem:[%s5337_s1 + $0x384] sm:$0xf0] }
  0xa4   :  { %1503 = vmatmul.bf16.gmra.mxu3 %v4191_v2  ;;  %v4261_v30 = vor.u32 %v3239_v60, %v2528_v1  ;;  %v3067_v56 = vor.u32 %v3377_v42, %v3066_v40  ;;  %v3248_v40 = vld [vmem:[%s5338_s0 + $0x1c4] sm:$0xf] }
  0xa5   :  { %1601 = vmatmul.bf16.gmra.mxu1 %v4193_v5  ;;  %5385 = vst [vmem:[#allocation10_spill] sm:$0xff] %v4253_v12 }
  0xa6   :  { %v1357_v32 = vpop.f32.mrf.mxu2  ;;  %5388 = vst [vmem:[#allocation13_spill] sm:$0xff] %v4261_v30  ;;  %1678 = vmatpush.bf16.msra.mxu3 %v3067_v56 }
  0xa7   :  { %v1406_v34 = vpop.f32.mrf.mxu3 }
  0xa8   :  { %v4219_v35 = vadd.f32 %v1406_v34, %v1357_v32  ;;  %v1339_v36 = vpop.f32.mrf.mxu0  ;;  %v2628_v32 = vld [vmem:[%s5337_s1 + $0x18] sm:$0xf0] }
  0xa9   :  { %v2631_v34 = vor.u32 %v3266_v31, %v2628_v32  ;;  %v3251_v31 = vld [vmem:[%s5338_s0 + $0x1d8] sm:$0xf0] }
  0xaa   :  { %v1388_v37 = vpop.f32.mrf.mxu1 }
  0xab   :  { %v4221_v38 = vadd.f32 %v1388_v37, %v1339_v36  ;;  %v3002_v37 = vld [vmem:[%s5337_s1 + $0x300] sm:$0xf]  ;;  %1775 = vmatpush.bf16.msra.mxu1 %v2631_v34 }
  0xac   :  { %v3003_v41 = vor.u32 %v3361_v39, %v3002_v37  ;;  %v2562_v34 = vld [vmem:[%s5338_s0 + $0x1c0] sm:$0xf]  ;;  %v3252_v37 = vld [vmem:[%s5338_s0 + $0x1e0] sm:$0xf0] }
  0xad   :  { %v2556_v39 = vld [vmem:[%s5338_s0 + $0x1dc] sm:$0xf0] }
  0xae   :  { %v1359_v10 = vpop.f32.mrf.mxu2  ;;  %1629 = vmatpush.bf16.msra.mxu2 %v3003_v41  ;;  %v2564_v41 = vld [vmem:[%s5338_s0 + $0x1e4] sm:$0xf0] }
  0xaf   :  { %v1408_v11 = vpop.f32.mrf.mxu3 }
  0xb0   :  { %v4257_v15 = vadd.f32 %v1408_v11, %v1359_v10  ;;  %v1342_v24 = vpop.f32.mrf.mxu0  ;;  %v3130_v10 = vld [vmem:[%s5337_s1 + $0x400] sm:$0xf]  ;;  %v3393_v11 = vld [vmem:[%s5337_s1 + $0x404] sm:$0xf0] }
  0xb1   :  { %v3131_v32 = vor.u32 %v3393_v11, %v3130_v10  ;;  %v4329_v11 = vor.u32 %v3248_v40, %v2564_v41 }
  0xb2   :  { %v1391_v33 = vpop.f32.mrf.mxu1 }
  0xb3   :  { %v4269_v36 = vadd.f32 %v1391_v33, %v1342_v24  ;;  %1459 = vmatmul.bf16.gmra.mxu2 %v4253_v12  ;;  %1557 = vmatmul.bf16.gmra.mxu0 %v4255_v13  ;;  %v2554_v24 = vld [vmem:[%s5338_s0 + $0x1b8] sm:$0xf]  ;;  %v3247_v33 = vld [vmem:[%s5338_s0 + $0x1bc] sm:$0xf]  ;;  %5392 = vst [vmem:[#allocation17_spill] sm:$0xff] %v4329_v11 }
  0xb4   :  { %1508 = vmatmul.bf16.gmra.mxu3 %v4259_v29  ;;  %1727 = vmatpush.bf16.msra.mxu0 %v3131_v32  ;;  %v4321_v56 = vor.u32 %v3251_v31, %v2554_v24  ;;  %v4327_v10 = vor.u32 %v3247_v33, %v2556_v39  ;;  %v2620_v32 = vld [vmem:[%s5337_s1 + $0x8] sm:$0xf0]  ;;  %v3294_v33 = vld [vmem:[%s5337_s1 + $0xf4] sm:$0xf] }
  0xb5   :  { %1606 = vmatmul.bf16.gmra.mxu1 %v4261_v30  ;;  %v3264_v30 = vld [vmem:[%s5337_s1 + $0x4] sm:$0xf] }
  0xb6   :  { %v1362_v43 = vpop.f32.mrf.mxu2  ;;  %5389 = vst [vmem:[#allocation14_spill] sm:$0xff] %v4321_v56  ;;  %v2623_v24 = vor.u32 %v3264_v30, %v2620_v32 }
  0xb7   :  { %v1411_v57 = vpop.f32.mrf.mxu3  ;;  %5391 = vst [vmem:[#allocation16_spill] sm:$0xff] %v4327_v10 }
  0xb8   :  { %v4287_v58 = vadd.f32 %v1411_v57, %v1362_v43  ;;  %v1344_v59 = vpop.f32.mrf.mxu0  ;;  %v4323_v57 = vor.u32 %v3252_v37, %v2562_v34  ;;  %v2740_v34 = vld [vmem:[%s5337_s1 + $0xf8] sm:$0xf0]  ;;  %1776 = vmatpush.bf16.msra.mxu1 %v2623_v24  ;;  %v2590_v24 = vld [vmem:[%s5338_s0 + $0x200] sm:$0xf] }
  0xb9   :  { %v2743_v30 = vor.u32 %v3294_v33, %v2740_v34  ;;  %v2804_v37 = vld [vmem:[%s5337_s1 + $0x178] sm:$0xf0]  ;;  %v3260_v33 = vld [vmem:[%s5338_s0 + $0x220] sm:$0xf0]  ;;  %v3326_v34 = vld [vmem:[%s5337_s1 + $0x1f4] sm:$0xf] }
  0xba   :  { %v1393_v60 = vpop.f32.mrf.mxu1  ;;  %5390 = vst [vmem:[#allocation15_spill] sm:$0xff] %v4323_v57  ;;  %v4389_v55 = vor.u32 %v3260_v33, %v2590_v24  ;;  %v3342_v24 = vld [vmem:[%s5337_s1 + $0x274] sm:$0xf]  ;;  %v2732_v33 = vld [vmem:[%s5337_s1 + $0xe8] sm:$0xf0] }
  0xbb   :  { %v4289_v1 = vadd.f32 %v1393_v60, %v1344_v59  ;;  %1818 = vmatpush.bf16.msrb.mxu2 %v2743_v30  ;;  %v3256_v30 = vld [vmem:[%s5338_s0 + $0x204] sm:$0xf] }
  0xbc   :  { %5393 = vst [vmem:[#allocation18_spill] sm:$0xff] %v4389_v55 }
  0xbe   :  { %v1364_v42 = vpop.f32.mrf.mxu2 }
  0xbf   :  { %v1413_v43 = vpop.f32.mrf.mxu3 }
  0xc0   :  { %v4325_v59 = vadd.f32 %v1413_v43, %v1364_v42  ;;  %v1347_v60 = vpop.f32.mrf.mxu0 }
  0xc2   :  { %v1396_v5 = vpop.f32.mrf.mxu1 }
  0xc3   :  { %v4337_v31 = vadd.f32 %v1396_v5, %v1347_v60  ;;  %1464 = vmatmul.bf16.gmra.mxu2 %v4321_v56  ;;  %1562 = vmatmul.bf16.gmra.mxu0 %v4323_v57  ;;  %v3310_v5 = vld [vmem:[%s5337_s1 + $0x174] sm:$0xf] }
  0xc4   :  { %1513 = vmatmul.bf16.gmra.mxu3 %v4327_v10  ;;  %v2807_v40 = vor.u32 %v3310_v5, %v2804_v37  ;;  %v2868_v5 = vld [vmem:[%s5337_s1 + $0x1f8] sm:$0xf0]  ;;  %v2598_v37 = vld [vmem:[%s5338_s0 + $0x208] sm:$0xf] }
  0xc5   :  { %1611 = vmatmul.bf16.gmra.mxu1 %v4329_v11 }
  0xc6   :  { %v1367_v39 = vpop.f32.mrf.mxu2  ;;  %1867 = vmatpush.bf16.msrb.mxu3 %v2807_v40  ;;  %v2871_v40 = vor.u32 %v3326_v34, %v2868_v5 }
  0xc7   :  { %v1416_v41 = vpop.f32.mrf.mxu3 }
  0xc8   :  { %v4355_v42 = vadd.f32 %v1416_v41, %v1367_v39  ;;  %v1349_v43 = vpop.f32.mrf.mxu0  ;;  %v3261_v39 = vld [vmem:[%s5338_s0 + $0x228] sm:$0xf0]  ;;  %v2592_v41 = vld [vmem:[%s5338_s0 + $0x224] sm:$0xf0]  ;;  %1916 = vmatpush.bf16.msrb.mxu0 %v2871_v40 }
  0xc9   :  { %v4391_v19 = vor.u32 %v3261_v39, %v2598_v37  ;;  %v4395_v47 = vor.u32 %v3256_v30, %v2592_v41  ;;  %v3308_v37 = vld [vmem:[%s5337_s1 + $0x164] sm:$0xf]  ;;  %v2796_v39 = vld [vmem:[%s5337_s1 + $0x168] sm:$0xf0] }
  0xca   :  { %v1398_v60 = vpop.f32.mrf.mxu1  ;;  %v2799_v41 = vor.u32 %v3308_v37, %v2796_v39  ;;  %v2362_v37 = vld [vmem:[%s5338_s0 + $0x20] sm:$0xf]  ;;  %v3200_v39 = vld [vmem:[%s5338_s0 + $0x40] sm:$0xf0] }
  0xcb   :  { %v4357_v32 = vadd.f32 %v1398_v60, %v1349_v43  ;;  %v3257_v43 = vld [vmem:[%s5338_s0 + $0x20c] sm:$0xf]  ;;  %v2600_v60 = vld [vmem:[%s5338_s0 + $0x22c] sm:$0xf0]  ;;  %5394 = vst [vmem:[#allocation19_spill] sm:$0xff] %v4391_v19 }
  0xcc   :  { %5395 = vst [vmem:[#allocation20_spill] sm:$0xff] %v4395_v47  ;;  %v4397_v22 = vor.u32 %v3257_v43, %v2600_v60  ;;  %1868 = vmatpush.bf16.msrb.mxu3 %v2799_v41  ;;  %v3195_v41 = vld [vmem:[%s5338_s0 + $0x1c] sm:$0xf] }
  0xce   :  { %v1369_v11 = vpop.f32.mrf.mxu2  ;;  %5396 = vst [vmem:[#allocation21_spill] sm:$0xff] %v4397_v22 }
  0xcf   :  { %v1418_v28 = vpop.f32.mrf.mxu3 }
  0xd0   :  { %v4393_v34 = vadd.f32 %v1418_v28, %v1369_v11  ;;  %v1352_v5 = vpop.f32.mrf.mxu0  ;;  %v2932_v28 = vld [vmem:[%s5337_s1 + $0x278] sm:$0xf0] }
  0xd1   :  { %v2935_v11 = vor.u32 %v3342_v24, %v2932_v28 }
  0xd2   :  { %v1401_v57 = vpop.f32.mrf.mxu1 }
  0xd3   :  { %v4399_v56 = vadd.f32 %v1401_v57, %v1352_v5  ;;  %1469 = vmatmul.bf16.gmra.mxu2 %v4389_v55  ;;  %1567 = vmatmul.bf16.gmra.mxu0 %v4391_v19  ;;  %v3292_v57 = vld [vmem:[%s5337_s1 + $0xe4] sm:$0xf]  ;;  %v4453_v19 = vor.u32 %v3200_v39, %v2362_v37  ;;  %v3290_v37 = vld [vmem:[%s5337_s1 + $0xd4] sm:$0xf]  ;;  %v2724_v39 = vld [vmem:[%s5337_s1 + $0xd8] sm:$0xf0] }
  0xd4   :  { %1518 = vmatmul.bf16.gmra.mxu3 %v4395_v47  ;;  %v2735_v30 = vor.u32 %v3292_v57, %v2732_v33  ;;  %1965 = vmatpush.bf16.msrb.mxu1 %v2935_v11  ;;  %v2354_v57 = vld [vmem:[%s5338_s0 + $0x18] sm:$0xf]  ;;  %v3324_v33 = vld [vmem:[%s5337_s1 + $0x1e4] sm:$0xf]  ;;  %v2860_v11 = vld [vmem:[%s5337_s1 + $0x1e8] sm:$0xf0] }
  0xd5   :  { %1616 = vmatmul.bf16.gmra.mxu1 %v4397_v22  ;;  %5398 = vst [vmem:[#allocation23_spill] sm:$0xff] %v4453_v19 }
  0xd6   :  { %v1372_v40 = vpop.f32.mrf.mxu2  ;;  %1819 = vmatpush.bf16.msrb.mxu2 %v2735_v30  ;;  %v3199_v30 = vld [vmem:[%s5338_s0 + $0x38] sm:$0xf0] }
  0xd7   :  { %v1421_v43 = vpop.f32.mrf.mxu3  ;;  %v4451_v22 = vor.u32 %v3199_v30, %v2354_v57  ;;  %v2924_v57 = vld [vmem:[%s5337_s1 + $0x268] sm:$0xf0] }
  0xd8   :  { %v4423_v60 = vadd.f32 %v1421_v43, %v1372_v40  ;;  %v1354_v5 = vpop.f32.mrf.mxu0  ;;  %v2863_v40 = vor.u32 %v3324_v33, %v2860_v11  ;;  %v2356_v43 = vld [vmem:[%s5338_s0 + $0x3c] sm:$0xf0]  ;;  %v3340_v11 = vld [vmem:[%s5337_s1 + $0x264] sm:$0xf] }
  0xd9   :  { %5397 = vst [vmem:[#allocation22_spill] sm:$0xff] %v4451_v22  ;;  %v4457_v10 = vor.u32 %v3195_v41, %v2356_v43  ;;  %v2927_v30 = vor.u32 %v3340_v11, %v2924_v57  ;;  %v3306_v41 = vld [vmem:[%s5337_s1 + $0x154] sm:$0xf]  ;;  %v2788_v43 = vld [vmem:[%s5337_s1 + $0x158] sm:$0xf0] }
  0xda   :  { %v1403_v24 = vpop.f32.mrf.mxu1  ;;  %1917 = vmatpush.bf16.msrb.mxu0 %v2863_v40  ;;  %v2727_v40 = vor.u32 %v3290_v37, %v2724_v39  ;;  %v2390_v39 = vld [vmem:[%s5338_s0 + $0x60] sm:$0xf] }
  0xdb   :  { %v4425_v28 = vadd.f32 %v1403_v24, %v1354_v5  ;;  %5399 = vst [vmem:[#allocation24_spill] sm:$0xff] %v4457_v10  ;;  %1966 = vmatpush.bf16.msrb.mxu1 %v2927_v30  ;;  %v2852_v30 = vld [vmem:[%s5337_s1 + $0x1d8] sm:$0xf0] }
  0xdc   :  { %1820 = vmatpush.bf16.msrb.mxu2 %v2727_v40 }
  0xde   :  { %v1374_v5 = vpop.f32.mrf.mxu2 }
  0xdf   :  { %v1423_v24 = vpop.f32.mrf.mxu3 }
  0xe0   :  { %v4455_v55 = vadd.f32 %v1423_v24, %v1374_v5  ;;  %v1533_v47 = vpop.f32.mrf.mxu0 }
  0xe2   :  { %v1582_v33 = vpop.f32.mrf.mxu1 }
  0xe3   :  { %1630 = vmatmul.bf16.vlgmr.msra.gmra.mxu2 %v4451_v22  ;;  %1728 = vmatmul.bf16.vlgmr.msra.gmra.mxu0 %v4453_v19 }
  0xe4   :  { %1679 = vmatmul.bf16.vlgmr.msra.gmra.mxu3 %v4457_v10  ;;  %v3322_v10 = vld [vmem:[%s5337_s1 + $0x1d4] sm:$0xf] }
  0xe5   :  { %1777 = vmatmul.bf16.vlgmr.msra.gmra.mxu1 %v3598_v4  ;;  %v2791_v4 = vor.u32 %v3306_v41, %v2788_v43  ;;  %v2855_v40 = vor.u32 %v3322_v10, %v2852_v30  ;;  %v3204_v41 = vld [vmem:[%s5338_s0 + $0x64] sm:$0xf]  ;;  %v2392_v43 = vld [vmem:[%s5338_s0 + $0x84] sm:$0xf0] }
  0xe6   :  { %v1435_v5 = vpop.f32.mrf.mxu2  ;;  %v4513_v30 = vor.u32 %v3204_v41, %v2392_v43 }
  0xe7   :  { %v1436_v24 = vadd.f32 %v1435_v5, %v4201_v14  ;;  %v1484_v11 = vpop.f32.mrf.mxu3  ;;  %1869 = vmatpush.bf16.msrb.mxu3 %v2791_v4  ;;  %v3208_v14 = vld [vmem:[%s5338_s0 + $0x80] sm:$0xf0]  ;;  %1918 = vmatpush.bf16.msrb.mxu0 %v2855_v40 }
  0xe8   :  { %v1535_v57 = vpop.f32.mrf.mxu0  ;;  %v4509_v51 = vor.u32 %v3208_v14, %v2390_v39  ;;  %v3304_v14 = vld [vmem:[%s5337_s1 + $0x144] sm:$0xf] }
  0xe9   :  { %v1485_v19 = vadd.f32 %v1484_v11, %v1436_v24 }
  0xea   :  { %v1584_v22 = vpop.f32.mrf.mxu1  ;;  %5400 = vst [vmem:[#allocation25_spill] sm:$0xff] %v4509_v51 }
  0xeb   :  { %v1534_v37 = vadd.f32 %v1533_v47, %v1485_v19  ;;  %v2398_v47 = vld [vmem:[%s5338_s0 + $0x68] sm:$0xf]  ;;  %v3209_v19 = vld [vmem:[%s5338_s0 + $0x88] sm:$0xf0] }
  0xec   :  { %v4511_v13 = vor.u32 %v3209_v19, %v2398_v47  ;;  %v2780_v47 = vld [vmem:[%s5337_s1 + $0x148] sm:$0xf0] }
  0xed   :  { %v4506_v5 = vadd.f32 %v1582_v33, %v1534_v37  ;;  %v3338_v33 = vld [vmem:[%s5337_s1 + $0x254] sm:$0xf]  ;;  %v2783_v40 = vor.u32 %v3304_v14, %v2780_v47 }
  0xee   :  { %v1437_v4 = vpop.f32.mrf.mxu2  ;;  %5401 = vst [vmem:[#allocation26_spill] sm:$0xff] %v4511_v13 }
  0xef   :  { %v1438_v24 = vadd.f32 %v1437_v4, %v4221_v38  ;;  %v1486_v11 = vpop.f32.mrf.mxu3  ;;  %v2916_v38 = vld [vmem:[%s5337_s1 + $0x258] sm:$0xf0]  ;;  %1870 = vmatpush.bf16.msrb.mxu3 %v2783_v40 }
  0xf0   :  { %v1538_v10 = vpop.f32.mrf.mxu0  ;;  %v2919_v37 = vor.u32 %v3338_v33, %v2916_v38  ;;  %v2426_v38 = vld [vmem:[%s5338_s0 + $0xa8] sm:$0xf] }
  0xf1   :  { %v1487_v12 = vadd.f32 %v1486_v11, %v1438_v24 }
  0xf2   :  { %v1587_v29 = vpop.f32.mrf.mxu1  ;;  %1967 = vmatpush.bf16.msrb.mxu1 %v2919_v37  ;;  %v3218_v37 = vld [vmem:[%s5338_s0 + $0xd0] sm:$0xf0] }
  0xf3   :  { %v1536_v6 = vadd.f32 %v1535_v57, %v1487_v12  ;;  %1635 = vmatmul.bf16.gmra.mxu2 %v4509_v51  ;;  %1733 = vmatmul.bf16.gmra.mxu0 %v4511_v13  ;;  %v3288_v12 = vld [vmem:[%s5337_s1 + $0xc4] sm:$0xf]  ;;  %v2716_v57 = vld [vmem:[%s5337_s1 + $0xc8] sm:$0xf0] }
  0xf4   :  { %1684 = vmatmul.bf16.gmra.mxu3 %v4513_v30  ;;  %v2719_v39 = vor.u32 %v3288_v12, %v2716_v57  ;;  %v3213_v57 = vld [vmem:[%s5338_s0 + $0xac] sm:$0xf] }
  0xf5   :  { %1782 = vmatmul.bf16.gmra.mxu1 %v3730_v0  ;;  %v4537_v19 = vadd.f32 %v1584_v22, %v1536_v6  ;;  %v3320_v6 = vld [vmem:[%s5337_s1 + $0x1c4] sm:$0xf]  ;;  %v2844_v22 = vld [vmem:[%s5337_s1 + $0x1c8] sm:$0xf0] }
  0xf6   :  { %v1440_v0 = vpop.f32.mrf.mxu2  ;;  %1821 = vmatpush.bf16.msrb.mxu2 %v2719_v39  ;;  %v2847_v12 = vor.u32 %v3320_v6, %v2844_v22  ;;  %v2428_v39 = vld [vmem:[%s5338_s0 + $0xcc] sm:$0xf0] }
  0xf7   :  { %v1441_v41 = vadd.f32 %v1440_v0, %v4269_v36  ;;  %v1489_v43 = vpop.f32.mrf.mxu3  ;;  %v3217_v36 = vld [vmem:[%s5338_s0 + $0xc8] sm:$0xf0]  ;;  %v4571_v6 = vor.u32 %v3213_v57, %v2428_v39 }
  0xf8   :  { %v1540_v4 = vpop.f32.mrf.mxu0  ;;  %1919 = vmatpush.bf16.msrb.mxu0 %v2847_v12 }
  0xf9   :  { %v1490_v24 = vadd.f32 %v1489_v43, %v1441_v41  ;;  %v4567_v41 = vor.u32 %v3217_v36, %v2426_v38  ;;  %v2708_v38 = vld [vmem:[%s5337_s1 + $0xb8] sm:$0xf0] }
  0xfa   :  { %v1589_v11 = vpop.f32.mrf.mxu1 }
  0xfb   :  { %v1539_v33 = vadd.f32 %v1538_v10, %v1490_v24  ;;  %v2434_v10 = vld [vmem:[%s5338_s0 + $0xb0] sm:$0xf]  ;;  %5402 = vst [vmem:[#allocation27_spill] sm:$0xff] %v4567_v41 }
  0xfc   :  { %v4569_v43 = vor.u32 %v3218_v37, %v2434_v10  ;;  %v3302_v10 = vld [vmem:[%s5337_s1 + $0x134] sm:$0xf]  ;;  %v2772_v37 = vld [vmem:[%s5337_s1 + $0x138] sm:$0xf0] }
  0xfd   :  { %v4564_v14 = vadd.f32 %v1587_v29, %v1539_v33  ;;  %v3336_v29 = vld [vmem:[%s5337_s1 + $0x244] sm:$0xf]  ;;  %v2775_v57 = vor.u32 %v3302_v10, %v2772_v37 }
  0xfe   :  { %v1442_v47 = vpop.f32.mrf.mxu2  ;;  %5403 = vst [vmem:[#allocation28_spill] sm:$0xff] %v4569_v43 }
  0xff   :  { %v1443_v0 = vadd.f32 %v1442_v47, %v4289_v1  ;;  %v1491_v40 = vpop.f32.mrf.mxu3  ;;  %v2908_v1 = vld [vmem:[%s5337_s1 + $0x248] sm:$0xf0]  ;;  %1871 = vmatpush.bf16.msrb.mxu3 %v2775_v57 }
 0x100   :  { %v1543_v24 = vpop.f32.mrf.mxu0  ;;  %v2911_v33 = vor.u32 %v3336_v29, %v2908_v1  ;;  %v2462_v1 = vld [vmem:[%s5338_s0 + $0xf0] sm:$0xf] }
 0x101   :  { %v1492_v22 = vadd.f32 %v1491_v40, %v1443_v0 }
 0x102   :  { %v1592_v13 = vpop.f32.mrf.mxu1  ;;  %1968 = vmatpush.bf16.msrb.mxu1 %v2911_v33  ;;  %v3227_v33 = vld [vmem:[%s5338_s0 + $0x118] sm:$0xf0] }
 0x103   :  { %v1541_v51 = vadd.f32 %v1540_v4, %v1492_v22  ;;  %1640 = vmatmul.bf16.gmra.mxu2 %v4567_v41  ;;  %1738 = vmatmul.bf16.gmra.mxu0 %v4569_v43  ;;  %v3286_v4 = vld [vmem:[%s5337_s1 + $0xb4] sm:$0xf] }
 0x104   :  { %1689 = vmatmul.bf16.gmra.mxu3 %v4571_v6  ;;  %v2711_v36 = vor.u32 %v3286_v4, %v2708_v38  ;;  %v3222_v38 = vld [vmem:[%s5338_s0 + $0xf4] sm:$0xf] }
 0x105   :  { %1787 = vmatmul.bf16.gmra.mxu1 %v3829_v50  ;;  %v4595_v12 = vadd.f32 %v1589_v11, %v1541_v51  ;;  %v3318_v51 = vld [vmem:[%s5337_s1 + $0x1b4] sm:$0xf]  ;;  %v2836_v11 = vld [vmem:[%s5337_s1 + $0x1b8] sm:$0xf0] }
 0x106   :  { %v1445_v50 = vpop.f32.mrf.mxu2  ;;  %1822 = vmatpush.bf16.msrb.mxu2 %v2711_v36  ;;  %v2839_v4 = vor.u32 %v3318_v51, %v2836_v11  ;;  %v2464_v36 = vld [vmem:[%s5338_s0 + $0x114] sm:$0xf0] }
 0x107   :  { %v1446_v39 = vadd.f32 %v1445_v50, %v4337_v31  ;;  %v1494_v47 = vpop.f32.mrf.mxu3  ;;  %v3226_v31 = vld [vmem:[%s5338_s0 + $0x110] sm:$0xf0]  ;;  %v4629_v51 = vor.u32 %v3222_v38, %v2464_v36 }
 0x108   :  { %v1545_v0 = vpop.f32.mrf.mxu0  ;;  %1920 = vmatpush.bf16.msrb.mxu0 %v2839_v4 }
 0x109   :  { %v1495_v40 = vadd.f32 %v1494_v47, %v1446_v39  ;;  %v4625_v39 = vor.u32 %v3226_v31, %v2462_v1  ;;  %v2700_v1 = vld [vmem:[%s5337_s1 + $0xa8] sm:$0xf0] }
 0x10a   :  { %v1594_v22 = vpop.f32.mrf.mxu1 }
 0x10b   :  { %v1544_v29 = vadd.f32 %v1543_v24, %v1495_v40  ;;  %v2470_v24 = vld [vmem:[%s5338_s0 + $0xf8] sm:$0xf]  ;;  %5404 = vst [vmem:[#allocation29_spill] sm:$0xff] %v4625_v39 }
 0x10c   :  { %v4627_v47 = vor.u32 %v3227_v33, %v2470_v24  ;;  %v3300_v24 = vld [vmem:[%s5337_s1 + $0x124] sm:$0xf]  ;;  %v2764_v33 = vld [vmem:[%s5337_s1 + $0x128] sm:$0xf0] }
 0x10d   :  { %v4622_v10 = vadd.f32 %v1592_v13, %v1544_v29  ;;  %v3334_v13 = vld [vmem:[%s5337_s1 + $0x234] sm:$0xf]  ;;  %v2767_v38 = vor.u32 %v3300_v24, %v2764_v33 }
 0x10e   :  { %v1447_v37 = vpop.f32.mrf.mxu2  ;;  %5405 = vst [vmem:[#allocation30_spill] sm:$0xff] %v4627_v47 }
 0x10f   :  { %v1448_v50 = vadd.f32 %v1447_v37, %v4357_v32  ;;  %v1496_v57 = vpop.f32.mrf.mxu3  ;;  %v2900_v32 = vld [vmem:[%s5337_s1 + $0x238] sm:$0xf0]  ;;  %1872 = vmatpush.bf16.msrb.mxu3 %v2767_v38 }
 0x110   :  { %v1548_v40 = vpop.f32.mrf.mxu0  ;;  %v2903_v29 = vor.u32 %v3334_v13, %v2900_v32  ;;  %v2498_v32 = vld [vmem:[%s5338_s0 + $0x138] sm:$0xf] }
 0x111   :  { %v1497_v11 = vadd.f32 %v1496_v57, %v1448_v50 }
 0x112   :  { %v1597_v43 = vpop.f32.mrf.mxu1  ;;  %1969 = vmatpush.bf16.msrb.mxu1 %v2903_v29  ;;  %v3236_v29 = vld [vmem:[%s5338_s0 + $0x160] sm:$0xf0] }
 0x113   :  { %v1546_v41 = vadd.f32 %v1545_v0, %v1497_v11  ;;  %1645 = vmatmul.bf16.gmra.mxu2 %v4625_v39  ;;  %1743 = vmatmul.bf16.gmra.mxu0 %v4627_v47  ;;  %v3284_v0 = vld [vmem:[%s5337_s1 + $0xa4] sm:$0xf] }
 0x114   :  { %1694 = vmatmul.bf16.gmra.mxu3 %v4629_v51  ;;  %v2703_v31 = vor.u32 %v3284_v0, %v2700_v1  ;;  %v3231_v1 = vld [vmem:[%s5338_s0 + $0x13c] sm:$0xf] }
 0x115   :  { %1792 = vmatmul.bf16.gmra.mxu1 %v3895_v21  ;;  %v4653_v4 = vadd.f32 %v1594_v22, %v1546_v41  ;;  %v3316_v41 = vld [vmem:[%s5337_s1 + $0x1a4] sm:$0xf]  ;;  %v2828_v22 = vld [vmem:[%s5337_s1 + $0x1a8] sm:$0xf0] }
 0x116   :  { %v1450_v21 = vpop.f32.mrf.mxu2  ;;  %1823 = vmatpush.bf16.msrb.mxu2 %v2703_v31  ;;  %v2831_v0 = vor.u32 %v3316_v41, %v2828_v22  ;;  %v2500_v31 = vld [vmem:[%s5338_s0 + $0x15c] sm:$0xf0] }
 0x117   :  { %v1451_v36 = vadd.f32 %v1450_v21, %v4399_v56  ;;  %v1499_v37 = vpop.f32.mrf.mxu3  ;;  %v3235_v56 = vld [vmem:[%s5338_s0 + $0x158] sm:$0xf0]  ;;  %v4687_v41 = vor.u32 %v3231_v1, %v2500_v31 }
 0x118   :  { %v1550_v50 = vpop.f32.mrf.mxu0  ;;  %1921 = vmatpush.bf16.msrb.mxu0 %v2831_v0 }
 0x119   :  { %v1500_v57 = vadd.f32 %v1499_v37, %v1451_v36  ;;  %v4683_v36 = vor.u32 %v3235_v56, %v2498_v32  ;;  %v2692_v32 = vld [vmem:[%s5337_s1 + $0x98] sm:$0xf0] }
 0x11a   :  { %v1599_v11 = vpop.f32.mrf.mxu1 }
 0x11b   :  { %v1549_v13 = vadd.f32 %v1548_v40, %v1500_v57  ;;  %v2506_v40 = vld [vmem:[%s5338_s0 + $0x140] sm:$0xf]  ;;  %5406 = vst [vmem:[#allocation31_spill] sm:$0xff] %v4683_v36 }
 0x11c   :  { %v4685_v37 = vor.u32 %v3236_v29, %v2506_v40  ;;  %v3298_v40 = vld [vmem:[%s5337_s1 + $0x114] sm:$0xf]  ;;  %v2756_v29 = vld [vmem:[%s5337_s1 + $0x118] sm:$0xf0] }
 0x11d   :  { %v4680_v24 = vadd.f32 %v1597_v43, %v1549_v13  ;;  %v3332_v43 = vld [vmem:[%s5337_s1 + $0x224] sm:$0xf]  ;;  %v2759_v1 = vor.u32 %v3298_v40, %v2756_v29 }
 0x11e   :  { %v1452_v33 = vpop.f32.mrf.mxu2  ;;  %5407 = vst [vmem:[#allocation32_spill] sm:$0xff] %v4685_v37 }
 0x11f   :  { %v1453_v21 = vadd.f32 %v1452_v33, %v4425_v28  ;;  %v1501_v38 = vpop.f32.mrf.mxu3  ;;  %v2892_v28 = vld [vmem:[%s5337_s1 + $0x228] sm:$0xf0]  ;;  %1873 = vmatpush.bf16.msrb.mxu3 %v2759_v1 }
 0x120   :  { %v1553_v57 = vpop.f32.mrf.mxu0  ;;  %v2895_v13 = vor.u32 %v3332_v43, %v2892_v28  ;;  %v2534_v28 = vld [vmem:[%s5338_s0 + $0x180] sm:$0xf] }
 0x121   :  { %v1502_v22 = vadd.f32 %v1501_v38, %v1453_v21 }
 0x122   :  { %v1602_v47 = vpop.f32.mrf.mxu1  ;;  %1970 = vmatpush.bf16.msrb.mxu1 %v2895_v13  ;;  %v3245_v13 = vld [vmem:[%s5338_s0 + $0x1a8] sm:$0xf0] }
 0x123   :  { %v1551_v39 = vadd.f32 %v1550_v50, %v1502_v22  ;;  %1650 = vmatmul.bf16.gmra.mxu2 %v4683_v36  ;;  %1748 = vmatmul.bf16.gmra.mxu0 %v4685_v37  ;;  %v3282_v50 = vld [vmem:[%s5337_s1 + $0x94] sm:$0xf] }
 0x124   :  { %1699 = vmatmul.bf16.gmra.mxu3 %v4687_v41  ;;  %v2695_v56 = vor.u32 %v3282_v50, %v2692_v32  ;;  %v3240_v32 = vld [vmem:[%s5338_s0 + $0x184] sm:$0xf] }
 0x125   :  { %1797 = vmatmul.bf16.gmra.mxu1 %v3596_v3  ;;  %v4711_v0 = vadd.f32 %v1599_v11, %v1551_v39  ;;  %v3314_v39 = vld [vmem:[%s5337_s1 + $0x194] sm:$0xf]  ;;  %v2820_v11 = vld [vmem:[%s5337_s1 + $0x198] sm:$0xf0] }
 0x126   :  { %v1455_v3 = vpop.f32.mrf.mxu2  ;;  %1824 = vmatpush.bf16.msrb.mxu2 %v2695_v56  ;;  %v2823_v50 = vor.u32 %v3314_v39, %v2820_v11  ;;  %v2536_v56 = vld [vmem:[%s5338_s0 + $0x1a4] sm:$0xf0] }
 0x127   :  { %v1456_v31 = vadd.f32 %v1455_v3, %v4219_v35  ;;  %v1504_v33 = vpop.f32.mrf.mxu3  ;;  %v3244_v35 = vld [vmem:[%s5338_s0 + $0x1a0] sm:$0xf0]  ;;  %v4745_v39 = vor.u32 %v3240_v32, %v2536_v56 }
 0x128   :  { %v1555_v21 = vpop.f32.mrf.mxu0  ;;  %1922 = vmatpush.bf16.msrb.mxu0 %v2823_v50 }
 0x129   :  { %v1505_v38 = vadd.f32 %v1504_v33, %v1456_v31  ;;  %v4741_v31 = vor.u32 %v3244_v35, %v2534_v28  ;;  %v2684_v28 = vld [vmem:[%s5337_s1 + $0x88] sm:$0xf0] }
 0x12a   :  { %v1604_v22 = vpop.f32.mrf.mxu1 }
 0x12b   :  { %v1554_v43 = vadd.f32 %v1553_v57, %v1505_v38  ;;  %v2542_v57 = vld [vmem:[%s5338_s0 + $0x188] sm:$0xf]  ;;  %5408 = vst [vmem:[#allocation33_spill] sm:$0xff] %v4741_v31 }
 0x12c   :  { %v4743_v33 = vor.u32 %v3245_v13, %v2542_v57  ;;  %v3296_v57 = vld [vmem:[%s5337_s1 + $0x104] sm:$0xf]  ;;  %v2748_v13 = vld [vmem:[%s5337_s1 + $0x108] sm:$0xf0] }
 0x12d   :  { %v4738_v40 = vadd.f32 %v1602_v47, %v1554_v43  ;;  %v3330_v47 = vld [vmem:[%s5337_s1 + $0x214] sm:$0xf]  ;;  %v2751_v32 = vor.u32 %v3296_v57, %v2748_v13 }
 0x12e   :  { %v1457_v29 = vpop.f32.mrf.mxu2  ;;  %5409 = vst [vmem:[#allocation34_spill] sm:$0xff] %v4743_v33 }
 0x12f   :  { %v1458_v3 = vadd.f32 %v1457_v29, %v4257_v15  ;;  %v1506_v1 = vpop.f32.mrf.mxu3  ;;  %v2884_v15 = vld [vmem:[%s5337_s1 + $0x218] sm:$0xf0]  ;;  %1874 = vmatpush.bf16.msrb.mxu3 %v2751_v32 }
 0x130   :  { %v1558_v38 = vpop.f32.mrf.mxu0  ;;  %v2887_v43 = vor.u32 %v3330_v47, %v2884_v15  ;;  %v2570_v15 = vld [vmem:[%s5338_s0 + $0x1c8] sm:$0xf] }
 0x131   :  { %v1507_v11 = vadd.f32 %v1506_v1, %v1458_v3 }
 0x132   :  { %v1607_v37 = vpop.f32.mrf.mxu1  ;;  %1971 = vmatpush.bf16.msrb.mxu1 %v2887_v43  ;;  %v3254_v43 = vld [vmem:[%s5338_s0 + $0x1f0] sm:$0xf0] }
 0x133   :  { %v1556_v36 = vadd.f32 %v1555_v21, %v1507_v11  ;;  %1655 = vmatmul.bf16.gmra.mxu2 %v4741_v31  ;;  %1753 = vmatmul.bf16.gmra.mxu0 %v4743_v33  ;;  %v3280_v21 = vld [vmem:[%s5337_s1 + $0x84] sm:$0xf] }
 0x134   :  { %1704 = vmatmul.bf16.gmra.mxu3 %v4745_v39  ;;  %v2687_v35 = vor.u32 %v3280_v21, %v2684_v28  ;;  %v3249_v28 = vld [vmem:[%s5338_s0 + $0x1cc] sm:$0xf]  ;;  %v3328_v31 = vld [vmem:[%s5337_s1 + $0x204] sm:$0xf] }
 0x135   :  { %1802 = vmatmul.bf16.gmra.mxu1 %v3728_v63  ;;  %v4769_v50 = vadd.f32 %v1604_v22, %v1556_v36  ;;  %v3312_v36 = vld [vmem:[%s5337_s1 + $0x184] sm:$0xf]  ;;  %v2812_v22 = vld [vmem:[%s5337_s1 + $0x188] sm:$0xf0] }
 0x136   :  { %v1460_v63 = vpop.f32.mrf.mxu2  ;;  %1825 = vmatpush.bf16.msrb.mxu2 %v2687_v35  ;;  %v2815_v21 = vor.u32 %v3312_v36, %v2812_v22  ;;  %v2572_v35 = vld [vmem:[%s5338_s0 + $0x1ec] sm:$0xf0] }
 0x137   :  { %v1461_v56 = vadd.f32 %v1460_v63, %v4287_v58  ;;  %v1509_v29 = vpop.f32.mrf.mxu3  ;;  %v3253_v58 = vld [vmem:[%s5338_s0 + $0x1e8] sm:$0xf0]  ;;  %v4803_v36 = vor.u32 %v3249_v28, %v2572_v35 }
 0x138   :  { %v1560_v3 = vpop.f32.mrf.mxu0  ;;  %1923 = vmatpush.bf16.msrb.mxu0 %v2815_v21 }
 0x139   :  { %v1510_v1 = vadd.f32 %v1509_v29, %v1461_v56  ;;  %v4799_v56 = vor.u32 %v3253_v58, %v2570_v15  ;;  %v3358_v15 = vld [vmem:[%s5337_s1 + $0x2f4] sm:$0xf]  ;;  %v2996_v58 = vld [vmem:[%s5337_s1 + $0x2f8] sm:$0xf0] }
 0x13a   :  { %v1609_v11 = vpop.f32.mrf.mxu1 }
 0x13b   :  { %v1559_v47 = vadd.f32 %v1558_v38, %v1510_v1  ;;  %v2578_v38 = vld [vmem:[%s5338_s0 + $0x1d0] sm:$0xf]  ;;  %5410 = vst [vmem:[#allocation35_spill] sm:$0xff] %v4799_v56 }
 0x13c   :  { %v4801_v29 = vor.u32 %v3254_v43, %v2578_v38  ;;  %v2999_v38 = vor.u32 %v3358_v15, %v2996_v58  ;;  %v3258_v58 = vld [vmem:[%s5338_s0 + $0x214] sm:$0xf] }
 0x13d   :  { %v4796_v57 = vadd.f32 %v1607_v37, %v1559_v47  ;;  %v2876_v37 = vld [vmem:[%s5337_s1 + $0x208] sm:$0xf0] }
 0x13e   :  { %v1462_v13 = vpop.f32.mrf.mxu2  ;;  %5411 = vst [vmem:[#allocation36_spill] sm:$0xff] %v4801_v29  ;;  %2014 = vmatpush.bf16.msra.mxu2 %v2999_v38 }
 0x13f   :  { %v1463_v63 = vadd.f32 %v1462_v13, %v4325_v59  ;;  %v1511_v32 = vpop.f32.mrf.mxu3  ;;  %v2879_v59 = vor.u32 %v3328_v31, %v2876_v37  ;;  %v3060_v31 = vld [vmem:[%s5337_s1 + $0x378] sm:$0xf0]  ;;  %v2606_v37 = vld [vmem:[%s5338_s0 + $0x210] sm:$0xf] }
 0x140   :  { %v1563_v1 = vpop.f32.mrf.mxu0 }
 0x141   :  { %v1512_v22 = vadd.f32 %v1511_v32, %v1463_v63  ;;  %1972 = vmatpush.bf16.msrb.mxu1 %v2879_v59  ;;  %v3263_v59 = vld [vmem:[%s5338_s0 + $0x238] sm:$0xf0] }
 0x142   :  { %v1612_v33 = vpop.f32.mrf.mxu1 }
 0x143   :  { %v1561_v47 = vadd.f32 %v1560_v3, %v1512_v22  ;;  %1660 = vmatmul.bf16.gmra.mxu2 %v4799_v56  ;;  %1758 = vmatmul.bf16.gmra.mxu0 %v4801_v29  ;;  %v3374_v3 = vld [vmem:[%s5337_s1 + $0x374] sm:$0xf] }
 0x144   :  { %1709 = vmatmul.bf16.gmra.mxu3 %v4803_v36  ;;  %v3063_v21 = vor.u32 %v3374_v3, %v3060_v31  ;;  %v2608_v3 = vld [vmem:[%s5338_s0 + $0x234] sm:$0xf0] }
 0x145   :  { %1807 = vmatmul.bf16.gmra.mxu1 %v3827_v49  ;;  %v4827_v43 = vadd.f32 %v1609_v11, %v1561_v47  ;;  %v3390_v11 = vld [vmem:[%s5337_s1 + $0x3f4] sm:$0xf]  ;;  %v3124_v47 = vld [vmem:[%s5337_s1 + $0x3f8] sm:$0xf0] }
 0x146   :  { %v1465_v49 = vpop.f32.mrf.mxu2  ;;  %2063 = vmatpush.bf16.msra.mxu3 %v3063_v21  ;;  %v3127_v15 = vor.u32 %v3390_v11, %v3124_v47  ;;  %v4861_v11 = vor.u32 %v3258_v58, %v2608_v3 }
 0x147   :  { %v1466_v28 = vadd.f32 %v1465_v49, %v4355_v42  ;;  %v1514_v35 = vpop.f32.mrf.mxu3  ;;  %v3262_v42 = vld [vmem:[%s5338_s0 + $0x230] sm:$0xf0] }
 0x148   :  { %v1565_v13 = vpop.f32.mrf.mxu0  ;;  %2112 = vmatpush.bf16.msra.mxu0 %v3127_v15 }
 0x149   :  { %v1515_v63 = vadd.f32 %v1514_v35, %v1466_v28  ;;  %v4857_v28 = vor.u32 %v3262_v42, %v2606_v37  ;;  %v2988_v37 = vld [vmem:[%s5337_s1 + $0x2e8] sm:$0xf0]  ;;  %v3372_v42 = vld [vmem:[%s5337_s1 + $0x364] sm:$0xf] }
 0x14a   :  { %v1614_v32 = vpop.f32.mrf.mxu1 }
 0x14b   :  { %v1564_v22 = vadd.f32 %v1563_v1, %v1515_v63  ;;  %v2614_v1 = vld [vmem:[%s5338_s0 + $0x218] sm:$0xf] }
 0x14c   :  { %v4859_v35 = vor.u32 %v3263_v59, %v2614_v1  ;;  %v3052_v59 = vld [vmem:[%s5337_s1 + $0x368] sm:$0xf0] }
 0x14d   :  { %v4854_v38 = vadd.f32 %v1612_v33, %v1564_v22  ;;  %v3406_v33 = vld [vmem:[%s5337_s1 + $0x474] sm:$0xf]  ;;  %v3055_v58 = vor.u32 %v3372_v42, %v3052_v59 }
 0x14e   :  { %v1467_v31 = vpop.f32.mrf.mxu2 }
 0x14f   :  { %v1468_v49 = vadd.f32 %v1467_v31, %v4393_v34  ;;  %v1516_v21 = vpop.f32.mrf.mxu3  ;;  %v3188_v34 = vld [vmem:[%s5337_s1 + $0x478] sm:$0xf0]  ;;  %2064 = vmatpush.bf16.msra.mxu3 %v3055_v58  ;;  %v3354_v58 = vld [vmem:[%s5337_s1 + $0x2d4] sm:$0xf] }
 0x150   :  { %v1568_v63 = vpop.f32.mrf.mxu0  ;;  %v3191_v22 = vor.u32 %v3406_v33, %v3188_v34  ;;  %v3388_v34 = vld [vmem:[%s5337_s1 + $0x3e4] sm:$0xf] }
 0x151   :  { %v1517_v47 = vadd.f32 %v1516_v21, %v1468_v49 }
 0x152   :  { %v1617_v29 = vpop.f32.mrf.mxu1  ;;  %2161 = vmatpush.bf16.msra.mxu1 %v3191_v22 }
 0x153   :  { %v1566_v56 = vadd.f32 %v1565_v13, %v1517_v47  ;;  %1665 = vmatmul.bf16.gmra.mxu2 %v4857_v28  ;;  %1763 = vmatmul.bf16.gmra.mxu0 %v4859_v35  ;;  %v3356_v13 = vld [vmem:[%s5337_s1 + $0x2e4] sm:$0xf] }
 0x154   :  { %1714 = vmatmul.bf16.gmra.mxu3 %v4861_v11  ;;  %v2991_v1 = vor.u32 %v3356_v13, %v2988_v37 }
 0x155   :  { %1812 = vmatmul.bf16.gmra.mxu1 %v3893_v20  ;;  %v4885_v15 = vadd.f32 %v1614_v32, %v1566_v56  ;;  %v3116_v56 = vld [vmem:[%s5337_s1 + $0x3e8] sm:$0xf0] }
 0x156   :  { %v1470_v20 = vpop.f32.mrf.mxu2  ;;  %2015 = vmatpush.bf16.msra.mxu2 %v2991_v1  ;;  %v3119_v32 = vor.u32 %v3388_v34, %v3116_v56 }
 0x157   :  { %v1471_v3 = vadd.f32 %v1470_v20, %v4423_v60  ;;  %v1519_v31 = vpop.f32.mrf.mxu3  ;;  %v3404_v20 = vld [vmem:[%s5337_s1 + $0x464] sm:$0xf] }
 0x158   :  { %v1570_v49 = vpop.f32.mrf.mxu0  ;;  %2113 = vmatpush.bf16.msra.mxu0 %v3119_v32 }
 0x159   :  { %v1520_v21 = vadd.f32 %v1519_v31, %v1471_v3 }
 0x15a   :  { %v1619_v47 = vpop.f32.mrf.mxu1 }
 0x15b   :  { %v1569_v33 = vadd.f32 %v1568_v63, %v1520_v21 }
 0x15d   :  { %v4894_v22 = vadd.f32 %v1617_v29, %v1569_v33  ;;  %v3180_v29 = vld [vmem:[%s5337_s1 + $0x468] sm:$0xf0] }
 0x15e   :  { %v1472_v13 = vpop.f32.mrf.mxu2 }
 0x15f   :  { %v1473_v60 = vadd.f32 %v1472_v13, %v4455_v55  ;;  %v1521_v37 = vpop.f32.mrf.mxu3  ;;  %v3183_v55 = vor.u32 %v3404_v20, %v3180_v29 }
 0x160   :  { %v1729_v42 = vpop.f32.mrf.mxu0 }
 0x161   :  { %v1522_v1 = vadd.f32 %v1521_v37, %v1473_v60  ;;  %2162 = vmatpush.bf16.msra.mxu1 %v3183_v55  ;;  %v3386_v60 = vld [vmem:[%s5337_s1 + $0x3d4] sm:$0xf] }
 0x162   :  { %v4897_v59 = vpop.f32.mrf.mxu1 }
 0x163   :  { %v1571_v63 = vadd.f32 %v1570_v49, %v1522_v1  ;;  %1826 = vmatmul.bf16.vlgmr.msrb.gmra.mxu2 %v3611_v9  ;;  %1924 = vmatmul.bf16.vlgmr.msrb.gmra.mxu0 %v3957_v46  ;;  %v2980_v9 = vld [vmem:[%s5337_s1 + $0x2d8] sm:$0xf0]  ;;  %v3370_v46 = vld [vmem:[%s5337_s1 + $0x354] sm:$0xf] }
 0x164   :  { %1875 = vmatmul.bf16.vlgmr.msrb.gmra.mxu3 %v3953_v44  ;;  %v2983_v3 = vor.u32 %v3354_v58, %v2980_v9  ;;  %v3044_v44 = vld [vmem:[%s5337_s1 + $0x358] sm:$0xf0]  ;;  %v3352_v9 = vld [vmem:[%s5337_s1 + $0x2c4] sm:$0xf] }
 0x165   :  { %1973 = vmatmul.bf16.vlgmr.msrb.gmra.mxu1 %v3955_v45  ;;  %v4921_v31 = vadd.f32 %v1619_v47, %v1571_v63  ;;  %v3047_v49 = vor.u32 %v3370_v46, %v3044_v44  ;;  %v3108_v47 = vld [vmem:[%s5337_s1 + $0x3d8] sm:$0xf0] }
 0x166   :  { %v1631_v45 = vpop.f32.mrf.mxu2  ;;  %2016 = vmatpush.bf16.msra.mxu2 %v2983_v3  ;;  %v3111_v1 = vor.u32 %v3386_v60, %v3108_v47  ;;  %v3172_v58 = vld [vmem:[%s5337_s1 + $0x458] sm:$0xf0]  ;;  %v3384_v60 = vld [vmem:[%s5337_s1 + $0x3c4] sm:$0xf] }
 0x167   :  { %v1632_v21 = vadd.f32 %v1631_v45, %v4506_v5  ;;  %v1680_v33 = vpop.f32.mrf.mxu3  ;;  %2065 = vmatpush.bf16.msra.mxu3 %v3047_v49 }
 0x168   :  { %v1731_v34 = vpop.f32.mrf.mxu0  ;;  %2114 = vmatpush.bf16.msra.mxu0 %v3111_v1 }
 0x169   :  { %v1681_v56 = vadd.f32 %v1680_v33, %v1632_v21 }
 0x16a   :  { %v4924_v32 = vpop.f32.mrf.mxu1 }
 0x16b   :  { %v4926_v13 = vadd.f32 %v1729_v42, %v1681_v56 }
 0x16e   :  { %v1633_v37 = vpop.f32.mrf.mxu2 }
 0x16f   :  { %v1634_v5 = vadd.f32 %v1633_v37, %v4537_v19  ;;  %v1682_v63 = vpop.f32.mrf.mxu3  ;;  %v3402_v19 = vld [vmem:[%s5337_s1 + $0x454] sm:$0xf] }
 0x170   :  { %v1734_v20 = vpop.f32.mrf.mxu0 }
 0x171   :  { %v1683_v29 = vadd.f32 %v1682_v63, %v1634_v5 }
 0x172   :  { %v4935_v55 = vpop.f32.mrf.mxu1 }
 0x173   :  { %v4937_v42 = vadd.f32 %v1731_v34, %v1683_v29  ;;  %1831 = vmatmul.bf16.gmra.mxu2 %v3743_v7  ;;  %1929 = vmatmul.bf16.gmra.mxu0 %v4017_v18  ;;  %v3175_v7 = vor.u32 %v3402_v19, %v3172_v58  ;;  %v3036_v18 = vld [vmem:[%s5337_s1 + $0x348] sm:$0xf0] }
 0x174   :  { %1880 = vmatmul.bf16.gmra.mxu3 %v4013_v16  ;;  %v2972_v16 = vld [vmem:[%s5337_s1 + $0x2c8] sm:$0xf0] }
 0x175   :  { %1978 = vmatmul.bf16.gmra.mxu1 %v4015_v17  ;;  %v3368_v17 = vld [vmem:[%s5337_s1 + $0x344] sm:$0xf]  ;;  %v2975_v45 = vor.u32 %v3352_v9, %v2972_v16  ;;  %v3164_v58 = vld [vmem:[%s5337_s1 + $0x448] sm:$0xf0]  ;;  %v3350_v9 = vld [vmem:[%s5337_s1 + $0x2b4] sm:$0xf] }
 0x176   :  { %v1636_v46 = vpop.f32.mrf.mxu2  ;;  %v3039_v49 = vor.u32 %v3368_v17, %v3036_v18  ;;  %2163 = vmatpush.bf16.msra.mxu1 %v3175_v7 }
 0x177   :  { %v1637_v3 = vadd.f32 %v1636_v46, %v4564_v14  ;;  %v1685_v44 = vpop.f32.mrf.mxu3  ;;  %2017 = vmatpush.bf16.msra.mxu2 %v2975_v45  ;;  %v3100_v14 = vld [vmem:[%s5337_s1 + $0x3c8] sm:$0xf0] }
 0x178   :  { %v1736_v21 = vpop.f32.mrf.mxu0  ;;  %2066 = vmatpush.bf16.msra.mxu3 %v3039_v49  ;;  %v3103_v37 = vor.u32 %v3384_v60, %v3100_v14 }
 0x179   :  { %v1686_v33 = vadd.f32 %v1685_v44, %v1637_v3 }
 0x17a   :  { %v4962_v34 = vpop.f32.mrf.mxu1  ;;  %2115 = vmatpush.bf16.msra.mxu0 %v3103_v37 }
 0x17b   :  { %v4964_v56 = vadd.f32 %v1734_v20, %v1686_v33  ;;  %v3382_v33 = vld [vmem:[%s5337_s1 + $0x3b4] sm:$0xf] }
 0x17e   :  { %v1638_v47 = vpop.f32.mrf.mxu2 }
 0x17f   :  { %v1639_v1 = vadd.f32 %v1638_v47, %v4595_v12  ;;  %v1687_v5 = vpop.f32.mrf.mxu3  ;;  %v3400_v12 = vld [vmem:[%s5337_s1 + $0x444] sm:$0xf] }
 0x180   :  { %v1739_v63 = vpop.f32.mrf.mxu0 }
 0x181   :  { %v1688_v29 = vadd.f32 %v1687_v5, %v1639_v1 }
 0x182   :  { %v4973_v19 = vpop.f32.mrf.mxu1 }
 0x183   :  { %v4975_v20 = vadd.f32 %v1736_v21, %v1688_v29  ;;  %1836 = vmatmul.bf16.gmra.mxu2 %v3833_v52  ;;  %1934 = vmatmul.bf16.gmra.mxu0 %v4077_v54  ;;  %v3167_v52 = vor.u32 %v3400_v12, %v3164_v58  ;;  %v3028_v54 = vld [vmem:[%s5337_s1 + $0x338] sm:$0xf0] }
 0x184   :  { %1885 = vmatmul.bf16.gmra.mxu3 %v4073_v48  ;;  %v2964_v48 = vld [vmem:[%s5337_s1 + $0x2b8] sm:$0xf0] }
 0x185   :  { %1983 = vmatmul.bf16.gmra.mxu1 %v4075_v53  ;;  %v3366_v53 = vld [vmem:[%s5337_s1 + $0x334] sm:$0xf]  ;;  %v2967_v17 = vor.u32 %v3350_v9, %v2964_v48  ;;  %v3156_v58 = vld [vmem:[%s5337_s1 + $0x438] sm:$0xf0] }
 0x186   :  { %v1641_v46 = vpop.f32.mrf.mxu2  ;;  %v3031_v18 = vor.u32 %v3366_v53, %v3028_v54  ;;  %2164 = vmatpush.bf16.msra.mxu1 %v3167_v52 }
 0x187   :  { %v1642_v7 = vadd.f32 %v1641_v46, %v4622_v10  ;;  %v1690_v16 = vpop.f32.mrf.mxu3  ;;  %2018 = vmatpush.bf16.msra.mxu2 %v2967_v17  ;;  %v3092_v10 = vld [vmem:[%s5337_s1 + $0x3b8] sm:$0xf0]  ;;  %v3020_v46 = vld [vmem:[%s5337_s1 + $0x328] sm:$0xf0] }
 0x188   :  { %v1741_v3 = vpop.f32.mrf.mxu0  ;;  %2067 = vmatpush.bf16.msra.mxu3 %v3031_v18  ;;  %v3095_v14 = vor.u32 %v3382_v33, %v3092_v10 }
 0x189   :  { %v1691_v44 = vadd.f32 %v1690_v16, %v1642_v7 }
 0x18a   :  { %v5000_v45 = vpop.f32.mrf.mxu1  ;;  %2116 = vmatpush.bf16.msra.mxu0 %v3095_v14 }
 0x18b   :  { %v5002_v49 = vadd.f32 %v1739_v63, %v1691_v44  ;;  %v3380_v44 = vld [vmem:[%s5337_s1 + $0x3a4] sm:$0xf] }
 0x18d   :  { %v2210_v21 = vmax.f32 %v4926_v13, %v5002_v49  ;;  %v3076_v13 = vld [vmem:[%s5337_s1 + $0x398] sm:$0xf0]  ;;  %v5414_v49 = vld [vmem:[#allocation10_spill] sm:$0xff] }
 0x18e   :  { %v1643_v60 = vpop.f32.mrf.mxu2 }
 0x18f   :  { %v1644_v47 = vadd.f32 %v1643_v60, %v4653_v4  ;;  %v1692_v37 = vpop.f32.mrf.mxu3  ;;  %v3398_v4 = vld [vmem:[%s5337_s1 + $0x434] sm:$0xf] }
 0x190   :  { %v1744_v1 = vpop.f32.mrf.mxu0  ;;  %v3159_v9 = vor.u32 %v3398_v4, %v3156_v58  ;;  %v3148_v4 = vld [vmem:[%s5337_s1 + $0x428] sm:$0xf0] }
 0x191   :  { %v1693_v5 = vadd.f32 %v1692_v37, %v1644_v47 }
 0x192   :  { %v5013_v63 = vpop.f32.mrf.mxu1  ;;  %2165 = vmatpush.bf16.msra.mxu1 %v3159_v9 }
 0x193   :  { %v5015_v29 = vadd.f32 %v1741_v3, %v1693_v5  ;;  %1841 = vmatmul.bf16.gmra.mxu2 %v3899_v23  ;;  %1939 = vmatmul.bf16.gmra.mxu0 %v4131_v27  ;;  %v3348_v23 = vld [vmem:[%s5337_s1 + $0x2a4] sm:$0xf] }
 0x194   :  { %1890 = vmatmul.bf16.gmra.mxu3 %v4127_v25  ;;  %v2956_v25 = vld [vmem:[%s5337_s1 + $0x2a8] sm:$0xf0] }
 0x195   :  { %1988 = vmatmul.bf16.gmra.mxu1 %v4129_v26  ;;  %v2216_v12 = vmax.f32 %v4937_v42, %v5015_v29  ;;  %v3364_v26 = vld [vmem:[%s5337_s1 + $0x324] sm:$0xf]  ;;  %v2959_v53 = vor.u32 %v3348_v23, %v2956_v25  ;;  %v3012_v23 = vld [vmem:[%s5337_s1 + $0x318] sm:$0xf0] }
 0x196   :  { %v1646_v27 = vpop.f32.mrf.mxu2  ;;  %v3023_v54 = vor.u32 %v3364_v26, %v3020_v46  ;;  %v3140_v42 = vld [vmem:[%s5337_s1 + $0x418] sm:$0xf0] }
 0x197   :  { %v1647_v52 = vadd.f32 %v1646_v27, %v4680_v24  ;;  %v1695_v48 = vpop.f32.mrf.mxu3  ;;  %2019 = vmatpush.bf16.msra.mxu2 %v2959_v53  ;;  %v3084_v24 = vld [vmem:[%s5337_s1 + $0x3a8] sm:$0xf0] }
 0x198   :  { %v1746_v7 = vpop.f32.mrf.mxu0  ;;  %2068 = vmatpush.bf16.msra.mxu3 %v3023_v54  ;;  %v3087_v10 = vor.u32 %v3380_v44, %v3084_v24 }
 0x199   :  { %v1696_v16 = vadd.f32 %v1695_v48, %v1647_v52 }
 0x19a   :  { %v5042_v17 = vpop.f32.mrf.mxu1  ;;  %2117 = vmatpush.bf16.msra.mxu0 %v3087_v10  ;;  %v5412_v10 = vld [vmem:[#allocation2_spill] sm:$0xff] }
 0x19b   :  { %v1745_v18 = vadd.f32 %v1744_v1, %v1696_v16 }
 0x19d   :  { %v2222_v3 = vmax.f32 %v4964_v56, %v1745_v18 }
 0x19e   :  { %v1648_v33 = vpop.f32.mrf.mxu2 }
 0x19f   :  { %v1649_v60 = vadd.f32 %v1648_v33, %v4711_v0  ;;  %v1697_v14 = vpop.f32.mrf.mxu3  ;;  %v3396_v0 = vld [vmem:[%s5337_s1 + $0x424] sm:$0xf] }
 0x1a0   :  { %v1749_v47 = vpop.f32.mrf.mxu0  ;;  %v3151_v58 = vor.u32 %v3396_v0, %v3148_v4 }
 0x1a1   :  { %v1698_v37 = vadd.f32 %v1697_v14, %v1649_v60  ;;  %v5413_v60 = vld [vmem:[#allocation12_spill] sm:$0xff] }
 0x1a2   :  { %v5052_v5 = vpop.f32.mrf.mxu1  ;;  %2166 = vmatpush.bf16.msra.mxu1 %v3151_v58  ;;  %v3378_v14 = vld [vmem:[%s5337_s1 + $0x394] sm:$0xf] }
 0x1a3   :  { %v5054_v1 = vadd.f32 %v1746_v7, %v1698_v37  ;;  %1846 = vmatmul.bf16.gmra.mxu2 %v3609_v8  ;;  %1944 = vmatmul.bf16.gmra.mxu0 %v4191_v2  ;;  %v3346_v8 = vld [vmem:[%s5337_s1 + $0x294] sm:$0xf] }
 0x1a4   :  { %1895 = vmatmul.bf16.gmra.mxu3 %v4187_v61  ;;  %v2948_v61 = vld [vmem:[%s5337_s1 + $0x298] sm:$0xf0] }
 0x1a5   :  { %1993 = vmatmul.bf16.gmra.mxu1 %v4189_v62  ;;  %v2228_v56 = vmax.f32 %v4975_v20, %v5054_v1  ;;  %v3362_v62 = vld [vmem:[%s5337_s1 + $0x314] sm:$0xf]  ;;  %v2951_v25 = vor.u32 %v3346_v8, %v2948_v61 }
 0x1a6   :  { %v1651_v2 = vpop.f32.mrf.mxu2  ;;  %v3015_v26 = vor.u32 %v3362_v62, %v3012_v23  ;;  %v3394_v23 = vld [vmem:[%s5337_s1 + $0x414] sm:$0xf] }
 0x1a7   :  { %v1652_v27 = vadd.f32 %v1651_v2, %v4738_v40  ;;  %v1700_v9 = vpop.f32.mrf.mxu3  ;;  %2020 = vmatpush.bf16.msra.mxu2 %v2951_v25 }
 0x1a8   :  { %v1751_v46 = vpop.f32.mrf.mxu0  ;;  %2069 = vmatpush.bf16.msra.mxu3 %v3015_v26 }
 0x1a9   :  { %v1701_v52 = vadd.f32 %v1700_v9, %v1652_v27  ;;  %v2940_v27 = vld [vmem:[%s5337_s1 + $0x288] sm:$0xf0] }
 0x1aa   :  { %v5081_v48 = vpop.f32.mrf.mxu1  ;;  %v3004_v9 = vld [vmem:[%s5337_s1 + $0x308] sm:$0xf0] }
 0x1ab   :  { %v1750_v53 = vadd.f32 %v1749_v47, %v1701_v52 }
 0x1ad   :  { %v5086_v54 = vmax.f32 %v2210_v21, %v1750_v53  ;;  %v3079_v21 = vor.u32 %v3378_v14, %v3076_v13  ;;  %v5417_v14 = vld [vmem:[#allocation16_spill] sm:$0xff] }
 0x1ae   :  { %v1653_v7 = vpop.f32.mrf.mxu2 }
 0x1af   :  { %v1654_v16 = vadd.f32 %v1653_v7, %v4769_v50  ;;  %v1702_v40 = vpop.f32.mrf.mxu3  ;;  %v5415_v50 = vld [vmem:[#allocation11_spill] sm:$0xff]  ;;  %2118 = vmatpush.bf16.msra.mxu0 %v3079_v21  ;;  %v3376_v7 = vld [vmem:[%s5337_s1 + $0x384] sm:$0xf] }
 0x1b0   :  { %v1754_v18 = vpop.f32.mrf.mxu0 }
 0x1b1   :  { %v1703_v44 = vadd.f32 %v1702_v40, %v1654_v16  ;;  %v3068_v16 = vld [vmem:[%s5337_s1 + $0x388] sm:$0xf0] }
 0x1b2   :  { %v5089_v24 = vpop.f32.mrf.mxu1 }
 0x1b3   :  { %v1752_v33 = vadd.f32 %v1751_v46, %v1703_v44  ;;  %1851 = vmatmul.bf16.gmra.mxu2 %v5412_v10  ;;  %1949 = vmatmul.bf16.gmra.mxu0 %v5413_v60  ;;  %v3071_v44 = vor.u32 %v3376_v7, %v3068_v16  ;;  %v5416_v60 = vld [vmem:[#allocation3_spill] sm:$0xff] }
 0x1b4   :  { %1900 = vmatmul.bf16.gmra.mxu3 %v5414_v49  ;;  %v5418_v49 = vld [vmem:[#allocation14_spill] sm:$0xff] }
 0x1b5   :  { %1998 = vmatmul.bf16.gmra.mxu1 %v5415_v50  ;;  %v5104_v47 = vmax.f32 %v2216_v12, %v1752_v33  ;;  %v3143_v12 = vor.u32 %v3394_v23, %v3140_v42  ;;  %v3132_v33 = vld [vmem:[%s5337_s1 + $0x408] sm:$0xf0]  ;;  %2119 = vmatpush.bf16.msra.mxu0 %v3071_v44 }
 0x1b6   :  { %v1656_v37 = vpop.f32.mrf.mxu2  ;;  %v5419_v50 = vld [vmem:[#allocation15_spill] sm:$0xff] }
 0x1b7   :  { %v1657_v0 = vadd.f32 %v1656_v37, %v4796_v57  ;;  %v1705_v4 = vpop.f32.mrf.mxu3  ;;  %v3344_v57 = vld [vmem:[%s5337_s1 + $0x284] sm:$0xf]  ;;  %2167 = vmatpush.bf16.msra.mxu1 %v3143_v12 }
 0x1b8   :  { %v1756_v8 = vpop.f32.mrf.mxu0  ;;  %v2943_v46 = vor.u32 %v3344_v57, %v2940_v27 }
 0x1b9   :  { %v1706_v2 = vadd.f32 %v1705_v4, %v1657_v0 }
 0x1ba   :  { %v5107_v58 = vpop.f32.mrf.mxu1  ;;  %2021 = vmatpush.bf16.msra.mxu2 %v2943_v46 }
 0x1bb   :  { %v1755_v61 = vadd.f32 %v1754_v18, %v1706_v2 }
 0x1bd   :  { %v5109_v62 = vmax.f32 %v2222_v3, %v1755_v61  ;;  %v3360_v3 = vld [vmem:[%s5337_s1 + $0x304] sm:$0xf] }
 0x1be   :  { %v1658_v29 = vpop.f32.mrf.mxu2  ;;  %v3007_v52 = vor.u32 %v3360_v3, %v3004_v9  ;;  %v5420_v3 = vld [vmem:[#allocation4_spill] sm:$0xff]  ;;  %v5422_v9 = vld [vmem:[#allocation18_spill] sm:$0xff] }
 0x1bf   :  { %v1659_v25 = vadd.f32 %v1658_v29, %v4827_v43  ;;  %v1707_v26 = vpop.f32.mrf.mxu3  ;;  %v3392_v43 = vld [vmem:[%s5337_s1 + $0x404] sm:$0xf] }
 0x1c0   :  { %v1759_v53 = vpop.f32.mrf.mxu0  ;;  %2070 = vmatpush.bf16.msra.mxu3 %v3007_v52  ;;  %v3135_v13 = vor.u32 %v3392_v43, %v3132_v33 }
 0x1c1   :  { %v1708_v40 = vadd.f32 %v1707_v26, %v1659_v25  ;;  %v5423_v25 = vld [vmem:[#allocation19_spill] sm:$0xff] }
 0x1c2   :  { %v5136_v18 = vpop.f32.mrf.mxu1  ;;  %2168 = vmatpush.bf16.msra.mxu1 %v3135_v13 }
 0x1c3   :  { %v1757_v10 = vadd.f32 %v1756_v8, %v1708_v40  ;;  %1856 = vmatmul.bf16.gmra.mxu2 %v5416_v60  ;;  %1954 = vmatmul.bf16.gmra.mxu0 %v5417_v14 }
 0x1c4   :  { %1905 = vmatmul.bf16.gmra.mxu3 %v5418_v49 }
 0x1c5   :  { %2003 = vmatmul.bf16.gmra.mxu1 %v5419_v50  ;;  %v2229_v21 = vmax.f32 %v2228_v56, %v1757_v10 }
 0x1c6   :  { %v1661_v37 = vpop.f32.mrf.mxu2 }
 0x1c7   :  { %v1662_v0 = vadd.f32 %v1661_v37, %v4854_v38  ;;  %v1710_v4 = vpop.f32.mrf.mxu3  ;;  %v5421_v38 = vld [vmem:[#allocation20_spill] sm:$0xff] }
 0x1c8   :  { %v1761_v8 = vpop.f32.mrf.mxu0 }
 0x1c9   :  { %v1711_v2 = vadd.f32 %v1710_v4, %v1662_v0 }
 0x1ca   :  { %v5152_v61 = vpop.f32.mrf.mxu1 }
 0x1cb   :  { %v1760_v23 = vadd.f32 %v1759_v53, %v1711_v2  ;;  %v5424_v2 = vld [vmem:[#allocation5_spill] sm:$0xff] }
 0x1cd   :  { %v2212_v42 = vmax.f32 %v5086_v54, %v1760_v23  ;;  %v5425_v23 = vld [vmem:[#allocation24_spill] sm:$0xff] }
 0x1ce   :  { %v1663_v57 = vpop.f32.mrf.mxu2 }
 0x1cf   :  { %v1664_v29 = vadd.f32 %v1663_v57, %v4885_v15  ;;  %v1712_v12 = vpop.f32.mrf.mxu3  ;;  %v5166_v15 = vld [vmem:[%s5339_s2] sm:$0x3] }
 0x1d0   :  { %v1764_v27 = vpop.f32.mrf.mxu0  ;;  %v2236_v40 = vperm.slane %v5166_v15, 0 }
 0x1d1   :  { %v1713_v20 = vadd.f32 %v1712_v12, %v1664_v29 }
 0x1d2   :  { %v5156_v1 = vpop.f32.mrf.mxu1 }
 0x1d3   :  { %v1762_v56 = vadd.f32 %v1761_v8, %v1713_v20  ;;  %1861 = vmatmul.bf16.gmra.mxu2 %v5420_v3  ;;  %1959 = vmatmul.bf16.gmra.mxu0 %v5421_v38 }
 0x1d4   :  { %1910 = vmatmul.bf16.gmra.mxu3 %v5422_v9 }
 0x1d5   :  { %2008 = vmatmul.bf16.gmra.mxu1 %v5423_v25  ;;  %v2218_v26 = vmax.f32 %v5104_v47, %v1762_v56  ;;  %v2240_v47 = vadd.f32 %v2236_v40, %v2212_v42  ;;  %v5427_v42 = vld [vmem:[#allocation23_spill] sm:$0xff] }
 0x1d6   :  { %v1666_v54 = vpop.f32.mrf.mxu2 }
 0x1d7   :  { %v1667_v46 = vadd.f32 %v1666_v54, %v4894_v22  ;;  %v1715_v52 = vpop.f32.mrf.mxu3  ;;  %v2242_v43 = vadd.f32 %v2236_v40, %v2218_v26  ;;  %v5176_v0 = vmax.f32 %v2240_v47, 0.0 }
 0x1d8   :  { %v1766_v53 = vpop.f32.mrf.mxu0 }
 0x1d9   :  { %v1716_v7 = vadd.f32 %v1715_v52, %v1667_v46  ;;  %v5174_v50 = vmax.f32 %v2242_v43, 0.0  ;;  %v2282_v29 = vmul.f32 %v5176_v0, %v5176_v0 }
 0x1da   :  { %v5169_v16 = vpop.f32.mrf.mxu1 }
 0x1db   :  { %v1765_v44 = vadd.f32 %v1764_v27, %v1716_v7  ;;  %v2264_v27 = vadd.f32 %v5174_v50, %v5176_v0 }
 0x1dd   :  { %v2224_v33 = vmax.f32 %v5109_v62, %v1765_v44  ;;  %v5426_v62 = vld [vmem:[#allocation22_spill] sm:$0xff] }
 0x1de   :  { %v1668_v10 = vpop.f32.mrf.mxu2 }
 0x1df   :  { %v2244_v60 = vadd.f32 %v2236_v40, %v2224_v33  ;;  %v1669_v14 = vadd.f32 %v1668_v10, %v4921_v31  ;;  %v1717_v13 = vpop.f32.mrf.mxu3  ;;  %v2284_v31 = vmul.f32 %v5174_v50, %v5174_v50 }
 0x1e0   :  { %v1925_v49 = vpop.f32.mrf.mxu0 }
 0x1e1   :  { %v1718_v22 = vadd.f32 %v1717_v13, %v1669_v14  ;;  %v5178_v4 = vmax.f32 %v2244_v60, 0.0  ;;  %v2290_v25 = vadd.f32 %v2284_v31, %v2282_v29  ;;  %v2308_v13 = vlaneseq  ;;  %v5429_v29 = vld [vmem:[#allocation25_spill] sm:$0xff] }
 0x1e2   :  { %v1974_v37 = vpop.f32.mrf.mxu1 }
 0x1e3   :  { %v1767_v8 = vadd.f32 %v1766_v53, %v1718_v22  ;;  %2022 = vmatmul.bf16.vlgmr.msra.gmra.mxu2 %v5424_v2  ;;  %2120 = vmatmul.bf16.vlgmr.msra.gmra.mxu0 %v5425_v23  ;;  %v2286_v20 = vmul.f32 %v5178_v4, %v5178_v4  ;;  %v2265_v26 = vadd.f32 %v2264_v27, %v5178_v4 }
 0x1e4   :  { %2071 = vmatmul.bf16.vlgmr.msra.gmra.mxu3 %v5426_v62 }
 0x1e5   :  { %2169 = vmatmul.bf16.vlgmr.msra.gmra.mxu1 %v5427_v42  ;;  %v2230_v57 = vmax.f32 %v2229_v21, %v1767_v8  ;;  %v2291_v52 = vadd.f32 %v2290_v25, %v2286_v20 }
 0x1e6   :  { %v1827_v12 = vpop.f32.mrf.mxu2 }
 0x1e7   :  { %v2246_v56 = vadd.f32 %v2236_v40, %v2230_v57  ;;  %v1828_v3 = vadd.f32 %v1827_v12, %v4897_v59  ;;  %v1876_v38 = vpop.f32.mrf.mxu3  ;;  %v5430_v12 = vld [vmem:[#allocation26_spill] sm:$0xff] }
 0x1e8   :  { %v1927_v9 = vpop.f32.mrf.mxu0 }
 0x1e9   :  { %v5194_v54 = vmax.f32 %v2246_v56, 0.0  ;;  %v1877_v21 = vadd.f32 %v1876_v38, %v1828_v3 }
 0x1ea   :  { %v1976_v46 = vpop.f32.mrf.mxu1 }
 0x1eb   :  { %v2266_v53 = vadd.f32 %v2265_v26, %v5194_v54  ;;  %v2288_v7 = vmul.f32 %v5194_v54, %v5194_v54  ;;  %v1926_v44 = vadd.f32 %v1925_v49, %v1877_v21  ;;  %v5428_v49 = vld [vmem:[#allocation6_spill] sm:$0xff] }
 0x1ed   :  { %v2267_v43 = vrot.slane %v2266_v53, 4  ;;  %v2292_v40 = vadd.f32 %v2291_v52, %v2288_v7  ;;  %v5199_v33 = vadd.f32 %v1974_v37, %v1926_v44  ;;  %v5204_v37 = vshrl.u32 %v2308_v13, 7  ;;  %v5431_v13 = vld [vmem:[#allocation7_spill] sm:$0xff] }
 0x1ee   :  { %v1829_v59 = vpop.f32.mrf.mxu2 }
 0x1ef   :  { %v2268_v47 = vadd.f32 %v2267_v43, %v2266_v53  ;;  %v2293_v10 = vrot.slane %v2292_v40, 4  ;;  %v1830_v60 = vadd.f32 %v1829_v59, %v4924_v32  ;;  %v1878_v14 = vpop.f32.mrf.mxu3  ;;  %vm2310_vm0 = vcmp.eq.s32.totalorder %v5204_v37, 0 }
 0x1f0   :  { %v1930_v22 = vpop.f32.mrf.mxu0  ;;  %vm2313_vm1 = vcmp.eq.s32.totalorder %v5204_v37, 1 }
 0x1f1   :  { %v2269_v8 = vrot.slane %v2268_v47, 2  ;;  %v2294_v2 = vadd.f32 %v2293_v10, %v2292_v40  ;;  %v1879_v23 = vadd.f32 %v1878_v14, %v1830_v60 }
 0x1f2   :  { %v1979_v62 = vpop.f32.mrf.mxu1 }
 0x1f3   :  { %v2270_v42 = vadd.f32 %v2269_v8, %v2268_v47  ;;  %v2295_v31 = vrot.slane %v2294_v2, 2  ;;  %v1928_v57 = vadd.f32 %v1927_v9, %v1879_v23  ;;  %2027 = vmatmul.bf16.gmra.mxu2 %v5428_v49  ;;  %2125 = vmatmul.bf16.gmra.mxu0 %v4513_v30  ;;  %v5433_v8 = vld [vmem:[#allocation28_spill] sm:$0xff] }
 0x1f4   :  { %2076 = vmatmul.bf16.gmra.mxu3 %v5429_v29 }
 0x1f5   :  { %2174 = vmatmul.bf16.gmra.mxu1 %v5430_v12  ;;  %v2271_v32 = vrot.slane %v2270_v42, 1  ;;  %v2296_v27 = vadd.f32 %v2295_v31, %v2294_v2  ;;  %v5208_v20 = vadd.f32 %v1976_v46, %v1928_v57 }
 0x1f6   :  { %v1832_v56 = vpop.f32.mrf.mxu2 }
 0x1f7   :  { %v2272_v3 = vadd.f32 %v2271_v32, %v2270_v42  ;;  %v2297_v38 = vrot.slane %v2296_v27, 1  ;;  %v1833_v25 = vadd.f32 %v1832_v56, %v4935_v55  ;;  %v1881_v9 = vpop.f32.mrf.mxu3 }
 0x1f8   :  { %v1932_v30 = vpop.f32.mrf.mxu0 }
 0x1f9   :  { %v2298_v26 = vadd.f32 %v2297_v38, %v2296_v27  ;;  %v1882_v21 = vadd.f32 %v1881_v9, %v1833_v25  ;;  %v2311_v53 = vsel %vm2310_vm0, %v2272_v3, 0.0  ;;  %v5434_v25 = vld [vmem:[#allocation8_spill] sm:$0xff]  ;;  %v5436_v9 = vld [vmem:[#allocation30_spill] sm:$0xff] }
 0x1fa   :  { %v1981_v52 = vpop.f32.mrf.mxu1 }
 0x1fb   :  { %v2314_v46 = vsel %vm2313_vm1, %v2298_v26, 0.0  ;;  %v1931_v7 = vadd.f32 %v1930_v22, %v1882_v21  ;;  %v5432_v22 = vld [vmem:[#allocation27_spill] sm:$0xff] }
 0x1fc   :  { %v2316_v44 = vadd.f32 %v2314_v46, %v2311_v53 }
 0x1fd   :  { %v5217_v43 = vadd.f32 %v1979_v62, %v1931_v7 }
 0x1fe   :  { %2318 = vst [vmem:[%s5340_s4] sm:$0xff] %v2316_v44  ;;  %v1834_v55 = vpop.f32.mrf.mxu2 }
 0x1ff   :  { %v1835_v40 = vadd.f32 %v1834_v55, %v4962_v34  ;;  %v1883_v59 = vpop.f32.mrf.mxu3 }
 0x200   :  { %v1935_v47 = vpop.f32.mrf.mxu0 }
 0x201   :  { %v1884_v10 = vadd.f32 %v1883_v59, %v1835_v40 }
 0x202   :  { %v1984_v60 = vpop.f32.mrf.mxu1 }
 0x203   :  { %v1933_v14 = vadd.f32 %v1932_v30, %v1884_v10  ;;  %2032 = vmatmul.bf16.gmra.mxu2 %v5431_v13  ;;  %2130 = vmatmul.bf16.gmra.mxu0 %v4571_v6  ;;  %v5439_v13 = vld [vmem:[#allocation32_spill] sm:$0xff] }
 0x204   :  { %2081 = vmatmul.bf16.gmra.mxu3 %v5432_v22 }
 0x205   :  { %2179 = vmatmul.bf16.gmra.mxu1 %v5433_v8  ;;  %v5227_v2 = vadd.f32 %v1981_v52, %v1933_v14  ;;  %v5437_v14 = vld [vmem:[#allocation9_spill] sm:$0xff] }
 0x206   :  { %v1837_v23 = vpop.f32.mrf.mxu2 }
 0x207   :  { %v1838_v62 = vadd.f32 %v1837_v23, %v4973_v19  ;;  %v1886_v42 = vpop.f32.mrf.mxu3  ;;  %v5435_v19 = vld [vmem:[#allocation29_spill] sm:$0xff] }
 0x208   :  { %v1937_v34 = vpop.f32.mrf.mxu0 }
 0x209   :  { %v1887_v31 = vadd.f32 %v1886_v42, %v1838_v62 }
 0x20a   :  { %v1986_v57 = vpop.f32.mrf.mxu1 }
 0x20b   :  { %v1936_v49 = vadd.f32 %v1935_v47, %v1887_v31 }
 0x20d   :  { %v5230_v29 = vadd.f32 %v1984_v60, %v1936_v49 }
 0x20e   :  { %v1839_v12 = vpop.f32.mrf.mxu2 }
 0x20f   :  { %v1840_v32 = vadd.f32 %v1839_v12, %v5000_v45  ;;  %v1888_v6 = vpop.f32.mrf.mxu3 }
 0x210   :  { %v1940_v27 = vpop.f32.mrf.mxu0 }
 0x211   :  { %v1889_v56 = vadd.f32 %v1888_v6, %v1840_v32 }
 0x212   :  { %v1989_v3 = vpop.f32.mrf.mxu1 }
 0x213   :  { %v1938_v38 = vadd.f32 %v1937_v34, %v1889_v56  ;;  %2037 = vmatmul.bf16.gmra.mxu2 %v5434_v25  ;;  %2135 = vmatmul.bf16.gmra.mxu0 %v4629_v51 }
 0x214   :  { %2086 = vmatmul.bf16.gmra.mxu3 %v5435_v19 }
 0x215   :  { %2184 = vmatmul.bf16.gmra.mxu1 %v5436_v9  ;;  %v5237_v30 = vadd.f32 %v1986_v57, %v1938_v38  ;;  %v5442_v38 = vld [vmem:[#allocation34_spill] sm:$0xff] }
 0x216   :  { %v1842_v26 = vpop.f32.mrf.mxu2 }
 0x217   :  { %v1843_v21 = vadd.f32 %v1842_v26, %v5013_v63  ;;  %v1891_v52 = vpop.f32.mrf.mxu3  ;;  %v5438_v63 = vld [vmem:[#allocation31_spill] sm:$0xff] }
 0x218   :  { %v1942_v45 = vpop.f32.mrf.mxu0 }
 0x219   :  { %v1892_v53 = vadd.f32 %v1891_v52, %v1843_v21 }
 0x21a   :  { %v1991_v46 = vpop.f32.mrf.mxu1 }
 0x21b   :  { %v1941_v7 = vadd.f32 %v1940_v27, %v1892_v53 }
 0x21d   :  { %v5240_v44 = vadd.f32 %v1989_v3, %v1941_v7  ;;  %v5440_v3 = vld [vmem:[#allocation13_spill] sm:$0xff] }
 0x21e   :  { %v1844_v55 = vpop.f32.mrf.mxu2 }
 0x21f   :  { %v1845_v40 = vadd.f32 %v1844_v55, %v5042_v17  ;;  %v1893_v51 = vpop.f32.mrf.mxu3 }
 0x220   :  { %v1945_v59 = vpop.f32.mrf.mxu0 }
 0x221   :  { %v1894_v47 = vadd.f32 %v1893_v51, %v1845_v40 }
 0x222   :  { %v1994_v10 = vpop.f32.mrf.mxu1 }
 0x223   :  { %v1943_v60 = vadd.f32 %v1942_v45, %v1894_v47  ;;  %2042 = vmatmul.bf16.gmra.mxu2 %v5437_v14  ;;  %2140 = vmatmul.bf16.gmra.mxu0 %v4687_v41  ;;  %v5443_v47 = vld [vmem:[#allocation17_spill] sm:$0xff] }
 0x224   :  { %2091 = vmatmul.bf16.gmra.mxu3 %v5438_v63 }
 0x225   :  { %2189 = vmatmul.bf16.gmra.mxu1 %v5439_v13  ;;  %v5247_v22 = vadd.f32 %v1991_v46, %v1943_v60 }
 0x226   :  { %v1847_v8 = vpop.f32.mrf.mxu2 }
 0x227   :  { %v1848_v23 = vadd.f32 %v1847_v8, %v5052_v5  ;;  %v1896_v62 = vpop.f32.mrf.mxu3  ;;  %v5441_v5 = vld [vmem:[#allocation33_spill] sm:$0xff] }
 0x228   :  { %v1947_v17 = vpop.f32.mrf.mxu0 }
 0x229   :  { %v1897_v42 = vadd.f32 %v1896_v62, %v1848_v23 }
 0x22a   :  { %v1996_v34 = vpop.f32.mrf.mxu1 }
 0x22b   :  { %v1946_v31 = vadd.f32 %v1945_v59, %v1897_v42 }
 0x22d   :  { %v5250_v57 = vadd.f32 %v1994_v10, %v1946_v31  ;;  %v5445_v10 = vld [vmem:[#allocation36_spill] sm:$0xff] }
 0x22e   :  { %v1849_v49 = vpop.f32.mrf.mxu2 }
 0x22f   :  { %v1850_v12 = vadd.f32 %v1849_v49, %v5081_v48  ;;  %v1898_v41 = vpop.f32.mrf.mxu3 }
 0x230   :  { %v1950_v32 = vpop.f32.mrf.mxu0 }
 0x231   :  { %v1899_v6 = vadd.f32 %v1898_v41, %v1850_v12 }
 0x232   :  { %v1999_v27 = vpop.f32.mrf.mxu1 }
 0x233   :  { %v1948_v56 = vadd.f32 %v1947_v17, %v1899_v6  ;;  %2047 = vmatmul.bf16.gmra.mxu2 %v5440_v3  ;;  %2145 = vmatmul.bf16.gmra.mxu0 %v4745_v39 }
 0x234   :  { %2096 = vmatmul.bf16.gmra.mxu3 %v5441_v5 }
 0x235   :  { %2194 = vmatmul.bf16.gmra.mxu1 %v5442_v38  ;;  %v5257_v25 = vadd.f32 %v1996_v34, %v1948_v56 }
 0x236   :  { %v1852_v19 = vpop.f32.mrf.mxu2 }
 0x237   :  { %v1853_v9 = vadd.f32 %v1852_v19, %v5089_v24  ;;  %v1901_v26 = vpop.f32.mrf.mxu3  ;;  %v5444_v24 = vld [vmem:[#allocation35_spill] sm:$0xff] }
 0x238   :  { %v1952_v48 = vpop.f32.mrf.mxu0 }
 0x239   :  { %v1902_v21 = vadd.f32 %v1901_v26, %v1853_v9 }
 0x23a   :  { %v2001_v52 = vpop.f32.mrf.mxu1 }
 0x23b   :  { %v1951_v45 = vadd.f32 %v1950_v32, %v1902_v21  ;;  %v5446_v32 = vld [vmem:[#allocation21_spill] sm:$0xff] }
 0x23d   :  { %v5260_v53 = vadd.f32 %v1999_v27, %v1951_v45 }
 0x23e   :  { %v1854_v46 = vpop.f32.mrf.mxu2 }
 0x23f   :  { %v1855_v7 = vadd.f32 %v1854_v46, %v5107_v58  ;;  %v1903_v39 = vpop.f32.mrf.mxu3 }
 0x240   :  { %v1955_v55 = vpop.f32.mrf.mxu0 }
 0x241   :  { %v1904_v40 = vadd.f32 %v1903_v39, %v1855_v7 }
 0x242   :  { %v2004_v51 = vpop.f32.mrf.mxu1 }
 0x243   :  { %v1953_v59 = vadd.f32 %v1952_v48, %v1904_v40  ;;  %2052 = vmatmul.bf16.gmra.mxu2 %v5443_v47  ;;  %2150 = vmatmul.bf16.gmra.mxu0 %v4803_v36 }
 0x244   :  { %2101 = vmatmul.bf16.gmra.mxu3 %v5444_v24 }
 0x245   :  { %2199 = vmatmul.bf16.gmra.mxu1 %v5445_v10  ;;  %v5267_v60 = vadd.f32 %v2001_v52, %v1953_v59 }
 0x246   :  { %v1857_v14 = vpop.f32.mrf.mxu2 }
 0x247   :  { %v1858_v63 = vadd.f32 %v1857_v14, %v5136_v18  ;;  %v1906_v13 = vpop.f32.mrf.mxu3 }
 0x248   :  { %v1957_v58 = vpop.f32.mrf.mxu0 }
 0x249   :  { %v1907_v8 = vadd.f32 %v1906_v13, %v1858_v63 }
 0x24a   :  { %v2006_v23 = vpop.f32.mrf.mxu1 }
 0x24b   :  { %v1956_v62 = vadd.f32 %v1955_v55, %v1907_v8 }
 0x24d   :  { %v5270_v17 = vadd.f32 %v2004_v51, %v1956_v62 }
 0x24e   :  { %v1859_v42 = vpop.f32.mrf.mxu2 }
 0x24f   :  { %v1860_v34 = vadd.f32 %v1859_v42, %v5152_v61  ;;  %v1908_v36 = vpop.f32.mrf.mxu3 }
 0x250   :  { %v1960_v31 = vpop.f32.mrf.mxu0 }
 0x251   :  { %v1909_v49 = vadd.f32 %v1908_v36, %v1860_v34 }
 0x252   :  { %v2009_v12 = vpop.f32.mrf.mxu1 }
 0x253   :  { %v1958_v41 = vadd.f32 %v1957_v58, %v1909_v49  ;;  %2057 = vmatmul.bf16.gmra.mxu2 %v5446_v32  ;;  %2155 = vmatmul.bf16.gmra.mxu0 %v4861_v11 }
 0x254   :  { %2106 = vmatmul.bf16.gmra.mxu3 %v4857_v28 }
 0x255   :  { %2204 = vmatmul.bf16.gmra.mxu1 %v4859_v35  ;;  %v5277_v18 = vadd.f32 %v2006_v23, %v1958_v41 }
 0x256   :  { %v1862_v6 = vpop.f32.mrf.mxu2 }
 0x257   :  { %v1863_v27 = vadd.f32 %v1862_v6, %v5156_v1  ;;  %v1911_v56 = vpop.f32.mrf.mxu3 }
 0x258   :  { %v1962_v61 = vpop.f32.mrf.mxu0 }
 0x259   :  { %v1912_v3 = vadd.f32 %v1911_v56, %v1863_v27 }
 0x25a   :  { %v2011_v5 = vpop.f32.mrf.mxu1 }
 0x25b   :  { %v1961_v38 = vadd.f32 %v1960_v31, %v1912_v3 }
 0x25d   :  { %v5280_v19 = vadd.f32 %v2009_v12, %v1961_v38 }
 0x25e   :  { %v1864_v9 = vpop.f32.mrf.mxu2 }
 0x25f   :  { %v1865_v26 = vadd.f32 %v1864_v9, %v5169_v16  ;;  %v1913_v11 = vpop.f32.mrf.mxu3 }
 0x260   :  { %v2121_v48 = vpop.f32.mrf.mxu0 }
 0x261   :  { %v1914_v28 = vadd.f32 %v1913_v11, %v1865_v26 }
 0x262   :  { %v2170_v21 = vpop.f32.mrf.mxu1 }
 0x263   :  { %v1963_v35 = vadd.f32 %v1962_v61, %v1914_v28 }
 0x265   :  { %v5283_v52 = vadd.f32 %v2011_v5, %v1963_v35 }
 0x266   :  { %v2023_v45 = vpop.f32.mrf.mxu2 }
 0x267   :  { %v2024_v1 = vadd.f32 %v2023_v45, %v5199_v33  ;;  %v2072_v46 = vpop.f32.mrf.mxu3 }
 0x268   :  { %v2123_v7 = vpop.f32.mrf.mxu0 }
 0x269   :  { %v2073_v39 = vadd.f32 %v2072_v46, %v2024_v1 }
 0x26a   :  { %v2172_v55 = vpop.f32.mrf.mxu1 }
 0x26b   :  { %v2122_v40 = vadd.f32 %v2121_v48, %v2073_v39 }
 0x26d   :  { %v5286_v51 = vadd.f32 %v2170_v21, %v2122_v40 }
 0x26e   :  { %v2025_v59 = vpop.f32.mrf.mxu2 }
 0x26f   :  { %v2026_v16 = vadd.f32 %v2025_v59, %v5208_v20  ;;  %v2074_v47 = vpop.f32.mrf.mxu3 }
 0x270   :  { %v2126_v24 = vpop.f32.mrf.mxu0 }
 0x271   :  { %v2075_v10 = vadd.f32 %v2074_v47, %v2026_v16 }
 0x272   :  { %v2175_v14 = vpop.f32.mrf.mxu1 }
 0x273   :  { %v2124_v63 = vadd.f32 %v2123_v7, %v2075_v10 }
 0x275   :  { %v5289_v13 = vadd.f32 %v2172_v55, %v2124_v63 }
 0x276   :  { %v2028_v58 = vpop.f32.mrf.mxu2 }
 0x277   :  { %v2029_v33 = vadd.f32 %v2028_v58, %v5217_v43  ;;  %v2077_v8 = vpop.f32.mrf.mxu3 }
 0x278   :  { %v2128_v23 = vpop.f32.mrf.mxu0 }
 0x279   :  { %v2078_v62 = vadd.f32 %v2077_v8, %v2029_v33 }
 0x27a   :  { %v2177_v42 = vpop.f32.mrf.mxu1 }
 0x27b   :  { %v2127_v34 = vadd.f32 %v2126_v24, %v2078_v62 }
 0x27d   :  { %v5292_v36 = vadd.f32 %v2175_v14, %v2127_v34 }
 0x27e   :  { %v2030_v31 = vpop.f32.mrf.mxu2 }
 0x27f   :  { %v2031_v20 = vadd.f32 %v2030_v31, %v5227_v2  ;;  %v2079_v49 = vpop.f32.mrf.mxu3 }
 0x280   :  { %v2131_v12 = vpop.f32.mrf.mxu0 }
 0x281   :  { %v2080_v41 = vadd.f32 %v2079_v49, %v2031_v20 }
 0x282   :  { %v2180_v32 = vpop.f32.mrf.mxu1 }
 0x283   :  { %v2129_v6 = vadd.f32 %v2128_v23, %v2080_v41 }
 0x285   :  { %v5295_v27 = vadd.f32 %v2177_v42, %v2129_v6 }
 0x286   :  { %v2033_v56 = vpop.f32.mrf.mxu2 }
 0x287   :  { %v2034_v43 = vadd.f32 %v2033_v56, %v5230_v29  ;;  %v2082_v61 = vpop.f32.mrf.mxu3 }
 0x288   :  { %v2133_v3 = vpop.f32.mrf.mxu0 }
 0x289   :  { %v2083_v5 = vadd.f32 %v2082_v61, %v2034_v43 }
 0x28a   :  { %v2182_v38 = vpop.f32.mrf.mxu1 }
 0x28b   :  { %v2132_v9 = vadd.f32 %v2131_v12, %v2083_v5 }
 0x28d   :  { %v2181_v26 = vadd.f32 %v2180_v32, %v2132_v9 }
 0x28e   :  { %v2035_v11 = vpop.f32.mrf.mxu2 }
 0x28f   :  { %v2213_v48 = vmax.f32 %v5286_v51, %v2181_v26  ;;  %v2036_v2 = vadd.f32 %v2035_v11, %v5237_v30  ;;  %v2084_v28 = vpop.f32.mrf.mxu3 }
 0x290   :  { %v2136_v21 = vpop.f32.mrf.mxu0 }
 0x291   :  { %v2085_v35 = vadd.f32 %v2084_v28, %v2036_v2 }
 0x292   :  { %v2185_v45 = vpop.f32.mrf.mxu1 }
 0x293   :  { %v2134_v1 = vadd.f32 %v2133_v3, %v2085_v35 }
 0x295   :  { %v2183_v46 = vadd.f32 %v2182_v38, %v2134_v1 }
 0x296   :  { %v2038_v7 = vpop.f32.mrf.mxu2 }
 0x297   :  { %v2219_v29 = vmax.f32 %v5289_v13, %v2183_v46  ;;  %v2039_v39 = vadd.f32 %v2038_v7, %v5240_v44  ;;  %v2087_v55 = vpop.f32.mrf.mxu3 }
 0x298   :  { %v2138_v40 = vpop.f32.mrf.mxu0 }
 0x299   :  { %v2088_v59 = vadd.f32 %v2087_v55, %v2039_v39 }
 0x29a   :  { %v2187_v16 = vpop.f32.mrf.mxu1 }
 0x29b   :  { %v2137_v47 = vadd.f32 %v2136_v21, %v2088_v59 }
 0x29d   :  { %v2186_v24 = vadd.f32 %v2185_v45, %v2137_v47 }
 0x29e   :  { %v2040_v51 = vpop.f32.mrf.mxu2 }
 0x29f   :  { %v2225_v30 = vmax.f32 %v5292_v36, %v2186_v24  ;;  %v2041_v10 = vadd.f32 %v2040_v51, %v5247_v22  ;;  %v2089_v14 = vpop.f32.mrf.mxu3  ;;  %v2237_v24 = vperm.slane %v5166_v15, 1 }
 0x2a0   :  { %v2141_v63 = vpop.f32.mrf.mxu0 }
 0x2a1   :  { %v2090_v58 = vadd.f32 %v2089_v14, %v2041_v10 }
 0x2a2   :  { %v2190_v33 = vpop.f32.mrf.mxu1 }
 0x2a3   :  { %v2139_v8 = vadd.f32 %v2138_v40, %v2090_v58 }
 0x2a5   :  { %v2188_v23 = vadd.f32 %v2187_v16, %v2139_v8 }
 0x2a6   :  { %v2043_v13 = vpop.f32.mrf.mxu2 }
 0x2a7   :  { %v2231_v44 = vmax.f32 %v5295_v27, %v2188_v23  ;;  %v2044_v62 = vadd.f32 %v2043_v13, %v5250_v57  ;;  %v2092_v42 = vpop.f32.mrf.mxu3 }
 0x2a8   :  { %v2143_v34 = vpop.f32.mrf.mxu0 }
 0x2a9   :  { %v2093_v31 = vadd.f32 %v2092_v42, %v2044_v62 }
 0x2aa   :  { %v2192_v20 = vpop.f32.mrf.mxu1 }
 0x2ab   :  { %v2142_v49 = vadd.f32 %v2141_v63, %v2093_v31 }
 0x2ad   :  { %v2191_v12 = vadd.f32 %v2190_v33, %v2142_v49 }
 0x2ae   :  { %v2045_v36 = vpop.f32.mrf.mxu2 }
 0x2af   :  { %v2214_v41 = vmax.f32 %v2213_v48, %v2191_v12  ;;  %v2046_v22 = vadd.f32 %v2045_v36, %v5257_v25  ;;  %v2094_v32 = vpop.f32.mrf.mxu3 }
 0x2b0   :  { %v2146_v6 = vpop.f32.mrf.mxu0 }
 0x2b1   :  { %v2095_v56 = vadd.f32 %v2094_v32, %v2046_v22 }
 0x2b2   :  { %v2195_v43 = vpop.f32.mrf.mxu1 }
 0x2b3   :  { %v2144_v61 = vadd.f32 %v2143_v34, %v2095_v56 }
 0x2b5   :  { %v2193_v3 = vadd.f32 %v2192_v20, %v2144_v61 }
 0x2b6   :  { %v2048_v5 = vpop.f32.mrf.mxu2 }
 0x2b7   :  { %v2220_v27 = vmax.f32 %v2219_v29, %v2193_v3  ;;  %v2049_v57 = vadd.f32 %v2048_v5, %v5260_v53  ;;  %v2097_v38 = vpop.f32.mrf.mxu3 }
 0x2b8   :  { %v2148_v26 = vpop.f32.mrf.mxu0 }
 0x2b9   :  { %v2098_v9 = vadd.f32 %v2097_v38, %v2049_v57 }
 0x2ba   :  { %v2197_v2 = vpop.f32.mrf.mxu1 }
 0x2bb   :  { %v2147_v11 = vadd.f32 %v2146_v6, %v2098_v9 }
 0x2bd   :  { %v2196_v28 = vadd.f32 %v2195_v43, %v2147_v11 }
 0x2be   :  { %v2050_v21 = vpop.f32.mrf.mxu2 }
 0x2bf   :  { %v2226_v48 = vmax.f32 %v2225_v30, %v2196_v28  ;;  %v2051_v25 = vadd.f32 %v2050_v21, %v5267_v60  ;;  %v2099_v35 = vpop.f32.mrf.mxu3 }
 0x2c0   :  { %v2151_v46 = vpop.f32.mrf.mxu0 }
 0x2c1   :  { %v2100_v45 = vadd.f32 %v2099_v35, %v2051_v25 }
 0x2c2   :  { %v2200_v39 = vpop.f32.mrf.mxu1 }
 0x2c3   :  { %v2149_v1 = vadd.f32 %v2148_v26, %v2100_v45 }
 0x2c5   :  { %v2198_v7 = vadd.f32 %v2197_v2, %v2149_v1 }
 0x2c6   :  { %v2053_v55 = vpop.f32.mrf.mxu2 }
 0x2c7   :  { %v2232_v29 = vmax.f32 %v2231_v44, %v2198_v7  ;;  %v2054_v53 = vadd.f32 %v2053_v55, %v5270_v17  ;;  %v2102_v40 = vpop.f32.mrf.mxu3 }
 0x2c8   :  { %v2153_v51 = vpop.f32.mrf.mxu0 }
 0x2c9   :  { %v2103_v59 = vadd.f32 %v2102_v40, %v2054_v53 }
 0x2ca   :  { %v2202_v63 = vpop.f32.mrf.mxu1 }
 0x2cb   :  { %v2152_v16 = vadd.f32 %v2151_v46, %v2103_v59 }
 0x2cd   :  { %v2201_v47 = vadd.f32 %v2200_v39, %v2152_v16 }
 0x2ce   :  { %v2055_v30 = vpop.f32.mrf.mxu2 }
 0x2cf   :  { %v2215_v10 = vmax.f32 %v2214_v41, %v2201_v47  ;;  %v2056_v60 = vadd.f32 %v2055_v30, %v5277_v18  ;;  %v2104_v14 = vpop.f32.mrf.mxu3 }
 0x2d0   :  { %v2156_v34 = vpop.f32.mrf.mxu0 }
 0x2d1   :  { %v2241_v58 = vadd.f32 %v2237_v24, %v2215_v10  ;;  %v2105_v33 = vadd.f32 %v2104_v14, %v2056_v60 }
 0x2d2   :  { %v2205_v20 = vpop.f32.mrf.mxu1 }
 0x2d3   :  { %v2249_v8 = vmax.f32 %v2241_v58, 0.0  ;;  %v2154_v23 = vadd.f32 %v2153_v51, %v2105_v33 }
 0x2d5   :  { %v2256_v13 = vpack.c.bf16 %v2249_v8, %v5176_v0  ;;  %v2203_v17 = vadd.f32 %v2202_v63, %v2154_v23  ;;  %v2283_v36 = vmul.f32 %v2249_v8, %v2249_v8 }
 0x2d6   :  { %v2058_v44 = vpop.f32.mrf.mxu2 }
 0x2d7   :  { %2260 = vst [vmem:[%s5341_s3] sm:$0xff] %v2256_v13  ;;  %v2221_v15 = vmax.f32 %v2220_v27, %v2203_v17  ;;  %v2059_v62 = vadd.f32 %v2058_v44, %v5280_v19  ;;  %v2107_v42 = vpop.f32.mrf.mxu3 }
 0x2d8   :  { %v2158_v27 = vpop.f32.mrf.mxu0 }
 0x2d9   :  { %v2243_v18 = vadd.f32 %v2237_v24, %v2221_v15  ;;  %v2108_v31 = vadd.f32 %v2107_v42, %v2059_v62 }
 0x2da   :  { %v2207_v9 = vpop.f32.mrf.mxu1 }
 0x2db   :  { %v2251_v49 = vmax.f32 %v2243_v18, 0.0  ;;  %v2157_v12 = vadd.f32 %v2156_v34, %v2108_v31 }
 0x2dd   :  { %v2257_v41 = vpack.c.bf16 %v2251_v49, %v5174_v50  ;;  %v2273_v0 = vadd.f32 %v2251_v49, %v2249_v8  ;;  %v2285_v22 = vmul.f32 %v2251_v49, %v2251_v49  ;;  %v2206_v32 = vadd.f32 %v2205_v20, %v2157_v12 }
 0x2de   :  { %v2060_v6 = vpop.f32.mrf.mxu2 }
 0x2df   :  { %2261 = vst [vmem:[%s5341_s3 + $0x8] sm:$0xff] %v2257_v41  ;;  %v2299_v56 = vadd.f32 %v2285_v22, %v2283_v36  ;;  %v2227_v19 = vmax.f32 %v2226_v48, %v2206_v32  ;;  %v2061_v43 = vadd.f32 %v2060_v6, %v5283_v52  ;;  %v2109_v61 = vpop.f32.mrf.mxu3 }
 0x2e1   :  { %v2245_v3 = vadd.f32 %v2237_v24, %v2227_v19  ;;  %v2110_v5 = vadd.f32 %v2109_v61, %v2061_v43 }
 0x2e3   :  { %v2253_v57 = vmax.f32 %v2245_v3, 0.0  ;;  %v2159_v38 = vadd.f32 %v2158_v27, %v2110_v5 }
 0x2e5   :  { %v2258_v50 = vpack.c.bf16 %v2253_v57, %v5178_v4  ;;  %v2274_v26 = vadd.f32 %v2273_v0, %v2253_v57  ;;  %v2287_v11 = vmul.f32 %v2253_v57, %v2253_v57  ;;  %v2208_v2 = vadd.f32 %v2207_v9, %v2159_v38 }
 0x2e7   :  { %2262 = vst [vmem:[%s5341_s3 + $0x10] sm:$0xff] %v2258_v50  ;;  %v2300_v28 = vadd.f32 %v2299_v56, %v2287_v11  ;;  %v2233_v21 = vmax.f32 %v2232_v29, %v2208_v2 }
 0x2e9   :  { %v2247_v48 = vadd.f32 %v2237_v24, %v2233_v21 }
 0x2eb   :  { %v2255_v52 = vmax.f32 %v2247_v48, 0.0 }
 0x2ed   :  { %v2259_v25 = vpack.c.bf16 %v2255_v52, %v5194_v54  ;;  %v2275_v35 = vadd.f32 %v2274_v26, %v2255_v52  ;;  %v2289_v45 = vmul.f32 %v2255_v52, %v2255_v52 }
 0x2ef   :  { %2263 = vst [vmem:[%s5341_s3 + $0x18] sm:$0xff] %v2259_v25  ;;  %v2276_v4 = vrot.slane %v2275_v35, 4  ;;  %v2301_v1 = vadd.f32 %v2300_v28, %v2289_v45 }
 0x2f1   :  { %v2277_v46 = vadd.f32 %v2276_v4, %v2275_v35  ;;  %v2302_v7 = vrot.slane %v2301_v1, 4 }
 0x2f3   :  { %v2278_v39 = vrot.slane %v2277_v46, 2  ;;  %v2303_v55 = vadd.f32 %v2302_v7, %v2301_v1 }
 0x2f5   :  { %v2279_v53 = vadd.f32 %v2278_v39, %v2277_v46  ;;  %v2304_v40 = vrot.slane %v2303_v55, 2 }
 0x2f7   :  { %v2280_v59 = vrot.slane %v2279_v53, 1  ;;  %v2305_v29 = vadd.f32 %v2304_v40, %v2303_v55 }
 0x2f9   :  { %v2281_v16 = vadd.f32 %v2280_v59, %v2279_v53  ;;  %v2306_v47 = vrot.slane %v2305_v29, 1 }
 0x2fb   :  { %v2307_v24 = vadd.f32 %v2306_v47, %v2305_v29  ;;  %v2312_v54 = vsel %vm2310_vm0, %v2281_v16, 0.0 }
 0x2fd   :  { %v2315_v51 = vsel %vm2313_vm1, %v2307_v24, 0.0 }
 0x2fe   :  { %v2317_v30 = vadd.f32 %v2315_v51, %v2312_v54 }
 0x300   :  { %2319 = vst [vmem:[%s5340_s4 + $0x8] sm:$0xff] %v2317_v30 }

// kernel: conditioned_vae_encoder.14
= control target key start
LH: loop header
LB: loop body
LE: loop exit
PB: predicated region body
PF: predicated region fallthrough
CT: control target
= control target key end

     0   :  { %s6626_s1 = inlined_call_operand.vmem [shape: bf16[2304,256], index: 1, kind: input, shape index: {}]   ;;  %s6627_s0 = inlined_call_operand.vmem [shape: bf16[1,32,2304], index: 0, kind: input, shape index: {}]   ;;  %s6628_s2 = inlined_call_operand.vmem [shape: f32[1,256], index: 2, kind: input, shape index: {}]   ;;  %s6629_s4 = inlined_call_operand.vmem [shape: f32[8,256], index: 4, kind: output, shape index: {1}]   ;;  %s6630_s3 = inlined_call_operand.vmem [shape: bf16[32,256], index: 3, kind: output, shape index: {0}]  }
   0x1   :  { %v2932_v0 = vld [vmem:[%s6626_s1 + $0x70] sm:$0xf]  ;;  %v4077_v1 = vld [vmem:[%s6626_s1 + $0x74] sm:$0xf0]  ;;  %v2924_v11 = vld [vmem:[%s6626_s1 + $0x60] sm:$0xf] }
   0x2   :  { %v2996_v2 = vld [vmem:[%s6626_s1 + $0xf0] sm:$0xf]  ;;  %v2933_v3 = vor.u32 %v4077_v1, %v2932_v0  ;;  %v4093_v4 = vld [vmem:[%s6626_s1 + $0xf4] sm:$0xf0]  ;;  %v4075_v13 = vld [vmem:[%s6626_s1 + $0x64] sm:$0xf0] }
   0x3   :  { %v3060_v5 = vld [vmem:[%s6626_s1 + $0x170] sm:$0xf]  ;;  %v4109_v6 = vld [vmem:[%s6626_s1 + $0x174] sm:$0xf0]  ;;  %v2997_v7 = vor.u32 %v4093_v4, %v2996_v2  ;;  %v2988_v14 = vld [vmem:[%s6626_s1 + $0xe0] sm:$0xf]  ;;  %v2925_v16 = vor.u32 %v4075_v13, %v2924_v11 }
   0x4   :  { %v3061_v8 = vor.u32 %v4109_v6, %v3060_v5  ;;  %v3124_v9 = vld [vmem:[%s6626_s1 + $0x1f0] sm:$0xf]  ;;  %v4125_v10 = vld [vmem:[%s6626_s1 + $0x1f4] sm:$0xf0]  ;;  %1966 = vmatpush.bf16.msra.mxu0 %v2933_v3  ;;  %v4091_v15 = vld [vmem:[%s6626_s1 + $0xe4] sm:$0xf0] }
   0x5   :  { %v3125_v12 = vor.u32 %v4125_v10, %v3124_v9  ;;  %1985 = vmatpush.bf16.msra.mxu1 %v2997_v7  ;;  %v2989_v17 = vor.u32 %v4091_v15, %v2988_v14  ;;  %v3052_v18 = vld [vmem:[%s6626_s1 + $0x160] sm:$0xf]  ;;  %v4107_v19 = vld [vmem:[%s6626_s1 + $0x164] sm:$0xf0]  ;;  %v2916_v23 = vld [vmem:[%s6626_s1 + $0x50] sm:$0xf] }
   0x6   :  { %2004 = vmatpush.bf16.msra.mxu2 %v3061_v8  ;;  %v3116_v20 = vld [vmem:[%s6626_s1 + $0x1e0] sm:$0xf]  ;;  %v3053_v21 = vor.u32 %v4107_v19, %v3052_v18  ;;  %v4123_v22 = vld [vmem:[%s6626_s1 + $0x1e4] sm:$0xf0]  ;;  %v4073_v24 = vld [vmem:[%s6626_s1 + $0x54] sm:$0xf0] }
   0x7   :  { %2023 = vmatpush.bf16.msra.mxu3 %v3125_v12  ;;  %v3117_v25 = vor.u32 %v4123_v22, %v3116_v20  ;;  %v2980_v26 = vld [vmem:[%s6626_s1 + $0xd0] sm:$0xf]  ;;  %v4089_v27 = vld [vmem:[%s6626_s1 + $0xd4] sm:$0xf0]  ;;  %v2917_v29 = vor.u32 %v4073_v24, %v2916_v23  ;;  %v2908_v35 = vld [vmem:[%s6626_s1 + $0x40] sm:$0xf] }
   0x8   :  { %v3044_v28 = vld [vmem:[%s6626_s1 + $0x150] sm:$0xf]  ;;  %1967 = vmatpush.bf16.msra.mxu0 %v2925_v16  ;;  %v4105_v30 = vld [vmem:[%s6626_s1 + $0x154] sm:$0xf0]  ;;  %v2981_v33 = vor.u32 %v4089_v27, %v2980_v26  ;;  %v4071_v36 = vld [vmem:[%s6626_s1 + $0x44] sm:$0xf0] }
   0x9   :  { %v3108_v31 = vld [vmem:[%s6626_s1 + $0x1d0] sm:$0xf]  ;;  %v4121_v32 = vld [vmem:[%s6626_s1 + $0x1d4] sm:$0xf0]  ;;  %1986 = vmatpush.bf16.msra.mxu1 %v2989_v17  ;;  %v3045_v34 = vor.u32 %v4105_v30, %v3044_v28  ;;  %v2972_v37 = vld [vmem:[%s6626_s1 + $0xc0] sm:$0xf]  ;;  %v2909_v44 = vor.u32 %v4071_v36, %v2908_v35 }
   0xa   :  { %2005 = vmatpush.bf16.msra.mxu2 %v3053_v21  ;;  %v3109_v38 = vor.u32 %v4121_v32, %v3108_v31  ;;  %v4087_v39 = vld [vmem:[%s6626_s1 + $0xc4] sm:$0xf0]  ;;  %v3036_v40 = vld [vmem:[%s6626_s1 + $0x140] sm:$0xf]  ;;  %v2900_v47 = vld [vmem:[%s6626_s1 + $0x30] sm:$0xf] }
   0xb   :  { %2024 = vmatpush.bf16.msra.mxu3 %v3117_v25  ;;  %v4103_v41 = vld [vmem:[%s6626_s1 + $0x144] sm:$0xf0]  ;;  %v3100_v42 = vld [vmem:[%s6626_s1 + $0x1c0] sm:$0xf]  ;;  %v2973_v45 = vor.u32 %v4087_v39, %v2972_v37  ;;  %v4069_v48 = vld [vmem:[%s6626_s1 + $0x34] sm:$0xf0] }
   0xc   :  { %v4119_v43 = vld [vmem:[%s6626_s1 + $0x1c4] sm:$0xf0]  ;;  %1968 = vmatpush.bf16.msra.mxu0 %v2917_v29  ;;  %v3037_v46 = vor.u32 %v4103_v41, %v3036_v40  ;;  %v2964_v49 = vld [vmem:[%s6626_s1 + $0xb0] sm:$0xf]  ;;  %v4085_v51 = vld [vmem:[%s6626_s1 + $0xb4] sm:$0xf0]  ;;  %v2901_v56 = vor.u32 %v4069_v48, %v2900_v47 }
   0xd   :  { %1987 = vmatpush.bf16.msra.mxu1 %v2981_v33  ;;  %v3101_v50 = vor.u32 %v4119_v43, %v3100_v42  ;;  %v3028_v52 = vld [vmem:[%s6626_s1 + $0x130] sm:$0xf]  ;;  %v4101_v53 = vld [vmem:[%s6626_s1 + $0x134] sm:$0xf0]  ;;  %v2965_v57 = vor.u32 %v4085_v51, %v2964_v49  ;;  %v2892_v59 = vld [vmem:[%s6626_s1 + $0x20] sm:$0xf] }
   0xe   :  { %2006 = vmatpush.bf16.msra.mxu2 %v3045_v34  ;;  %v3092_v54 = vld [vmem:[%s6626_s1 + $0x1b0] sm:$0xf]  ;;  %v4117_v55 = vld [vmem:[%s6626_s1 + $0x1b4] sm:$0xf0]  ;;  %v3029_v58 = vor.u32 %v4101_v53, %v3028_v52  ;;  %v4067_v60 = vld [vmem:[%s6626_s1 + $0x24] sm:$0xf0] }
   0xf   :  { %2025 = vmatpush.bf16.msra.mxu3 %v3109_v38  ;;  %v2956_v61 = vld [vmem:[%s6626_s1 + $0xa0] sm:$0xf]  ;;  %v3093_v62 = vor.u32 %v4117_v55, %v3092_v54  ;;  %v4083_v63 = vld [vmem:[%s6626_s1 + $0xa4] sm:$0xf0]  ;;  %v2893_v4 = vor.u32 %v4067_v60, %v2892_v59  ;;  %v2884_v7 = vld [vmem:[%s6626_s1 + $0x10] sm:$0xf] }
  0x10   :  { %1969 = vmatpush.bf16.msra.mxu0 %v2909_v44  ;;  %v3020_v0 = vld [vmem:[%s6626_s1 + $0x120] sm:$0xf]  ;;  %v4099_v1 = vld [vmem:[%s6626_s1 + $0x124] sm:$0xf0]  ;;  %v2957_v5 = vor.u32 %v4083_v63, %v2956_v61  ;;  %v4065_v8 = vld [vmem:[%s6626_s1 + $0x14] sm:$0xf0] }
  0x11   :  { %1988 = vmatpush.bf16.msra.mxu1 %v2973_v45  ;;  %v3084_v2 = vld [vmem:[%s6626_s1 + $0x1a0] sm:$0xf]  ;;  %v4115_v3 = vld [vmem:[%s6626_s1 + $0x1a4] sm:$0xf0]  ;;  %v3021_v6 = vor.u32 %v4099_v1, %v3020_v0  ;;  %v2948_v9 = vld [vmem:[%s6626_s1 + $0x90] sm:$0xf]  ;;  %v2885_v17 = vor.u32 %v4065_v8, %v2884_v7 }
  0x12   :  { %2007 = vmatpush.bf16.msra.mxu2 %v3037_v46  ;;  %v3085_v10 = vor.u32 %v4115_v3, %v3084_v2  ;;  %v4081_v11 = vld [vmem:[%s6626_s1 + $0x94] sm:$0xf0]  ;;  %v3012_v12 = vld [vmem:[%s6626_s1 + $0x110] sm:$0xf]  ;;  %v2876_v16 = vld [vmem:[%s6626_s1] sm:$0xf] }
  0x13   :  { %2026 = vmatpush.bf16.msra.mxu3 %v3101_v50  ;;  %v4097_v13 = vld [vmem:[%s6626_s1 + $0x114] sm:$0xf0]  ;;  %v3076_v14 = vld [vmem:[%s6626_s1 + $0x190] sm:$0xf]  ;;  %v4063_v18 = vld [vmem:[%s6626_s1 + $0x4] sm:$0xf0]  ;;  %v2949_v21 = vor.u32 %v4081_v11, %v2948_v9 }
  0x14   :  { %1970 = vmatpush.bf16.msra.mxu0 %v2901_v56  ;;  %v4113_v15 = vld [vmem:[%s6626_s1 + $0x194] sm:$0xf0]  ;;  %v2940_v19 = vld [vmem:[%s6626_s1 + $0x80] sm:$0xf]  ;;  %v4079_v20 = vld [vmem:[%s6626_s1 + $0x84] sm:$0xf0]  ;;  %v3013_v22 = vor.u32 %v4097_v13, %v3012_v12  ;;  %v2877_v34 = vor.u32 %v4063_v18, %v2876_v16 }
  0x15   :  { %1989 = vmatpush.bf16.msra.mxu1 %v2965_v57  ;;  %v3004_v23 = vld [vmem:[%s6626_s1 + $0x100] sm:$0xf]  ;;  %v4095_v24 = vld [vmem:[%s6626_s1 + $0x104] sm:$0xf0]  ;;  %v3077_v26 = vor.u32 %v4113_v15, %v3076_v14  ;;  %v4026_v30 = vld [vmem:[%s6627_s0 + $0x4] sm:$0xf]  ;;  %v2941_v38 = vor.u32 %v4079_v20, %v2940_v19 }
  0x16   :  { %2008 = vmatpush.bf16.msra.mxu2 %v3029_v58  ;;  %v3068_v25 = vld [vmem:[%s6626_s1 + $0x180] sm:$0xf]  ;;  %v4111_v27 = vld [vmem:[%s6626_s1 + $0x184] sm:$0xf0]  ;;  %v2734_v31 = vld [vmem:[%s6627_s0 + $0x48] sm:$0xf0]  ;;  %v3005_v39 = vor.u32 %v4095_v24, %v3004_v23 }
  0x17   :  { %2027 = vmatpush.bf16.msra.mxu3 %v3093_v62  ;;  %v2732_v28 = vld [vmem:[%s6627_s0] sm:$0xf]  ;;  %v4035_v29 = vld [vmem:[%s6627_s0 + $0x44] sm:$0xf0]  ;;  %v3316_v32 = vld [vmem:[%s6626_s1 + $0x370] sm:$0xf]  ;;  %v3069_v43 = vor.u32 %v4111_v27, %v3068_v25  ;;  %v4624_v53 = vor.u32 %v4026_v30, %v2734_v31 }
  0x18   :  { %1971 = vmatpush.bf16.msra.mxu0 %v2893_v4  ;;  %v4173_v33 = vld [vmem:[%s6626_s1 + $0x374] sm:$0xf0]  ;;  %v2740_v35 = vld [vmem:[%s6627_s0 + $0x8] sm:$0xf]  ;;  %v3252_v36 = vld [vmem:[%s6626_s1 + $0x2f0] sm:$0xf]  ;;  %v4613_v48 = vor.u32 %v4035_v29, %v2732_v28 }
  0x19   :  { %1990 = vmatpush.bf16.msra.mxu1 %v2957_v5  ;;  %v4157_v37 = vld [vmem:[%s6626_s1 + $0x2f4] sm:$0xf0]  ;;  %v4036_v40 = vld [vmem:[%s6627_s0 + $0x4c] sm:$0xf0]  ;;  %v4027_v41 = vld [vmem:[%s6627_s0 + $0xc] sm:$0xf]  ;;  %v3317_v44 = vor.u32 %v4173_v33, %v3316_v32 }
  0x1a   :  { %2009 = vmatpush.bf16.msra.mxu2 %v3021_v6  ;;  %v2742_v42 = vld [vmem:[%s6627_s0 + $0x50] sm:$0xf0]  ;;  %v3188_v45 = vld [vmem:[%s6626_s1 + $0x270] sm:$0xf]  ;;  %v4141_v46 = vld [vmem:[%s6626_s1 + $0x274] sm:$0xf0]  ;;  %v3253_v49 = vor.u32 %v4157_v37, %v3252_v36  ;;  %v4626_v54 = vor.u32 %v4036_v40, %v2740_v35 }
  0x1b   :  { %2028 = vmatpush.bf16.msra.mxu3 %v3085_v10  ;;  %v3380_v47 = vld [vmem:[%s6626_s1 + $0x3f0] sm:$0xf]  ;;  %v4189_v50 = vld [vmem:[%s6626_s1 + $0x3f4] sm:$0xf0]  ;;  %v3308_v51 = vld [vmem:[%s6626_s1 + $0x360] sm:$0xf]  ;;  %v4634_v57 = vor.u32 %v4027_v41, %v2742_v42  ;;  %v3189_v58 = vor.u32 %v4141_v46, %v3188_v45 }
  0x1c   :  { %1972 = vmatpush.bf16.msra.mxu0 %v2885_v17  ;;  %v4171_v52 = vld [vmem:[%s6626_s1 + $0x364] sm:$0xf0]  ;;  %v3244_v55 = vld [vmem:[%s6626_s1 + $0x2e0] sm:$0xf]  ;;  %v3381_v59 = vor.u32 %v4189_v50, %v3380_v47  ;;  %v3300_v2 = vld [vmem:[%s6626_s1 + $0x350] sm:$0xf] }
  0x1d   :  { %1991 = vmatpush.bf16.msra.mxu1 %v2949_v21  ;;  %v4155_v56 = vld [vmem:[%s6626_s1 + $0x2e4] sm:$0xf0]  ;;  %v3309_v60 = vor.u32 %v4171_v52, %v3308_v51  ;;  %v3180_v61 = vld [vmem:[%s6626_s1 + $0x260] sm:$0xf]  ;;  %v4169_v3 = vld [vmem:[%s6626_s1 + $0x354] sm:$0xf0] }
  0x1e   :  { %2010 = vmatpush.bf16.msra.mxu2 %v3013_v22  ;;  %v4139_v62 = vld [vmem:[%s6626_s1 + $0x264] sm:$0xf0]  ;;  %v3372_v63 = vld [vmem:[%s6626_s1 + $0x3e0] sm:$0xf]  ;;  %v3245_v0 = vor.u32 %v4155_v56, %v3244_v55  ;;  %v3236_v4 = vld [vmem:[%s6626_s1 + $0x2d0] sm:$0xf]  ;;  %v3301_v8 = vor.u32 %v4169_v3, %v3300_v2 }
  0x1f   :  { %2029 = vmatpush.bf16.msra.mxu3 %v3077_v26  ;;  %v4187_v1 = vld [vmem:[%s6626_s1 + $0x3e4] sm:$0xf0]  ;;  %v4153_v5 = vld [vmem:[%s6626_s1 + $0x2d4] sm:$0xf0]  ;;  %v3181_v6 = vor.u32 %v4139_v62, %v3180_v61  ;;  %v3172_v9 = vld [vmem:[%s6626_s1 + $0x250] sm:$0xf] }
  0x20   :  { %1973 = vmatpush.bf16.msra.mxu0 %v2877_v34  ;;  %v3373_v7 = vor.u32 %v4187_v1, %v3372_v63  ;;  %v4137_v10 = vld [vmem:[%s6626_s1 + $0x254] sm:$0xf0]  ;;  %v3364_v11 = vld [vmem:[%s6626_s1 + $0x3d0] sm:$0xf]  ;;  %v3237_v12 = vor.u32 %v4153_v5, %v3236_v4  ;;  %v3292_v14 = vld [vmem:[%s6626_s1 + $0x340] sm:$0xf] }
  0x21   :  { %1992 = vmatpush.bf16.msra.mxu1 %v2941_v38  ;;  %v4185_v13 = vld [vmem:[%s6626_s1 + $0x3d4] sm:$0xf0]  ;;  %v4167_v15 = vld [vmem:[%s6626_s1 + $0x344] sm:$0xf0]  ;;  %v3228_v16 = vld [vmem:[%s6626_s1 + $0x2c0] sm:$0xf]  ;;  %v3173_v18 = vor.u32 %v4137_v10, %v3172_v9 }
  0x22   :  { %2011 = vmatpush.bf16.msra.mxu2 %v3005_v39  ;;  %v4151_v17 = vld [vmem:[%s6626_s1 + $0x2c4] sm:$0xf0]  ;;  %v3164_v19 = vld [vmem:[%s6626_s1 + $0x240] sm:$0xf]  ;;  %v3365_v22 = vor.u32 %v4185_v13, %v3364_v11  ;;  %v3293_v23 = vor.u32 %v4167_v15, %v3292_v14  ;;  %v2804_v25 = vld [vmem:[%s6627_s0 + $0x90] sm:$0xf] }
  0x23   :  { %2030 = vmatpush.bf16.msra.mxu3 %v3069_v43  ;;  %1974 = vmatmul.bf16.vlgmr.msra.gmra.mxu0 %v4613_v48  ;;  %v4135_v20 = vld [vmem:[%s6626_s1 + $0x244] sm:$0xf0]  ;;  %v3356_v21 = vld [vmem:[%s6626_s1 + $0x3c0] sm:$0xf]  ;;  %v4053_v26 = vld [vmem:[%s6627_s0 + $0xd4] sm:$0xf0]  ;;  %v3229_v27 = vor.u32 %v4151_v17, %v3228_v16 }
  0x24   :  { %1993 = vmatmul.bf16.vlgmr.msra.gmra.mxu1 %v4624_v53  ;;  %2042 = vmatpush.bf16.msrb.mxu0 %v3189_v58  ;;  %v4183_v24 = vld [vmem:[%s6626_s1 + $0x3c4] sm:$0xf0]  ;;  %v4044_v28 = vld [vmem:[%s6627_s0 + $0x94] sm:$0xf]  ;;  %v2806_v29 = vld [vmem:[%s6627_s0 + $0xd8] sm:$0xf0]  ;;  %v3165_v35 = vor.u32 %v4135_v20, %v3164_v19 }
  0x25   :  { %2061 = vmatpush.bf16.msrb.mxu1 %v3253_v49  ;;  %2012 = vmatmul.bf16.vlgmr.msra.gmra.mxu2 %v4626_v54  ;;  %v3284_v30 = vld [vmem:[%s6626_s1 + $0x330] sm:$0xf]  ;;  %v4165_v31 = vld [vmem:[%s6626_s1 + $0x334] sm:$0xf0]  ;;  %v4054_v36 = vld [vmem:[%s6627_s0 + $0xdc] sm:$0xf0]  ;;  %v3357_v39 = vor.u32 %v4183_v24, %v3356_v21  ;;  %v4756_v50 = vor.u32 %v4044_v28, %v2806_v29 }
  0x26   :  { %2080 = vmatpush.bf16.msrb.mxu2 %v3317_v44  ;;  %2031 = vmatmul.bf16.vlgmr.msra.gmra.mxu3 %v4634_v57  ;;  %v2812_v32 = vld [vmem:[%s6627_s0 + $0x98] sm:$0xf]  ;;  %v3220_v33 = vld [vmem:[%s6626_s1 + $0x2b0] sm:$0xf]  ;;  %v4045_v37 = vld [vmem:[%s6627_s0 + $0x9c] sm:$0xf]  ;;  %v3285_v40 = vor.u32 %v4165_v31, %v3284_v30  ;;  %v4745_v44 = vor.u32 %v4053_v26, %v2804_v25 }
  0x27   :  { %2099 = vmatpush.bf16.msrb.mxu3 %v3381_v59  ;;  %v4149_v34 = vld [vmem:[%s6626_s1 + $0x2b4] sm:$0xf0]  ;;  %v2814_v38 = vld [vmem:[%s6627_s0 + $0xe0] sm:$0xf0]  ;;  %v3156_v41 = vld [vmem:[%s6626_s1 + $0x230] sm:$0xf]  ;;  %v4758_v51 = vor.u32 %v4054_v36, %v2812_v32 }
  0x28   :  { %2043 = vmatpush.bf16.msrb.mxu0 %v3181_v6  ;;  %v4133_v42 = vld [vmem:[%s6626_s1 + $0x234] sm:$0xf0]  ;;  %v3348_v43 = vld [vmem:[%s6626_s1 + $0x3b0] sm:$0xf]  ;;  %v3221_v45 = vor.u32 %v4149_v34, %v3220_v33  ;;  %v3276_v47 = vld [vmem:[%s6626_s1 + $0x320] sm:$0xf]  ;;  %v4766_v56 = vor.u32 %v4045_v37, %v2814_v38 }
  0x29   :  { %2062 = vmatpush.bf16.msrb.mxu1 %v3245_v0  ;;  %v4181_v46 = vld [vmem:[%s6626_s1 + $0x3b4] sm:$0xf0]  ;;  %v4163_v49 = vld [vmem:[%s6626_s1 + $0x324] sm:$0xf0]  ;;  %v3212_v52 = vld [vmem:[%s6626_s1 + $0x2a0] sm:$0xf]  ;;  %v3157_v58 = vor.u32 %v4133_v42, %v3156_v41 }
  0x2a   :  { %2081 = vmatpush.bf16.msrb.mxu2 %v3309_v60  ;;  %v4147_v55 = vld [vmem:[%s6626_s1 + $0x2a4] sm:$0xf0]  ;;  %v3349_v59 = vor.u32 %v4181_v46, %v3348_v43  ;;  %v3277_v60 = vor.u32 %v4163_v49, %v3276_v47  ;;  %v3148_v61 = vld [vmem:[%s6626_s1 + $0x220] sm:$0xf]  ;;  %v3268_v2 = vld [vmem:[%s6626_s1 + $0x310] sm:$0xf] }
  0x2b   :  { %2100 = vmatpush.bf16.msrb.mxu3 %v3373_v7  ;;  %v4131_v62 = vld [vmem:[%s6626_s1 + $0x224] sm:$0xf0]  ;;  %v3340_v63 = vld [vmem:[%s6626_s1 + $0x3a0] sm:$0xf]  ;;  %v3213_v0 = vor.u32 %v4147_v55, %v3212_v52  ;;  %v4161_v3 = vld [vmem:[%s6626_s1 + $0x314] sm:$0xf0] }
  0x2c   :  { %2044 = vmatpush.bf16.msrb.mxu0 %v3173_v18  ;;  %v4179_v1 = vld [vmem:[%s6626_s1 + $0x3a4] sm:$0xf0]  ;;  %v3204_v4 = vld [vmem:[%s6626_s1 + $0x290] sm:$0xf]  ;;  %v4145_v5 = vld [vmem:[%s6626_s1 + $0x294] sm:$0xf0]  ;;  %v3149_v6 = vor.u32 %v4131_v62, %v3148_v61  ;;  %v3269_v9 = vor.u32 %v4161_v3, %v3268_v2 }
  0x2d   :  { %2063 = vmatpush.bf16.msrb.mxu1 %v3237_v12  ;;  %v3140_v7 = vld [vmem:[%s6626_s1 + $0x210] sm:$0xf]  ;;  %v4129_v10 = vld [vmem:[%s6626_s1 + $0x214] sm:$0xf0]  ;;  %v3205_v13 = vor.u32 %v4145_v5, %v3204_v4  ;;  %v3260_v14 = vld [vmem:[%s6626_s1 + $0x300] sm:$0xf] }
  0x2e   :  { %2082 = vmatpush.bf16.msrb.mxu2 %v3301_v8  ;;  %v3341_v8 = vor.u32 %v4179_v1, %v3340_v63  ;;  %v3332_v11 = vld [vmem:[%s6626_s1 + $0x390] sm:$0xf]  ;;  %v4177_v12 = vld [vmem:[%s6626_s1 + $0x394] sm:$0xf0]  ;;  %v4159_v15 = vld [vmem:[%s6626_s1 + $0x304] sm:$0xf0]  ;;  %v3141_v20 = vor.u32 %v4129_v10, %v3140_v7 }
  0x2f   :  { %2101 = vmatpush.bf16.msrb.mxu3 %v3365_v22  ;;  %v3196_v16 = vld [vmem:[%s6626_s1 + $0x280] sm:$0xf]  ;;  %v4143_v17 = vld [vmem:[%s6626_s1 + $0x284] sm:$0xf0]  ;;  %v3572_v18 = vld [vmem:[%s6626_s1 + $0x570] sm:$0xf]  ;;  %v3333_v24 = vor.u32 %v4177_v12, %v3332_v11  ;;  %v3261_v25 = vor.u32 %v4159_v15, %v3260_v14 }
  0x30   :  { %2045 = vmatpush.bf16.msrb.mxu0 %v3165_v35  ;;  %v4237_v19 = vld [vmem:[%s6626_s1 + $0x574] sm:$0xf0]  ;;  %v3132_v21 = vld [vmem:[%s6626_s1 + $0x200] sm:$0xf]  ;;  %v3508_v22 = vld [vmem:[%s6626_s1 + $0x4f0] sm:$0xf]  ;;  %v3197_v29 = vor.u32 %v4143_v17, %v3196_v16 }
  0x31   :  { %2064 = vmatpush.bf16.msrb.mxu1 %v3229_v27  ;;  %v4127_v26 = vld [vmem:[%s6626_s1 + $0x204] sm:$0xf0]  ;;  %v3324_v27 = vld [vmem:[%s6626_s1 + $0x380] sm:$0xf]  ;;  %v2748_v30 = vld [vmem:[%s6627_s0 + $0x10] sm:$0xf]  ;;  %v3573_v34 = vor.u32 %v4237_v19, %v3572_v18 }
  0x32   :  { %2083 = vmatpush.bf16.msrb.mxu2 %v3293_v23  ;;  %v4221_v23 = vld [vmem:[%s6626_s1 + $0x4f4] sm:$0xf0]  ;;  %v4175_v28 = vld [vmem:[%s6626_s1 + $0x384] sm:$0xf0]  ;;  %v4028_v32 = vld [vmem:[%s6627_s0 + $0x14] sm:$0xf]  ;;  %v3133_v42 = vor.u32 %v4127_v26, %v3132_v21 }
  0x33   :  { %2102 = vmatpush.bf16.msrb.mxu3 %v3357_v39  ;;  %1979 = vmatmul.bf16.gmra.mxu0 %v4745_v44  ;;  %v4037_v31 = vld [vmem:[%s6627_s0 + $0x54] sm:$0xf0]  ;;  %v2750_v33 = vld [vmem:[%s6627_s0 + $0x58] sm:$0xf0]  ;;  %v3444_v35 = vld [vmem:[%s6626_s1 + $0x470] sm:$0xf]  ;;  %v3509_v38 = vor.u32 %v4221_v23, %v3508_v22  ;;  %v3325_v47 = vor.u32 %v4175_v28, %v3324_v27 }
  0x34   :  { %1998 = vmatmul.bf16.gmra.mxu1 %v4756_v50  ;;  %2046 = vmatpush.bf16.msrb.mxu0 %v3157_v58  ;;  %v4205_v36 = vld [vmem:[%s6626_s1 + $0x474] sm:$0xf0]  ;;  %v3636_v37 = vld [vmem:[%s6626_s1 + $0x5f0] sm:$0xf]  ;;  %v4235_v41 = vld [vmem:[%s6626_s1 + $0x564] sm:$0xf0]  ;;  %v4903_v1 = vor.u32 %v4028_v32, %v2750_v33 }
  0x35   :  { %2065 = vmatpush.bf16.msrb.mxu1 %v3221_v45  ;;  %2017 = vmatmul.bf16.gmra.mxu2 %v4758_v51  ;;  %v4253_v39 = vld [vmem:[%s6626_s1 + $0x5f4] sm:$0xf0]  ;;  %v4038_v45 = vld [vmem:[%s6627_s0 + $0x5c] sm:$0xf0]  ;;  %v4029_v46 = vld [vmem:[%s6627_s0 + $0x1c] sm:$0xf]  ;;  %v3445_v52 = vor.u32 %v4205_v36, %v3444_v35 }
  0x36   :  { %2084 = vmatpush.bf16.msrb.mxu2 %v3285_v40  ;;  %2036 = vmatmul.bf16.gmra.mxu3 %v4766_v56  ;;  %v3564_v40 = vld [vmem:[%s6626_s1 + $0x560] sm:$0xf]  ;;  %v2756_v43 = vld [vmem:[%s6627_s0 + $0x18] sm:$0xf]  ;;  %v2758_v49 = vld [vmem:[%s6627_s0 + $0x60] sm:$0xf0] }
  0x37   :  { %2103 = vmatpush.bf16.msrb.mxu3 %v3349_v59  ;;  %v3436_v55 = vld [vmem:[%s6626_s1 + $0x460] sm:$0xf]  ;;  %v4203_v58 = vld [vmem:[%s6626_s1 + $0x464] sm:$0xf0]  ;;  %v3637_v59 = vor.u32 %v4253_v39, %v3636_v37  ;;  %v3556_v3 = vld [vmem:[%s6626_s1 + $0x550] sm:$0xf]  ;;  %v4914_v5 = vor.u32 %v4038_v45, %v2756_v43 }
  0x38   :  { %2047 = vmatpush.bf16.msrb.mxu0 %v3149_v6  ;;  %v3500_v61 = vld [vmem:[%s6626_s1 + $0x4e0] sm:$0xf]  ;;  %v4219_v62 = vld [vmem:[%s6626_s1 + $0x4e4] sm:$0xf0]  ;;  %v4233_v4 = vld [vmem:[%s6626_s1 + $0x554] sm:$0xf0]  ;;  %v4916_v6 = vor.u32 %v4029_v46, %v2758_v49  ;;  %v3437_v7 = vor.u32 %v4203_v58, %v3436_v55 }
  0x39   :  { %2066 = vmatpush.bf16.msrb.mxu1 %v3213_v0  ;;  %v3628_v63 = vld [vmem:[%s6626_s1 + $0x5e0] sm:$0xf]  ;;  %v4901_v0 = vor.u32 %v4037_v31, %v2748_v30  ;;  %v4251_v2 = vld [vmem:[%s6626_s1 + $0x5e4] sm:$0xf0]  ;;  %v4201_v10 = vld [vmem:[%s6626_s1 + $0x454] sm:$0xf0]  ;;  %v3557_v12 = vor.u32 %v4233_v4, %v3556_v3 }
  0x3a   :  { %2085 = vmatpush.bf16.msrb.mxu2 %v3277_v60  ;;  %v3565_v60 = vor.u32 %v4235_v41, %v3564_v40  ;;  %v3629_v11 = vor.u32 %v4251_v2, %v3628_v63  ;;  %v4217_v14 = vld [vmem:[%s6626_s1 + $0x4d4] sm:$0xf0]  ;;  %v3620_v15 = vld [vmem:[%s6626_s1 + $0x5d0] sm:$0xf]  ;;  %v3548_v17 = vld [vmem:[%s6626_s1 + $0x540] sm:$0xf] }
  0x3b   :  { %2104 = vmatpush.bf16.msrb.mxu3 %v3341_v8  ;;  %v3501_v8 = vor.u32 %v4219_v62, %v3500_v61  ;;  %v4249_v16 = vld [vmem:[%s6626_s1 + $0x5d4] sm:$0xf0]  ;;  %v4231_v18 = vld [vmem:[%s6626_s1 + $0x544] sm:$0xf0]  ;;  %v3420_v21 = vld [vmem:[%s6626_s1 + $0x440] sm:$0xf] }
  0x3c   :  { %2048 = vmatpush.bf16.msrb.mxu0 %v3141_v20  ;;  %v4199_v22 = vld [vmem:[%s6626_s1 + $0x444] sm:$0xf0]  ;;  %v3621_v23 = vor.u32 %v4249_v16, %v3620_v15  ;;  %v3612_v27 = vld [vmem:[%s6626_s1 + $0x5c0] sm:$0xf]  ;;  %v4229_v30 = vld [vmem:[%s6626_s1 + $0x534] sm:$0xf0] }
  0x3d   :  { %2067 = vmatpush.bf16.msrb.mxu1 %v3205_v13  ;;  %v3492_v13 = vld [vmem:[%s6626_s1 + $0x4d0] sm:$0xf]  ;;  %v4215_v26 = vld [vmem:[%s6626_s1 + $0x4c4] sm:$0xf0]  ;;  %v3421_v31 = vor.u32 %v4199_v22, %v3420_v21  ;;  %v2820_v36 = vld [vmem:[%s6627_s0 + $0xa0] sm:$0xf] }
  0x3e   :  { %2086 = vmatpush.bf16.msrb.mxu2 %v3269_v9  ;;  %v3428_v9 = vld [vmem:[%s6626_s1 + $0x450] sm:$0xf]  ;;  %v3493_v20 = vor.u32 %v4217_v14, %v3492_v13  ;;  %v4247_v28 = vld [vmem:[%s6626_s1 + $0x5c4] sm:$0xf0]  ;;  %v2822_v39 = vld [vmem:[%s6627_s0 + $0xe8] sm:$0xf0] }
  0x3f   :  { %2105 = vmatpush.bf16.msrb.mxu3 %v3333_v24  ;;  %v3429_v19 = vor.u32 %v4201_v10, %v3428_v9  ;;  %v3549_v24 = vor.u32 %v4231_v18, %v3548_v17  ;;  %v3412_v33 = vld [vmem:[%s6626_s1 + $0x430] sm:$0xf]  ;;  %v3613_v35 = vor.u32 %v4247_v28, %v3612_v27  ;;  %v4055_v37 = vld [vmem:[%s6627_s0 + $0xe4] sm:$0xf0]  ;;  %v4245_v45 = vld [vmem:[%s6626_s1 + $0x5b4] sm:$0xf0] }
  0x40   :  { %2049 = vmatpush.bf16.msrb.mxu0 %v3133_v42  ;;  %v3476_v41 = vld [vmem:[%s6626_s1 + $0x4b0] sm:$0xf]  ;;  %v4213_v42 = vld [vmem:[%s6626_s1 + $0x4b4] sm:$0xf0]  ;;  %v3532_v46 = vld [vmem:[%s6626_s1 + $0x520] sm:$0xf] }
  0x41   :  { %2068 = vmatpush.bf16.msrb.mxu1 %v3197_v29  ;;  %v3540_v29 = vld [vmem:[%s6626_s1 + $0x530] sm:$0xf]  ;;  %v2828_v49 = vld [vmem:[%s6627_s0 + $0xa8] sm:$0xf]  ;;  %v4047_v55 = vld [vmem:[%s6627_s0 + $0xac] sm:$0xf] }
  0x42   :  { %2087 = vmatpush.bf16.msrb.mxu2 %v3261_v25  ;;  %v3484_v25 = vld [vmem:[%s6626_s1 + $0x4c0] sm:$0xf]  ;;  %v3541_v40 = vor.u32 %v4229_v30, %v3540_v29  ;;  %v3604_v43 = vld [vmem:[%s6626_s1 + $0x5b0] sm:$0xf]  ;;  %v2830_v58 = vld [vmem:[%s6627_s0 + $0xf0] sm:$0xf0] }
  0x43   :  { %2106 = vmatpush.bf16.msrb.mxu3 %v3325_v47  ;;  %2050 = vmatmul.bf16.vlgmr.msrb.gmra.mxu0 %v4901_v0  ;;  %v3485_v32 = vor.u32 %v4215_v26, %v3484_v25  ;;  %v4227_v47 = vld [vmem:[%s6626_s1 + $0x524] sm:$0xf0]  ;;  %v3404_v61 = vld [vmem:[%s6626_s1 + $0x420] sm:$0xf]  ;;  %v3605_v63 = vor.u32 %v4245_v45, %v3604_v43  ;;  %v5048_v14 = vor.u32 %v4047_v55, %v2830_v58  ;;  %v3396_v17 = vld [vmem:[%s6626_s1 + $0x410] sm:$0xf] }
  0x44   :  { %2118 = vmatpush.bf16.msra.mxu0 %v3445_v52  ;;  %2069 = vmatmul.bf16.vlgmr.msrb.gmra.mxu1 %v4903_v1  ;;  %v4056_v52 = vld [vmem:[%s6627_s0 + $0xec] sm:$0xf0]  ;;  %v4195_v62 = vld [vmem:[%s6626_s1 + $0x424] sm:$0xf0]  ;;  %v3533_v2 = vor.u32 %v4227_v47, %v3532_v46  ;;  %v3468_v3 = vld [vmem:[%s6626_s1 + $0x4a0] sm:$0xf] }
  0x45   :  { %2137 = vmatpush.bf16.msra.mxu1 %v3509_v38  ;;  %2088 = vmatmul.bf16.vlgmr.msrb.gmra.mxu2 %v4914_v5  ;;  %v4046_v38 = vld [vmem:[%s6627_s0 + $0xa4] sm:$0xf]  ;;  %v4211_v4 = vld [vmem:[%s6626_s1 + $0x4a4] sm:$0xf0]  ;;  %v5046_v13 = vor.u32 %v4056_v52, %v2828_v49  ;;  %v3405_v15 = vor.u32 %v4195_v62, %v3404_v61  ;;  %v4193_v18 = vld [vmem:[%s6626_s1 + $0x414] sm:$0xf0] }
  0x46   :  { %2156 = vmatpush.bf16.msra.mxu2 %v3573_v34  ;;  %2107 = vmatmul.bf16.vlgmr.msrb.gmra.mxu3 %v4916_v6  ;;  %v4197_v34 = vld [vmem:[%s6626_s1 + $0x434] sm:$0xf0]  ;;  %v5035_v9 = vor.u32 %v4046_v38, %v2822_v39  ;;  %v4243_v10 = vld [vmem:[%s6626_s1 + $0x5a4] sm:$0xf0]  ;;  %v3469_v16 = vor.u32 %v4211_v4, %v3468_v3  ;;  %v3460_v21 = vld [vmem:[%s6626_s1 + $0x490] sm:$0xf]  ;;  %v3397_v29 = vor.u32 %v4193_v18, %v3396_v17 }
  0x47   :  { %2175 = vmatpush.bf16.msra.mxu3 %v3637_v59  ;;  %v3413_v59 = vor.u32 %v4197_v34, %v3412_v33  ;;  %v4209_v22 = vld [vmem:[%s6626_s1 + $0x494] sm:$0xf0]  ;;  %v3516_v25 = vld [vmem:[%s6626_s1 + $0x500] sm:$0xf]  ;;  %v4223_v26 = vld [vmem:[%s6626_s1 + $0x504] sm:$0xf0] }
  0x48   :  { %2119 = vmatpush.bf16.msra.mxu0 %v3437_v7  ;;  %v3596_v7 = vld [vmem:[%s6626_s1 + $0x5a0] sm:$0xf]  ;;  %v3828_v27 = vld [vmem:[%s6626_s1 + $0x770] sm:$0xf]  ;;  %v4301_v28 = vld [vmem:[%s6626_s1 + $0x774] sm:$0xf0]  ;;  %v3461_v30 = vor.u32 %v4209_v22, %v3460_v21 }
  0x49   :  { %2138 = vmatpush.bf16.msra.mxu1 %v3501_v8  ;;  %v5033_v8 = vor.u32 %v4055_v37, %v2820_v36  ;;  %v3452_v33 = vld [vmem:[%s6626_s1 + $0x480] sm:$0xf]  ;;  %v4207_v36 = vld [vmem:[%s6626_s1 + $0x484] sm:$0xf0]  ;;  %v3829_v39 = vor.u32 %v4301_v28, %v3828_v27  ;;  %v4285_v43 = vld [vmem:[%s6626_s1 + $0x6f4] sm:$0xf0] }
  0x4a   :  { %2157 = vmatpush.bf16.msra.mxu2 %v3565_v60  ;;  %v3477_v60 = vor.u32 %v4213_v42, %v3476_v41  ;;  %v3580_v37 = vld [vmem:[%s6626_s1 + $0x580] sm:$0xf]  ;;  %v4239_v38 = vld [vmem:[%s6626_s1 + $0x584] sm:$0xf0]  ;;  %v4269_v41 = vld [vmem:[%s6626_s1 + $0x674] sm:$0xf0]  ;;  %v3453_v49 = vor.u32 %v4207_v36, %v3452_v33 }
  0x4b   :  { %2176 = vmatpush.bf16.msra.mxu3 %v3629_v11  ;;  %v3524_v11 = vld [vmem:[%s6626_s1 + $0x510] sm:$0xf]  ;;  %v4317_v46 = vld [vmem:[%s6626_s1 + $0x7f4] sm:$0xf0]  ;;  %v3820_v52 = vld [vmem:[%s6626_s1 + $0x760] sm:$0xf]  ;;  %v3581_v58 = vor.u32 %v4239_v38, %v3580_v37 }
  0x4c   :  { %2120 = vmatpush.bf16.msra.mxu0 %v3429_v19  ;;  %v3597_v19 = vor.u32 %v4243_v10, %v3596_v7  ;;  %v3764_v42 = vld [vmem:[%s6626_s1 + $0x6f0] sm:$0xf]  ;;  %v4299_v55 = vld [vmem:[%s6626_s1 + $0x764] sm:$0xf0]  ;;  %v4030_v61 = vld [vmem:[%s6627_s0 + $0x24] sm:$0xf] }
  0x4d   :  { %2139 = vmatpush.bf16.msra.mxu1 %v3493_v20  ;;  %v3892_v45 = vld [vmem:[%s6626_s1 + $0x7f0] sm:$0xf]  ;;  %v3692_v4 = vld [vmem:[%s6626_s1 + $0x660] sm:$0xf]  ;;  %v4267_v7 = vld [vmem:[%s6626_s1 + $0x664] sm:$0xf0] }
  0x4e   :  { %2158 = vmatpush.bf16.msra.mxu2 %v3557_v12  ;;  %v4225_v12 = vld [vmem:[%s6626_s1 + $0x514] sm:$0xf0]  ;;  %v3893_v3 = vor.u32 %v4317_v46, %v3892_v45  ;;  %v2772_v10 = vld [vmem:[%s6627_s0 + $0x28] sm:$0xf]  ;;  %v3756_v17 = vld [vmem:[%s6626_s1 + $0x6e0] sm:$0xf] }
  0x4f   :  { %2177 = vmatpush.bf16.msra.mxu3 %v3621_v23  ;;  %v3525_v20 = vor.u32 %v4225_v12, %v3524_v11  ;;  %v3588_v23 = vld [vmem:[%s6626_s1 + $0x590] sm:$0xf]  ;;  %v4031_v12 = vld [vmem:[%s6627_s0 + $0x2c] sm:$0xf]  ;;  %v4283_v18 = vld [vmem:[%s6626_s1 + $0x6e4] sm:$0xf0] }
  0x50   :  { %2121 = vmatpush.bf16.msra.mxu0 %v3421_v31  ;;  %v3388_v31 = vld [vmem:[%s6626_s1 + $0x400] sm:$0xf]  ;;  %v4040_v11 = vld [vmem:[%s6627_s0 + $0x6c] sm:$0xf0]  ;;  %v4315_v21 = vld [vmem:[%s6626_s1 + $0x7e4] sm:$0xf0] }
  0x51   :  { %2140 = vmatpush.bf16.msra.mxu1 %v3485_v32  ;;  %v4191_v32 = vld [vmem:[%s6626_s1 + $0x404] sm:$0xf0]  ;;  %v3812_v22 = vld [vmem:[%s6626_s1 + $0x750] sm:$0xf]  ;;  %v4265_v27 = vld [vmem:[%s6626_s1 + $0x654] sm:$0xf0]  ;;  %v5184_v28 = vor.u32 %v4040_v11, %v2772_v10 }
  0x52   :  { %2159 = vmatpush.bf16.msra.mxu2 %v3549_v24  ;;  %v4241_v24 = vld [vmem:[%s6626_s1 + $0x594] sm:$0xf0]  ;;  %v3389_v47 = vor.u32 %v4191_v32, %v3388_v31  ;;  %v3748_v32 = vld [vmem:[%s6626_s1 + $0x6d0] sm:$0xf]  ;;  %v3804_v38 = vld [vmem:[%s6626_s1 + $0x740] sm:$0xf] }
  0x53   :  { %2178 = vmatpush.bf16.msra.mxu3 %v3613_v35  ;;  %2055 = vmatmul.bf16.gmra.mxu0 %v5033_v8  ;;  %v3589_v34 = vor.u32 %v4241_v24, %v3588_v23  ;;  %v3517_v35 = vor.u32 %v4223_v26, %v3516_v25  ;;  %v4297_v25 = vld [vmem:[%s6626_s1 + $0x754] sm:$0xf0]  ;;  %v3684_v26 = vld [vmem:[%s6626_s1 + $0x650] sm:$0xf]  ;;  %v3740_v45 = vld [vmem:[%s6626_s1 + $0x6c0] sm:$0xf] }
  0x54   :  { %2122 = vmatpush.bf16.msra.mxu0 %v3413_v59  ;;  %2074 = vmatmul.bf16.gmra.mxu1 %v5035_v9  ;;  %v2764_v59 = vld [vmem:[%s6627_s0 + $0x20] sm:$0xf]  ;;  %v4281_v33 = vld [vmem:[%s6626_s1 + $0x6d4] sm:$0xf0]  ;;  %v3876_v36 = vld [vmem:[%s6626_s1 + $0x7d0] sm:$0xf] }
  0x55   :  { %2141 = vmatpush.bf16.msra.mxu1 %v3477_v60  ;;  %2093 = vmatmul.bf16.gmra.mxu2 %v5046_v13  ;;  %v4039_v60 = vld [vmem:[%s6627_s0 + $0x64] sm:$0xf0]  ;;  %v4313_v37 = vld [vmem:[%s6626_s1 + $0x7d4] sm:$0xf0]  ;;  %v4048_v10 = vld [vmem:[%s6627_s0 + $0xb4] sm:$0xf] }
  0x56   :  { %2160 = vmatpush.bf16.msra.mxu2 %v3541_v40  ;;  %2112 = vmatmul.bf16.gmra.mxu3 %v5048_v14  ;;  %v3700_v40 = vld [vmem:[%s6626_s1 + $0x670] sm:$0xf]  ;;  %v5171_v23 = vor.u32 %v4039_v60, %v2764_v59  ;;  %v4279_v46 = vld [vmem:[%s6626_s1 + $0x6c4] sm:$0xf0]  ;;  %v4293_v59 = vld [vmem:[%s6626_s1 + $0x734] sm:$0xf0] }
  0x57   :  { %2179 = vmatpush.bf16.msra.mxu3 %v3605_v63  ;;  %v3701_v62 = vor.u32 %v4269_v41, %v3700_v40  ;;  %v2766_v63 = vld [vmem:[%s6627_s0 + $0x68] sm:$0xf0]  ;;  %v3676_v40 = vld [vmem:[%s6626_s1 + $0x640] sm:$0xf]  ;;  %v4263_v41 = vld [vmem:[%s6626_s1 + $0x644] sm:$0xf0] }
  0x58   :  { %2123 = vmatpush.bf16.msra.mxu0 %v3405_v15  ;;  %v3821_v15 = vor.u32 %v4299_v55, %v3820_v52  ;;  %v5173_v24 = vor.u32 %v4030_v61, %v2766_v63  ;;  %v3868_v52 = vld [vmem:[%s6626_s1 + $0x7c0] sm:$0xf]  ;;  %v4311_v55 = vld [vmem:[%s6626_s1 + $0x7c4] sm:$0xf0]  ;;  %v3668_v60 = vld [vmem:[%s6626_s1 + $0x630] sm:$0xf] }
  0x59   :  { %2142 = vmatpush.bf16.msra.mxu1 %v3469_v16  ;;  %v2774_v16 = vld [vmem:[%s6627_s0 + $0x70] sm:$0xf0]  ;;  %v4261_v61 = vld [vmem:[%s6626_s1 + $0x634] sm:$0xf0]  ;;  %v3869_v63 = vor.u32 %v4311_v55, %v3868_v52  ;;  %v2838_v11 = vld [vmem:[%s6627_s0 + $0xf8] sm:$0xf0] }
  0x5a   :  { %2161 = vmatpush.bf16.msra.mxu2 %v3533_v2  ;;  %v3765_v2 = vor.u32 %v4285_v43, %v3764_v42  ;;  %v3749_v42 = vor.u32 %v4281_v33, %v3748_v32  ;;  %v3877_v43 = vor.u32 %v4313_v37, %v3876_v36  ;;  %v3724_v32 = vld [vmem:[%s6626_s1 + $0x6a0] sm:$0xf]  ;;  %v4275_v33 = vld [vmem:[%s6626_s1 + $0x6a4] sm:$0xf0]  ;;  %v3716_v52 = vld [vmem:[%s6626_s1 + $0x690] sm:$0xf] }
  0x5b   :  { %2180 = vmatpush.bf16.msra.mxu3 %v3597_v19  ;;  %v3693_v19 = vor.u32 %v4267_v7, %v3692_v4  ;;  %v2836_v4 = vld [vmem:[%s6627_s0 + $0xb0] sm:$0xf]  ;;  %v4057_v7 = vld [vmem:[%s6627_s0 + $0xf4] sm:$0xf0]  ;;  %v3852_v36 = vld [vmem:[%s6626_s1 + $0x7a0] sm:$0xf] }
  0x5c   :  { %2124 = vmatpush.bf16.msra.mxu0 %v3397_v29  ;;  %v5186_v29 = vor.u32 %v4031_v12, %v2774_v16  ;;  %v3860_v16 = vld [vmem:[%s6626_s1 + $0x7b0] sm:$0xf]  ;;  %v4307_v37 = vld [vmem:[%s6626_s1 + $0x7a4] sm:$0xf0]  ;;  %v4273_v55 = vld [vmem:[%s6626_s1 + $0x694] sm:$0xf0] }
  0x5d   :  { %2143 = vmatpush.bf16.msra.mxu1 %v3461_v30  ;;  %v3757_v30 = vor.u32 %v4283_v18, %v3756_v17  ;;  %v4309_v17 = vld [vmem:[%s6626_s1 + $0x7b4] sm:$0xf0]  ;;  %v3788_v18 = vld [vmem:[%s6626_s1 + $0x720] sm:$0xf] }
  0x5e   :  { %2162 = vmatpush.bf16.msra.mxu2 %v3525_v20  ;;  %v3884_v20 = vld [vmem:[%s6626_s1 + $0x7e0] sm:$0xf] }
  0x5f   :  { %2181 = vmatpush.bf16.msra.mxu3 %v3589_v34  ;;  %v3885_v31 = vor.u32 %v4315_v21, %v3884_v20  ;;  %v3813_v34 = vor.u32 %v4297_v25, %v3812_v22  ;;  %v3660_v20 = vld [vmem:[%s6626_s1 + $0x620] sm:$0xf]  ;;  %v4259_v21 = vld [vmem:[%s6626_s1 + $0x624] sm:$0xf0]  ;;  %v2844_v22 = vld [vmem:[%s6627_s0 + $0xb8] sm:$0xf] }
  0x60   :  { %2125 = vmatpush.bf16.msra.mxu0 %v3389_v47  ;;  %v4058_v25 = vld [vmem:[%s6627_s0 + $0xfc] sm:$0xf0] }
  0x61   :  { %2144 = vmatpush.bf16.msra.mxu1 %v3453_v49  ;;  %v3677_v49 = vor.u32 %v4263_v41, %v3676_v40  ;;  %v5305_v40 = vor.u32 %v4048_v10, %v2838_v11  ;;  %v4289_v41 = vld [vmem:[%s6626_s1 + $0x714] sm:$0xf0]  ;;  %v3956_v10 = vld [vmem:[%s6626_s1 + $0x870] sm:$0xf] }
  0x62   :  { %2163 = vmatpush.bf16.msra.mxu2 %v3517_v35  ;;  %v3685_v35 = vor.u32 %v4265_v27, %v3684_v26  ;;  %v4049_v26 = vld [vmem:[%s6627_s0 + $0xbc] sm:$0xf]  ;;  %v2846_v27 = vld [vmem:[%s6627_s0 + $0x100] sm:$0xf0]  ;;  %v4333_v11 = vld [vmem:[%s6626_s1 + $0x874] sm:$0xf0] }
  0x63   :  { %2182 = vmatpush.bf16.msra.mxu3 %v3581_v58  ;;  %2126 = vmatmul.bf16.vlgmr.msra.gmra.mxu0 %v5171_v23  ;;  %v3796_v58 = vld [vmem:[%s6626_s1 + $0x730] sm:$0xf] }
  0x64   :  { %2194 = vmatpush.bf16.msrb.mxu0 %v3701_v62  ;;  %2145 = vmatmul.bf16.vlgmr.msra.gmra.mxu1 %v5173_v24  ;;  %v3741_v62 = vor.u32 %v4279_v46, %v3740_v45  ;;  %v3797_v12 = vor.u32 %v4293_v59, %v3796_v58  ;;  %v5316_v45 = vor.u32 %v4058_v25, %v2844_v22  ;;  %v3844_v58 = vld [vmem:[%s6626_s1 + $0x790] sm:$0xf]  ;;  %v4349_v25 = vld [vmem:[%s6626_s1 + $0x8f4] sm:$0xf0] }
  0x65   :  { %2213 = vmatpush.bf16.msrb.mxu1 %v3765_v2  ;;  %2164 = vmatmul.bf16.vlgmr.msra.gmra.mxu2 %v5184_v28  ;;  %v3732_v2 = vld [vmem:[%s6626_s1 + $0x6b0] sm:$0xf]  ;;  %v5318_v46 = vor.u32 %v4049_v26, %v2846_v27  ;;  %v3957_v27 = vor.u32 %v4333_v11, %v3956_v10 }
  0x66   :  { %2232 = vmatpush.bf16.msrb.mxu2 %v3829_v39  ;;  %v4295_v39 = vld [vmem:[%s6626_s1 + $0x744] sm:$0xf0]  ;;  %2183 = vmatmul.bf16.vlgmr.msra.gmra.mxu3 %v5186_v29  ;;  %v4020_v22 = vld [vmem:[%s6626_s1 + $0x8f0] sm:$0xf] }
  0x67   :  { %2251 = vmatpush.bf16.msrb.mxu3 %v3893_v3  ;;  %v3805_v47 = vor.u32 %v4295_v39, %v3804_v38  ;;  %v4277_v3 = vld [vmem:[%s6626_s1 + $0x6b4] sm:$0xf0]  ;;  %v3780_v38 = vld [vmem:[%s6626_s1 + $0x710] sm:$0xf]  ;;  %v5303_v39 = vor.u32 %v4057_v7, %v2836_v4  ;;  %v4076_v4 = vld [vmem:[%s6626_s1 + $0x74] sm:$0xf] }
  0x68   :  { %2195 = vmatpush.bf16.msrb.mxu0 %v3693_v19  ;;  %v4291_v19 = vld [vmem:[%s6626_s1 + $0x724] sm:$0xf0]  ;;  %v3781_v59 = vor.u32 %v4289_v41, %v3780_v38  ;;  %v2934_v7 = vld [vmem:[%s6626_s1 + $0x78] sm:$0xf0]  ;;  %v2780_v38 = vld [vmem:[%s6627_s0 + $0x30] sm:$0xf] }
  0x69   :  { %2214 = vmatpush.bf16.msrb.mxu1 %v3757_v30  ;;  %v3733_v30 = vor.u32 %v4277_v3, %v3732_v2  ;;  %v3644_v2 = vld [vmem:[%s6626_s1 + $0x600] sm:$0xf]  ;;  %v4255_v3 = vld [vmem:[%s6626_s1 + $0x604] sm:$0xf0]  ;;  %v2937_v26 = vor.u32 %v4076_v4, %v2934_v7  ;;  %v4041_v41 = vld [vmem:[%s6627_s0 + $0x74] sm:$0xf0] }
  0x6a   :  { %2233 = vmatpush.bf16.msrb.mxu2 %v3821_v15  ;;  %v3669_v15 = vor.u32 %v4261_v61, %v3668_v60  ;;  %v4305_v61 = vld [vmem:[%s6626_s1 + $0x794] sm:$0xf0]  ;;  %v4072_v4 = vld [vmem:[%s6626_s1 + $0x54] sm:$0xf]  ;;  %v2918_v7 = vld [vmem:[%s6626_s1 + $0x58] sm:$0xf0] }
  0x6b   :  { %2252 = vmatpush.bf16.msrb.mxu3 %v3885_v31  ;;  %v3861_v31 = vor.u32 %v4309_v17, %v3860_v16  ;;  %v3708_v16 = vld [vmem:[%s6626_s1 + $0x680] sm:$0xf]  ;;  %v4271_v17 = vld [vmem:[%s6626_s1 + $0x684] sm:$0xf0] }
  0x6c   :  { %2196 = vmatpush.bf16.msrb.mxu0 %v3685_v35  ;;  %v3661_v35 = vor.u32 %v4259_v21, %v3660_v20  ;;  %v3645_v20 = vor.u32 %v4255_v3, %v3644_v2  ;;  %v4303_v21 = vld [vmem:[%s6626_s1 + $0x784] sm:$0xf0]  ;;  %v4033_v2 = vld [vmem:[%s6627_s0 + $0x3c] sm:$0xf]  ;;  %v2790_v3 = vld [vmem:[%s6627_s0 + $0x80] sm:$0xf0] }
  0x6d   :  { %2215 = vmatpush.bf16.msrb.mxu1 %v3749_v42  ;;  %v3652_v42 = vld [vmem:[%s6626_s1 + $0x610] sm:$0xf] }
  0x6e   :  { %2234 = vmatpush.bf16.msrb.mxu2 %v3813_v34  ;;  %v3789_v34 = vor.u32 %v4291_v19, %v3788_v18  ;;  %v3836_v18 = vld [vmem:[%s6626_s1 + $0x780] sm:$0xf] }
  0x6f   :  { %2253 = vmatpush.bf16.msrb.mxu3 %v3877_v43  ;;  %v4257_v43 = vld [vmem:[%s6626_s1 + $0x614] sm:$0xf0] }
  0x70   :  { %2197 = vmatpush.bf16.msrb.mxu0 %v3677_v49  ;;  %v3853_v49 = vor.u32 %v4307_v37, %v3852_v36  ;;  %v3653_v60 = vor.u32 %v4257_v43, %v3652_v42  ;;  %v3709_v36 = vor.u32 %v4271_v17, %v3708_v16  ;;  %v3837_v37 = vor.u32 %v4303_v21, %v3836_v18  ;;  %v4032_v42 = vld [vmem:[%s6627_s0 + $0x34] sm:$0xf]  ;;  %v2782_v43 = vld [vmem:[%s6627_s0 + $0x78] sm:$0xf0]  ;;  %v4004_v16 = vld [vmem:[%s6626_s1 + $0x8d0] sm:$0xf] }
  0x71   :  { %2216 = vmatpush.bf16.msrb.mxu1 %v3741_v62  ;;  %v3772_v62 = vld [vmem:[%s6626_s1 + $0x700] sm:$0xf]  ;;  %v5447_v17 = vor.u32 %v4041_v41, %v2780_v38  ;;  %v5449_v18 = vor.u32 %v4032_v42, %v2782_v43  ;;  %v2982_v21 = vld [vmem:[%s6626_s1 + $0xd8] sm:$0xf0]  ;;  %v4086_v38 = vld [vmem:[%s6626_s1 + $0xc4] sm:$0xf] }
  0x72   :  { %2235 = vmatpush.bf16.msrb.mxu2 %v3805_v47  ;;  %v3725_v47 = vor.u32 %v4275_v33, %v3724_v32  ;;  %v4074_v32 = vld [vmem:[%s6626_s1 + $0x64] sm:$0xf]  ;;  %v2926_v33 = vld [vmem:[%s6626_s1 + $0x68] sm:$0xf0] }
  0x73   :  { %2254 = vmatpush.bf16.msrb.mxu3 %v3869_v63  ;;  %v4287_v63 = vld [vmem:[%s6626_s1 + $0x704] sm:$0xf0]  ;;  %2131 = vmatmul.bf16.gmra.mxu0 %v5303_v39  ;;  %v2974_v41 = vld [vmem:[%s6626_s1 + $0xc8] sm:$0xf0] }
  0x74   :  { %2198 = vmatpush.bf16.msrb.mxu0 %v3669_v15  ;;  %2150 = vmatmul.bf16.gmra.mxu1 %v5305_v40  ;;  %v3845_v15 = vor.u32 %v4305_v61, %v3844_v58  ;;  %v3773_v19 = vor.u32 %v4287_v63, %v3772_v62  ;;  %v2990_v61 = vld [vmem:[%s6626_s1 + $0xe8] sm:$0xf0]  ;;  %v2788_v62 = vld [vmem:[%s6627_s0 + $0x38] sm:$0xf]  ;;  %v4042_v63 = vld [vmem:[%s6627_s0 + $0x7c] sm:$0xf0] }
  0x75   :  { %2217 = vmatpush.bf16.msrb.mxu1 %v3733_v30  ;;  %2169 = vmatmul.bf16.gmra.mxu2 %v5316_v45  ;;  %v4092_v30 = vld [vmem:[%s6626_s1 + $0xf4] sm:$0xf] }
  0x76   :  { %2236 = vmatpush.bf16.msrb.mxu2 %v3797_v12  ;;  %2188 = vmatmul.bf16.gmra.mxu3 %v5318_v46  ;;  %v3717_v12 = vor.u32 %v4273_v55, %v3716_v52  ;;  %v4012_v52 = vld [vmem:[%s6626_s1 + $0x8e0] sm:$0xf]  ;;  %v2929_v55 = vor.u32 %v4074_v32, %v2926_v33 }
  0x77   :  { %2255 = vmatpush.bf16.msrb.mxu3 %v3861_v31  ;;  %v2998_v31 = vld [vmem:[%s6626_s1 + $0xf8] sm:$0xf0] }
  0x78   :  { %2199 = vmatpush.bf16.msrb.mxu0 %v3661_v35  ;;  %v4331_v35 = vld [vmem:[%s6626_s1 + $0x864] sm:$0xf0] }
  0x79   :  { %2218 = vmatpush.bf16.msrb.mxu1 %v3725_v47  ;;  %v4021_v47 = vor.u32 %v4349_v25, %v4020_v22  ;;  %v5460_v22 = vor.u32 %v4042_v63, %v2788_v62  ;;  %v5462_v25 = vor.u32 %v4033_v2, %v2790_v3  ;;  %v4084_v62 = vld [vmem:[%s6626_s1 + $0xb4] sm:$0xf]  ;;  %v2966_v63 = vld [vmem:[%s6626_s1 + $0xb8] sm:$0xf0] }
  0x7a   :  { %2237 = vmatpush.bf16.msrb.mxu2 %v3789_v34  ;;  %v3948_v34 = vld [vmem:[%s6626_s1 + $0x860] sm:$0xf] }
  0x7b   :  { %2256 = vmatpush.bf16.msrb.mxu3 %v3853_v49  ;;  %v3001_v49 = vor.u32 %v4092_v30, %v2998_v31  ;;  %v3949_v58 = vor.u32 %v4331_v35, %v3948_v34  ;;  %v4070_v30 = vld [vmem:[%s6626_s1 + $0x44] sm:$0xf]  ;;  %v2910_v31 = vld [vmem:[%s6626_s1 + $0x48] sm:$0xf0]  ;;  %v3932_v34 = vld [vmem:[%s6626_s1 + $0x840] sm:$0xf] }
  0x7c   :  { %2200 = vmatpush.bf16.msrb.mxu0 %v3653_v60  ;;  %v4090_v60 = vld [vmem:[%s6626_s1 + $0xe4] sm:$0xf]  ;;  %v4327_v35 = vld [vmem:[%s6626_s1 + $0x844] sm:$0xf0]  ;;  %v2913_v42 = vor.u32 %v4070_v30, %v2910_v31  ;;  %v2958_v31 = vld [vmem:[%s6626_s1 + $0xa8] sm:$0xf0] }
  0x7d   :  { %2219 = vmatpush.bf16.msrb.mxu1 %v3717_v12  ;;  %v2993_v11 = vor.u32 %v4090_v60, %v2990_v61  ;;  %v3940_v12 = vld [vmem:[%s6626_s1 + $0x850] sm:$0xf]  ;;  %v3933_v43 = vor.u32 %v4327_v35, %v3932_v34  ;;  %v4341_v61 = vld [vmem:[%s6626_s1 + $0x8b4] sm:$0xf0]  ;;  %v4082_v30 = vld [vmem:[%s6626_s1 + $0xa4] sm:$0xf] }
  0x7e   :  { %2238 = vmatpush.bf16.msrb.mxu2 %v3781_v59  ;;  %v4347_v59 = vld [vmem:[%s6626_s1 + $0x8e4] sm:$0xf0]  ;;  %v3988_v60 = vld [vmem:[%s6626_s1 + $0x8b0] sm:$0xf]  ;;  %v4051_v34 = vld [vmem:[%s6627_s0 + $0xcc] sm:$0xf] }
  0x7f   :  { %2257 = vmatpush.bf16.msrb.mxu3 %v3845_v15  ;;  %v4013_v10 = vor.u32 %v4347_v59, %v4012_v52  ;;  %v4329_v15 = vld [vmem:[%s6626_s1 + $0x854] sm:$0xf0]  ;;  %v2862_v35 = vld [vmem:[%s6627_s0 + $0x110] sm:$0xf0] }
  0x80   :  { %2201 = vmatpush.bf16.msrb.mxu0 %v3645_v20  ;;  %v4088_v20 = vld [vmem:[%s6626_s1 + $0xd4] sm:$0xf]  ;;  %v4325_v59 = vld [vmem:[%s6626_s1 + $0x834] sm:$0xf0] }
  0x81   :  { %2220 = vmatpush.bf16.msrb.mxu1 %v3709_v36  ;;  %v2985_v33 = vor.u32 %v4088_v20, %v2982_v21  ;;  %v3996_v36 = vld [vmem:[%s6626_s1 + $0x8c0] sm:$0xf]  ;;  %v4323_v21 = vld [vmem:[%s6626_s1 + $0x824] sm:$0xf0] }
  0x82   :  { %2239 = vmatpush.bf16.msrb.mxu2 %v3773_v19  ;;  %v4345_v19 = vld [vmem:[%s6626_s1 + $0x8d4] sm:$0xf0]  ;;  %v3916_v20 = vld [vmem:[%s6626_s1 + $0x820] sm:$0xf] }
  0x83   :  { %2258 = vmatpush.bf16.msrb.mxu3 %v3837_v37  ;;  %v4005_v32 = vor.u32 %v4345_v19, %v4004_v16  ;;  %2202 = vmatmul.bf16.vlgmr.msrb.gmra.mxu0 %v5447_v17  ;;  %v4343_v37 = vld [vmem:[%s6626_s1 + $0x8c4] sm:$0xf0]  ;;  %v3989_v16 = vor.u32 %v4341_v61, %v3988_v60  ;;  %v2969_v19 = vor.u32 %v4084_v62, %v2966_v63  ;;  %v4080_v60 = vld [vmem:[%s6626_s1 + $0x94] sm:$0xf]  ;;  %v2950_v61 = vld [vmem:[%s6626_s1 + $0x98] sm:$0xf0] }
  0x84   :  { %2270 = vmatpush.bf16.msra.mxu0 %v3957_v27  ;;  %v3941_v27 = vor.u32 %v4329_v15, %v3940_v12  ;;  %2221 = vmatmul.bf16.vlgmr.msrb.gmra.mxu1 %v5449_v18  ;;  %v3997_v52 = vor.u32 %v4343_v37, %v3996_v36  ;;  %v4050_v12 = vld [vmem:[%s6627_s0 + $0xc4] sm:$0xf]  ;;  %v2854_v15 = vld [vmem:[%s6627_s0 + $0x108] sm:$0xf0]  ;;  %v3917_v37 = vor.u32 %v4323_v21, %v3916_v20 }
  0x85   :  { %2289 = vmatpush.bf16.msra.mxu1 %v4021_v47  ;;  %2240 = vmatmul.bf16.vlgmr.msrb.gmra.mxu2 %v5460_v22  ;;  %v4068_v47 = vld [vmem:[%s6626_s1 + $0x34] sm:$0xf]  ;;  %v5594_v63 = vor.u32 %v4051_v34, %v2862_v35  ;;  %v4078_v20 = vld [vmem:[%s6626_s1 + $0x84] sm:$0xf]  ;;  %v2942_v21 = vld [vmem:[%s6626_s1 + $0x88] sm:$0xf0] }
  0x86   :  { %2308 = vmatpush.bf16.msra.mxu2 %v2937_v26  ;;  %v2921_v26 = vor.u32 %v4072_v4, %v2918_v7  ;;  %2259 = vmatmul.bf16.vlgmr.msrb.gmra.mxu3 %v5462_v25  ;;  %v4066_v4 = vld [vmem:[%s6626_s1 + $0x24] sm:$0xf]  ;;  %v2894_v7 = vld [vmem:[%s6626_s1 + $0x28] sm:$0xf0]  ;;  %v3126_v35 = vld [vmem:[%s6626_s1 + $0x1f8] sm:$0xf0] }
  0x87   :  { %2327 = vmatpush.bf16.msra.mxu3 %v3001_v49  ;;  %v2902_v49 = vld [vmem:[%s6626_s1 + $0x38] sm:$0xf0]  ;;  %v2897_v36 = vor.u32 %v4066_v4, %v2894_v7  ;;  %v2878_v7 = vld [vmem:[%s6626_s1 + $0x8] sm:$0xf0] }
  0x88   :  { %2271 = vmatpush.bf16.msra.mxu0 %v3949_v58  ;;  %v3924_v58 = vld [vmem:[%s6626_s1 + $0x830] sm:$0xf]  ;;  %v2905_v2 = vor.u32 %v4068_v47, %v2902_v49  ;;  %v4321_v49 = vld [vmem:[%s6626_s1 + $0x814] sm:$0xf0] }
  0x89   :  { %2290 = vmatpush.bf16.msra.mxu1 %v4013_v10  ;;  %v3925_v3 = vor.u32 %v4325_v59, %v3924_v58  ;;  %v2852_v10 = vld [vmem:[%s6627_s0 + $0xc0] sm:$0xf]  ;;  %v3908_v47 = vld [vmem:[%s6626_s1 + $0x810] sm:$0xf]  ;;  %v5581_v58 = vor.u32 %v4050_v12, %v2854_v15  ;;  %v4337_v59 = vld [vmem:[%s6626_s1 + $0x894] sm:$0xf0]  ;;  %v2953_v15 = vor.u32 %v4080_v60, %v2950_v61 }
  0x8a   :  { %2309 = vmatpush.bf16.msra.mxu2 %v2929_v55  ;;  %v2977_v55 = vor.u32 %v4086_v38, %v2974_v41  ;;  %v4064_v38 = vld [vmem:[%s6626_s1 + $0x14] sm:$0xf]  ;;  %v2886_v41 = vld [vmem:[%s6626_s1 + $0x18] sm:$0xf0]  ;;  %v3909_v4 = vor.u32 %v4321_v49, %v3908_v47  ;;  %v4138_v49 = vld [vmem:[%s6626_s1 + $0x264] sm:$0xf] }
  0x8b   :  { %2328 = vmatpush.bf16.msra.mxu3 %v2993_v11  ;;  %v4059_v11 = vld [vmem:[%s6627_s0 + $0x104] sm:$0xf0]  ;;  %v4106_v61 = vld [vmem:[%s6626_s1 + $0x164] sm:$0xf] }
  0x8c   :  { %2272 = vmatpush.bf16.msra.mxu0 %v3941_v27  ;;  %v4339_v27 = vld [vmem:[%s6626_s1 + $0x8a4] sm:$0xf0] }
  0x8d   :  { %2291 = vmatpush.bf16.msra.mxu1 %v4005_v32  ;;  %v2860_v32 = vld [vmem:[%s6627_s0 + $0xc8] sm:$0xf] }
  0x8e   :  { %2310 = vmatpush.bf16.msra.mxu2 %v2921_v26  ;;  %v3980_v26 = vld [vmem:[%s6626_s1 + $0x8a0] sm:$0xf] }
  0x8f   :  { %2329 = vmatpush.bf16.msra.mxu3 %v2985_v33  ;;  %v4060_v33 = vld [vmem:[%s6627_s0 + $0x10c] sm:$0xf0] }
  0x90   :  { %2273 = vmatpush.bf16.msra.mxu0 %v3933_v43  ;;  %v2961_v43 = vor.u32 %v4082_v30, %v2958_v31  ;;  %v5592_v62 = vor.u32 %v4060_v33, %v2860_v32  ;;  %v4108_v30 = vld [vmem:[%s6626_s1 + $0x174] sm:$0xf]  ;;  %v3062_v31 = vld [vmem:[%s6626_s1 + $0x178] sm:$0xf0] }
  0x91   :  { %2292 = vmatpush.bf16.msra.mxu1 %v3997_v52  ;;  %v3972_v52 = vld [vmem:[%s6626_s1 + $0x890] sm:$0xf]  ;;  %v4124_v32 = vld [vmem:[%s6626_s1 + $0x1f4] sm:$0xf]  ;;  %v3065_v47 = vor.u32 %v4108_v30, %v3062_v31  ;;  %v3174_v31 = vld [vmem:[%s6626_s1 + $0x258] sm:$0xf0] }
  0x92   :  { %2311 = vmatpush.bf16.msra.mxu2 %v2913_v42  ;;  %v3981_v42 = vor.u32 %v4339_v27, %v3980_v26  ;;  %v3973_v12 = vor.u32 %v4337_v59, %v3972_v52  ;;  %v4140_v26 = vld [vmem:[%s6626_s1 + $0x274] sm:$0xf]  ;;  %v3190_v27 = vld [vmem:[%s6626_s1 + $0x278] sm:$0xf0]  ;;  %v3182_v52 = vld [vmem:[%s6626_s1 + $0x268] sm:$0xf0]  ;;  %v3129_v59 = vor.u32 %v4124_v32, %v3126_v35 }
  0x93   :  { %2330 = vmatpush.bf16.msra.mxu3 %v2977_v55  ;;  %v5579_v55 = vor.u32 %v4059_v11, %v2852_v10  ;;  %v3900_v10 = vld [vmem:[%s6626_s1 + $0x800] sm:$0xf]  ;;  %v4319_v11 = vld [vmem:[%s6626_s1 + $0x804] sm:$0xf0]  ;;  %v4136_v30 = vld [vmem:[%s6626_s1 + $0x254] sm:$0xf] }
  0x94   :  { %2274 = vmatpush.bf16.msra.mxu0 %v3925_v3  ;;  %v2889_v3 = vor.u32 %v4064_v38, %v2886_v41  ;;  %2226 = vmatmul.bf16.gmra.mxu1 %v5581_v58  ;;  %v3901_v34 = vor.u32 %v4319_v11, %v3900_v10  ;;  %v2945_v41 = vor.u32 %v4078_v20, %v2942_v21  ;;  %v3246_v10 = vld [vmem:[%s6626_s1 + $0x2e8] sm:$0xf0]  ;;  %v4034_v20 = vld [vmem:[%s6627_s0 + $0x44] sm:$0xf]  ;;  %v4104_v32 = vld [vmem:[%s6626_s1 + $0x154] sm:$0xf] }
  0x95   :  { %2293 = vmatpush.bf16.msra.mxu1 %v3989_v16  ;;  %v3964_v16 = vld [vmem:[%s6626_s1 + $0x880] sm:$0xf]  ;;  %2207 = vmatmul.bf16.gmra.mxu0 %v5579_v55  ;;  %v2798_v21 = vld [vmem:[%s6627_s0 + $0x88] sm:$0xf0] }
  0x96   :  { %2312 = vmatpush.bf16.msra.mxu2 %v2905_v2  ;;  %v4062_v2 = vld [vmem:[%s6626_s1 + $0x4] sm:$0xf]  ;;  %2264 = vmatmul.bf16.gmra.mxu3 %v5594_v63 }
  0x97   :  { %2331 = vmatpush.bf16.msra.mxu3 %v2969_v19  ;;  %v4335_v19 = vld [vmem:[%s6626_s1 + $0x884] sm:$0xf0]  ;;  %2245 = vmatmul.bf16.gmra.mxu2 %v5592_v62  ;;  %v2881_v33 = vor.u32 %v4062_v2, %v2878_v7  ;;  %v3054_v2 = vld [vmem:[%s6626_s1 + $0x168] sm:$0xf0]  ;;  %v4154_v7 = vld [vmem:[%s6626_s1 + $0x2e4] sm:$0xf] }
  0x98   :  { %2275 = vmatpush.bf16.msra.mxu0 %v3917_v37  ;;  %v3254_v37 = vld [vmem:[%s6626_s1 + $0x2f8] sm:$0xf0]  ;;  %v3965_v38 = vor.u32 %v4335_v19, %v3964_v16  ;;  %v3057_v16 = vor.u32 %v4106_v61, %v3054_v2  ;;  %v4043_v19 = vld [vmem:[%s6627_s0 + $0x84] sm:$0xf0] }
  0x99   :  { %2294 = vmatpush.bf16.msra.mxu1 %v3981_v42  ;;  %v340_v42 = vld [vmem:[%s6628_s2] sm:$0x3] }
  0x9a   :  { %2313 = vmatpush.bf16.msra.mxu2 %v2897_v36  ;;  %v4156_v36 = vld [vmem:[%s6626_s1 + $0x2f4] sm:$0xf]  ;;  %v5675_v11 = vperm.slane %v340_v42, 0  ;;  %v3238_v42 = vld [vmem:[%s6626_s1 + $0x2d8] sm:$0xf0] }
  0x9b   :  { %2332 = vmatpush.bf16.msra.mxu3 %v2961_v43  ;;  %v3193_v43 = vor.u32 %v4140_v26, %v3190_v27  ;;  %v3257_v60 = vor.u32 %v4156_v36, %v3254_v37  ;;  %v3249_v27 = vor.u32 %v4154_v7, %v3246_v10  ;;  %v5706_v37 = vor.u32 %v4034_v20, %v2798_v21  ;;  %v3038_v7 = vld [vmem:[%s6626_s1 + $0x148] sm:$0xf0]  ;;  %v4118_v10 = vld [vmem:[%s6626_s1 + $0x1c4] sm:$0xf]  ;;  %v4132_v21 = vld [vmem:[%s6626_s1 + $0x234] sm:$0xf] }
  0x9c   :  { %2276 = vmatpush.bf16.msra.mxu0 %v3909_v4  ;;  %v3118_v4 = vld [vmem:[%s6626_s1 + $0x1e8] sm:$0xf0] }
  0x9d   :  { %2295 = vmatpush.bf16.msra.mxu1 %v3973_v12  ;;  %v2796_v12 = vld [vmem:[%s6627_s0 + $0x40] sm:$0xf] }
  0x9e   :  { %2314 = vmatpush.bf16.msra.mxu2 %v2889_v3  ;;  %v4122_v3 = vld [vmem:[%s6626_s1 + $0x1e4] sm:$0xf]  ;;  %v5704_v36 = vor.u32 %v4043_v19, %v2796_v12  ;;  %v3102_v12 = vld [vmem:[%s6626_s1 + $0x1c8] sm:$0xf0] }
  0x9f   :  { %2333 = vmatpush.bf16.msra.mxu3 %v2953_v15  ;;  %v3185_v15 = vor.u32 %v4138_v49, %v3182_v52  ;;  %v3121_v26 = vor.u32 %v4122_v3, %v3118_v4  ;;  %v3177_v49 = vor.u32 %v4136_v30, %v3174_v31  ;;  %v4102_v4 = vld [vmem:[%s6626_s1 + $0x144] sm:$0xf]  ;;  %v3105_v30 = vor.u32 %v4118_v10, %v3102_v12  ;;  %v3022_v12 = vld [vmem:[%s6626_s1 + $0x128] sm:$0xf0] }
  0xa0   :  { %2277 = vmatpush.bf16.msra.mxu0 %v3901_v34  ;;  %v4120_v34 = vld [vmem:[%s6626_s1 + $0x1d4] sm:$0xf]  ;;  %v1975_v35 = vpop.f32.mrf.mxu0  ;;  %v3041_v20 = vor.u32 %v4102_v4, %v3038_v7  ;;  %v4098_v10 = vld [vmem:[%s6626_s1 + $0x124] sm:$0xf] }
  0xa1   :  { %2296 = vmatpush.bf16.msra.mxu1 %v3965_v38  ;;  %v3110_v38 = vld [vmem:[%s6626_s1 + $0x1d8] sm:$0xf0] }
  0xa2   :  { %2315 = vmatpush.bf16.msra.mxu2 %v2881_v33  ;;  %v3046_v33 = vld [vmem:[%s6626_s1 + $0x158] sm:$0xf0]  ;;  %v3113_v2 = vor.u32 %v4120_v34, %v3110_v38 }
  0xa3   :  { %2334 = vmatpush.bf16.msra.mxu3 %v2945_v41  ;;  %v4152_v41 = vld [vmem:[%s6626_s1 + $0x2d4] sm:$0xf]  ;;  %v3049_v52 = vor.u32 %v4104_v32, %v3046_v33  ;;  %v3094_v38 = vld [vmem:[%s6626_s1 + $0x1b8] sm:$0xf0] }
  0xa4   :  { %2346 = vmatpush.bf16.msrb.mxu0 %v3065_v47  ;;  %v1994_v47 = vpop.f32.mrf.mxu1  ;;  %v3241_v3 = vor.u32 %v4152_v41, %v3238_v42  ;;  %2297 = vmatmul.bf16.vlgmr.msra.gmra.mxu1 %v5706_v37  ;;  %v4116_v32 = vld [vmem:[%s6626_s1 + $0x1b4] sm:$0xf]  ;;  %v3222_v42 = vld [vmem:[%s6626_s1 + $0x2b8] sm:$0xf0] }
  0xa5   :  { %2365 = vmatpush.bf16.msrb.mxu1 %v3129_v59  ;;  %v4134_v59 = vld [vmem:[%s6626_s1 + $0x244] sm:$0xf]  ;;  %2278 = vmatmul.bf16.vlgmr.msra.gmra.mxu0 %v5704_v36  ;;  %v4148_v41 = vld [vmem:[%s6626_s1 + $0x2b4] sm:$0xf]  ;;  %v3097_v4 = vor.u32 %v4116_v32, %v3094_v38  ;;  %v3014_v38 = vld [vmem:[%s6626_s1 + $0x118] sm:$0xf0] }
  0xa6   :  { %2384 = vmatpush.bf16.msrb.mxu2 %v3193_v43  ;;  %v1976_v43 = vadd.f32 %v1975_v35, %v5675_v11  ;;  %2335 = vmatmul.bf16.vlgmr.msra.gmra.mxu3 %v4624_v53  ;;  %v3030_v53 = vld [vmem:[%s6626_s1 + $0x138] sm:$0xf0]  ;;  %v3225_v7 = vor.u32 %v4148_v41, %v3222_v42  ;;  %v4112_v41 = vld [vmem:[%s6626_s1 + $0x194] sm:$0xf] }
  0xa7   :  { %2403 = vmatpush.bf16.msrb.mxu3 %v3257_v60  ;;  %v3166_v60 = vld [vmem:[%s6626_s1 + $0x248] sm:$0xf0]  ;;  %2316 = vmatmul.bf16.vlgmr.msra.gmra.mxu2 %v4613_v48  ;;  %v4100_v48 = vld [vmem:[%s6626_s1 + $0x134] sm:$0xf] }
  0xa8   :  { %2347 = vmatpush.bf16.msrb.mxu0 %v3057_v16  ;;  %v1995_v61 = vadd.f32 %v1994_v47, %v1976_v43  ;;  %v3230_v16 = vld [vmem:[%s6626_s1 + $0x2c8] sm:$0xf0]  ;;  %v3169_v19 = vor.u32 %v4134_v59, %v3166_v60  ;;  %v1977_v35 = vpop.f32.mrf.mxu0  ;;  %v3033_v59 = vor.u32 %v4100_v48, %v3030_v53  ;;  %v4130_v60 = vld [vmem:[%s6626_s1 + $0x224] sm:$0xf]  ;;  %v4128_v48 = vld [vmem:[%s6626_s1 + $0x214] sm:$0xf] }
  0xa9   :  { %2366 = vmatpush.bf16.msrb.mxu1 %v3121_v26  ;;  %v3158_v26 = vld [vmem:[%s6626_s1 + $0x238] sm:$0xf0]  ;;  %v2032_v34 = vpop.f32.mrf.mxu3  ;;  %v1978_v43 = vadd.f32 %v1977_v35, %v5675_v11  ;;  %v4096_v35 = vld [vmem:[%s6626_s1 + $0x114] sm:$0xf] }
  0xaa   :  { %2385 = vmatpush.bf16.msrb.mxu2 %v3185_v15  ;;  %v4150_v15 = vld [vmem:[%s6626_s1 + $0x2c4] sm:$0xf]  ;;  %v3142_v53 = vld [vmem:[%s6626_s1 + $0x218] sm:$0xf0] }
  0xab   :  { %2404 = vmatpush.bf16.msrb.mxu3 %v3249_v27  ;;  %v2013_v27 = vpop.f32.mrf.mxu2  ;;  %v3233_v31 = vor.u32 %v4150_v15, %v3230_v16  ;;  %v4114_v15 = vld [vmem:[%s6626_s1 + $0x1a4] sm:$0xf]  ;;  %v3086_v16 = vld [vmem:[%s6626_s1 + $0x1a8] sm:$0xf0] }
  0xac   :  { %2348 = vmatpush.bf16.msrb.mxu0 %v3049_v52  ;;  %v2014_v33 = vadd.f32 %v2013_v27, %v1995_v61  ;;  %v1996_v47 = vpop.f32.mrf.mxu1  ;;  %v3161_v52 = vor.u32 %v4132_v21, %v3158_v26  ;;  %v3150_v61 = vld [vmem:[%s6626_s1 + $0x228] sm:$0xf0]  ;;  %v4061_v21 = vld [vmem:[%s6627_s0 + $0x114] sm:$0xf0]  ;;  %v4052_v26 = vld [vmem:[%s6627_s0 + $0xd4] sm:$0xf] }
  0xad   :  { %2367 = vmatpush.bf16.msrb.mxu1 %v3113_v2  ;;  %v1997_v2 = vadd.f32 %v1996_v47, %v1978_v43  ;;  %v2870_v27 = vld [vmem:[%s6627_s0 + $0x118] sm:$0xf0] }
  0xae   :  { %2386 = vmatpush.bf16.msrb.mxu2 %v3177_v49  ;;  %v5771_v49 = vadd.f32 %v2032_v34, %v2014_v33  ;;  %v3089_v33 = vor.u32 %v4114_v15, %v3086_v16  ;;  %v3017_v15 = vor.u32 %v4096_v35, %v3014_v38  ;;  %v3134_v16 = vld [vmem:[%s6626_s1 + $0x208] sm:$0xf0]  ;;  %v3318_v35 = vld [vmem:[%s6626_s1 + $0x378] sm:$0xf0]  ;;  %v4188_v38 = vld [vmem:[%s6626_s1 + $0x3f4] sm:$0xf] }
  0xaf   :  { %2405 = vmatpush.bf16.msrb.mxu3 %v3241_v3  ;;  %v2868_v3 = vld [vmem:[%s6627_s0 + $0xd0] sm:$0xf] }
  0xb0   :  { %2349 = vmatpush.bf16.msrb.mxu0 %v3041_v20  ;;  %v3214_v20 = vld [vmem:[%s6626_s1 + $0x2a8] sm:$0xf0]  ;;  %v1980_v47 = vpop.f32.mrf.mxu0 }
  0xb1   :  { %2368 = vmatpush.bf16.msrb.mxu1 %v3105_v30  ;;  %v3153_v30 = vor.u32 %v4130_v60, %v3150_v61  ;;  %v2034_v43 = vpop.f32.mrf.mxu3  ;;  %v3078_v60 = vld [vmem:[%s6626_s1 + $0x198] sm:$0xf0]  ;;  %v4144_v61 = vld [vmem:[%s6626_s1 + $0x294] sm:$0xf] }
  0xb2   :  { %2387 = vmatpush.bf16.msrb.mxu2 %v3169_v19  ;;  %v4146_v19 = vld [vmem:[%s6626_s1 + $0x2a4] sm:$0xf] }
  0xb3   :  { %2406 = vmatpush.bf16.msrb.mxu3 %v3233_v31  ;;  %v3025_v31 = vor.u32 %v4098_v10, %v3022_v12  ;;  %v2015_v32 = vpop.f32.mrf.mxu2  ;;  %v3217_v34 = vor.u32 %v4146_v19, %v3214_v20  ;;  %v3145_v12 = vor.u32 %v4128_v48, %v3142_v53  ;;  %v4094_v19 = vld [vmem:[%s6626_s1 + $0x104] sm:$0xf]  ;;  %v3006_v20 = vld [vmem:[%s6626_s1 + $0x108] sm:$0xf0] }
  0xb4   :  { %2350 = vmatpush.bf16.msrb.mxu0 %v3033_v59  ;;  %v2016_v42 = vadd.f32 %v2015_v32, %v1997_v2  ;;  %v5826_v59 = vor.u32 %v4052_v26, %v2870_v27  ;;  %v1981_v2 = vadd.f32 %v1980_v47, %v5675_v11  ;;  %v3081_v26 = vor.u32 %v4112_v41, %v3078_v60  ;;  %v4142_v48 = vld [vmem:[%s6626_s1 + $0x284] sm:$0xf]  ;;  %v3198_v53 = vld [vmem:[%s6626_s1 + $0x288] sm:$0xf0]  ;;  %v4204_v32 = vld [vmem:[%s6626_s1 + $0x474] sm:$0xf] }
  0xb5   :  { %2369 = vmatpush.bf16.msrb.mxu1 %v3097_v4  ;;  %v3206_v4 = vld [vmem:[%s6626_s1 + $0x298] sm:$0xf0] }
  0xb6   :  { %2388 = vmatpush.bf16.msrb.mxu2 %v3161_v52  ;;  %v5824_v52 = vor.u32 %v4061_v21, %v2868_v3  ;;  %v4126_v3 = vld [vmem:[%s6626_s1 + $0x204] sm:$0xf]  ;;  %v5841_v10 = vadd.f32 %v2034_v43, %v2016_v42  ;;  %v3209_v27 = vor.u32 %v4144_v61, %v3206_v4  ;;  %2302 = vmatmul.bf16.gmra.mxu1 %v5826_v59  ;;  %v3510_v43 = vld [vmem:[%s6626_s1 + $0x4f8] sm:$0xf0] }
  0xb7   :  { %2407 = vmatpush.bf16.msrb.mxu3 %v3225_v7  ;;  %v1999_v7 = vpop.f32.mrf.mxu1  ;;  %2321 = vmatmul.bf16.gmra.mxu2 %v4745_v44  ;;  %v3137_v41 = vor.u32 %v4126_v3, %v3134_v16  ;;  %v3009_v42 = vor.u32 %v4094_v19, %v3006_v20  ;;  %v3382_v44 = vld [vmem:[%s6626_s1 + $0x3f8] sm:$0xf0]  ;;  %v3201_v61 = vor.u32 %v4142_v48, %v3198_v53  ;;  %v3438_v16 = vld [vmem:[%s6626_s1 + $0x468] sm:$0xf0]  ;;  %v4218_v53 = vld [vmem:[%s6626_s1 + $0x4e4] sm:$0xf] }
  0xb8   :  { %2351 = vmatpush.bf16.msrb.mxu0 %v3025_v31  ;;  %v2000_v21 = vadd.f32 %v1999_v7, %v1981_v2  ;;  %v3070_v31 = vld [vmem:[%s6626_s1 + $0x188] sm:$0xf0]  ;;  %2340 = vmatmul.bf16.gmra.mxu3 %v4756_v50  ;;  %v4220_v50 = vld [vmem:[%s6626_s1 + $0x4f4] sm:$0xf]  ;;  %v1982_v7 = vpop.f32.mrf.mxu0 }
  0xb9   :  { %2370 = vmatpush.bf16.msrb.mxu1 %v3089_v33  ;;  %2283 = vmatmul.bf16.gmra.mxu0 %v5824_v52  ;;  %v3446_v33 = vld [vmem:[%s6626_s1 + $0x478] sm:$0xf0]  ;;  %v2037_v2 = vpop.f32.mrf.mxu3  ;;  %v1983_v19 = vadd.f32 %v1982_v7, %v5675_v11  ;;  %v3374_v11 = vld [vmem:[%s6626_s1 + $0x3e8] sm:$0xf0]  ;;  %v4216_v7 = vld [vmem:[%s6626_s1 + $0x4d4] sm:$0xf] }
  0xba   :  { %2389 = vmatpush.bf16.msrb.mxu2 %v3153_v30  ;;  %v4110_v30 = vld [vmem:[%s6626_s1 + $0x184] sm:$0xf]  ;;  %v3449_v3 = vor.u32 %v4204_v32, %v3446_v33  ;;  %v3502_v32 = vld [vmem:[%s6626_s1 + $0x4e8] sm:$0xf0] }
  0xbb   :  { %2408 = vmatpush.bf16.msrb.mxu3 %v3217_v34  ;;  %v4172_v34 = vld [vmem:[%s6626_s1 + $0x374] sm:$0xf]  ;;  %v2018_v47 = vpop.f32.mrf.mxu2  ;;  %v3073_v60 = vor.u32 %v4110_v30, %v3070_v31  ;;  %v3310_v30 = vld [vmem:[%s6626_s1 + $0x368] sm:$0xf0]  ;;  %v4186_v31 = vld [vmem:[%s6626_s1 + $0x3e4] sm:$0xf] }
  0xbc   :  { %2352 = vmatpush.bf16.msrb.mxu0 %v3017_v15  ;;  %v2019_v4 = vadd.f32 %v2018_v47, %v2000_v21  ;;  %v4202_v15 = vld [vmem:[%s6626_s1 + $0x464] sm:$0xf]  ;;  %v3302_v47 = vld [vmem:[%s6626_s1 + $0x358] sm:$0xf0] }
  0xbd   :  { %2371 = vmatpush.bf16.msrb.mxu1 %v3081_v26  ;;  %v3385_v26 = vor.u32 %v4188_v38, %v3382_v44  ;;  %v4170_v21 = vld [vmem:[%s6626_s1 + $0x364] sm:$0xf]  ;;  %v3377_v38 = vor.u32 %v4186_v31, %v3374_v11  ;;  %v3430_v44 = vld [vmem:[%s6626_s1 + $0x458] sm:$0xf0] }
  0xbe   :  { %2390 = vmatpush.bf16.msrb.mxu2 %v3145_v12  ;;  %v3321_v12 = vor.u32 %v4172_v34, %v3318_v35  ;;  %v5908_v48 = vadd.f32 %v2037_v2, %v2019_v4  ;;  %v3441_v34 = vor.u32 %v4202_v15, %v3438_v16  ;;  %v3313_v35 = vor.u32 %v4170_v21, %v3310_v30  ;;  %v3366_v2 = vld [vmem:[%s6626_s1 + $0x3d8] sm:$0xf0]  ;;  %v3422_v21 = vld [vmem:[%s6626_s1 + $0x448] sm:$0xf0]  ;;  %v4166_v11 = vld [vmem:[%s6626_s1 + $0x344] sm:$0xf] }
  0xbf   :  { %2409 = vmatpush.bf16.msrb.mxu3 %v3209_v27  ;;  %v2001_v20 = vpop.f32.mrf.mxu1  ;;  %v3513_v27 = vor.u32 %v4220_v50, %v3510_v43  ;;  %v4168_v43 = vld [vmem:[%s6626_s1 + $0x354] sm:$0xf] }
  0xc0   :  { %2353 = vmatpush.bf16.msrb.mxu0 %v3009_v42  ;;  %v2002_v33 = vadd.f32 %v2001_v20, %v1983_v19  ;;  %v4200_v42 = vld [vmem:[%s6626_s1 + $0x454] sm:$0xf] }
  0xc1   :  { %2372 = vmatpush.bf16.msrb.mxu1 %v3073_v60  ;;  %v4184_v60 = vld [vmem:[%s6626_s1 + $0x3d4] sm:$0xf]  ;;  %v2039_v4 = vpop.f32.mrf.mxu3  ;;  %v3433_v20 = vor.u32 %v4200_v42, %v3430_v44 }
  0xc2   :  { %2391 = vmatpush.bf16.msrb.mxu2 %v3137_v41  ;;  %v3505_v41 = vor.u32 %v4218_v53, %v3502_v32  ;;  %v3369_v30 = vor.u32 %v4184_v60, %v3366_v2  ;;  %v4182_v53 = vld [vmem:[%s6626_s1 + $0x3c4] sm:$0xf]  ;;  %v3350_v60 = vld [vmem:[%s6626_s1 + $0x3b8] sm:$0xf0] }
  0xc3   :  { %2410 = vmatpush.bf16.msrb.mxu3 %v3201_v61  ;;  %v2020_v50 = vpop.f32.mrf.mxu2 }
  0xc4   :  { %2422 = vmatpush.bf16.msra.mxu0 %v3321_v12  ;;  %v2021_v61 = vadd.f32 %v2020_v50, %v2002_v33  ;;  %v2051_v12 = vpop.f32.mrf.mxu0  ;;  %v3358_v33 = vld [vmem:[%s6626_s1 + $0x3c8] sm:$0xf0]  ;;  %v4180_v50 = vld [vmem:[%s6626_s1 + $0x3b4] sm:$0xf] }
  0xc5   :  { %2441 = vmatpush.bf16.msra.mxu1 %v3385_v26  ;;  %v2052_v19 = vadd.f32 %v2051_v12, %v5771_v49  ;;  %v3305_v26 = vor.u32 %v4168_v43, %v3302_v47  ;;  %v3294_v49 = vld [vmem:[%s6626_s1 + $0x348] sm:$0xf0]  ;;  %v3361_v42 = vor.u32 %v4182_v53, %v3358_v33 }
  0xc6   :  { %2460 = vmatpush.bf16.msra.mxu2 %v3449_v3  ;;  %v3494_v3 = vld [vmem:[%s6626_s1 + $0x4d8] sm:$0xf0]  ;;  %v5943_v16 = vadd.f32 %v2039_v4, %v2021_v61  ;;  %2373 = vmatmul.bf16.vlgmr.msrb.gmra.mxu1 %v4634_v57  ;;  %v3297_v57 = vor.u32 %v4166_v11, %v3294_v49  ;;  %v4212_v61 = vld [vmem:[%s6626_s1 + $0x4b4] sm:$0xf]  ;;  %v4178_v11 = vld [vmem:[%s6626_s1 + $0x3a4] sm:$0xf] }
  0xc7   :  { %2479 = vmatpush.bf16.msra.mxu3 %v3513_v27  ;;  %v2070_v15 = vpop.f32.mrf.mxu1  ;;  %v4198_v27 = vld [vmem:[%s6626_s1 + $0x444] sm:$0xf]  ;;  %v3497_v31 = vor.u32 %v4216_v7, %v3494_v3  ;;  %2392 = vmatmul.bf16.vlgmr.msrb.gmra.mxu2 %v4901_v0  ;;  %v4164_v0 = vld [vmem:[%s6626_s1 + $0x334] sm:$0xf]  ;;  %v3478_v4 = vld [vmem:[%s6626_s1 + $0x4b8] sm:$0xf0] }
  0xc8   :  { %2423 = vmatpush.bf16.msra.mxu0 %v3313_v35  ;;  %v2071_v32 = vadd.f32 %v2070_v15, %v2052_v19  ;;  %v3486_v35 = vld [vmem:[%s6626_s1 + $0x4c8] sm:$0xf0]  ;;  %2411 = vmatmul.bf16.vlgmr.msrb.gmra.mxu3 %v4903_v1  ;;  %v3286_v1 = vld [vmem:[%s6626_s1 + $0x338] sm:$0xf0] }
  0xc9   :  { %2442 = vmatpush.bf16.msra.mxu1 %v3377_v38  ;;  %2354 = vmatmul.bf16.vlgmr.msrb.gmra.mxu0 %v4626_v54  ;;  %v3425_v54 = vor.u32 %v4198_v27, %v3422_v21  ;;  %v4196_v38 = vld [vmem:[%s6626_s1 + $0x434] sm:$0xf]  ;;  %v2108_v47 = vpop.f32.mrf.mxu3  ;;  %v3289_v19 = vor.u32 %v4164_v0, %v3286_v1  ;;  %v3353_v21 = vor.u32 %v4180_v50, %v3350_v60  ;;  %v3342_v53 = vld [vmem:[%s6626_s1 + $0x3a8] sm:$0xf0]  ;;  %v3462_v60 = vld [vmem:[%s6626_s1 + $0x498] sm:$0xf0] }
  0xca   :  { %2461 = vmatpush.bf16.msra.mxu2 %v3441_v34  ;;  %v4214_v34 = vld [vmem:[%s6626_s1 + $0x4c4] sm:$0xf]  ;;  %v3470_v33 = vld [vmem:[%s6626_s1 + $0x4a8] sm:$0xf0]  ;;  %v4176_v0 = vld [vmem:[%s6626_s1 + $0x394] sm:$0xf] }
  0xcb   :  { %2480 = vmatpush.bf16.msra.mxu3 %v3505_v41  ;;  %v3414_v41 = vld [vmem:[%s6626_s1 + $0x438] sm:$0xf0]  ;;  %v3489_v44 = vor.u32 %v4214_v34, %v3486_v35  ;;  %v2089_v43 = vpop.f32.mrf.mxu2 }
  0xcc   :  { %2424 = vmatpush.bf16.msra.mxu0 %v3305_v26  ;;  %v2090_v2 = vadd.f32 %v2089_v43, %v2071_v32  ;;  %v2053_v7 = vpop.f32.mrf.mxu0  ;;  %v3417_v15 = vor.u32 %v4196_v38, %v3414_v41  ;;  %v3406_v26 = vld [vmem:[%s6626_s1 + $0x428] sm:$0xf0]  ;;  %v4210_v32 = vld [vmem:[%s6626_s1 + $0x4a4] sm:$0xf]  ;;  %v3345_v38 = vor.u32 %v4178_v11, %v3342_v53  ;;  %v3334_v43 = vld [vmem:[%s6626_s1 + $0x398] sm:$0xf0] }
  0xcd   :  { %2443 = vmatpush.bf16.msra.mxu1 %v3369_v30  ;;  %v2054_v12 = vadd.f32 %v2053_v7, %v5841_v10  ;;  %v3481_v30 = vor.u32 %v4212_v61, %v3478_v4  ;;  %v4162_v10 = vld [vmem:[%s6626_s1 + $0x324] sm:$0xf]  ;;  %v3473_v41 = vor.u32 %v4210_v32, %v3470_v33  ;;  %v3454_v53 = vld [vmem:[%s6626_s1 + $0x488] sm:$0xf0]  ;;  %v4268_v32 = vld [vmem:[%s6626_s1 + $0x674] sm:$0xf] }
  0xce   :  { %2462 = vmatpush.bf16.msra.mxu2 %v3433_v20  ;;  %v4194_v20 = vld [vmem:[%s6626_s1 + $0x424] sm:$0xf]  ;;  %v6005_v27 = vadd.f32 %v2108_v47, %v2090_v2  ;;  %v4208_v47 = vld [vmem:[%s6626_s1 + $0x494] sm:$0xf]  ;;  %v3702_v33 = vld [vmem:[%s6626_s1 + $0x678] sm:$0xf0] }
  0xcf   :  { %2481 = vmatpush.bf16.msra.mxu3 %v3497_v31  ;;  %v2072_v3 = vpop.f32.mrf.mxu1  ;;  %v3278_v31 = vld [vmem:[%s6626_s1 + $0x328] sm:$0xf0]  ;;  %v3409_v34 = vor.u32 %v4194_v20, %v3406_v26  ;;  %v4190_v7 = vld [vmem:[%s6626_s1 + $0x404] sm:$0xf] }
  0xd0   :  { %2425 = vmatpush.bf16.msra.mxu0 %v3297_v57  ;;  %v2073_v49 = vadd.f32 %v2072_v3, %v2054_v12  ;;  %v3281_v35 = vor.u32 %v4162_v10, %v3278_v31  ;;  %v3398_v57 = vld [vmem:[%s6626_s1 + $0x418] sm:$0xf0]  ;;  %v4158_v20 = vld [vmem:[%s6626_s1 + $0x304] sm:$0xf]  ;;  %v3262_v26 = vld [vmem:[%s6626_s1 + $0x308] sm:$0xf0] }
  0xd1   :  { %2444 = vmatpush.bf16.msra.mxu1 %v3361_v42  ;;  %v4160_v42 = vld [vmem:[%s6626_s1 + $0x314] sm:$0xf]  ;;  %v2110_v50 = vpop.f32.mrf.mxu3  ;;  %v4174_v10 = vld [vmem:[%s6626_s1 + $0x384] sm:$0xf]  ;;  %v3326_v31 = vld [vmem:[%s6626_s1 + $0x388] sm:$0xf0] }
  0xd2   :  { %2463 = vmatpush.bf16.msra.mxu2 %v3425_v54  ;;  %v4192_v54 = vld [vmem:[%s6626_s1 + $0x414] sm:$0xf]  ;;  %v4206_v11 = vld [vmem:[%s6626_s1 + $0x484] sm:$0xf] }
  0xd3   :  { %2482 = vmatpush.bf16.msra.mxu3 %v3489_v44  ;;  %v3270_v44 = vld [vmem:[%s6626_s1 + $0x318] sm:$0xf0]  ;;  %v2091_v1 = vpop.f32.mrf.mxu2  ;;  %v3401_v12 = vor.u32 %v4192_v54, %v3398_v57  ;;  %v3265_v54 = vor.u32 %v4158_v20, %v3262_v26  ;;  %v4282_v20 = vld [vmem:[%s6626_s1 + $0x6e4] sm:$0xf]  ;;  %v3758_v26 = vld [vmem:[%s6626_s1 + $0x6e8] sm:$0xf0] }
  0xd4   :  { %2426 = vmatpush.bf16.msra.mxu0 %v3289_v19  ;;  %v2092_v61 = vadd.f32 %v2091_v1, %v2073_v49  ;;  %v2056_v4 = vpop.f32.mrf.mxu0  ;;  %v3390_v19 = vld [vmem:[%s6626_s1 + $0x408] sm:$0xf0]  ;;  %v3766_v57 = vld [vmem:[%s6626_s1 + $0x6f8] sm:$0xf0] }
  0xd5   :  { %2445 = vmatpush.bf16.msra.mxu1 %v3353_v21  ;;  %v2057_v3 = vadd.f32 %v2056_v4, %v5908_v48  ;;  %v3337_v48 = vor.u32 %v4176_v0, %v3334_v43  ;;  %v3705_v0 = vor.u32 %v4268_v32, %v3702_v33  ;;  %v3694_v43 = vld [vmem:[%s6626_s1 + $0x668] sm:$0xf0]  ;;  %v4232_v32 = vld [vmem:[%s6626_s1 + $0x554] sm:$0xf]  ;;  %v3558_v33 = vld [vmem:[%s6626_s1 + $0x558] sm:$0xf0] }
  0xd6   :  { %2464 = vmatpush.bf16.msra.mxu2 %v3417_v15  ;;  %v3273_v15 = vor.u32 %v4160_v42, %v3270_v44  ;;  %v6062_v21 = vadd.f32 %v2110_v50, %v2092_v61  ;;  %2378 = vmatmul.bf16.gmra.mxu1 %v4766_v56  ;;  %v3574_v56 = vld [vmem:[%s6626_s1 + $0x578] sm:$0xf0]  ;;  %v4266_v50 = vld [vmem:[%s6626_s1 + $0x664] sm:$0xf] }
  0xd7   :  { %2483 = vmatpush.bf16.msra.mxu3 %v3481_v30  ;;  %v2075_v2 = vpop.f32.mrf.mxu1  ;;  %v3465_v30 = vor.u32 %v4208_v47, %v3462_v60  ;;  %2397 = vmatmul.bf16.gmra.mxu2 %v5033_v8  ;;  %v3638_v8 = vld [vmem:[%s6626_s1 + $0x5f8] sm:$0xf0] }
  0xd8   :  { %2427 = vmatpush.bf16.msra.mxu0 %v3281_v35  ;;  %v2076_v49 = vadd.f32 %v2075_v2, %v2057_v3  ;;  %2416 = vmatmul.bf16.gmra.mxu3 %v5035_v9  ;;  %v3393_v35 = vor.u32 %v4190_v7, %v3390_v19  ;;  %v4284_v9 = vld [vmem:[%s6626_s1 + $0x6f4] sm:$0xf]  ;;  %v4234_v7 = vld [vmem:[%s6626_s1 + $0x564] sm:$0xf]  ;;  %v3566_v3 = vld [vmem:[%s6626_s1 + $0x568] sm:$0xf0] }
  0xd9   :  { %2446 = vmatpush.bf16.msra.mxu1 %v3345_v38  ;;  %2359 = vmatmul.bf16.gmra.mxu0 %v4758_v51  ;;  %v4236_v51 = vld [vmem:[%s6626_s1 + $0x574] sm:$0xf]  ;;  %v3329_v38 = vor.u32 %v4174_v10, %v3326_v31  ;;  %v2113_v44 = vpop.f32.mrf.mxu3  ;;  %v3769_v2 = vor.u32 %v4284_v9, %v3766_v57  ;;  %v3630_v19 = vld [vmem:[%s6626_s1 + $0x5e8] sm:$0xf0]  ;;  %v3569_v10 = vor.u32 %v4234_v7, %v3566_v3  ;;  %v4278_v7 = vld [vmem:[%s6626_s1 + $0x6c4] sm:$0xf] }
  0xda   :  { %2465 = vmatpush.bf16.msra.mxu2 %v3409_v34  ;;  %v4252_v34 = vld [vmem:[%s6626_s1 + $0x5f4] sm:$0xf]  ;;  %v3577_v1 = vor.u32 %v4236_v51, %v3574_v56  ;;  %v3742_v3 = vld [vmem:[%s6626_s1 + $0x6c8] sm:$0xf0] }
  0xdb   :  { %2484 = vmatpush.bf16.msra.mxu3 %v3473_v41  ;;  %v3457_v41 = vor.u32 %v4206_v11, %v3454_v53  ;;  %v2094_v42 = vpop.f32.mrf.mxu2  ;;  %v3641_v4 = vor.u32 %v4252_v34, %v3638_v8  ;;  %v3761_v11 = vor.u32 %v4282_v20, %v3758_v26  ;;  %v3686_v53 = vld [vmem:[%s6626_s1 + $0x658] sm:$0xf0]  ;;  %v4248_v51 = vld [vmem:[%s6626_s1 + $0x5d4] sm:$0xf]  ;;  %v3745_v20 = vor.u32 %v4278_v7, %v3742_v3 }
  0xdc   :  { %2428 = vmatpush.bf16.msra.mxu0 %v3273_v15  ;;  %v2095_v47 = vadd.f32 %v2094_v42, %v2076_v49  ;;  %v2058_v60 = vpop.f32.mrf.mxu0  ;;  %v4264_v49 = vld [vmem:[%s6626_s1 + $0x654] sm:$0xf]  ;;  %v3750_v8 = vld [vmem:[%s6626_s1 + $0x6d8] sm:$0xf0] }
  0xdd   :  { %2447 = vmatpush.bf16.msra.mxu1 %v3337_v48  ;;  %v2059_v15 = vadd.f32 %v2058_v60, %v5943_v16  ;;  %v3697_v16 = vor.u32 %v4266_v50, %v3694_v43  ;;  %v3689_v42 = vor.u32 %v4264_v49, %v3686_v53  ;;  %v4230_v60 = vld [vmem:[%s6626_s1 + $0x544] sm:$0xf]  ;;  %v4244_v26 = vld [vmem:[%s6626_s1 + $0x5b4] sm:$0xf] }
  0xde   :  { %2466 = vmatpush.bf16.msra.mxu2 %v3401_v12  ;;  %v4250_v12 = vld [vmem:[%s6626_s1 + $0x5e4] sm:$0xf]  ;;  %v6129_v48 = vadd.f32 %v2113_v44, %v2095_v47  ;;  %v3561_v44 = vor.u32 %v4232_v32, %v3558_v33 }
  0xdf   :  { %2485 = vmatpush.bf16.msra.mxu3 %v3465_v30  ;;  %v2077_v61 = vpop.f32.mrf.mxu1  ;;  %v3633_v31 = vor.u32 %v4250_v12, %v3630_v19  ;;  %v4260_v12 = vld [vmem:[%s6626_s1 + $0x634] sm:$0xf] }
  0xe0   :  { %2429 = vmatpush.bf16.msra.mxu0 %v3265_v54  ;;  %v2078_v30 = vadd.f32 %v2077_v61, %v2059_v15  ;;  %v4280_v54 = vld [vmem:[%s6626_s1 + $0x6d4] sm:$0xf]  ;;  %v4246_v61 = vld [vmem:[%s6626_s1 + $0x5c4] sm:$0xf]  ;;  %v3670_v15 = vld [vmem:[%s6626_s1 + $0x638] sm:$0xf0] }
  0xe1   :  { %2448 = vmatpush.bf16.msra.mxu1 %v3329_v38  ;;  %v2115_v34 = vpop.f32.mrf.mxu3  ;;  %v3753_v47 = vor.u32 %v4280_v54, %v3750_v8  ;;  %v3673_v33 = vor.u32 %v4260_v12, %v3670_v15  ;;  %v3718_v12 = vld [vmem:[%s6626_s1 + $0x698] sm:$0xf0] }
  0xe2   :  { %2467 = vmatpush.bf16.msra.mxu2 %v3393_v35  ;;  %v3622_v35 = vld [vmem:[%s6626_s1 + $0x5d8] sm:$0xf0] }
  0xe3   :  { %2486 = vmatpush.bf16.msra.mxu3 %v3457_v41  ;;  %v2096_v56 = vpop.f32.mrf.mxu2  ;;  %v3625_v43 = vor.u32 %v4248_v51, %v3622_v35 }
  0xe4   :  { %2498 = vmatpush.bf16.msrb.mxu0 %v3577_v1  ;;  %v2097_v9 = vadd.f32 %v2096_v56, %v2078_v30  ;;  %v2127_v57 = vpop.f32.mrf.mxu0  ;;  %v3678_v1 = vld [vmem:[%s6626_s1 + $0x648] sm:$0xf0]  ;;  %v4258_v56 = vld [vmem:[%s6626_s1 + $0x624] sm:$0xf] }
  0xe5   :  { %2517 = vmatpush.bf16.msrb.mxu1 %v3641_v4  ;;  %v2128_v41 = vadd.f32 %v2127_v57, %v6005_v27  ;;  %v3550_v27 = vld [vmem:[%s6626_s1 + $0x548] sm:$0xf0] }
  0xe6   :  { %2536 = vmatpush.bf16.msrb.mxu2 %v3705_v0  ;;  %v4262_v0 = vld [vmem:[%s6626_s1 + $0x644] sm:$0xf]  ;;  %v6162_v50 = vadd.f32 %v2115_v34, %v2097_v9  ;;  %2449 = vmatmul.bf16.vlgmr.msra.gmra.mxu1 %v4916_v6  ;;  %v3553_v6 = vor.u32 %v4230_v60, %v3550_v27  ;;  %v3662_v34 = vld [vmem:[%s6626_s1 + $0x628] sm:$0xf0] }
  0xe7   :  { %2555 = vmatpush.bf16.msrb.mxu3 %v3769_v2  ;;  %v2146_v38 = vpop.f32.mrf.mxu1  ;;  %v3614_v2 = vld [vmem:[%s6626_s1 + $0x5c8] sm:$0xf0]  ;;  %2468 = vmatmul.bf16.vlgmr.msra.gmra.mxu2 %v5171_v23  ;;  %v4228_v23 = vld [vmem:[%s6626_s1 + $0x534] sm:$0xf]  ;;  %v4226_v9 = vld [vmem:[%s6626_s1 + $0x524] sm:$0xf] }
  0xe8   :  { %2499 = vmatpush.bf16.msrb.mxu0 %v3569_v10  ;;  %v2147_v4 = vadd.f32 %v2146_v38, %v2128_v41  ;;  %2487 = vmatmul.bf16.vlgmr.msra.gmra.mxu3 %v5173_v24  ;;  %v3617_v19 = vor.u32 %v4246_v61, %v3614_v2  ;;  %v3542_v24 = vld [vmem:[%s6626_s1 + $0x538] sm:$0xf0]  ;;  %v3534_v57 = vld [vmem:[%s6626_s1 + $0x528] sm:$0xf0]  ;;  %v4242_v38 = vld [vmem:[%s6626_s1 + $0x5a4] sm:$0xf] }
  0xe9   :  { %2518 = vmatpush.bf16.msrb.mxu1 %v3633_v31  ;;  %2430 = vmatmul.bf16.vlgmr.msra.gmra.mxu0 %v4914_v5  ;;  %v3681_v5 = vor.u32 %v4262_v0, %v3678_v1  ;;  %v3606_v10 = vld [vmem:[%s6626_s1 + $0x5b8] sm:$0xf0]  ;;  %v4276_v31 = vld [vmem:[%s6626_s1 + $0x6b4] sm:$0xf]  ;;  %v3545_v51 = vor.u32 %v4228_v23, %v3542_v24  ;;  %v3598_v41 = vld [vmem:[%s6626_s1 + $0x5a8] sm:$0xf0]  ;;  %v3665_v0 = vor.u32 %v4258_v56, %v3662_v34 }
  0xea   :  { %2537 = vmatpush.bf16.msrb.mxu2 %v3697_v16  ;;  %v2184_v16 = vpop.f32.mrf.mxu3  ;;  %v3609_v54 = vor.u32 %v4244_v26, %v3606_v10  ;;  %v3537_v1 = vor.u32 %v4226_v9, %v3534_v57  ;;  %v3601_v60 = vor.u32 %v4242_v38, %v3598_v41  ;;  %v4224_v61 = vld [vmem:[%s6626_s1 + $0x514] sm:$0xf]  ;;  %v3646_v26 = vld [vmem:[%s6626_s1 + $0x608] sm:$0xf0]  ;;  %v3958_v34 = vld [vmem:[%s6626_s1 + $0x878] sm:$0xf0] }
  0xeb   :  { %2556 = vmatpush.bf16.msrb.mxu3 %v3761_v11  ;;  %v2165_v30 = vpop.f32.mrf.mxu2  ;;  %v3734_v11 = vld [vmem:[%s6626_s1 + $0x6b8] sm:$0xf0]  ;;  %v4240_v2 = vld [vmem:[%s6626_s1 + $0x594] sm:$0xf] }
  0xec   :  { %2500 = vmatpush.bf16.msrb.mxu0 %v3561_v44  ;;  %v2166_v49 = vadd.f32 %v2165_v30, %v2147_v4  ;;  %v6210_v53 = vpop.f32.mrf.mxu0  ;;  %v3737_v8 = vor.u32 %v4276_v31, %v3734_v11  ;;  %v3726_v44 = vld [vmem:[%s6626_s1 + $0x6a8] sm:$0xf0]  ;;  %v3526_v4 = vld [vmem:[%s6626_s1 + $0x518] sm:$0xf0]  ;;  %v4222_v30 = vld [vmem:[%s6626_s1 + $0x504] sm:$0xf] }
  0xed   :  { %2519 = vmatpush.bf16.msrb.mxu1 %v3625_v43  ;;  %v4256_v43 = vld [vmem:[%s6626_s1 + $0x614] sm:$0xf]  ;;  %v3529_v24 = vor.u32 %v4224_v61, %v3526_v4  ;;  %v4238_v11 = vld [vmem:[%s6626_s1 + $0x584] sm:$0xf]  ;;  %v4022_v57 = vld [vmem:[%s6626_s1 + $0x8f8] sm:$0xf0] }
  0xee   :  { %2538 = vmatpush.bf16.msrb.mxu2 %v3689_v42  ;;  %v6220_v35 = vadd.f32 %v2184_v16, %v2166_v49  ;;  %v4274_v42 = vld [vmem:[%s6626_s1 + $0x6a4] sm:$0xf]  ;;  %v3518_v16 = vld [vmem:[%s6626_s1 + $0x508] sm:$0xf0]  ;;  %v4332_v56 = vld [vmem:[%s6626_s1 + $0x874] sm:$0xf] }
  0xef   :  { %2557 = vmatpush.bf16.msrb.mxu3 %v3753_v47  ;;  %v6212_v32 = vpop.f32.mrf.mxu1  ;;  %v3654_v47 = vld [vmem:[%s6626_s1 + $0x618] sm:$0xf0]  ;;  %v3729_v27 = vor.u32 %v4274_v42, %v3726_v44  ;;  %v3582_v49 = vld [vmem:[%s6626_s1 + $0x588] sm:$0xf0]  ;;  %v3521_v9 = vor.u32 %v4222_v30, %v3518_v16 }
  0xf0   :  { %2501 = vmatpush.bf16.msrb.mxu0 %v3553_v6  ;;  %v4272_v6 = vld [vmem:[%s6626_s1 + $0x694] sm:$0xf]  ;;  %v3657_v23 = vor.u32 %v4256_v43, %v3654_v47  ;;  %v3585_v38 = vor.u32 %v4238_v11, %v3582_v49  ;;  %v4330_v43 = vld [vmem:[%s6626_s1 + $0x864] sm:$0xf]  ;;  %v3950_v47 = vld [vmem:[%s6626_s1 + $0x868] sm:$0xf0] }
  0xf1   :  { %2520 = vmatpush.bf16.msrb.mxu1 %v3617_v19  ;;  %v3721_v31 = vor.u32 %v4272_v6, %v3718_v12  ;;  %v4314_v6 = vld [vmem:[%s6626_s1 + $0x7e4] sm:$0xf]  ;;  %v3886_v12 = vld [vmem:[%s6626_s1 + $0x7e8] sm:$0xf0]  ;;  %v4296_v11 = vld [vmem:[%s6626_s1 + $0x754] sm:$0xf] }
  0xf2   :  { %2539 = vmatpush.bf16.msrb.mxu2 %v3681_v5  ;;  %v6257_v3 = vpop.f32.mrf.mxu3  ;;  %v3590_v5 = vld [vmem:[%s6626_s1 + $0x598] sm:$0xf0]  ;;  %v3889_v30 = vor.u32 %v4314_v6, %v3886_v12 }
  0xf3   :  { %2558 = vmatpush.bf16.msrb.mxu3 %v3745_v20  ;;  %v6255_v7 = vpop.f32.mrf.mxu2  ;;  %v4254_v20 = vld [vmem:[%s6626_s1 + $0x604] sm:$0xf]  ;;  %v3593_v10 = vor.u32 %v4240_v2, %v3590_v5  ;;  %v3822_v5 = vld [vmem:[%s6626_s1 + $0x768] sm:$0xf0]  ;;  %v3814_v49 = vld [vmem:[%s6626_s1 + $0x758] sm:$0xf0] }
  0xf4   :  { %2502 = vmatpush.bf16.msrb.mxu0 %v3545_v51  ;;  %v6268_v15 = vpop.f32.mrf.mxu0  ;;  %v3710_v51 = vld [vmem:[%s6626_s1 + $0x688] sm:$0xf0]  ;;  %v4298_v2 = vld [vmem:[%s6626_s1 + $0x764] sm:$0xf] }
  0xf5   :  { %2521 = vmatpush.bf16.msrb.mxu1 %v3609_v54  ;;  %v4316_v54 = vld [vmem:[%s6626_s1 + $0x7f4] sm:$0xf] }
  0xf6   :  { %2540 = vmatpush.bf16.msrb.mxu2 %v3673_v33  ;;  %v4270_v33 = vld [vmem:[%s6626_s1 + $0x684] sm:$0xf]  ;;  %2454 = vmatmul.bf16.gmra.mxu1 %v5048_v14  ;;  %v3830_v14 = vld [vmem:[%s6626_s1 + $0x778] sm:$0xf0] }
  0xf7   :  { %2559 = vmatpush.bf16.msrb.mxu3 %v3737_v8  ;;  %v6270_v19 = vpop.f32.mrf.mxu1  ;;  %2473 = vmatmul.bf16.gmra.mxu2 %v5303_v39  ;;  %v3649_v8 = vor.u32 %v4254_v20, %v3646_v26  ;;  %v3894_v39 = vld [vmem:[%s6626_s1 + $0x7f8] sm:$0xf0]  ;;  %v3713_v41 = vor.u32 %v4270_v33, %v3710_v51  ;;  %v4346_v20 = vld [vmem:[%s6626_s1 + $0x8e4] sm:$0xf]  ;;  %v3825_v26 = vor.u32 %v4298_v2, %v3822_v5  ;;  %v4312_v33 = vld [vmem:[%s6626_s1 + $0x7d4] sm:$0xf] }
  0xf8   :  { %2503 = vmatpush.bf16.msrb.mxu0 %v3537_v1  ;;  %2492 = vmatmul.bf16.gmra.mxu3 %v5305_v40  ;;  %v4348_v40 = vld [vmem:[%s6626_s1 + $0x8f4] sm:$0xf]  ;;  %v3897_v61 = vor.u32 %v4316_v54, %v3894_v39  ;;  %v3817_v39 = vor.u32 %v4296_v11, %v3814_v49  ;;  %v3926_v5 = vld [vmem:[%s6626_s1 + $0x838] sm:$0xf0] }
  0xf9   :  { %2522 = vmatpush.bf16.msrb.mxu1 %v3601_v60  ;;  %2435 = vmatmul.bf16.gmra.mxu0 %v5046_v13  ;;  %v4300_v13 = vld [vmem:[%s6626_s1 + $0x774] sm:$0xf]  ;;  %v4025_v4 = vor.u32 %v4348_v40, %v4022_v57  ;;  %v4326_v40 = vld [vmem:[%s6626_s1 + $0x844] sm:$0xf]  ;;  %v3934_v57 = vld [vmem:[%s6626_s1 + $0x848] sm:$0xf0] }
  0xfa   :  { %2541 = vmatpush.bf16.msrb.mxu2 %v3665_v0  ;;  %v6326_v44 = vpop.f32.mrf.mxu3  ;;  %v3961_v0 = vor.u32 %v4332_v56, %v3958_v34  ;;  %v3833_v1 = vor.u32 %v4300_v13, %v3830_v14  ;;  %v3878_v34 = vld [vmem:[%s6626_s1 + $0x7d8] sm:$0xf0]  ;;  %v4344_v13 = vld [vmem:[%s6626_s1 + $0x8d4] sm:$0xf] }
  0xfb   :  { %2560 = vmatpush.bf16.msrb.mxu3 %v3729_v27  ;;  %v6324_v42 = vpop.f32.mrf.mxu2  ;;  %v4006_v14 = vld [vmem:[%s6626_s1 + $0x8d8] sm:$0xf0]  ;;  %v4324_v2 = vld [vmem:[%s6626_s1 + $0x834] sm:$0xf] }
  0xfc   :  { %2504 = vmatpush.bf16.msrb.mxu0 %v3529_v24  ;;  %v6334_v60 = vpop.f32.mrf.mxu0  ;;  %v3953_v24 = vor.u32 %v4330_v43, %v3950_v47  ;;  %v4310_v43 = vld [vmem:[%s6626_s1 + $0x7c4] sm:$0xf]  ;;  %v3870_v47 = vld [vmem:[%s6626_s1 + $0x7c8] sm:$0xf0]  ;;  %v3929_v11 = vor.u32 %v4324_v2, %v3926_v5  ;;  %v4304_v2 = vld [vmem:[%s6626_s1 + $0x794] sm:$0xf] }
  0xfd   :  { %2523 = vmatpush.bf16.msrb.mxu1 %v3593_v10  ;;  %v4328_v10 = vld [vmem:[%s6626_s1 + $0x854] sm:$0xf]  ;;  %v3873_v6 = vor.u32 %v4310_v43, %v3870_v47  ;;  %v3910_v47 = vld [vmem:[%s6626_s1 + $0x818] sm:$0xf0] }
  0xfe   :  { %2542 = vmatpush.bf16.msrb.mxu2 %v3657_v23  ;;  %v4014_v23 = vld [vmem:[%s6626_s1 + $0x8e8] sm:$0xf0]  ;;  %v4320_v43 = vld [vmem:[%s6626_s1 + $0x814] sm:$0xf] }
  0xff   :  { %2561 = vmatpush.bf16.msrb.mxu3 %v3721_v31  ;;  %v6336_v27 = vpop.f32.mrf.mxu1  ;;  %v4017_v16 = vor.u32 %v4346_v20, %v4014_v23  ;;  %v3942_v31 = vld [vmem:[%s6626_s1 + $0x858] sm:$0xf0]  ;;  %v4308_v20 = vld [vmem:[%s6626_s1 + $0x7b4] sm:$0xf] }
 0x100   :  { %2505 = vmatpush.bf16.msrb.mxu0 %v3521_v9  ;;  %v3945_v9 = vor.u32 %v4328_v10, %v3942_v31 }
 0x101   :  { %2524 = vmatpush.bf16.msrb.mxu1 %v3585_v38  ;;  %v3881_v38 = vor.u32 %v4312_v33, %v3878_v34  ;;  %v4322_v33 = vld [vmem:[%s6626_s1 + $0x824] sm:$0xf]  ;;  %v3918_v34 = vld [vmem:[%s6626_s1 + $0x828] sm:$0xf0] }
 0x102   :  { %2543 = vmatpush.bf16.msrb.mxu2 %v3649_v8  ;;  %v6373_v56 = vpop.f32.mrf.mxu3 }
 0x103   :  { %2562 = vmatpush.bf16.msrb.mxu3 %v3713_v41  ;;  %v6371_v51 = vpop.f32.mrf.mxu2  ;;  %v4009_v41 = vor.u32 %v4344_v13, %v4006_v14 }
 0x104   :  { %2574 = vmatpush.bf16.msra.mxu0 %v3833_v1  ;;  %v6384_v54 = vpop.f32.mrf.mxu0  ;;  %v3806_v1 = vld [vmem:[%s6626_s1 + $0x748] sm:$0xf0] }
 0x105   :  { %2593 = vmatpush.bf16.msra.mxu1 %v3897_v61  ;;  %v4342_v61 = vld [vmem:[%s6626_s1 + $0x8c4] sm:$0xf] }
 0x106   :  { %2612 = vmatpush.bf16.msra.mxu2 %v3961_v0  ;;  %v4294_v0 = vld [vmem:[%s6626_s1 + $0x744] sm:$0xf]  ;;  %2525 = vmatmul.bf16.vlgmr.msrb.gmra.mxu1 %v5186_v29 }
 0x107   :  { %2631 = vmatpush.bf16.msra.mxu3 %v4025_v4  ;;  %v6386_v8 = vpop.f32.mrf.mxu1  ;;  %v3998_v4 = vld [vmem:[%s6626_s1 + $0x8c8] sm:$0xf0]  ;;  %2544 = vmatmul.bf16.vlgmr.msrb.gmra.mxu2 %v5447_v17  ;;  %v3809_v29 = vor.u32 %v4294_v0, %v3806_v1  ;;  %v4292_v17 = vld [vmem:[%s6626_s1 + $0x734] sm:$0xf]  ;;  %v3921_v0 = vor.u32 %v4322_v33, %v3918_v34 }
 0x108   :  { %2575 = vmatpush.bf16.msra.mxu0 %v3825_v26  ;;  %2563 = vmatmul.bf16.vlgmr.msrb.gmra.mxu3 %v5449_v18  ;;  %v4001_v12 = vor.u32 %v4342_v61, %v3998_v4  ;;  %v3798_v18 = vld [vmem:[%s6626_s1 + $0x738] sm:$0xf0] }
 0x109   :  { %2594 = vmatpush.bf16.msra.mxu1 %v3889_v30  ;;  %2506 = vmatmul.bf16.vlgmr.msrb.gmra.mxu0 %v5184_v28  ;;  %v3937_v28 = vor.u32 %v4326_v40, %v3934_v57  ;;  %v3862_v26 = vld [vmem:[%s6626_s1 + $0x7b8] sm:$0xf0]  ;;  %v4340_v30 = vld [vmem:[%s6626_s1 + $0x8b4] sm:$0xf]  ;;  %v3801_v49 = vor.u32 %v4292_v17, %v3798_v18  ;;  %v4306_v40 = vld [vmem:[%s6626_s1 + $0x7a4] sm:$0xf] }
 0x10a   :  { %2613 = vmatpush.bf16.msra.mxu2 %v3953_v24  ;;  %v6433_v24 = vpop.f32.mrf.mxu3  ;;  %v3865_v13 = vor.u32 %v4308_v20, %v3862_v26  ;;  %v3854_v57 = vld [vmem:[%s6626_s1 + $0x7a8] sm:$0xf0]  ;;  %v4336_v17 = vld [vmem:[%s6626_s1 + $0x894] sm:$0xf]  ;;  %v3974_v18 = vld [vmem:[%s6626_s1 + $0x898] sm:$0xf0] }
 0x10b   :  { %2632 = vmatpush.bf16.msra.mxu3 %v4017_v16  ;;  %v6431_v23 = vpop.f32.mrf.mxu2  ;;  %v3990_v16 = vld [vmem:[%s6626_s1 + $0x8b8] sm:$0xf0]  ;;  %v3857_v61 = vor.u32 %v4306_v40, %v3854_v57  ;;  %v3977_v34 = vor.u32 %v4336_v17, %v3974_v18  ;;  %v4334_v40 = vld [vmem:[%s6626_s1 + $0x884] sm:$0xf]  ;;  %v3966_v57 = vld [vmem:[%s6626_s1 + $0x888] sm:$0xf0] }
 0x10c   :  { %2576 = vmatpush.bf16.msra.mxu0 %v3817_v39  ;;  %v6444_v10 = vpop.f32.mrf.mxu0  ;;  %v3993_v14 = vor.u32 %v4340_v30, %v3990_v16  ;;  %v3790_v39 = vld [vmem:[%s6626_s1 + $0x728] sm:$0xf0]  ;;  %v3913_v30 = vor.u32 %v4320_v43, %v3910_v47 }
 0x10d   :  { %2595 = vmatpush.bf16.msra.mxu1 %v3881_v38  ;;  %v4338_v38 = vld [vmem:[%s6626_s1 + $0x8a4] sm:$0xf] }
 0x10e   :  { %2614 = vmatpush.bf16.msra.mxu2 %v3945_v9  ;;  %v4290_v9 = vld [vmem:[%s6626_s1 + $0x724] sm:$0xf] }
 0x10f   :  { %2633 = vmatpush.bf16.msra.mxu3 %v4009_v41  ;;  %v6446_v31 = vpop.f32.mrf.mxu1  ;;  %v3982_v41 = vld [vmem:[%s6626_s1 + $0x8a8] sm:$0xf0]  ;;  %v3793_v1 = vor.u32 %v4290_v9, %v3790_v39  ;;  %v4302_v9 = vld [vmem:[%s6626_s1 + $0x784] sm:$0xf] }
 0x110   :  { %2577 = vmatpush.bf16.msra.mxu0 %v3809_v29  ;;  %v3985_v4 = vor.u32 %v4338_v38, %v3982_v41  ;;  %v3782_v29 = vld [vmem:[%s6626_s1 + $0x718] sm:$0xf0]  ;;  %v3838_v39 = vld [vmem:[%s6626_s1 + $0x788] sm:$0xf0] }
 0x111   :  { %2596 = vmatpush.bf16.msra.mxu1 %v3873_v6  ;;  %v3841_v41 = vor.u32 %v4302_v9, %v3838_v39 }
 0x112   :  { %2615 = vmatpush.bf16.msra.mxu2 %v3937_v28  ;;  %v4288_v28 = vld [vmem:[%s6626_s1 + $0x714] sm:$0xf]  ;;  %v6489_v6 = vpop.f32.mrf.mxu3 }
 0x113   :  { %2634 = vmatpush.bf16.msra.mxu3 %v4001_v12  ;;  %v6487_v5 = vpop.f32.mrf.mxu2  ;;  %v3846_v12 = vld [vmem:[%s6626_s1 + $0x798] sm:$0xf0]  ;;  %v3785_v16 = vor.u32 %v4288_v28, %v3782_v29 }
 0x114   :  { %2578 = vmatpush.bf16.msra.mxu0 %v3801_v49  ;;  %v2208_v20 = vpop.f32.mrf.mxu0  ;;  %v3902_v49 = vld [vmem:[%s6626_s1 + $0x808] sm:$0xf0]  ;;  %v3849_v33 = vor.u32 %v4304_v2, %v3846_v12 }
 0x115   :  { %2597 = vmatpush.bf16.msra.mxu1 %v3865_v13  ;;  %v4286_v13 = vld [vmem:[%s6626_s1 + $0x704] sm:$0xf] }
 0x116   :  { %2616 = vmatpush.bf16.msra.mxu2 %v3929_v11  ;;  %v4318_v11 = vld [vmem:[%s6626_s1 + $0x804] sm:$0xf]  ;;  %2530 = vmatmul.bf16.gmra.mxu1 %v5318_v46 }
 0x117   :  { %2635 = vmatpush.bf16.msra.mxu3 %v3993_v14  ;;  %v6500_v26 = vpop.f32.mrf.mxu1  ;;  %v3774_v14 = vld [vmem:[%s6626_s1 + $0x708] sm:$0xf0]  ;;  %2549 = vmatmul.bf16.gmra.mxu2 %v5579_v55  ;;  %v3905_v46 = vor.u32 %v4318_v11, %v3902_v49  ;;  %v2133_v55 = vadd.f32 %v6268_v15, %v6129_v48 }
 0x118   :  { %2579 = vmatpush.bf16.msra.mxu0 %v3793_v1  ;;  %2568 = vmatmul.bf16.gmra.mxu3 %v5581_v58  ;;  %v3777_v38 = vor.u32 %v4286_v13, %v3774_v14 }
 0x119   :  { %2598 = vmatpush.bf16.msra.mxu1 %v3857_v61  ;;  %2511 = vmatmul.bf16.gmra.mxu0 %v5316_v45  ;;  %v2130_v45 = vadd.f32 %v6210_v53, %v6062_v21  ;;  %v2152_v21 = vadd.f32 %v6270_v19, %v2133_v55 }
 0x11a   :  { %2617 = vmatpush.bf16.msra.mxu2 %v3921_v0  ;;  %v3969_v0 = vor.u32 %v4334_v40, %v3966_v57  ;;  %v2265_v43 = vpop.f32.mrf.mxu3 }
 0x11b   :  { %2636 = vmatpush.bf16.msra.mxu3 %v3985_v4  ;;  %v2246_v1 = vpop.f32.mrf.mxu2  ;;  %v2149_v4 = vadd.f32 %v6212_v32, %v2130_v45  ;;  %v2171_v28 = vadd.f32 %v6324_v42, %v2152_v21  ;;  %v2135_v32 = vadd.f32 %v6334_v60, %v6162_v50 }
 0x11c   :  { %2580 = vmatpush.bf16.msra.mxu0 %v3785_v16  ;;  %v2210_v47 = vpop.f32.mrf.mxu0 }
 0x11d   :  { %2599 = vmatpush.bf16.msra.mxu1 %v3849_v33  ;;  %v2168_v58 = vadd.f32 %v6255_v7, %v2149_v4  ;;  %v2190_v15 = vadd.f32 %v6326_v44, %v2171_v28  ;;  %v2204_v7 = vadd.f32 %v6384_v54, %v6220_v35  ;;  %v2154_v19 = vadd.f32 %v6336_v27, %v2135_v32 }
 0x11e   :  { %2618 = vmatpush.bf16.msra.mxu2 %v3913_v30 }
 0x11f   :  { %2637 = vmatpush.bf16.msra.mxu3 %v3977_v34  ;;  %v2229_v61 = vpop.f32.mrf.mxu1  ;;  %v2187_v53 = vadd.f32 %v6257_v3, %v2168_v58  ;;  %v4350_v3 = vld [vmem:[%s6628_s2] sm:$0x3]  ;;  %v2209_v44 = vadd.f32 %v2208_v20, %v2190_v15  ;;  %v2173_v35 = vadd.f32 %v6371_v51, %v2154_v19 }
 0x120   :  { %2581 = vmatpush.bf16.msra.mxu0 %v3777_v38  ;;  %v6552_v50 = vperm.slane %v4350_v3, 1 }
 0x121   :  { %2600 = vmatpush.bf16.msra.mxu1 %v3841_v41  ;;  %v2206_v48 = vadd.f32 %v6444_v10, %v2187_v53  ;;  %v2228_v30 = vadd.f32 %v6500_v26, %v2209_v44 }
 0x122   :  { %2619 = vmatpush.bf16.msra.mxu2 %v3905_v46  ;;  %v2267_v2 = vpop.f32.mrf.mxu3 }
 0x123   :  { %2638 = vmatpush.bf16.msra.mxu3 %v3969_v0  ;;  %v2248_v29 = vpop.f32.mrf.mxu2  ;;  %v2225_v42 = vadd.f32 %v6446_v31, %v2206_v48  ;;  %v2192_v31 = vadd.f32 %v6373_v56, %v2173_v35  ;;  %v2247_v51 = vadd.f32 %v2246_v1, %v2228_v30 }
 0x124   :  { %v2279_v12 = vpop.f32.mrf.mxu0 }
 0x125   :  { %v2211_v16 = vadd.f32 %v2210_v47, %v2192_v31  ;;  %v2266_v11 = vadd.f32 %v2265_v43, %v2247_v51 }
 0x126   :  { %2601 = vmatmul.bf16.vlgmr.msra.gmra.mxu1 %v5462_v25  ;;  %v2244_v25 = vadd.f32 %v6487_v5, %v2225_v42 }
 0x127   :  { %v2298_v17 = vpop.f32.mrf.mxu1  ;;  %2620 = vmatmul.bf16.vlgmr.msra.gmra.mxu2 %v5704_v36  ;;  %v2230_v9 = vadd.f32 %v2229_v61, %v2211_v16 }
 0x128   :  { %2639 = vmatmul.bf16.vlgmr.msra.gmra.mxu3 %v5706_v37  ;;  %v2263_v20 = vadd.f32 %v6489_v6, %v2244_v25  ;;  %v2710_v25 = vlaneseq }
 0x129   :  { %2582 = vmatmul.bf16.vlgmr.msra.gmra.mxu0 %v5460_v22  ;;  %v2223_v22 = vadd.f32 %v6386_v8, %v2204_v7  ;;  %v2249_v56 = vadd.f32 %v2248_v29, %v2230_v9 }
 0x12a   :  { %v2336_v60 = vpop.f32.mrf.mxu3  ;;  %v6592_v30 = vshrl.u32 %v2710_v25, 7 }
 0x12b   :  { %v2317_v36 = vpop.f32.mrf.mxu2  ;;  %v2242_v18 = vadd.f32 %v6431_v23, %v2223_v22  ;;  %v2268_v45 = vadd.f32 %v2267_v2, %v2249_v56 }
 0x12c   :  { %v2318_v37 = vadd.f32 %v2317_v36, %v6552_v50  ;;  %v2281_v54 = vpop.f32.mrf.mxu0  ;;  %vm2712_vm0 = vcmp.eq.s32.totalorder %v6592_v30, 0  ;;  %vm2715_vm1 = vcmp.eq.s32.totalorder %v6592_v30, 1 }
 0x12d   :  { %v2261_v8 = vadd.f32 %v6433_v24, %v2242_v18  ;;  %v2282_v5 = vadd.f32 %v2281_v54, %v2263_v20 }
 0x12e   :  { %v2337_v27 = vadd.f32 %v2336_v60, %v2318_v37 }
 0x12f   :  { %v2300_v10 = vpop.f32.mrf.mxu1  ;;  %v2280_v49 = vadd.f32 %v2279_v12, %v2261_v8 }
 0x130   :  { %v2301_v26 = vadd.f32 %v2300_v10, %v2282_v5 }
 0x131   :  { %v2299_v57 = vadd.f32 %v2298_v17, %v2280_v49 }
 0x132   :  { %v2338_v34 = vpop.f32.mrf.mxu3  ;;  %v6570_v24 = vmax.f32 %v2301_v26, 0.0 }
 0x133   :  { %v2319_v33 = vpop.f32.mrf.mxu2  ;;  %v6572_v46 = vmax.f32 %v2299_v57, 0.0 }
 0x134   :  { %v2320_v13 = vadd.f32 %v2319_v33, %v6552_v50 }
 0x135   :  { %v2666_v61 = vadd.f32 %v6570_v24, %v6572_v46 }
 0x136   :  { %v2284_v14 = vpop.f32.mrf.mxu0  ;;  %v2339_v40 = vadd.f32 %v2338_v34, %v2320_v13  ;;  %2606 = vmatmul.bf16.gmra.mxu1 %v5594_v63 }
 0x137   :  { %v2303_v23 = vpop.f32.mrf.mxu1  ;;  %v2285_v39 = vadd.f32 %v2284_v14, %v2266_v11  ;;  %2625 = vmatmul.bf16.gmra.mxu2 %v5824_v52 }
 0x138   :  { %2644 = vmatmul.bf16.gmra.mxu3 %v5826_v59  ;;  %v2684_v59 = vmul.f32 %v6572_v46, %v6572_v46 }
 0x139   :  { %v2304_v6 = vadd.f32 %v2303_v23, %v2285_v39  ;;  %2587 = vmatmul.bf16.gmra.mxu0 %v5592_v62  ;;  %v2686_v62 = vmul.f32 %v6570_v24, %v6570_v24 }
 0x13b   :  { %v6574_v38 = vmax.f32 %v2304_v6, 0.0  ;;  %v2322_v41 = vpop.f32.mrf.mxu2  ;;  %v2341_v0 = vpop.f32.mrf.mxu3  ;;  %v2692_v58 = vadd.f32 %v2686_v62, %v2684_v59 }
 0x13c   :  { %v2323_v1 = vadd.f32 %v2322_v41, %v6552_v50 }
 0x13d   :  { %v2688_v4 = vmul.f32 %v6574_v38, %v6574_v38  ;;  %v2667_v21 = vadd.f32 %v2666_v61, %v6574_v38 }
 0x13e   :  { %v2286_v43 = vpop.f32.mrf.mxu0  ;;  %v2342_v52 = vadd.f32 %v2341_v0, %v2323_v1 }
 0x13f   :  { %v2305_v47 = vpop.f32.mrf.mxu1  ;;  %v2287_v63 = vadd.f32 %v2286_v43, %v2268_v45  ;;  %v2693_v28 = vadd.f32 %v2692_v58, %v2688_v4 }
 0x141   :  { %v2306_v55 = vadd.f32 %v2305_v47, %v2287_v63 }
 0x143   :  { %v6586_v53 = vmax.f32 %v2306_v55, 0.0  ;;  %v2324_v12 = vpop.f32.mrf.mxu2  ;;  %v2343_v17 = vpop.f32.mrf.mxu3 }
 0x144   :  { %v2325_v32 = vadd.f32 %v2324_v12, %v6552_v50 }
 0x145   :  { %v2668_v29 = vadd.f32 %v2667_v21, %v6586_v53  ;;  %v2690_v2 = vmul.f32 %v6586_v53, %v6586_v53 }
 0x146   :  { %v2355_v48 = vpop.f32.mrf.mxu0  ;;  %v2344_v42 = vadd.f32 %v2343_v17, %v2325_v32 }
 0x147   :  { %v2374_v15 = vpop.f32.mrf.mxu1  ;;  %v2669_v7 = vrot.slane %v2668_v29, 4  ;;  %v2694_v3 = vadd.f32 %v2693_v28, %v2690_v2  ;;  %v2356_v19 = vadd.f32 %v2355_v48, %v2337_v27 }
 0x149   :  { %v2670_v44 = vadd.f32 %v2669_v7, %v2668_v29  ;;  %v2695_v35 = vrot.slane %v2694_v3, 4  ;;  %v2375_v22 = vadd.f32 %v2374_v15, %v2356_v19 }
 0x14b   :  { %v2671_v36 = vrot.slane %v2670_v44, 2  ;;  %v2696_v60 = vadd.f32 %v2695_v35, %v2694_v3  ;;  %v2393_v10 = vpop.f32.mrf.mxu2  ;;  %v2412_v18 = vpop.f32.mrf.mxu3 }
 0x14c   :  { %v2394_v31 = vadd.f32 %v2393_v10, %v2375_v22 }
 0x14d   :  { %v2672_v37 = vadd.f32 %v2671_v36, %v2670_v44  ;;  %v2697_v54 = vrot.slane %v2696_v60, 2 }
 0x14e   :  { %v2357_v50 = vpop.f32.mrf.mxu0  ;;  %v2413_v27 = vadd.f32 %v2412_v18, %v2394_v31 }
 0x14f   :  { %v2376_v20 = vpop.f32.mrf.mxu1  ;;  %v2673_v51 = vrot.slane %v2672_v37, 1  ;;  %v2698_v8 = vadd.f32 %v2697_v54, %v2696_v60  ;;  %v2358_v16 = vadd.f32 %v2357_v50, %v2339_v40 }
 0x151   :  { %v2674_v5 = vadd.f32 %v2673_v51, %v2672_v37  ;;  %v2699_v11 = vrot.slane %v2698_v8, 1  ;;  %v2377_v49 = vadd.f32 %v2376_v20, %v2358_v16 }
 0x153   :  { %v2700_v33 = vadd.f32 %v2699_v11, %v2698_v8  ;;  %v2713_v34 = vsel %vm2712_vm0, %v2674_v5, 0.0  ;;  %v2395_v14 = vpop.f32.mrf.mxu2  ;;  %v2414_v23 = vpop.f32.mrf.mxu3 }
 0x154   :  { %v2396_v26 = vadd.f32 %v2395_v14, %v2377_v49 }
 0x155   :  { %v2716_v13 = vsel %vm2715_vm1, %v2700_v33, 0.0 }
 0x156   :  { %v2718_v9 = vadd.f32 %v2716_v13, %v2713_v34  ;;  %v2360_v39 = vpop.f32.mrf.mxu0  ;;  %v2415_v57 = vadd.f32 %v2414_v23, %v2396_v26 }
 0x157   :  { %v2379_v40 = vpop.f32.mrf.mxu1  ;;  %v2361_v56 = vadd.f32 %v2360_v39, %v2342_v52 }
 0x158   :  { %2720 = vst [vmem:[%s6629_s4] sm:$0xff] %v2718_v9 }
 0x159   :  { %v2380_v6 = vadd.f32 %v2379_v40, %v2361_v56 }
 0x15b   :  { %v2398_v45 = vpop.f32.mrf.mxu2  ;;  %v2417_v41 = vpop.f32.mrf.mxu3 }
 0x15c   :  { %v2399_v0 = vadd.f32 %v2398_v45, %v2380_v6 }
 0x15e   :  { %v2362_v1 = vpop.f32.mrf.mxu0  ;;  %v2418_v62 = vadd.f32 %v2417_v41, %v2399_v0 }
 0x15f   :  { %v2381_v43 = vpop.f32.mrf.mxu1  ;;  %v2363_v47 = vadd.f32 %v2362_v1, %v2344_v42 }
 0x161   :  { %v2382_v63 = vadd.f32 %v2381_v43, %v2363_v47 }
 0x163   :  { %v2400_v59 = vpop.f32.mrf.mxu2  ;;  %v2419_v61 = vpop.f32.mrf.mxu3 }
 0x164   :  { %v2401_v4 = vadd.f32 %v2400_v59, %v2382_v63 }
 0x166   :  { %v2431_v55 = vpop.f32.mrf.mxu0  ;;  %v2420_v52 = vadd.f32 %v2419_v61, %v2401_v4 }
 0x167   :  { %v2450_v58 = vpop.f32.mrf.mxu1  ;;  %v2432_v54 = vadd.f32 %v2431_v55, %v2413_v27 }
 0x169   :  { %v2451_v10 = vadd.f32 %v2450_v58, %v2432_v54 }
 0x16b   :  { %v2469_v21 = vpop.f32.mrf.mxu2  ;;  %v2488_v28 = vpop.f32.mrf.mxu3 }
 0x16c   :  { %v2470_v50 = vadd.f32 %v2469_v21, %v2451_v10 }
 0x16e   :  { %v2433_v29 = vpop.f32.mrf.mxu0  ;;  %v2489_v16 = vadd.f32 %v2488_v28, %v2470_v50 }
 0x16f   :  { %v2452_v2 = vpop.f32.mrf.mxu1  ;;  %v2434_v8 = vadd.f32 %v2433_v29, %v2415_v57 }
 0x171   :  { %v2453_v5 = vadd.f32 %v2452_v2, %v2434_v8 }
 0x173   :  { %v2471_v12 = vpop.f32.mrf.mxu2  ;;  %v2490_v17 = vpop.f32.mrf.mxu3 }
 0x174   :  { %v2472_v34 = vadd.f32 %v2471_v12, %v2453_v5 }
 0x176   :  { %v2436_v32 = vpop.f32.mrf.mxu0  ;;  %v2491_v26 = vadd.f32 %v2490_v17, %v2472_v34 }
 0x177   :  { %v2455_v48 = vpop.f32.mrf.mxu1  ;;  %v2437_v23 = vadd.f32 %v2436_v32, %v2418_v62 }
 0x179   :  { %v2456_v27 = vadd.f32 %v2455_v48, %v2437_v23 }
 0x17b   :  { %v2474_v15 = vpop.f32.mrf.mxu2  ;;  %v2493_v7 = vpop.f32.mrf.mxu3 }
 0x17c   :  { %v2475_v45 = vadd.f32 %v2474_v15, %v2456_v27 }
 0x17e   :  { %v2438_v3 = vpop.f32.mrf.mxu0  ;;  %v2494_v63 = vadd.f32 %v2493_v7, %v2475_v45 }
 0x17f   :  { %v2457_v19 = vpop.f32.mrf.mxu1  ;;  %v2439_v1 = vadd.f32 %v2438_v3, %v2420_v52 }
 0x181   :  { %v2458_v61 = vadd.f32 %v2457_v19, %v2439_v1 }
 0x183   :  { %v2476_v42 = vpop.f32.mrf.mxu2  ;;  %v2495_v44 = vpop.f32.mrf.mxu3 }
 0x184   :  { %v2477_v21 = vadd.f32 %v2476_v42, %v2458_v61 }
 0x186   :  { %v2507_v35 = vpop.f32.mrf.mxu0  ;;  %v2496_v15 = vadd.f32 %v2495_v44, %v2477_v21 }
 0x187   :  { %v2526_v22 = vpop.f32.mrf.mxu1  ;;  %v2508_v11 = vadd.f32 %v2507_v35, %v2489_v16 }
 0x189   :  { %v2527_v9 = vadd.f32 %v2526_v22, %v2508_v11 }
 0x18b   :  { %v2545_v25 = vpop.f32.mrf.mxu2  ;;  %v2564_v36 = vpop.f32.mrf.mxu3 }
 0x18c   :  { %v2546_v39 = vadd.f32 %v2545_v25, %v2527_v9 }
 0x18e   :  { %v2509_v60 = vpop.f32.mrf.mxu0  ;;  %v2565_v41 = vadd.f32 %v2564_v36, %v2546_v39 }
 0x18f   :  { %v2528_v37 = vpop.f32.mrf.mxu1  ;;  %v2510_v40 = vadd.f32 %v2509_v60, %v2491_v26 }
 0x191   :  { %v2529_v43 = vadd.f32 %v2528_v37, %v2510_v40 }
 0x193   :  { %v2547_v18 = vpop.f32.mrf.mxu2  ;;  %v2566_v31 = vpop.f32.mrf.mxu3 }
 0x194   :  { %v2548_v59 = vadd.f32 %v2547_v18, %v2529_v43 }
 0x196   :  { %v2512_v20 = vpop.f32.mrf.mxu0  ;;  %v2567_v28 = vadd.f32 %v2566_v31, %v2548_v59 }
 0x197   :  { %v2531_v51 = vpop.f32.mrf.mxu1  ;;  %v2513_v4 = vadd.f32 %v2512_v20, %v2494_v63 }
 0x199   :  { %v2532_v17 = vadd.f32 %v2531_v51, %v2513_v4 }
 0x19b   :  { %v2550_v49 = vpop.f32.mrf.mxu2  ;;  %v2569_v33 = vpop.f32.mrf.mxu3 }
 0x19c   :  { %v2551_v35 = vadd.f32 %v2550_v49, %v2532_v17 }
 0x19e   :  { %v2514_v13 = vpop.f32.mrf.mxu0  ;;  %v2570_v36 = vadd.f32 %v2569_v33, %v2551_v35 }
 0x19f   :  { %v2533_v14 = vpop.f32.mrf.mxu1  ;;  %v2515_v3 = vadd.f32 %v2514_v13, %v2496_v15 }
 0x1a1   :  { %v2534_v37 = vadd.f32 %v2533_v14, %v2515_v3 }
 0x1a3   :  { %v2552_v56 = vpop.f32.mrf.mxu2  ;;  %v2571_v6 = vpop.f32.mrf.mxu3 }
 0x1a4   :  { %v2553_v44 = vadd.f32 %v2552_v56, %v2534_v37 }
 0x1a6   :  { %v2583_v0 = vpop.f32.mrf.mxu0  ;;  %v2572_v11 = vadd.f32 %v2571_v6, %v2553_v44 }
 0x1a7   :  { %v2602_v57 = vpop.f32.mrf.mxu1  ;;  %v2584_v47 = vadd.f32 %v2583_v0, %v2565_v41 }
 0x1a9   :  { %v2603_v55 = vadd.f32 %v2602_v57, %v2584_v47 }
 0x1ab   :  { %v2621_v62 = vpop.f32.mrf.mxu2  ;;  %v2640_v58 = vpop.f32.mrf.mxu3 }
 0x1ac   :  { %v2622_v29 = vadd.f32 %v2621_v62, %v2603_v55 }
 0x1ae   :  { %v2585_v2 = vpop.f32.mrf.mxu0  ;;  %v2641_v32 = vadd.f32 %v2640_v58, %v2622_v29 }
 0x1af   :  { %v2604_v12 = vpop.f32.mrf.mxu1  ;;  %v2586_v48 = vadd.f32 %v2585_v2, %v2567_v28 }
 0x1b0   :  { %v2651_v52 = vmax.f32 %v2641_v32, 0.0 }
 0x1b1   :  { %v2605_v22 = vadd.f32 %v2604_v12, %v2586_v48 }
 0x1b2   :  { %v2658_v7 = vpack.c.bf16 %v2651_v52, %v6572_v46  ;;  %v2685_v50 = vmul.f32 %v2651_v52, %v2651_v52 }
 0x1b3   :  { %v2623_v19 = vpop.f32.mrf.mxu2  ;;  %v2642_v25 = vpop.f32.mrf.mxu3 }
 0x1b4   :  { %2662 = vst [vmem:[%s6630_s3] sm:$0xff] %v2658_v7  ;;  %v2624_v42 = vadd.f32 %v2623_v19, %v2605_v22 }
 0x1b6   :  { %v2588_v60 = vpop.f32.mrf.mxu0  ;;  %v2643_v54 = vadd.f32 %v2642_v25, %v2624_v42 }
 0x1b7   :  { %v2589_v10 = vadd.f32 %v2588_v60, %v2570_v36  ;;  %v2607_v18 = vpop.f32.mrf.mxu1 }
 0x1b8   :  { %v2653_v31 = vmax.f32 %v2643_v54, 0.0 }
 0x1b9   :  { %v2608_v8 = vadd.f32 %v2607_v18, %v2589_v10 }
 0x1ba   :  { %v2659_v20 = vpack.c.bf16 %v2653_v31, %v6570_v24  ;;  %v2675_v46 = vadd.f32 %v2653_v31, %v2651_v52  ;;  %v2687_v51 = vmul.f32 %v2653_v31, %v2653_v31 }
 0x1bb   :  { %v2626_v16 = vpop.f32.mrf.mxu2  ;;  %v2645_v5 = vpop.f32.mrf.mxu3 }
 0x1bc   :  { %2663 = vst [vmem:[%s6630_s3 + $0x8] sm:$0xff] %v2659_v20  ;;  %v2701_v49 = vadd.f32 %v2687_v51, %v2685_v50  ;;  %v2627_v33 = vadd.f32 %v2626_v16, %v2608_v8 }
 0x1be   :  { %v2590_v34 = vpop.f32.mrf.mxu0  ;;  %v2646_v13 = vadd.f32 %v2645_v5, %v2627_v33 }
 0x1bf   :  { %v2591_v14 = vadd.f32 %v2590_v34, %v2572_v11  ;;  %v2609_v9 = vpop.f32.mrf.mxu1 }
 0x1c0   :  { %v2655_v23 = vmax.f32 %v2646_v13, 0.0 }
 0x1c1   :  { %v2610_v27 = vadd.f32 %v2609_v9, %v2591_v14 }
 0x1c2   :  { %v2660_v26 = vpack.c.bf16 %v2655_v23, %v6574_v38  ;;  %v2676_v24 = vadd.f32 %v2675_v46, %v2655_v23  ;;  %v2689_v39 = vmul.f32 %v2655_v23, %v2655_v23 }
 0x1c3   :  { %v2628_v40 = vpop.f32.mrf.mxu2  ;;  %v2647_v45 = vpop.f32.mrf.mxu3 }
 0x1c4   :  { %2664 = vst [vmem:[%s6630_s3 + $0x10] sm:$0xff] %v2660_v26  ;;  %v2702_v56 = vadd.f32 %v2701_v49, %v2689_v39  ;;  %v2629_v6 = vadd.f32 %v2628_v40, %v2610_v27 }
 0x1c6   :  { %v2648_v41 = vadd.f32 %v2647_v45, %v2629_v6 }
 0x1c8   :  { %v2657_v0 = vmax.f32 %v2648_v41, 0.0 }
 0x1ca   :  { %v2661_v57 = vpack.c.bf16 %v2657_v0, %v6586_v53  ;;  %v2677_v1 = vadd.f32 %v2676_v24, %v2657_v0  ;;  %v2691_v43 = vmul.f32 %v2657_v0, %v2657_v0 }
 0x1cc   :  { %2665 = vst [vmem:[%s6630_s3 + $0x18] sm:$0xff] %v2661_v57  ;;  %v2678_v38 = vrot.slane %v2677_v1, 4  ;;  %v2703_v47 = vadd.f32 %v2702_v56, %v2691_v43 }
 0x1ce   :  { %v2679_v63 = vadd.f32 %v2678_v38, %v2677_v1  ;;  %v2704_v59 = vrot.slane %v2703_v47, 4 }
 0x1d0   :  { %v2680_v61 = vrot.slane %v2679_v63, 2  ;;  %v2705_v4 = vadd.f32 %v2704_v59, %v2703_v47 }
 0x1d2   :  { %v2681_v55 = vadd.f32 %v2680_v61, %v2679_v63  ;;  %v2706_v62 = vrot.slane %v2705_v4, 2 }
 0x1d4   :  { %v2682_v58 = vrot.slane %v2681_v55, 1  ;;  %v2707_v21 = vadd.f32 %v2706_v62, %v2705_v4 }
 0x1d6   :  { %v2683_v28 = vadd.f32 %v2682_v58, %v2681_v55  ;;  %v2708_v29 = vrot.slane %v2707_v21, 1 }
 0x1d8   :  { %v2709_v2 = vadd.f32 %v2708_v29, %v2707_v21  ;;  %v2714_v53 = vsel %vm2712_vm0, %v2683_v28, 0.0 }
 0x1da   :  { %v2717_v12 = vsel %vm2715_vm1, %v2709_v2, 0.0 }
 0x1db   :  { %v2719_v17 = vadd.f32 %v2717_v12, %v2714_v53 }
 0x1dd   :  { %2721 = vst [vmem:[%s6629_s4 + $0x8] sm:$0xff] %v2719_v17 }

// kernel: conditioned_vae_encoder.15
= control target key start
LH: loop header
LB: loop body
LE: loop exit
PB: predicated region body
PF: predicated region fallthrough
CT: control target
= control target key end

     0   :  { %s3916_s20 = smov 96   ;;  %vm1041_vm0 = vcmask 261120   ;;  %vm1196_vm1 = vcmask 1043456   ;;  %vm1087_vm2 = vcmask 64512   ;;  %s5732_s5 = inlined_call_operand.vmem [shape: bf16[256,256], index: 5, kind: input, shape index: {}]   ;;  %s5733_s0 = inlined_call_operand.vmem [shape: bf16[32,256], index: 0, kind: input, shape index: {}]   ;;  %s5734_s1 = inlined_call_operand.vmem [shape: f32[1,256], index: 1, kind: input, shape index: {}]   ;;  %s5735_s2 = inlined_call_operand.vmem [shape: f32[1,256], index: 2, kind: input, shape index: {}]   ;;  %s5736_s7 = inlined_call_operand.vmem [shape: bf16[128,256], index: 7, kind: input, shape index: {}]   ;;  %s5737_s8 = inlined_call_operand.vmem [shape: bf16[256,256], index: 8, kind: input, shape index: {}]   ;;  %s5738_s6 = inlined_call_operand.vmem [shape: f32[1,256], index: 6, kind: input, shape index: {}]   ;;  %s5739_s3 = inlined_call_operand.vmem [shape: bf16[16,256], index: 3, kind: input, shape index: {}]   ;;  %s5740_s4 = inlined_call_operand.vmem [shape: f32[32,128], index: 4, kind: input, shape index: {}]   ;;  %s5741_s9 = inlined_call_operand.vmem [shape: bf16[256,256], index: 9, kind: input, shape index: {}]   ;;  %s5742_s10 = inlined_call_operand.vmem [shape: bf16[256,128], index: 10, kind: input, shape index: {}]   ;;  %s5743_s11 = inlined_call_operand.vmem [shape: f32[1,128], index: 11, kind: input, shape index: {}]   ;;  %s5744_s12 = inlined_call_operand.vmem [shape: f32[32,128], index: 12, kind: output, shape index: {}]  }
   0x1   :  { %v3091_v0 = vld [vmem:[%s5732_s5 + $0x70] sm:$0xf]  ;;  %v3600_v1 = vld [vmem:[%s5732_s5 + $0x74] sm:$0xf0]  ;;  %v3083_v5 = vld [vmem:[%s5732_s5 + $0x60] sm:$0xf] }
   0x2   :  { %v3155_v2 = vld [vmem:[%s5732_s5 + $0xf0] sm:$0xf]  ;;  %v3092_v3 = vor.u32 %v3600_v1, %v3091_v0  ;;  %v3616_v4 = vld [vmem:[%s5732_s5 + $0xf4] sm:$0xf0]  ;;  %v3598_v6 = vld [vmem:[%s5732_s5 + $0x64] sm:$0xf0] }
   0x3   :  { %v3156_v7 = vor.u32 %v3616_v4, %v3155_v2  ;;  %v3147_v8 = vld [vmem:[%s5732_s5 + $0xe0] sm:$0xf]  ;;  %v3614_v9 = vld [vmem:[%s5732_s5 + $0xe4] sm:$0xf0]  ;;  %v3084_v10 = vor.u32 %v3598_v6, %v3083_v5  ;;  %v3075_v12 = vld [vmem:[%s5732_s5 + $0x50] sm:$0xf] }
   0x4   :  { %284 = vmatpush.bf16.msra.mxu2 %v3092_v3  ;;  %v3148_v11 = vor.u32 %v3614_v9, %v3147_v8  ;;  %v3596_v13 = vld [vmem:[%s5732_s5 + $0x54] sm:$0xf0]  ;;  %v3139_v14 = vld [vmem:[%s5732_s5 + $0xd0] sm:$0xf]  ;;  %v3067_v18 = vld [vmem:[%s5732_s5 + $0x40] sm:$0xf] }
   0x5   :  { %303 = vmatpush.bf16.msra.mxu3 %v3156_v7  ;;  %v3612_v15 = vld [vmem:[%s5732_s5 + $0xd4] sm:$0xf0]  ;;  %v3076_v16 = vor.u32 %v3596_v13, %v3075_v12  ;;  %v3594_v19 = vld [vmem:[%s5732_s5 + $0x44] sm:$0xf0]  ;;  %v3131_v20 = vld [vmem:[%s5732_s5 + $0xc0] sm:$0xf] }
   0x6   :  { %v3140_v17 = vor.u32 %v3612_v15, %v3139_v14  ;;  %v3610_v21 = vld [vmem:[%s5732_s5 + $0xc4] sm:$0xf0]  ;;  %v3068_v22 = vor.u32 %v3594_v19, %v3067_v18  ;;  %v3059_v24 = vld [vmem:[%s5732_s5 + $0x30] sm:$0xf]  ;;  %v3592_v25 = vld [vmem:[%s5732_s5 + $0x34] sm:$0xf0] }
   0x7   :  { %v3132_v23 = vor.u32 %v3610_v21, %v3131_v20  ;;  %v3123_v26 = vld [vmem:[%s5732_s5 + $0xb0] sm:$0xf]  ;;  %v3608_v27 = vld [vmem:[%s5732_s5 + $0xb4] sm:$0xf0]  ;;  %v3060_v28 = vor.u32 %v3592_v25, %v3059_v24  ;;  %v42_v29 = vld [vmem:[%s5733_s0] sm:$0xff] }
   0x8   :  { %285 = vmatpush.bf16.msra.mxu2 %v3084_v10  ;;  %v43_v30 = vld [vmem:[%s5733_s0 + $0x8] sm:$0xff]  ;;  %v54_v31 = vld [vmem:[%s5734_s1] sm:$0x3]  ;;  %v3124_v32 = vor.u32 %v3608_v27, %v3123_v26  ;;  %v46_v37 = vunpack.c.l.bf16 %v42_v29  ;;  %v47_v42 = vunpack.c.h.bf16 %v42_v29  ;;  %v3043_v46 = vld [vmem:[%s5732_s5 + $0x10] sm:$0xf]  ;;  %s3917_s1 = smov 32  }
   0x9   :  { %304 = vmatpush.bf16.msra.mxu3 %v3148_v11  ;;  %v3051_v33 = vld [vmem:[%s5732_s5 + $0x20] sm:$0xf]  ;;  %v3590_v34 = vld [vmem:[%s5732_s5 + $0x24] sm:$0xf0]  ;;  %v48_v38 = vunpack.c.l.bf16 %v43_v30  ;;  %v4064_v39 = vperm.slane %v54_v31, 0  ;;  %v49_v43 = vunpack.c.h.bf16 %v43_v30  ;;  %v4069_v44 = vperm.slane %v54_v31, 1 }
   0xa   :  { %v3115_v35 = vld [vmem:[%s5732_s5 + $0xa0] sm:$0xf]  ;;  %v3606_v36 = vld [vmem:[%s5732_s5 + $0xa4] sm:$0xf0]  ;;  %v3052_v40 = vor.u32 %v3590_v34, %v3051_v33  ;;  %v3588_v47 = vld [vmem:[%s5732_s5 + $0x14] sm:$0xf0] }
   0xb   :  { %v68_v41 = vld [vmem:[%s5735_s2] sm:$0x3]  ;;  %v3116_v45 = vor.u32 %v3606_v36, %v3115_v35  ;;  %v3107_v48 = vld [vmem:[%s5732_s5 + $0x90] sm:$0xf]  ;;  %v3604_v49 = vld [vmem:[%s5732_s5 + $0x94] sm:$0xf0]  ;;  %v60_v50 = vmul.f32 %v4064_v39, %v46_v37  ;;  %v62_v51 = vmul.f32 %v4064_v39, %v48_v38  ;;  %v3044_v53 = vor.u32 %v3588_v47, %v3043_v46 }
   0xc   :  { %286 = vmatpush.bf16.msra.mxu2 %v3076_v16  ;;  %v4085_v52 = vperm.slane %v68_v41, 0  ;;  %v61_v54 = vmul.f32 %v4069_v44, %v47_v42  ;;  %v63_v55 = vmul.f32 %v4069_v44, %v49_v43  ;;  %v4089_v56 = vperm.slane %v68_v41, 1  ;;  %v3035_v58 = vld [vmem:[%s5732_s5] sm:$0xf]  ;;  %v3586_v59 = vld [vmem:[%s5732_s5 + $0x4] sm:$0xf0] }
   0xd   :  { %305 = vmatpush.bf16.msra.mxu3 %v3140_v17  ;;  %v3108_v57 = vor.u32 %v3604_v49, %v3107_v48  ;;  %v3099_v60 = vld [vmem:[%s5732_s5 + $0x80] sm:$0xf]  ;;  %v3602_v61 = vld [vmem:[%s5732_s5 + $0x84] sm:$0xf0]  ;;  %v3599_v62 = vld [vmem:[%s5732_s5 + $0x74] sm:$0xf]  ;;  %v3036_v4 = vor.u32 %v3586_v59, %v3035_v58 }
   0xe   :  { %v3093_v63 = vld [vmem:[%s5732_s5 + $0x78] sm:$0xf0]  ;;  %v74_v0 = vadd.f32 %v4085_v52, %v60_v50  ;;  %v76_v1 = vadd.f32 %v4085_v52, %v62_v51  ;;  %v3615_v2 = vld [vmem:[%s5732_s5 + $0xf4] sm:$0xf]  ;;  %v75_v5 = vadd.f32 %v4089_v56, %v61_v54  ;;  %v77_v6 = vadd.f32 %v4089_v56, %v63_v55  ;;  %v3597_v10 = vld [vmem:[%s5732_s5 + $0x64] sm:$0xf] }
   0xf   :  { %v3157_v3 = vld [vmem:[%s5732_s5 + $0xf8] sm:$0xf0]  ;;  %v3100_v7 = vor.u32 %v3602_v61, %v3099_v60  ;;  %v3096_v8 = vor.u32 %v3599_v62, %v3093_v63  ;;  %v3085_v11 = vld [vmem:[%s5732_s5 + $0x68] sm:$0xf0]  ;;  %v3613_v13 = vld [vmem:[%s5732_s5 + $0xe4] sm:$0xf] }
  0x10   :  { %287 = vmatpush.bf16.msra.mxu2 %v3068_v22  ;;  %v3160_v9 = vor.u32 %v3615_v2, %v3157_v3  ;;  %v4125_v12 = vpack.c.bf16 %v76_v1, %v74_v0  ;;  %v3149_v14 = vld [vmem:[%s5732_s5 + $0xe8] sm:$0xf0]  ;;  %v4133_v15 = vpack.c.bf16 %v77_v6, %v75_v5  ;;  %v44_v16 = vld [vmem:[%s5733_s0 + $0x10] sm:$0xff]  ;;  %v45_v17 = vld [vmem:[%s5733_s0 + $0x18] sm:$0xff]  ;;  %v3088_v18 = vor.u32 %v3597_v10, %v3085_v11 }
  0x11   :  { %306 = vmatpush.bf16.msra.mxu3 %v3132_v23  ;;  %v3152_v19 = vor.u32 %v3613_v13, %v3149_v14  ;;  %v3595_v20 = vld [vmem:[%s5732_s5 + $0x54] sm:$0xf]  ;;  %v3077_v21 = vld [vmem:[%s5732_s5 + $0x58] sm:$0xf0]  ;;  %v50_v24 = vunpack.c.l.bf16 %v44_v16  ;;  %v52_v25 = vunpack.c.l.bf16 %v45_v17  ;;  %v51_v26 = vunpack.c.h.bf16 %v44_v16  ;;  %v3593_v30 = vld [vmem:[%s5732_s5 + $0x44] sm:$0xf] }
  0x12   :  { %v3611_v22 = vld [vmem:[%s5732_s5 + $0xd4] sm:$0xf]  ;;  %v3141_v23 = vld [vmem:[%s5732_s5 + $0xd8] sm:$0xf0]  ;;  %v53_v27 = vunpack.c.h.bf16 %v45_v17  ;;  %v3069_v31 = vld [vmem:[%s5732_s5 + $0x48] sm:$0xf0] }
  0x13   :  { %v3144_v29 = vor.u32 %v3611_v22, %v3141_v23  ;;  %v3133_v33 = vld [vmem:[%s5732_s5 + $0xc8] sm:$0xf0]  ;;  %v64_v34 = vmul.f32 %v4064_v39, %v50_v24  ;;  %v66_v35 = vmul.f32 %v4064_v39, %v52_v25  ;;  %v65_v36 = vmul.f32 %v4069_v44, %v51_v26  ;;  %v3591_v41 = vld [vmem:[%s5732_s5 + $0x34] sm:$0xf]  ;;  %v3061_v42 = vld [vmem:[%s5732_s5 + $0x38] sm:$0xf0] }
  0x14   :  { %288 = vmatpush.bf16.msra.mxu2 %v3060_v28  ;;  %v3080_v28 = vor.u32 %v3595_v20, %v3077_v21  ;;  %v67_v37 = vmul.f32 %v4069_v44, %v53_v27  ;;  %v3072_v38 = vor.u32 %v3593_v30, %v3069_v31  ;;  %v3607_v44 = vld [vmem:[%s5732_s5 + $0xb4] sm:$0xf]  ;;  %v3064_v48 = vor.u32 %v3591_v41, %v3061_v42  ;;  %v3589_v50 = vld [vmem:[%s5732_s5 + $0x24] sm:$0xf]  ;;  %v3053_v51 = vld [vmem:[%s5732_s5 + $0x28] sm:$0xf0] }
  0x15   :  { %307 = vmatpush.bf16.msra.mxu3 %v3124_v32  ;;  %v3609_v32 = vld [vmem:[%s5732_s5 + $0xc4] sm:$0xf]  ;;  %v78_v43 = vadd.f32 %v4085_v52, %v64_v34  ;;  %v80_v39 = vadd.f32 %v4085_v52, %v66_v35  ;;  %v79_v46 = vadd.f32 %v4089_v56, %v65_v36  ;;  %v3117_v54 = vld [vmem:[%s5732_s5 + $0xa8] sm:$0xf0]  ;;  %v3587_v58 = vld [vmem:[%s5732_s5 + $0x14] sm:$0xf] }
  0x16   :  { %v81_v47 = vadd.f32 %v4089_v56, %v67_v37  ;;  %v3056_v56 = vor.u32 %v3589_v50, %v3053_v51  ;;  %v3045_v59 = vld [vmem:[%s5732_s5 + $0x18] sm:$0xf0]  ;;  %v3603_v60 = vld [vmem:[%s5732_s5 + $0x94] sm:$0xf]  ;;  %v3585_v0 = vld [vmem:[%s5732_s5 + $0x4] sm:$0xf] }
  0x17   :  { %v84_v52 = vpack.c.bf16 %v80_v39, %v78_v43  ;;  %v3109_v61 = vld [vmem:[%s5732_s5 + $0x98] sm:$0xf0]  ;;  %v3048_v62 = vor.u32 %v3587_v58, %v3045_v59  ;;  %v3037_v1 = vld [vmem:[%s5732_s5 + $0x8] sm:$0xf0]  ;;  %v3601_v2 = vld [vmem:[%s5732_s5 + $0x84] sm:$0xf] }
  0x18   :  { %289 = vmatpush.bf16.msra.mxu2 %v3052_v40  ;;  %v3136_v40 = vor.u32 %v3609_v32, %v3133_v33  ;;  %v85_v55 = vpack.c.bf16 %v81_v47, %v79_v46  ;;  %v3112_v63 = vor.u32 %v3603_v60, %v3109_v61  ;;  %v3101_v3 = vld [vmem:[%s5732_s5 + $0x88] sm:$0xf0]  ;;  %v3219_v6 = vld [vmem:[%s5736_s7 + $0x70] sm:$0xf]  ;;  %v3221_v10 = vld [vmem:[%s5736_s7 + $0x78] sm:$0xf0] }
  0x19   :  { %308 = vmatpush.bf16.msra.mxu3 %v3116_v45  ;;  %v3125_v45 = vld [vmem:[%s5732_s5 + $0xb8] sm:$0xf0]  ;;  %v3104_v5 = vor.u32 %v3601_v2, %v3101_v3  ;;  %v3211_v14 = vld [vmem:[%s5736_s7 + $0x60] sm:$0xf]  ;;  %v3629_v16 = vld [vmem:[%s5736_s7 + $0x64] sm:$0xf] }
  0x1a   :  { %v3128_v49 = vor.u32 %v3607_v44, %v3125_v45  ;;  %v3203_v20 = vld [vmem:[%s5736_s7 + $0x50] sm:$0xf]  ;;  %v3628_v21 = vld [vmem:[%s5736_s7 + $0x54] sm:$0xf0]  ;;  %v3627_v22 = vld [vmem:[%s5736_s7 + $0x54] sm:$0xf] }
  0x1b   :  { %v3204_v23 = vor.u32 %v3628_v21, %v3203_v20  ;;  %v3205_v24 = vld [vmem:[%s5736_s7 + $0x58] sm:$0xf0]  ;;  %v3625_v30 = vld [vmem:[%s5736_s7 + $0x44] sm:$0xf]  ;;  %v3197_v32 = vld [vmem:[%s5736_s7 + $0x48] sm:$0xf0] }
  0x1c   :  { %290 = vmatpush.bf16.msra.mxu2 %v3044_v53  ;;  %v3605_v53 = vld [vmem:[%s5732_s5 + $0xa4] sm:$0xf]  ;;  %v3208_v25 = vor.u32 %v3627_v22, %v3205_v24  ;;  %v3200_v33 = vor.u32 %v3625_v30, %v3197_v32  ;;  %v3187_v34 = vld [vmem:[%s5736_s7 + $0x30] sm:$0xf]  ;;  %v3624_v35 = vld [vmem:[%s5736_s7 + $0x34] sm:$0xf0] }
  0x1d   :  { %309 = vmatpush.bf16.msra.mxu3 %v3108_v57  ;;  %v3120_v57 = vor.u32 %v3605_v53, %v3117_v54  ;;  %v3623_v36 = vld [vmem:[%s5736_s7 + $0x34] sm:$0xf]  ;;  %v3188_v37 = vor.u32 %v3624_v35, %v3187_v34  ;;  %v3291_v41 = vld [vmem:[%s5737_s8 + $0x70] sm:$0xf]  ;;  %v3650_v42 = vld [vmem:[%s5737_s8 + $0x74] sm:$0xf0] }
  0x1e   :  { %v3355_v43 = vld [vmem:[%s5737_s8 + $0xf0] sm:$0xf]  ;;  %v3292_v44 = vor.u32 %v3650_v42, %v3291_v41  ;;  %v3666_v45 = vld [vmem:[%s5737_s8 + $0xf4] sm:$0xf0]  ;;  %v3621_v50 = vld [vmem:[%s5736_s7 + $0x24] sm:$0xf] }
  0x1f   :  { %v3356_v47 = vor.u32 %v3666_v45, %v3355_v43  ;;  %v3283_v54 = vld [vmem:[%s5737_s8 + $0x60] sm:$0xf]  ;;  %v3664_v58 = vld [vmem:[%s5737_s8 + $0xe4] sm:$0xf0]  ;;  %v3171_v60 = vld [vmem:[%s5736_s7 + $0x10] sm:$0xf] }
  0x20   :  { %291 = vmatpush.bf16.msra.mxu2 %v3036_v4  ;;  %v3040_v4 = vor.u32 %v3585_v0, %v3037_v1  ;;  %v3620_v61 = vld [vmem:[%s5736_s7 + $0x14] sm:$0xf0]  ;;  %v3173_v0 = vld [vmem:[%s5736_s7 + $0x18] sm:$0xf0]  ;;  %v3275_v2 = vld [vmem:[%s5737_s8 + $0x50] sm:$0xf] }
  0x21   :  { %310 = vmatpush.bf16.msra.mxu3 %v3100_v7  ;;  %v3632_v7 = vld [vmem:[%s5736_s7 + $0x74] sm:$0xf0]  ;;  %v3644_v20 = vld [vmem:[%s5737_s8 + $0x44] sm:$0xf0]  ;;  %v3331_v21 = vld [vmem:[%s5737_s8 + $0xc0] sm:$0xf] }
  0x22   :  { %v3646_v3 = vld [vmem:[%s5737_s8 + $0x54] sm:$0xf0]  ;;  %v3660_v24 = vld [vmem:[%s5737_s8 + $0xc4] sm:$0xf0]  ;;  %v3665_v30 = vld [vmem:[%s5737_s8 + $0xf4] sm:$0xf] }
  0x23   :  { %292 = vmatmul.bf16.vlgmr.msra.gmra.mxu2 %v4125_v12  ;;  %v3357_v32 = vld [vmem:[%s5737_s8 + $0xf8] sm:$0xf0]  ;;  %v3259_v34 = vld [vmem:[%s5737_s8 + $0x30] sm:$0xf]  ;;  %v3642_v35 = vld [vmem:[%s5737_s8 + $0x34] sm:$0xf0] }
  0x24   :  { %322 = vmatpush.bf16.msrb.mxu2 %v3096_v8  ;;  %311 = vmatmul.bf16.vlgmr.msra.gmra.mxu3 %v4133_v15  ;;  %v3631_v8 = vld [vmem:[%s5736_s7 + $0x74] sm:$0xf]  ;;  %v3285_v45 = vld [vmem:[%s5737_s8 + $0x68] sm:$0xf0] }
  0x25   :  { %341 = vmatpush.bf16.msrb.mxu3 %v3160_v9  ;;  %v3220_v9 = vor.u32 %v3632_v7, %v3219_v6  ;;  %v3224_v11 = vor.u32 %v3631_v8, %v3221_v10  ;;  %v3276_v6 = vor.u32 %v3646_v3, %v3275_v2  ;;  %v3662_v7 = vld [vmem:[%s5737_s8 + $0xd4] sm:$0xf0]  ;;  %v3163_v10 = vld [vmem:[%s5736_s7] sm:$0xf] }
  0x26   :  { %v3638_v2 = vld [vmem:[%s5737_s8 + $0x14] sm:$0xf0] }
  0x27   :  { %482 = vmatpush.bf16.msra.mxu0 %v3220_v9  ;;  %501 = vmatpush.bf16.msra.mxu1 %v3224_v11  ;;  %v3618_v11 = vld [vmem:[%s5736_s7 + $0x4] sm:$0xf0] }
  0x28   :  { %323 = vmatpush.bf16.msrb.mxu2 %v3088_v18  ;;  %v3213_v18 = vld [vmem:[%s5736_s7 + $0x68] sm:$0xf0] }
  0x29   :  { %342 = vmatpush.bf16.msrb.mxu3 %v3152_v19  ;;  %v3216_v19 = vor.u32 %v3629_v16, %v3213_v18  ;;  %v3164_v16 = vor.u32 %v3618_v11, %v3163_v10  ;;  %v3269_v10 = vld [vmem:[%s5737_s8 + $0x48] sm:$0xf0]  ;;  %v3659_v11 = vld [vmem:[%s5737_s8 + $0xc4] sm:$0xf] }
  0x2b   :  { %502 = vmatpush.bf16.msra.mxu1 %v3216_v19  ;;  %v3267_v19 = vld [vmem:[%s5737_s8 + $0x40] sm:$0xf] }
  0x2c   :  { %324 = vmatpush.bf16.msrb.mxu2 %v3080_v28  ;;  %v3195_v28 = vld [vmem:[%s5736_s7 + $0x40] sm:$0xf] }
  0x2d   :  { %343 = vmatpush.bf16.msrb.mxu3 %v3144_v29  ;;  %v3626_v29 = vld [vmem:[%s5736_s7 + $0x44] sm:$0xf0] }
  0x2e   :  { %v3196_v31 = vor.u32 %v3626_v29, %v3195_v28  ;;  %v3649_v28 = vld [vmem:[%s5737_s8 + $0x74] sm:$0xf]  ;;  %v3293_v29 = vld [vmem:[%s5737_s8 + $0x78] sm:$0xf0] }
  0x2f   :  { %503 = vmatpush.bf16.msra.mxu1 %v3208_v25  ;;  %v3332_v25 = vor.u32 %v3660_v24, %v3331_v21 }
  0x30   :  { %325 = vmatpush.bf16.msrb.mxu2 %v3072_v38  ;;  %v3189_v38 = vld [vmem:[%s5736_s7 + $0x38] sm:$0xf0] }
  0x31   :  { %344 = vmatpush.bf16.msrb.mxu3 %v3136_v40  ;;  %v3192_v40 = vor.u32 %v3623_v36, %v3189_v38  ;;  %v3323_v36 = vld [vmem:[%s5737_s8 + $0xb0] sm:$0xf]  ;;  %v3260_v38 = vor.u32 %v3642_v35, %v3259_v34  ;;  %v3641_v34 = vld [vmem:[%s5737_s8 + $0x34] sm:$0xf]  ;;  %v3261_v35 = vld [vmem:[%s5737_s8 + $0x38] sm:$0xf0] }
  0x33   :  { %297 = vmatmul.bf16.gmra.mxu2 %v84_v52  ;;  %504 = vmatpush.bf16.msra.mxu1 %v3200_v33  ;;  %v3360_v33 = vor.u32 %v3665_v30, %v3357_v32 }
  0x34   :  { %326 = vmatpush.bf16.msrb.mxu2 %v3064_v48  ;;  %316 = vmatmul.bf16.gmra.mxu3 %v85_v55  ;;  %v3179_v48 = vld [vmem:[%s5736_s7 + $0x20] sm:$0xf] }
  0x35   :  { %345 = vmatpush.bf16.msrb.mxu3 %v3128_v49  ;;  %v3622_v49 = vld [vmem:[%s5736_s7 + $0x24] sm:$0xf0] }
  0x36   :  { %v3180_v51 = vor.u32 %v3622_v49, %v3179_v48  ;;  %v3349_v49 = vld [vmem:[%s5737_s8 + $0xe8] sm:$0xf0] }
  0x37   :  { %505 = vmatpush.bf16.msra.mxu1 %v3192_v40  ;;  %v3658_v40 = vld [vmem:[%s5737_s8 + $0xb4] sm:$0xf0] }
  0x38   :  { %327 = vmatpush.bf16.msrb.mxu2 %v3056_v56  ;;  %v3347_v56 = vld [vmem:[%s5737_s8 + $0xe0] sm:$0xf]  ;;  %v3324_v43 = vor.u32 %v3658_v40, %v3323_v36  ;;  %v3264_v36 = vor.u32 %v3641_v34, %v3261_v35  ;;  %v3698_v35 = vld [vmem:[%s5741_s9 + $0xf4] sm:$0xf0] }
  0x39   :  { %346 = vmatpush.bf16.msrb.mxu3 %v3120_v57  ;;  %v3348_v59 = vor.u32 %v3664_v58, %v3347_v56  ;;  %v3656_v56 = vld [vmem:[%s5737_s8 + $0xa4] sm:$0xf0] }
  0x3c   :  { %328 = vmatpush.bf16.msrb.mxu2 %v3048_v62  ;;  %v3619_v62 = vld [vmem:[%s5736_s7 + $0x14] sm:$0xf] }
  0x3d   :  { %347 = vmatpush.bf16.msrb.mxu3 %v3112_v63  ;;  %v3172_v63 = vor.u32 %v3620_v61, %v3171_v60  ;;  %v3176_v1 = vor.u32 %v3619_v62, %v3173_v0  ;;  %v3661_v60 = vld [vmem:[%s5737_s8 + $0xd4] sm:$0xf]  ;;  %v3341_v61 = vld [vmem:[%s5737_s8 + $0xd8] sm:$0xf0] }
  0x3e   :  { %v3344_v0 = vor.u32 %v3661_v60, %v3341_v61  ;;  %v3309_v60 = vld [vmem:[%s5737_s8 + $0x98] sm:$0xf0] }
  0x40   :  { %329 = vmatpush.bf16.msrb.mxu2 %v3040_v4  ;;  %v3339_v4 = vld [vmem:[%s5737_s8 + $0xd0] sm:$0xf] }
  0x41   :  { %348 = vmatpush.bf16.msrb.mxu3 %v3104_v5  ;;  %v3340_v9 = vor.u32 %v3662_v7, %v3339_v4  ;;  %v3307_v4 = vld [vmem:[%s5737_s8 + $0x90] sm:$0xf]  ;;  %v3643_v7 = vld [vmem:[%s5737_s8 + $0x44] sm:$0xf] }
  0x43   :  { %330 = vmatmul.bf16.vlgmr.msrb.gmra.mxu2 %v4125_v12 }
  0x44   :  { %349 = vmatmul.bf16.vlgmr.msrb.gmra.mxu3 %v4133_v15  ;;  %v3630_v15 = vld [vmem:[%s5736_s7 + $0x64] sm:$0xf0]  ;;  %724 = vmatpush.bf16.msra.mxu2 %v3292_v44  ;;  %v3647_v44 = vld [vmem:[%s5737_s8 + $0x64] sm:$0xf] }
  0x45   :  { %v3212_v17 = vor.u32 %v3630_v15, %v3211_v14  ;;  %738 = vmatpush.bf16.msra.mxu3 %v3356_v47  ;;  %v3617_v14 = vld [vmem:[%s5736_s7 + $0x4] sm:$0xf]  ;;  %v4373_v15 = vld [vmem:[%s5738_s6] sm:$0x3]  ;;  %v3288_v48 = vor.u32 %v3647_v44, %v3285_v45 }
  0x46   :  { %v4388_v22 = vperm.slane %v4373_v15, 1  ;;  %v3663_v47 = vld [vmem:[%s5737_s8 + $0xe4] sm:$0xf]  ;;  %v4492_v32 = vperm.slane %v4373_v15, 0  ;;  %v3325_v15 = vld [vmem:[%s5737_s8 + $0xb8] sm:$0xf0] }
  0x47   :  { %483 = vmatpush.bf16.msra.mxu0 %v3212_v17  ;;  %v3165_v17 = vld [vmem:[%s5736_s7 + $0x8] sm:$0xf0] }
  0x48   :  { %v3168_v18 = vor.u32 %v3617_v14, %v3165_v17  ;;  %v3333_v17 = vld [vmem:[%s5737_s8 + $0xc8] sm:$0xf0] }
  0x49   :  { %739 = vmatpush.bf16.msra.mxu3 %v3348_v59  ;;  %v3277_v59 = vld [vmem:[%s5737_s8 + $0x58] sm:$0xf0]  ;;  %v3336_v24 = vor.u32 %v3659_v11, %v3333_v17 }
  0x4b   :  { %484 = vmatpush.bf16.msra.mxu0 %v3204_v23  ;;  %v3268_v23 = vor.u32 %v3644_v20, %v3267_v19  ;;  %v3636_v19 = vld [vmem:[%s5737_s8 + $0x4] sm:$0xf0] }
  0x4d   :  { %740 = vmatpush.bf16.msra.mxu3 %v3340_v9 }
  0x4f   :  { %485 = vmatpush.bf16.msra.mxu0 %v3196_v31  ;;  %v3296_v31 = vor.u32 %v3649_v28, %v3293_v29  ;;  %v3652_v28 = vld [vmem:[%s5737_s8 + $0x84] sm:$0xf0] }
  0x51   :  { %741 = vmatpush.bf16.msra.mxu3 %v3332_v25  ;;  %v3299_v25 = vld [vmem:[%s5737_s8 + $0x80] sm:$0xf] }
  0x53   :  { %335 = vmatmul.bf16.gmra.mxu2 %v84_v52  ;;  %486 = vmatpush.bf16.msra.mxu0 %v3188_v37  ;;  %v3181_v52 = vld [vmem:[%s5736_s7 + $0x28] sm:$0xf0] }
  0x54   :  { %354 = vmatmul.bf16.gmra.mxu3 %v85_v55  ;;  %v3184_v53 = vor.u32 %v3621_v50, %v3181_v52  ;;  %v3648_v55 = vld [vmem:[%s5737_s8 + $0x64] sm:$0xf0]  ;;  %v3251_v50 = vld [vmem:[%s5737_s8 + $0x20] sm:$0xf] }
  0x55   :  { %v3284_v57 = vor.u32 %v3648_v55, %v3283_v54  ;;  %742 = vmatpush.bf16.msra.mxu3 %v3324_v43  ;;  %v3315_v55 = vld [vmem:[%s5737_s8 + $0xa0] sm:$0xf]  ;;  %v3633_v43 = vld [vmem:[%s5739_s3 + $0x4] sm:$0xf] }
  0x56   :  { %506 = vmatpush.bf16.msra.mxu1 %v3184_v53  ;;  %v3352_v53 = vor.u32 %v3663_v47, %v3349_v49  ;;  %v3316_v58 = vor.u32 %v3656_v56, %v3315_v55  ;;  %v3229_v47 = vld [vmem:[%s5739_s3 + $0x8] sm:$0xf0]  ;;  %v3637_v56 = vld [vmem:[%s5737_s8 + $0x14] sm:$0xf] }
  0x57   :  { %487 = vmatpush.bf16.msra.mxu0 %v3180_v51  ;;  %725 = vmatpush.bf16.msra.mxu2 %v3284_v57  ;;  %v3640_v51 = vld [vmem:[%s5737_s8 + $0x24] sm:$0xf0]  ;;  %v3645_v57 = vld [vmem:[%s5737_s8 + $0x54] sm:$0xf]  ;;  %v3253_v49 = vld [vmem:[%s5737_s8 + $0x28] sm:$0xf0] }
  0x58   :  { %v3252_v54 = vor.u32 %v3640_v51, %v3251_v50  ;;  %v3317_v55 = vld [vmem:[%s5737_s8 + $0xa8] sm:$0xf0] }
  0x59   :  { %743 = vmatpush.bf16.msra.mxu3 %v3316_v58  ;;  %v3245_v58 = vld [vmem:[%s5737_s8 + $0x18] sm:$0xf0] }
  0x5a   :  { %507 = vmatpush.bf16.msra.mxu1 %v3176_v1  ;;  %v3243_v1 = vld [vmem:[%s5737_s8 + $0x10] sm:$0xf] }
  0x5b   :  { %488 = vmatpush.bf16.msra.mxu0 %v3172_v63  ;;  %726 = vmatpush.bf16.msra.mxu2 %v3276_v6  ;;  %v3280_v63 = vor.u32 %v3645_v57, %v3277_v59  ;;  %v3244_v3 = vor.u32 %v3638_v2, %v3243_v1  ;;  %v3654_v6 = vld [vmem:[%s5737_s8 + $0x94] sm:$0xf0]  ;;  %v3653_v59 = vld [vmem:[%s5737_s8 + $0x94] sm:$0xf]  ;;  %v3248_v2 = vor.u32 %v3637_v56, %v3245_v58  ;;  %v3467_v56 = vld [vmem:[%s5741_s9 + $0xd0] sm:$0xf] }
  0x5c   :  { %v3308_v9 = vor.u32 %v3654_v6, %v3307_v4  ;;  %v373_v4 = vld [vmem:[%s5740_s4 + $0x8] sm:$0xff]  ;;  %v3312_v6 = vor.u32 %v3653_v59, %v3309_v60  ;;  %v3679_v58 = vld [vmem:[%s5741_s9 + $0x64] sm:$0xf] }
  0x5e   :  { %508 = vmatpush.bf16.msra.mxu1 %v3168_v18  ;;  %v3235_v18 = vld [vmem:[%s5737_s8] sm:$0xf]  ;;  %744 = vmatpush.bf16.msra.mxu3 %v3308_v9 }
  0x5f   :  { %489 = vmatpush.bf16.msra.mxu0 %v3164_v16  ;;  %727 = vmatpush.bf16.msra.mxu2 %v3268_v23  ;;  %v3272_v16 = vor.u32 %v3643_v7, %v3269_v10  ;;  %v3236_v29 = vor.u32 %v3636_v19, %v3235_v18  ;;  %v3635_v7 = vld [vmem:[%s5737_s8 + $0x4] sm:$0xf]  ;;  %v3301_v10 = vld [vmem:[%s5737_s8 + $0x88] sm:$0xf0] }
  0x62   :  { %766 = vmatpush.bf16.msrb.mxu1 %v3360_v33 }
  0x63   :  { %752 = vmatpush.bf16.msrb.mxu0 %v3296_v31  ;;  %728 = vmatpush.bf16.msra.mxu2 %v3260_v38  ;;  %v3300_v31 = vor.u32 %v3652_v28, %v3299_v25  ;;  %v3227_v38 = vld [vmem:[%s5739_s3] sm:$0xf] }
  0x65   :  { %745 = vmatpush.bf16.msra.mxu3 %v3300_v31  ;;  %v3483_v31 = vld [vmem:[%s5741_s9 + $0xf0] sm:$0xf] }
  0x66   :  { %767 = vmatpush.bf16.msrb.mxu1 %v3352_v53 }
  0x67   :  { %753 = vmatpush.bf16.msrb.mxu0 %v3288_v48  ;;  %729 = vmatpush.bf16.msra.mxu2 %v3252_v54  ;;  %v3639_v48 = vld [vmem:[%s5737_s8 + $0x24] sm:$0xf] }
  0x68   :  { %v3256_v53 = vor.u32 %v3639_v48, %v3253_v49  ;;  %v3655_v54 = vld [vmem:[%s5737_s8 + $0xa4] sm:$0xf] }
  0x69   :  { %v3320_v57 = vor.u32 %v3655_v54, %v3317_v55 }
  0x6a   :  { %768 = vmatpush.bf16.msrb.mxu1 %v3344_v0 }
  0x6b   :  { %754 = vmatpush.bf16.msrb.mxu0 %v3280_v63  ;;  %730 = vmatpush.bf16.msra.mxu2 %v3244_v3  ;;  %v372_v63 = vld [vmem:[%s5740_s4] sm:$0xff] }
  0x6e   :  { %769 = vmatpush.bf16.msrb.mxu1 %v3336_v24 }
  0x6f   :  { %755 = vmatpush.bf16.msrb.mxu0 %v3272_v16  ;;  %731 = vmatpush.bf16.msra.mxu2 %v3236_v29 }
  0x73   :  { %756 = vmatpush.bf16.msrb.mxu0 %v3264_v36  ;;  %v3411_v36 = vld [vmem:[%s5741_s9 + $0x60] sm:$0xf] }
  0x77   :  { %757 = vmatpush.bf16.msrb.mxu0 %v3256_v53  ;;  %v3678_v53 = vld [vmem:[%s5741_s9 + $0x54] sm:$0xf0] }
  0x7b   :  { %758 = vmatpush.bf16.msrb.mxu0 %v3248_v2 }
  0xa6   :  { %v4237_v12 = vpop.f32.mrf.mxu2 }
  0xa7   :  { %v4239_v13 = vpop.f32.mrf.mxu3  ;;  %v294_v0 = vadd.f32 %v4237_v12, %v4492_v32  ;;  %v3237_v12 = vld [vmem:[%s5737_s8 + $0x8] sm:$0xf0] }
  0xa8   :  { %v3240_v19 = vor.u32 %v3635_v7, %v3237_v12  ;;  %v3405_v7 = vld [vmem:[%s5741_s9 + $0x58] sm:$0xf0] }
  0xaa   :  { %759 = vmatpush.bf16.msrb.mxu0 %v3240_v19 }
  0xae   :  { %v4265_v26 = vpop.f32.mrf.mxu2 }
  0xaf   :  { %v4267_v27 = vpop.f32.mrf.mxu3  ;;  %v296_v1 = vadd.f32 %v4265_v26, %v4492_v32  ;;  %v3651_v26 = vld [vmem:[%s5737_s8 + $0x84] sm:$0xf] }
  0xb1   :  { %v315_v16 = vadd.f32 %v4267_v27, %v296_v1  ;;  %v3395_v1 = vld [vmem:[%s5741_s9 + $0x40] sm:$0xf] }
  0xb6   :  { %v4302_v39 = vpop.f32.mrf.mxu2 }
  0xb7   :  { %v4307_v46 = vpop.f32.mrf.mxu3  ;;  %v299_v59 = vadd.f32 %v4302_v39, %v4492_v32  ;;  %v375_v39 = vld [vmem:[%s5740_s4 + $0x18] sm:$0xff] }
  0xbe   :  { %v4354_v5 = vpop.f32.mrf.mxu2 }
  0xbf   :  { %v4359_v8 = vpop.f32.mrf.mxu3  ;;  %v301_v60 = vadd.f32 %v4354_v5, %v4492_v32 }
  0xc6   :  { %v331_v37 = vpop.f32.mrf.mxu2 }
  0xc7   :  { %v332_v41 = vadd.f32 %v331_v37, %v4388_v22  ;;  %v350_v42 = vpop.f32.mrf.mxu3  ;;  %v3657_v37 = vld [vmem:[%s5737_s8 + $0xb4] sm:$0xf] }
  0xc9   :  { %v351_v52 = vadd.f32 %v350_v42, %v332_v41  ;;  %v3328_v41 = vor.u32 %v3657_v37, %v3325_v15  ;;  %v3634_v42 = vld [vmem:[%s5739_s3 + $0x4] sm:$0xf0]  ;;  %v3484_v37 = vor.u32 %v3698_v35, %v3483_v31  ;;  %v3451_v31 = vld [vmem:[%s5741_s9 + $0xb0] sm:$0xf] }
  0xca   :  { %v4515_v45 = vor.u32 %v3634_v42, %v3227_v38  ;;  %v3680_v15 = vld [vmem:[%s5741_s9 + $0x64] sm:$0xf0]  ;;  %v3475_v38 = vld [vmem:[%s5741_s9 + $0xe0] sm:$0xf] }
  0xcb   :  { %v360_v62 = vmul.f32 0.5, %v351_v52  ;;  %770 = vmatpush.bf16.msrb.mxu1 %v3328_v41  ;;  %v4527_v52 = vor.u32 %v3633_v43, %v3229_v47  ;;  %v374_v41 = vld [vmem:[%s5740_s4 + $0x10] sm:$0xff]  ;;  %v3412_v42 = vor.u32 %v3680_v15, %v3411_v36  ;;  %986 = vmatpush.bf16.msrb.mxu3 %v3484_v37  ;;  %v3379_v37 = vld [vmem:[%s5741_s9 + $0x20] sm:$0xf] }
  0xcc   :  { %732 = vmatmul.bf16.vlgmr.msra.gmra.mxu2 %v4515_v45  ;;  %v3681_v43 = vld [vmem:[%s5741_s9 + $0x74] sm:$0xf] }
  0xcd   :  { %v364_v20 = vmul.f32 1.442695, %v360_v62  ;;  %746 = vmatmul.bf16.vlgmr.msra.gmra.mxu3 %v4527_v52  ;;  %v3697_v47 = vld [vmem:[%s5741_s9 + $0xf4] sm:$0xf] }
  0xce   :  { %v333_v14 = vpop.f32.mrf.mxu2  ;;  %v3673_v15 = vld [vmem:[%s5741_s9 + $0x34] sm:$0xf] }
  0xcf   :  { %v334_v21 = vadd.f32 %v333_v14, %v4388_v22  ;;  %v352_v23 = vpop.f32.mrf.mxu3  ;;  %3779 = vpow2.f32 %v364_v20  ;;  %771 = vmatpush.bf16.msrb.mxu1 %v3320_v57  ;;  %v313_v14 = vadd.f32 %v4239_v13, %v294_v0  ;;  %v3694_v57 = vld [vmem:[%s5741_s9 + $0xd4] sm:$0xf0] }
  0xd1   :  { %v353_v30 = vadd.f32 %v352_v23, %v334_v21  ;;  %v3304_v23 = vor.u32 %v3651_v26, %v3301_v10  ;;  %v3469_v26 = vld [vmem:[%s5741_s9 + $0xd8] sm:$0xf0]  ;;  %v318_v10 = vadd.f32 %v4307_v46, %v299_v59  ;;  %v3387_v46 = vld [vmem:[%s5741_s9 + $0x30] sm:$0xf] }
  0xd2   :  { %v3435_v59 = vld [vmem:[%s5741_s9 + $0x90] sm:$0xf] }
  0xd3   :  { %v361_v33 = vmul.f32 0.5, %v353_v30  ;;  %772 = vmatpush.bf16.msrb.mxu1 %v3312_v6  ;;  %v3682_v30 = vld [vmem:[%s5741_s9 + $0x74] sm:$0xf0]  ;;  %v3677_v6 = vld [vmem:[%s5741_s9 + $0x54] sm:$0xf] }
  0xd5   :  { %v366_v40 = vmul.f32 1.442695, %v361_v33  ;;  %v3780_v61 = vpop.eup %3779 }
  0xd6   :  { %v336_v44 = vpop.f32.mrf.mxu2  ;;  %v376_v9 = vmul.f32 %v3780_v61, %v372_v63  ;;  %v3413_v61 = vld [vmem:[%s5741_s9 + $0x68] sm:$0xf0] }
  0xd7   :  { %3781 = vpow2.f32 %v366_v40  ;;  %v337_v50 = vadd.f32 %v336_v44, %v4388_v22  ;;  %v355_v51 = vpop.f32.mrf.mxu3  ;;  %773 = vmatpush.bf16.msrb.mxu1 %v3304_v23  ;;  %v3696_v40 = vld [vmem:[%s5741_s9 + $0xe4] sm:$0xf0]  ;;  %v3421_v44 = vld [vmem:[%s5741_s9 + $0x78] sm:$0xf0]  ;;  %v3477_v63 = vld [vmem:[%s5741_s9 + $0xe8] sm:$0xf0]  ;;  %v3416_v32 = vor.u32 %v3679_v58, %v3413_v61 }
  0xd8   :  { %v4574_v25 = vadd.f32 %v376_v9, %v313_v14  ;;  %v3476_v48 = vor.u32 %v3696_v40, %v3475_v38  ;;  %v3424_v49 = vor.u32 %v3681_v43, %v3421_v44  ;;  %v3693_v9 = vld [vmem:[%s5741_s9 + $0xd4] sm:$0xf]  ;;  %v3389_v38 = vld [vmem:[%s5741_s9 + $0x38] sm:$0xf0]  ;;  %v3672_v40 = vld [vmem:[%s5741_s9 + $0x24] sm:$0xf0] }
  0xd9   :  { %v356_v62 = vadd.f32 %v355_v51, %v337_v50  ;;  %v3485_v50 = vld [vmem:[%s5741_s9 + $0xf8] sm:$0xf0]  ;;  %v3403_v51 = vld [vmem:[%s5741_s9 + $0x50] sm:$0xf]  ;;  %v3443_v44 = vld [vmem:[%s5741_s9 + $0xa0] sm:$0xf] }
  0xda   :  { %v3488_v55 = vor.u32 %v3697_v47, %v3485_v50  ;;  %v3404_v5 = vor.u32 %v3678_v53, %v3403_v51  ;;  %987 = vmatpush.bf16.msrb.mxu3 %v3476_v48  ;;  %v3688_v47 = vld [vmem:[%s5741_s9 + $0xa4] sm:$0xf0]  ;;  %v3392_v48 = vor.u32 %v3673_v15, %v3389_v38  ;;  %v3371_v51 = vld [vmem:[%s5741_s9 + $0x10] sm:$0xf]  ;;  %v3671_v53 = vld [vmem:[%s5741_s9 + $0x24] sm:$0xf] }
  0xdb   :  { %v362_v3 = vmul.f32 0.5, %v356_v62  ;;  %v3695_v62 = vld [vmem:[%s5741_s9 + $0xe4] sm:$0xf]  ;;  %v3444_v58 = vor.u32 %v3688_v47, %v3443_v44 }
  0xdc   :  { %v3480_v0 = vor.u32 %v3695_v62, %v3477_v63 }
  0xdd   :  { %v3782_v11 = vpop.eup %3781  ;;  %v368_v20 = vmul.f32 1.442695, %v362_v3  ;;  %v3468_v3 = vor.u32 %v3694_v57, %v3467_v56  ;;  %v3687_v56 = vld [vmem:[%s5741_s9 + $0xa4] sm:$0xf]  ;;  %v3445_v57 = vld [vmem:[%s5741_s9 + $0xa8] sm:$0xf0] }
  0xde   :  { %v338_v17 = vpop.f32.mrf.mxu2  ;;  %v377_v18 = vmul.f32 %v3782_v11, %v373_v4  ;;  %v3676_v4 = vld [vmem:[%s5741_s9 + $0x44] sm:$0xf0]  ;;  %v320_v11 = vadd.f32 %v4359_v8, %v301_v60  ;;  %v3675_v8 = vld [vmem:[%s5741_s9 + $0x44] sm:$0xf]  ;;  %v3686_v60 = vld [vmem:[%s5741_s9 + $0x94] sm:$0xf0]  ;;  %v3448_v63 = vor.u32 %v3687_v56, %v3445_v57 }
  0xdf   :  { %v339_v21 = vadd.f32 %v338_v17, %v4388_v22  ;;  %v357_v24 = vpop.f32.mrf.mxu3  ;;  %3783 = vpow2.f32 %v368_v20  ;;  %v3419_v22 = vld [vmem:[%s5741_s9 + $0x70] sm:$0xf]  ;;  %v3692_v17 = vld [vmem:[%s5741_s9 + $0xc4] sm:$0xf0]  ;;  %v3396_v19 = vor.u32 %v3676_v4, %v3395_v1  ;;  %v3472_v20 = vor.u32 %v3693_v9, %v3469_v26  ;;  %988 = vmatpush.bf16.msrb.mxu3 %v3468_v3  ;;  %v3685_v1 = vld [vmem:[%s5741_s9 + $0x94] sm:$0xf] }
  0xe0   :  { %v4576_v28 = vadd.f32 %v377_v18, %v315_v16  ;;  %v3420_v34 = vor.u32 %v3682_v30, %v3419_v22  ;;  %v3459_v16 = vld [vmem:[%s5741_s9 + $0xc0] sm:$0xf]  ;;  %v3408_v18 = vor.u32 %v3677_v6, %v3405_v7  ;;  %v3436_v3 = vor.u32 %v3686_v60, %v3435_v59  ;;  %v3684_v6 = vld [vmem:[%s5741_s9 + $0x84] sm:$0xf0]  ;;  %v3667_v26 = vld [vmem:[%s5741_s9 + $0x4] sm:$0xf] }
  0xe1   :  { %v358_v29 = vadd.f32 %v357_v24, %v339_v21  ;;  %v3397_v21 = vld [vmem:[%s5741_s9 + $0x48] sm:$0xf0]  ;;  %v3460_v22 = vor.u32 %v3692_v17, %v3459_v16  ;;  %v3427_v4 = vld [vmem:[%s5741_s9 + $0x80] sm:$0xf] }
  0xe2   :  { %v384_v13 = vpack.c.bf16 %v4576_v28, %v4574_v25  ;;  %972 = vmatpush.bf16.msrb.mxu2 %v3420_v34  ;;  %v3400_v34 = vor.u32 %v3675_v8, %v3397_v21  ;;  %v3428_v16 = vor.u32 %v3684_v6, %v3427_v4 }
  0xe3   :  { %v363_v27 = vmul.f32 0.5, %v358_v29  ;;  %v3674_v29 = vld [vmem:[%s5741_s9 + $0x34] sm:$0xf0]  ;;  %989 = vmatpush.bf16.msrb.mxu3 %v3460_v22 }
  0xe4   :  { %490 = vmatmul.bf16.vlgmr.msra.gmra.mxu0 %v384_v13  ;;  %509 = vmatmul.bf16.vlgmr.msra.gmra.mxu1 %v384_v13  ;;  %v3691_v13 = vld [vmem:[%s5741_s9 + $0xc4] sm:$0xf]  ;;  %v3388_v35 = vor.u32 %v3674_v29, %v3387_v46 }
  0xe5   :  { %v370_v33 = vmul.f32 1.442695, %v363_v27  ;;  %v3784_v54 = vpop.eup %3783  ;;  %1000 = vmatpush.bf16.msra.mxu0 %v3424_v49  ;;  %1014 = vmatpush.bf16.msra.mxu1 %v3488_v55  ;;  %v3461_v27 = vld [vmem:[%s5741_s9 + $0xc8] sm:$0xf0]  ;;  %v3380_v49 = vor.u32 %v3672_v40, %v3379_v37  ;;  %v3670_v55 = vld [vmem:[%s5741_s9 + $0x14] sm:$0xf0] }
  0xe6   :  { %973 = vmatpush.bf16.msrb.mxu2 %v3412_v42  ;;  %v378_v2 = vmul.f32 %v3784_v54, %v374_v41  ;;  %v3464_v36 = vor.u32 %v3691_v13, %v3461_v27  ;;  %v3689_v41 = vld [vmem:[%s5741_s9 + $0xb4] sm:$0xf]  ;;  %v3453_v42 = vld [vmem:[%s5741_s9 + $0xb8] sm:$0xf0]  ;;  %v3381_v54 = vld [vmem:[%s5741_s9 + $0x28] sm:$0xf0]  ;;  %v3372_v62 = vor.u32 %v3670_v55, %v3371_v51 }
  0xe7   :  { %3785 = vpow2.f32 %v370_v33  ;;  %v3690_v33 = vld [vmem:[%s5741_s9 + $0xb4] sm:$0xf0]  ;;  %v3456_v50 = vor.u32 %v3689_v41, %v3453_v42  ;;  %v3384_v61 = vor.u32 %v3671_v53, %v3381_v54 }
  0xe8   :  { %v4685_v23 = vadd.f32 %v378_v2, %v318_v10  ;;  %v3452_v43 = vor.u32 %v3690_v33, %v3451_v31  ;;  %v3437_v2 = vld [vmem:[%s5741_s9 + $0x98] sm:$0xf0]  ;;  %v3365_v10 = vld [vmem:[%s5741_s9 + $0x8] sm:$0xf0] }
  0xe9   :  { %1001 = vmatpush.bf16.msra.mxu0 %v3416_v32  ;;  %1015 = vmatpush.bf16.msra.mxu1 %v3480_v0  ;;  %v3373_v32 = vld [vmem:[%s5741_s9 + $0x18] sm:$0xf0]  ;;  %v3668_v0 = vld [vmem:[%s5741_s9 + $0x4] sm:$0xf0]  ;;  %v3440_v9 = vor.u32 %v3685_v1, %v3437_v2  ;;  %v3368_v17 = vor.u32 %v3667_v26, %v3365_v10 }
  0xea   :  { %974 = vmatpush.bf16.msrb.mxu2 %v3404_v5  ;;  %990 = vmatpush.bf16.msrb.mxu3 %v3452_v43  ;;  %v3669_v5 = vld [vmem:[%s5741_s9 + $0x14] sm:$0xf] }
  0xeb   :  { %v3376_v7 = vor.u32 %v3669_v5, %v3373_v32 }
  0xed   :  { %v3786_v12 = vpop.eup %3785  ;;  %1002 = vmatpush.bf16.msra.mxu0 %v3408_v18  ;;  %1016 = vmatpush.bf16.msra.mxu1 %v3472_v20 }
  0xee   :  { %v379_v14 = vmul.f32 %v3786_v12, %v375_v39  ;;  %975 = vmatpush.bf16.msrb.mxu2 %v3396_v19  ;;  %v3363_v39 = vld [vmem:[%s5741_s9] sm:$0xf]  ;;  %991 = vmatpush.bf16.msrb.mxu3 %v3444_v58 }
  0xef   :  { %v3364_v12 = vor.u32 %v3668_v0, %v3363_v39 }
  0xf0   :  { %v4687_v24 = vadd.f32 %v379_v14, %v320_v11  ;;  %v3683_v11 = vld [vmem:[%s5741_s9 + $0x84] sm:$0xf]  ;;  %v3429_v14 = vld [vmem:[%s5741_s9 + $0x88] sm:$0xf0]  ;;  %s3915_s9 = smov 64  }
  0xf1   :  { %1003 = vmatpush.bf16.msra.mxu0 %v3400_v34  ;;  %1017 = vmatpush.bf16.msra.mxu1 %v3464_v36  ;;  %v3432_v18 = vor.u32 %v3683_v11, %v3429_v14 }
  0xf2   :  { %v385_v30 = vpack.c.bf16 %v4687_v24, %v4685_v23  ;;  %976 = vmatpush.bf16.msrb.mxu2 %v3388_v35  ;;  %992 = vmatpush.bf16.msrb.mxu3 %v3436_v3 }
  0xf4   :  { %495 = vmatmul.bf16.gmra.mxu0 %v385_v30  ;;  %514 = vmatmul.bf16.gmra.mxu1 %v385_v30 }
  0xf5   :  { %1004 = vmatpush.bf16.msra.mxu0 %v3392_v48  ;;  %1018 = vmatpush.bf16.msra.mxu1 %v3456_v50 }
  0xf6   :  { %977 = vmatpush.bf16.msrb.mxu2 %v3380_v49  ;;  %993 = vmatpush.bf16.msrb.mxu3 %v3428_v16 }
  0xf9   :  { %1005 = vmatpush.bf16.msra.mxu0 %v3384_v61  ;;  %1019 = vmatpush.bf16.msra.mxu1 %v3448_v63 }
  0xfa   :  { %978 = vmatpush.bf16.msrb.mxu2 %v3372_v62  ;;  %994 = vmatmul.bf16.vlgmr.msrb.gmra.mxu3 %v4527_v52 }
  0xfd   :  { %1006 = vmatpush.bf16.msra.mxu0 %v3376_v7  ;;  %1020 = vmatpush.bf16.msra.mxu1 %v3440_v9 }
  0xfe   :  { %979 = vmatpush.bf16.msrb.mxu2 %v3364_v12 }
 0x101   :  { %980 = vmatmul.bf16.vlgmr.msrb.gmra.mxu2 %v4515_v45  ;;  %1007 = vmatpush.bf16.msra.mxu0 %v3368_v17 }
 0x102   :  { %1021 = vmatpush.bf16.msra.mxu1 %v3432_v18 }
 0x104   :  { %760 = vmatmul.bf16.vlgmr.msrb.gmra.mxu0 %v4515_v45  ;;  %774 = vmatmul.bf16.vlgmr.msrb.gmra.mxu1 %v4527_v52 }
 0x114   :  { %1008 = vmatmul.bf16.vlgmr.msra.gmra.mxu0 %v4515_v45  ;;  %1022 = vmatmul.bf16.vlgmr.msra.gmra.mxu1 %v4527_v52 }
 0x14f   :  { %v733_v37 = vpop.f32.mrf.mxu2 }
 0x150   :  { %v747_v15 = vpop.f32.mrf.mxu3 }
 0x151   :  { %v748_v40 = vadd.f32 %v747_v15, %v733_v37 }
 0x157   :  { %v735_v49 = vpop.f32.mrf.mxu2 }
 0x158   :  { %v749_v50 = vpop.f32.mrf.mxu3 }
 0x159   :  { %v750_v55 = vadd.f32 %v749_v50, %v735_v49 }
 0x161   :  { %v491_v19 = vpop.f32.mrf.mxu0  ;;  %v510_v20 = vpop.f32.mrf.mxu1 }
 0x162   :  { %v4796_v46 = vpack.c.bf16 %v510_v20, %v491_v19 }
 0x164   :  { %v1038_v13 = vunpack.c.l.b16 %v4796_v46 }
 0x169   :  { %v493_v8 = vpop.f32.mrf.mxu0  ;;  %v512_v21 = vpop.f32.mrf.mxu1 }
 0x16a   :  { %v4798_v29 = vpack.c.bf16 %v512_v21, %v493_v8 }
 0x16c   :  { %v1039_v27 = vunpack.c.l.b16 %v4798_v29 }
 0x16e   :  { %v1040_v22 = vpack.c.b16 %v1039_v27, %v1038_v13 }
 0x170   :  { %1453 = vrot.lane.b32.xlu2 %v1040_v22, %s3915_s9  ;;  %1239 = vrot.lane.b32.xlu0 %v1040_v22, %s3916_s20 }
 0x171   :  { %v496_v45 = vpop.f32.mrf.mxu0  ;;  %v515_v52 = vpop.f32.mrf.mxu1 }
 0x172   :  { %v4804_v30 = vpack.c.bf16 %v515_v52, %v496_v45 }
 0x174   :  { %v1064_v35 = vunpack.c.l.b16 %v4804_v30 }
 0x179   :  { %v498_v31 = vpop.f32.mrf.mxu0  ;;  %v517_v33 = vpop.f32.mrf.mxu1 }
 0x17a   :  { %v4806_v34 = vpack.c.bf16 %v517_v33, %v498_v31 }
 0x17c   :  { %v1065_v36 = vunpack.c.l.b16 %v4806_v34 }
 0x17d   :  { %v995_v62 = vpop.f32.mrf.mxu3 }
 0x17e   :  { %v1066_v38 = vpack.c.b16 %v1065_v36, %v1064_v35 }
 0x180   :  { %1266 = vrot.lane.b32.xlu2 %v1066_v38, %s3916_s20 }
 0x181   :  { %v761_v41 = vpop.f32.mrf.mxu0  ;;  %v775_v42 = vpop.f32.mrf.mxu1 }
 0x182   :  { %v776_v43 = vadd.f32 %v775_v42, %v761_v41 }
 0x184   :  { %v4811_v44 = vpack.c.bf16 %v776_v43, %v748_v40  ;;  %v981_v61 = vpop.f32.mrf.mxu2 }
 0x185   :  { %v997_v32 = vpop.f32.mrf.mxu3  ;;  %v996_v2 = vadd.f32 %v995_v62, %v981_v61  ;;  %v1858_v62 = vrot.slane %v4798_v29, 4 }
 0x186   :  { %v1046_v47 = vsel %vm1041_vm0, %v4811_v44, 0  ;;  %v1242_v48 = vunpack.c.l.b16 %v4811_v44  ;;  %v1859_v36 = vrot.slane %v4811_v44, 4 }
 0x187   :  { %1055 = vmatpush.bf16.xpose.msra.mxu2 %v1046_v47 }
 0x188   :  { %1477 = vrot.lane.b32.xlu2 %v1066_v38, %s3915_s9  ;;  %v1243_v51 = vpack.c.b16 %v1242_v48, %v1242_v48  ;;  %v1867_v40 = vsel %vm1041_vm0, %v1859_v36, 0 }
 0x189   :  { %v763_v53 = vpop.f32.mrf.mxu0  ;;  %v777_v54 = vpop.f32.mrf.mxu1 }
 0x18a   :  { %v778_v56 = vadd.f32 %v777_v54, %v763_v53  ;;  %1455 = vrot.lane.b32.xlu1 %v1243_v51, %s3915_s9  ;;  %1244 = vrot.lane.b32.xlu0 %v1243_v51, %s3916_s20 }
 0x18c   :  { %v4819_v57 = vpack.c.bf16 %v778_v56, %v750_v55  ;;  %v983_v5 = vpop.f32.mrf.mxu2 }
 0x18d   :  { %v998_v4 = vadd.f32 %v997_v32, %v983_v5  ;;  %v1857_v5 = vrot.slane %v4796_v46, 4 }
 0x18e   :  { %3489 = vmatmul.msk.bf16.vlgmr.msra.gmra.mxu2 %vm1041_vm0, %v1040_v22  ;;  %v1071_v58 = vsel %vm1041_vm0, %v4819_v57, 0  ;;  %v1269_v59 = vunpack.c.l.b16 %v4819_v57  ;;  %v1885_v61 = vrot.slane %v4819_v57, 4 }
 0x18f   :  { %1080 = vmatpush.bf16.xpose.msra.mxu3 %v1071_v58 }
 0x190   :  { %1679 = vrot.lane.b32.xlu2 %v1066_v38, %s3917_s1  ;;  %v1270_v60 = vpack.c.b16 %v1269_v59, %v1269_v59  ;;  %v1893_v32 = vsel %vm1041_vm0, %v1885_v61, 0 }
 0x191   :  { %v1009_v63 = vpop.f32.mrf.mxu0  ;;  %v1023_v39 = vpop.f32.mrf.mxu1 }
 0x192   :  { %1655 = vrot.lane.b32.xlu0 %v1040_v22, %s3917_s1  ;;  %1271 = vrot.lane.b32.xlu1 %v1270_v60, %s3916_s20  ;;  %v1024_v3 = vadd.f32 %v1023_v39, %v1009_v63 }
 0x194   :  { %v4852_v7 = vpack.c.bf16 %v1024_v3, %v996_v2 }
 0x196   :  { %3490 = vmatmul.msk.bf16.vlgmr.msra.gmra.mxu3 %vm1041_vm0, %v1066_v38  ;;  %v1198_v9 = vsel %vm1196_vm1, %v4852_v7, 0  ;;  %v1399_v10 = vunpack.c.l.b16 %v4852_v7 }
 0x197   :  { %1207 = vmatpush.bf16.msrb.mxu2 %v1198_v9 }
 0x198   :  { %2063 = vrot.lane.b32.xlu2 %v4798_v29, %s3916_s20  ;;  %v1400_v11 = vpack.c.b16 %v1399_v10, %v1399_v10 }
 0x199   :  { %v1011_v0 = vpop.f32.mrf.mxu0  ;;  %v1025_v1 = vpop.f32.mrf.mxu1 }
 0x19a   :  { %2067 = vrot.lane.b32.xlu0 %v4811_v44, %s3916_s20  ;;  %1657 = vrot.lane.b32.xlu1 %v1243_v51, %s3917_s1  ;;  %v1026_v6 = vadd.f32 %v1025_v1, %v1011_v0  ;;  %v1861_v0 = vunpack.c.l.b16 %v1858_v62  ;;  %v1860_v1 = vunpack.c.l.b16 %v1857_v5 }
 0x19c   :  { %v4854_v12 = vpack.c.bf16 %v1026_v6, %v998_v4  ;;  %v1862_v4 = vpack.c.b16 %v1861_v0, %v1860_v1 }
 0x19e   :  { %v1223_v26 = vsel %vm1196_vm1, %v4854_v12, 0  ;;  %v1429_v14 = vunpack.c.l.b16 %v4854_v12 }
 0x19f   :  { %1232 = vmatpush.bf16.msrb.mxu3 %v1223_v26 }
 0x1a0   :  { %2093 = vrot.lane.b32.xlu2 %v4804_v30, %s3916_s20  ;;  %v1430_v16 = vpack.c.b16 %v1429_v14, %v1429_v14 }
 0x1a2   :  { %2099 = vrot.lane.b32.xlu0 %v4819_v57, %s3916_s20  ;;  %2061 = vrot.lane.b32.xlu1 %v4796_v46, %s3916_s20 }
 0x1a8   :  { %2283 = vrot.lane.b32.xlu2 %v4798_v29, %s3915_s9 }
 0x1aa   :  { %2095 = vrot.lane.b32.xlu0 %v4806_v34, %s3916_s20  ;;  %2287 = vrot.lane.b32.xlu1 %v4811_v44, %s3915_s9 }
 0x1b0   :  { %2313 = vrot.lane.b32.xlu2 %v4804_v30, %s3915_s9 }
 0x1b2   :  { %1479 = vrot.lane.b32.xlu0 %v1270_v60, %s3915_s9  ;;  %1681 = vrot.lane.b32.xlu1 %v1270_v60, %s3917_s1 }
 0x1b8   :  { %2503 = vrot.lane.b32.xlu2 %v4798_v29, %s3917_s1 }
 0x1ba   :  { %2319 = vrot.lane.b32.xlu0 %v4819_v57, %s3915_s9  ;;  %2281 = vrot.lane.b32.xlu1 %v4796_v46, %s3915_s9 }
 0x1c0   :  { %2535 = vrot.lane.b32.xlu2 %v4806_v34, %s3917_s1 }
 0x1c2   :  { %2315 = vrot.lane.b32.xlu0 %v4806_v34, %s3915_s9  ;;  %2507 = vrot.lane.b32.xlu1 %v4811_v44, %s3917_s1 }
 0x1c8   :  { %1606 = vrot.lane.b32.xlu2 %v1400_v11, %s3915_s9 }
 0x1ca   :  { %2539 = vrot.lane.b32.xlu0 %v4819_v57, %s3917_s1  ;;  %2501 = vrot.lane.b32.xlu1 %v4796_v46, %s3917_s1  ;;  %v1454_v21 = vpop.permute.xlu2 %1453 }
 0x1d0   :  { %1808 = vrot.lane.b32.xlu2 %v1400_v11, %s3917_s1 }
 0x1d2   :  { %2533 = vrot.lane.b32.xlu1 %v4804_v30, %s3917_s1  ;;  %1431 = vrot.lane.b32.xlu0 %v1430_v16, %s3916_s20 }
 0x1da   :  { %1401 = vrot.lane.b32.xlu1 %v1400_v11, %s3916_s20  ;;  %1633 = vrot.lane.b32.xlu0 %v1430_v16, %s3915_s9  ;;  %v1267_v45 = vpop.permute.xlu2 %1266 }
 0x1e2   :  { %1835 = vrot.lane.b32.xlu1 %v1430_v16, %s3917_s1  ;;  %v1240_v17 = vpop.permute.xlu0 %1239  ;;  %v1478_v49 = vpop.permute.xlu2 %1477 }
 0x1ea   :  { %v1680_v60 = vpop.permute.xlu2 %1679 }
 0x1f2   :  { %v2064_v2 = vpop.permute.xlu2 %2063 }
 0x1f3   :  { %v2066_v14 = vrot.slane %v2064_v2, 4 }
 0x1fa   :  { %v2094_v46 = vpop.permute.xlu2 %2093 }
 0x1fc   :  { %v1456_v18 = vpop.permute.xlu1 %1455  ;;  %v1245_v19 = vpop.permute.xlu0 %1244 }
 0x1fd   :  { %v1461_v20 = vsel %vm1041_vm0, %v1456_v18, 0  ;;  %v1250_v8 = vsel %vm1041_vm0, %v1245_v19, 0  ;;  %v2071_v18 = vunpack.c.l.b16 %v2066_v14 }
 0x1fe   :  { %1259 = vmatpush.bf16.xpose.msrb.mxu0 %v1250_v8 }
 0x204   :  { %v1656_v13 = vpop.permute.xlu0 %1655  ;;  %v1272_v27 = vpop.permute.xlu1 %1271 }
 0x205   :  { %v1277_v22 = vsel %vm1041_vm0, %v1272_v27, 0  ;;  %3493 = vmatmul.msk.bf16.vlgmr.msrb.gmra.mxu0 %vm1041_vm0, %v1240_v17  ;;  %v1883_v27 = vrot.slane %v4804_v30, 4 }
 0x206   :  { %1470 = vmatpush.bf16.xpose.msra.mxu0 %v1461_v20  ;;  %1286 = vmatpush.bf16.xpose.msrb.mxu1 %v1277_v22  ;;  %v1884_v20 = vrot.slane %v4806_v34, 4 }
 0x20c   :  { %v2068_v52 = vpop.permute.xlu0 %2067  ;;  %v1658_v31 = vpop.permute.xlu1 %1657 }
 0x20d   :  { %v1663_v33 = vsel %vm1041_vm0, %v1658_v31, 0  ;;  %3494 = vmatmul.msk.bf16.vlgmr.msrb.gmra.mxu1 %vm1041_vm0, %v1267_v45  ;;  %v2069_v50 = vrot.slane %v2068_v52, 4  ;;  %v2284_v52 = vpop.permute.xlu2 %2283  ;;  %v1887_v31 = vunpack.c.l.b16 %v1884_v20 }
 0x20e   :  { %1672 = vmatpush.bf16.xpose.msrb.mxu0 %v1663_v33  ;;  %v1886_v33 = vunpack.c.l.b16 %v1883_v27 }
 0x20f   :  { %v2077_v56 = vsel %vm1041_vm0, %v2069_v50, 0 }
 0x211   :  { %v4890_v35 = vpop.f32.mrf.mxu2 }
 0x212   :  { %v1088_v37 = vsel %vm1087_vm2, %v4890_v35, -inf }
 0x213   :  { %1089 = vmax.xlane.f32.xlu0 %v1088_v37 }
 0x214   :  { %v2100_v15 = vpop.permute.xlu0 %2099  ;;  %v2062_v38 = vpop.permute.xlu1 %2061 }
 0x215   :  { %3497 = vmatmul.msk.bf16.vlgmr.msra.gmra.mxu0 %vm1041_vm0, %v1454_v21  ;;  %v2101_v29 = vrot.slane %v2100_v15, 4  ;;  %v2065_v26 = vrot.slane %v2062_v38, 4  ;;  %v1888_v15 = vpack.c.b16 %v1887_v31, %v1886_v33  ;;  %v2286_v38 = vrot.slane %v2284_v52, 4 }
 0x216   :  { %1876 = vmatpush.bf16.xpose.msra.mxu0 %v1867_v40 }
 0x217   :  { %v2109_v16 = vsel %vm1041_vm0, %v2101_v29, 0  ;;  %v2070_v17 = vunpack.c.l.b16 %v2065_v26 }
 0x219   :  { %v4897_v41 = vpop.f32.mrf.mxu2  ;;  %v4899_v42 = vpop.f32.mrf.mxu3  ;;  %v2072_v8 = vpack.c.b16 %v2071_v18, %v2070_v17 }
 0x21a   :  { %v1091_v43 = vsel %vm1087_vm2, %v4897_v41, -inf  ;;  %v1094_v44 = vsel %vm1087_vm2, %v4899_v42, -inf }
 0x21b   :  { %1092 = vmax.xlane.f32.xlu1 %v1091_v43  ;;  %1095 = vmax.xlane.f32.xlu2 %v1094_v44  ;;  %v2314_v44 = vpop.permute.xlu2 %2313 }
 0x21c   :  { %v4905_v47 = vpop.permute.xlu0 %2095  ;;  %v2288_v48 = vpop.permute.xlu1 %2287 }
 0x21d   :  { %v2289_v3 = vrot.slane %v2288_v48, 4  ;;  %v2291_v48 = vunpack.c.l.b16 %v2286_v38 }
 0x21f   :  { %v2297_v57 = vsel %vm1041_vm0, %v2289_v3, 0 }
 0x221   :  { %v4907_v51 = vpop.f32.mrf.mxu3 }
 0x222   :  { %v1097_v53 = vsel %vm1087_vm2, %v4907_v51, -inf }
 0x223   :  { %1098 = vmax.xlane.f32.xlu2 %v1097_v53  ;;  %v2097_v53 = vrot.slane %v2094_v46, 4 }
 0x224   :  { %v1480_v54 = vpop.permute.xlu0 %1479  ;;  %v1682_v55 = vpop.permute.xlu1 %1681 }
 0x225   :  { %v1485_v58 = vsel %vm1041_vm0, %v1480_v54, 0  ;;  %v1687_v59 = vsel %vm1041_vm0, %v1682_v55, 0  ;;  %3501 = vmatmul.msk.bf16.vlgmr.msrb.gmra.mxu0 %vm1041_vm0, %v1656_v13  ;;  %v2102_v55 = vunpack.c.l.b16 %v2097_v53 }
 0x226   :  { %2086 = vmatpush.bf16.xpose.msrb.mxu0 %v2077_v56  ;;  %1494 = vmatpush.bf16.xpose.msra.mxu1 %v1485_v58  ;;  %v2504_v58 = vpop.permute.xlu2 %2503 }
 0x227   :  { %v2506_v61 = vrot.slane %v2504_v58, 4 }
 0x22c   :  { %v2320_v63 = vpop.permute.xlu0 %2319  ;;  %v2282_v39 = vpop.permute.xlu1 %2281 }
 0x22d   :  { %3498 = vmatmul.msk.bf16.vlgmr.msra.gmra.mxu1 %vm1041_vm0, %v1478_v49  ;;  %v2321_v36 = vrot.slane %v2320_v63, 4  ;;  %v2285_v37 = vrot.slane %v2282_v39, 4  ;;  %v2098_v49 = vrot.slane %v4905_v47, 4  ;;  %v2511_v39 = vunpack.c.l.b16 %v2506_v61 }
 0x22e   :  { %1696 = vmatpush.bf16.xpose.msrb.mxu1 %v1687_v59  ;;  %v2536_v3 = vpop.permute.xlu2 %2535 }
 0x22f   :  { %v2329_v40 = vsel %vm1041_vm0, %v2321_v36, 0  ;;  %v2290_v43 = vunpack.c.l.b16 %v2285_v37  ;;  %v2103_v54 = vunpack.c.l.b16 %v2098_v49 }
 0x231   :  { %v2292_v50 = vpack.c.b16 %v2291_v48, %v2290_v43  ;;  %v2104_v59 = vpack.c.b16 %v2103_v54, %v2102_v55 }
 0x234   :  { %v4920_v6 = vpop.permute.xlu0 %2315  ;;  %v2508_v9 = vpop.permute.xlu1 %2507 }
 0x235   :  { %3505 = vmatmul.msk.bf16.vlgmr.msra.gmra.mxu0 %vm1041_vm0, %v1862_v4  ;;  %v2509_v19 = vrot.slane %v2508_v9, 4  ;;  %v2318_v47 = vrot.slane %v4920_v6, 4  ;;  %v2538_v9 = vrot.slane %v2536_v3, 4 }
 0x236   :  { %1902 = vmatpush.bf16.xpose.msra.mxu1 %v1893_v32  ;;  %2306 = vmatpush.bf16.xpose.msra.mxu0 %v2297_v57  ;;  %v2317_v32 = vrot.slane %v2314_v44, 4  ;;  %v4941_v46 = vpop.permute.xlu2 %1606 }
 0x237   :  { %v2517_v22 = vsel %vm1041_vm0, %v2509_v19, 0  ;;  %v2323_v0 = vunpack.c.l.b16 %v2318_v47  ;;  %v2543_v29 = vunpack.c.l.b16 %v2538_v9 }
 0x238   :  { %v2322_v1 = vunpack.c.l.b16 %v2317_v32 }
 0x23a   :  { %v2324_v2 = vpack.c.b16 %v2323_v0, %v2322_v1 }
 0x23c   :  { %v2540_v10 = vpop.permute.xlu0 %2539  ;;  %v2502_v11 = vpop.permute.xlu1 %2501 }
 0x23d   :  { %3502 = vmatmul.msk.bf16.vlgmr.msrb.gmra.mxu1 %vm1041_vm0, %v1680_v60  ;;  %v2541_v56 = vrot.slane %v2540_v10, 4  ;;  %v2505_v60 = vrot.slane %v2502_v11, 4 }
 0x23e   :  { %2118 = vmatpush.bf16.xpose.msrb.mxu1 %v2109_v16  ;;  %v4950_v14 = vpop.permute.xlu2 %1808 }
 0x23f   :  { %v2549_v62 = vsel %vm1041_vm0, %v2541_v56, 0  ;;  %v2510_v63 = vunpack.c.l.b16 %v2505_v60 }
 0x241   :  { %v2512_v5 = vpack.c.b16 %v2511_v39, %v2510_v63 }
 0x244   :  { %v2534_v21 = vpop.permute.xlu1 %2533  ;;  %v1432_v13 = vpop.permute.xlu0 %1431 }
 0x245   :  { %3509 = vmatmul.msk.bf16.vlgmr.msrb.gmra.mxu0 %vm1041_vm0, %v2072_v8  ;;  %v1437_v45 = vsel %vm1196_vm1, %v1432_v13, 0  ;;  %v2537_v4 = vrot.slane %v2534_v21, 4 }
 0x246   :  { %2526 = vmatpush.bf16.xpose.msrb.mxu0 %v2517_v22  ;;  %1446 = vmatpush.bf16.msra.mxu3 %v1437_v45 }
 0x247   :  { %v2542_v57 = vunpack.c.l.b16 %v2537_v4 }
 0x249   :  { %v2544_v26 = vpack.c.b16 %v2543_v29, %v2542_v57 }
 0x24c   :  { %v1402_v34 = vpop.permute.xlu1 %1401  ;;  %v4944_v6 = vpop.permute.xlu0 %1633 }
 0x24d   :  { %v1407_v30 = vsel %vm1196_vm1, %v1402_v34, 0  ;;  %3506 = vmatmul.msk.bf16.vlgmr.msra.gmra.mxu1 %vm1041_vm0, %v1888_v15 }
 0x24e   :  { %2338 = vmatpush.bf16.xpose.msra.mxu1 %v2329_v40  ;;  %1416 = vmatpush.bf16.msra.mxu2 %v1407_v30 }
 0x254   :  { %v4952_v16 = vpop.permute.xlu1 %1835 }
 0x255   :  { %3513 = vmatmul.msk.bf16.vlgmr.msra.gmra.mxu0 %vm1041_vm0, %v2292_v50 }
 0x25d   :  { %3510 = vmatmul.msk.bf16.vlgmr.msrb.gmra.mxu1 %vm1041_vm0, %v2104_v59 }
 0x25e   :  { %2558 = vmatpush.bf16.xpose.msrb.mxu1 %v2549_v62 }
 0x265   :  { %3517 = vmatmul.msk.bf16.vlgmr.msrb.gmra.mxu0 %vm1041_vm0, %v2512_v5 }
 0x26d   :  { %3514 = vmatmul.msk.bf16.vlgmr.msra.gmra.mxu1 %vm1041_vm0, %v2324_v2 }
 0x27d   :  { %3518 = vmatmul.msk.bf16.vlgmr.msrb.gmra.mxu1 %vm1041_vm0, %v2544_v26 }
 0x282   :  { %v4946_v10 = vpop.f32.mrf.mxu0 }
 0x283   :  { %v1293_v11 = vsel %vm1087_vm2, %v4946_v10, -inf }
 0x284   :  { %1294 = vmax.xlane.f32.xlu0 %v1293_v11 }
 0x286   :  { %v1090_v17 = vpop.xlane.xlu0 %1089 }
 0x287   :  { %v1100_v18 = vsub.f32 %v4890_v35, %v1090_v17 }
 0x289   :  { %v1104_v19 = vmul.f32 1.442695, %v1100_v18 }
 0x28a   :  { %v4955_v20 = vpop.f32.mrf.mxu0  ;;  %v4957_v8 = vpop.f32.mrf.mxu1 }
 0x28b   :  { %3787 = vpow2.f32 %v1104_v19  ;;  %v1296_v21 = vsel %vm1087_vm2, %v4955_v20, -inf  ;;  %v1299_v13 = vsel %vm1087_vm2, %v4957_v8, -inf }
 0x28c   :  { %1297 = vmax.xlane.f32.xlu1 %v1296_v21  ;;  %1300 = vmax.xlane.f32.xlu2 %v1299_v13 }
 0x28e   :  { %v1093_v27 = vpop.xlane.xlu1 %1092  ;;  %v1096_v22 = vpop.xlane.xlu2 %1095 }
 0x28f   :  { %v1101_v45 = vsub.f32 %v4897_v41, %v1093_v27  ;;  %v1102_v31 = vsub.f32 %v4899_v42, %v1096_v22 }
 0x291   :  { %v4964_v52 = vpop.eup %3787  ;;  %v1106_v35 = vmul.f32 1.442695, %v1101_v45  ;;  %v1108_v34 = vmul.f32 1.442695, %v1102_v31 }
 0x292   :  { %v4967_v33 = vpop.f32.mrf.mxu1  ;;  %v4969_v36 = vpop.f32.mrf.mxu0  ;;  %v1112_v37 = vsel %vm1087_vm2, %v4964_v52, 0.0 }
 0x293   :  { %3789 = vpow2.f32 %v1106_v35  ;;  %v1302_v15 = vsel %vm1087_vm2, %v4967_v33, -inf  ;;  %v1501_v43 = vsel %vm1087_vm2, %v4969_v36, -inf }
 0x294   :  { %1113 = vadd.xlane.f32.xlu1 %v1112_v37  ;;  %1303 = vmax.xlane.f32.xlu0 %v1302_v15  ;;  %3791 = vpow2.f32 %v1108_v34 }
 0x296   :  { %v1099_v41 = vpop.xlane.xlu2 %1098 }
 0x297   :  { %v1103_v40 = vsub.f32 %v4907_v51, %v1099_v41 }
 0x299   :  { %v4975_v38 = vpop.eup %3789  ;;  %v1110_v44 = vmul.f32 1.442695, %v1103_v40 }
 0x29a   :  { %v4978_v42 = vpop.f32.mrf.mxu0  ;;  %v1115_v30 = vsel %vm1087_vm2, %v4975_v38, 0.0  ;;  %v4984_v48 = vpop.eup %3791 }
 0x29b   :  { %1116 = vadd.xlane.f32.xlu2 %v1115_v30  ;;  %3793 = vpow2.f32 %v1110_v44  ;;  %v1504_v51 = vsel %vm1087_vm2, %v4978_v42, -inf  ;;  %v1118_v50 = vsel %vm1087_vm2, %v4984_v48, 0.0 }
 0x29c   :  { %1502 = vmax.xlane.f32.xlu1 %v1501_v43 }
 0x2a1   :  { %v4992_v53 = vpop.eup %3793 }
 0x2a2   :  { %v4986_v49 = vpop.f32.mrf.mxu0  ;;  %v1121_v56 = vsel %vm1087_vm2, %v4992_v53, 0.0 }
 0x2a3   :  { %1505 = vmax.xlane.f32.xlu2 %v1504_v51  ;;  %v1703_v61 = vsel %vm1087_vm2, %v4986_v49, -inf }
 0x2a4   :  { %1119 = vadd.xlane.f32.xlu1 %v1118_v50 }
 0x2aa   :  { %v4994_v54 = vpop.f32.mrf.mxu1  ;;  %v4996_v55 = vpop.f32.mrf.mxu0 }
 0x2ab   :  { %1122 = vadd.xlane.f32.xlu2 %v1121_v56  ;;  %v1507_v58 = vsel %vm1087_vm2, %v4994_v54, -inf  ;;  %v1706_v62 = vsel %vm1087_vm2, %v4996_v55, -inf }
 0x2ac   :  { %1508 = vmax.xlane.f32.xlu0 %v1507_v58 }
 0x2b2   :  { %v5002_v59 = vpop.f32.mrf.mxu1  ;;  %v5004_v60 = vpop.f32.mrf.mxu0 }
 0x2b3   :  { %1704 = vmax.xlane.f32.xlu2 %v1703_v61  ;;  %v1510_v63 = vsel %vm1087_vm2, %v5002_v59, -inf  ;;  %v1909_v5 = vsel %vm1087_vm2, %v5004_v60, -inf }
 0x2b4   :  { %1707 = vmax.xlane.f32.xlu0 %v1706_v62  ;;  %1511 = vmax.xlane.f32.xlu1 %v1510_v63 }
 0x2ba   :  { %v5012_v39 = vpop.f32.mrf.mxu1  ;;  %v5014_v47 = vpop.f32.mrf.mxu0 }
 0x2bb   :  { %1910 = vmax.xlane.f32.xlu2 %v1909_v5  ;;  %v1709_v32 = vsel %vm1087_vm2, %v5012_v39, -inf  ;;  %v1912_v2 = vsel %vm1087_vm2, %v5014_v47, -inf }
 0x2bc   :  { %1710 = vmax.xlane.f32.xlu0 %v1709_v32 }
 0x2c2   :  { %v5020_v0 = vpop.f32.mrf.mxu1  ;;  %v5022_v1 = vpop.f32.mrf.mxu0 }
 0x2c3   :  { %v1712_v3 = vsel %vm1087_vm2, %v5020_v0, -inf  ;;  %v2125_v57 = vsel %vm1087_vm2, %v5022_v1, -inf }
 0x2c4   :  { %1913 = vmax.xlane.f32.xlu0 %v1912_v2  ;;  %1713 = vmax.xlane.f32.xlu1 %v1712_v3 }
 0x2ca   :  { %v5028_v4 = vpop.f32.mrf.mxu1  ;;  %v5030_v9 = vpop.f32.mrf.mxu0 }
 0x2cb   :  { %v1915_v29 = vsel %vm1087_vm2, %v5028_v4, -inf  ;;  %v2128_v18 = vsel %vm1087_vm2, %v5030_v9, -inf }
 0x2cc   :  { %2126 = vmax.xlane.f32.xlu1 %v2125_v57  ;;  %1916 = vmax.xlane.f32.xlu2 %v1915_v29 }
 0x2d2   :  { %v5036_v26 = vpop.f32.mrf.mxu1  ;;  %v5038_v11 = vpop.f32.mrf.mxu0 }
 0x2d3   :  { %v1918_v17 = vsel %vm1087_vm2, %v5036_v26, -inf  ;;  %v2345_v31 = vsel %vm1087_vm2, %v5038_v11, -inf }
 0x2d4   :  { %1919 = vmax.xlane.f32.xlu0 %v1918_v17  ;;  %2129 = vmax.xlane.f32.xlu2 %v2128_v18 }
 0x2da   :  { %v5044_v19 = vpop.f32.mrf.mxu1  ;;  %v5046_v21 = vpop.f32.mrf.mxu0 }
 0x2db   :  { %v2131_v13 = vsel %vm1087_vm2, %v5044_v19, -inf  ;;  %v2348_v34 = vsel %vm1087_vm2, %v5046_v21, -inf }
 0x2dc   :  { %2132 = vmax.xlane.f32.xlu2 %v2131_v13 }
 0x2e2   :  { %v5050_v27 = vpop.f32.mrf.mxu1  ;;  %v5052_v22 = vpop.f32.mrf.mxu0 }
 0x2e3   :  { %v2134_v45 = vsel %vm1087_vm2, %v5050_v27, -inf  ;;  %v2565_v35 = vsel %vm1087_vm2, %v5052_v22, -inf }
 0x2e4   :  { %2135 = vmax.xlane.f32.xlu0 %v2134_v45  ;;  %2566 = vmax.xlane.f32.xlu1 %v2565_v35 }
 0x2e5   :  { %2346 = vmax.xlane.f32.xlu2 %v2345_v31 }
 0x2ea   :  { %v5060_v37 = vpop.f32.mrf.mxu1  ;;  %v5062_v15 = vpop.f32.mrf.mxu0 }
 0x2eb   :  { %v2568_v41 = vsel %vm1087_vm2, %v5062_v15, -inf  ;;  %v2351_v30 = vsel %vm1087_vm2, %v5060_v37, -inf }
 0x2ec   :  { %2349 = vmax.xlane.f32.xlu0 %v2348_v34  ;;  %2569 = vmax.xlane.f32.xlu1 %v2568_v41 }
 0x2f2   :  { %v5068_v40 = vpop.f32.mrf.mxu1 }
 0x2f3   :  { %v2354_v43 = vsel %vm1087_vm2, %v5068_v40, -inf }
 0x2f4   :  { %2352 = vmax.xlane.f32.xlu0 %v2351_v30  ;;  %2355 = vmax.xlane.f32.xlu2 %v2354_v43 }
 0x2f7   :  { %v1295_v44 = vpop.xlane.xlu0 %1294 }
 0x2f8   :  { %v1305_v51 = vsub.f32 %v4946_v10, %v1295_v44 }
 0x2fa   :  { %v1309_v50 = vmul.f32 1.442695, %v1305_v51  ;;  %v5075_v56 = vpop.f32.mrf.mxu1 }
 0x2fb   :  { %v2571_v58 = vsel %vm1087_vm2, %v5075_v56, -inf }
 0x2fc   :  { %3795 = vpow2.f32 %v1309_v50  ;;  %2572 = vmax.xlane.f32.xlu1 %v2571_v58 }
 0x2ff   :  { %v1298_v61 = vpop.xlane.xlu1 %1297  ;;  %v1301_v62 = vpop.xlane.xlu2 %1300 }
 0x300   :  { %v1306_v63 = vsub.f32 %v4955_v20, %v1298_v61  ;;  %v1307_v5 = vsub.f32 %v4957_v8, %v1301_v62 }
 0x302   :  { %v5081_v32 = vpop.eup %3795  ;;  %v1311_v2 = vmul.f32 1.442695, %v1306_v63  ;;  %v1313_v3 = vmul.f32 1.442695, %v1307_v5  ;;  %v5083_v57 = vpop.f32.mrf.mxu1 }
 0x303   :  { %v1317_v10 = vsel %vm1087_vm2, %v5081_v32, 0.0  ;;  %v2574_v29 = vsel %vm1087_vm2, %v5083_v57, -inf }
 0x304   :  { %3797 = vpow2.f32 %v1311_v2  ;;  %1318 = vadd.xlane.f32.xlu0 %v1317_v10  ;;  %2575 = vmax.xlane.f32.xlu1 %v2574_v29 }
 0x305   :  { %3799 = vpow2.f32 %v1313_v3 }
 0x307   :  { %v1304_v17 = vpop.xlane.xlu0 %1303  ;;  %v1114_v20 = vpop.xlane.xlu1 %1113 }
 0x308   :  { %v1308_v8 = vsub.f32 %v4967_v33, %v1304_v17  ;;  %3801 = vrcp.f32 %v1114_v20  ;;  %v1135_v61 = vand.u32 2147483648, %v1114_v20  ;;  %v1133_v63 = vand.u32 2147483647, %v1114_v20 }
 0x309   :  { %vm1129_vm4 = vweird.f32 %v1114_v20 }
 0x30a   :  { %v5090_v18 = vpop.eup %3797  ;;  %v1315_v13 = vmul.f32 1.442695, %v1308_v8  ;;  %v1136_v29 = vor.u32 1.1754944e-38, %v1135_v61  ;;  %vm1134_vm6 = vcmp.eq.f32.partialorder %v1133_v63, 8.507059e+37 }
 0x30b   :  { %v5092_v45 = vpop.eup %3799  ;;  %v1320_v35 = vsel %vm1087_vm2, %v5090_v18, 0.0 }
 0x30c   :  { %3803 = vpow2.f32 %v1315_v13  ;;  %1321 = vadd.xlane.f32.xlu1 %v1320_v35  ;;  %v1323_v31 = vsel %vm1087_vm2, %v5092_v45, 0.0 }
 0x30d   :  { %1324 = vadd.xlane.f32.xlu0 %v1323_v31 }
 0x30e   :  { %v3802_v34 = vpop.eup %3801  ;;  %v1117_v41 = vpop.xlane.xlu2 %1116 }
 0x30f   :  { %v1125_v30 = vmul.f32 %v3802_v34, %v1114_v20  ;;  %3805 = vrcp.f32 %v1117_v41  ;;  %v1503_v33 = vpop.xlane.xlu1 %1502  ;;  %vm1130_vm3 = vweird.f32 %v3802_v34  ;;  %v1150_v31 = vand.u32 2147483648, %v1117_v41 }
 0x310   :  { %v1513_v43 = vsub.f32 %v4969_v36, %v1503_v33  ;;  %vm1131_vm5 = vmor %vm1129_vm4, %vm1130_vm3  ;;  %vm1144_vm8 = vweird.f32 %v1117_v41 }
 0x311   :  { %v1126_v44 = vsub.f32 1.0, %v1125_v30 }
 0x312   :  { %v5099_v51 = vpop.eup %3803  ;;  %v1517_v50 = vmul.f32 1.442695, %v1513_v43 }
 0x313   :  { %v1127_v58 = vmul.f32 %v3802_v34, %v1126_v44  ;;  %v1326_v62 = vsel %vm1087_vm2, %v5099_v51, 0.0  ;;  %v1148_v44 = vand.u32 2147483647, %v1117_v41 }
 0x314   :  { %3807 = vpow2.f32 %v1517_v50  ;;  %1327 = vadd.xlane.f32.xlu1 %v1326_v62 }
 0x315   :  { %v3806_v5 = vpop.eup %3805  ;;  %v1128_v2 = vadd.f32 %v3802_v34, %v1127_v58  ;;  %vm1149_vm10 = vcmp.eq.f32.partialorder %v1148_v44, 8.507059e+37 }
 0x316   :  { %v1140_v3 = vmul.f32 %v3806_v5, %v1117_v41  ;;  %v1506_v10 = vpop.xlane.xlu2 %1505  ;;  %vm1145_vm7 = vweird.f32 %v3806_v5 }
 0x317   :  { %v1132_v36 = vsel %vm1131_vm5, %v3802_v34, %v1128_v2  ;;  %v1514_v17 = vsub.f32 %v4978_v42, %v1506_v10  ;;  %v1120_v8 = vpop.xlane.xlu1 %1119  ;;  %vm1146_vm9 = vmor %vm1144_vm8, %vm1145_vm7  ;;  %v1151_v34 = vor.u32 1.1754944e-38, %v1150_v31 }
 0x318   :  { %v1141_v13 = vsub.f32 1.0, %v1140_v3  ;;  %3809 = vrcp.f32 %v1120_v8  ;;  %v1137_v35 = vsel %vm1134_vm6, %v1136_v29, %v1132_v36  ;;  %v1163_v44 = vand.u32 2147483647, %v1120_v8 }
 0x319   :  { %v1519_v30 = vmul.f32 1.442695, %v1514_v17  ;;  %v1138_v20 = vmul.f32 %v4964_v52, %v1137_v35  ;;  %vm1159_vm12 = vweird.f32 %v1120_v8 }
 0x31a   :  { %v5104_v33 = vpop.eup %3807  ;;  %v1142_v43 = vmul.f32 %v3806_v5, %v1141_v13  ;;  %vm1164_vm14 = vcmp.eq.f32.partialorder %v1163_v44, 8.507059e+37 }
 0x31b   :  { %3811 = vpow2.f32 %v1519_v30  ;;  %v1525_v42 = vsel %vm1087_vm2, %v5104_v33, 0.0  ;;  %v1184_v10 = vpack.c.bf16 %v1138_v20, %v1138_v20 }
 0x31c   :  { %v1143_v50 = vadd.f32 %v3806_v5, %v1142_v43  ;;  %1526 = vadd.xlane.f32.xlu2 %v1525_v42 }
 0x31d   :  { %v1190_v30 = vunpack.c.l.b16 %v1184_v10 }
 0x31e   :  { %v3810_v58 = vpop.eup %3809  ;;  %v1147_v61 = vsel %vm1146_vm9, %v3806_v5, %v1143_v50  ;;  %v1123_v62 = vpop.xlane.xlu2 %1122  ;;  %v1165_v5 = vand.u32 2147483648, %v1120_v8 }
 0x31f   :  { %v1152_v63 = vsel %vm1149_vm10, %v1151_v34, %v1147_v61  ;;  %v1155_v2 = vmul.f32 %v3810_v58, %v1120_v8  ;;  %3813 = vrcp.f32 %v1123_v62  ;;  %v1509_v3 = vpop.xlane.xlu0 %1508  ;;  %vm1160_vm11 = vweird.f32 %v3810_v58 }
 0x320   :  { %v1153_v36 = vmul.f32 %v4975_v38, %v1152_v63  ;;  %v1515_v29 = vsub.f32 %v4994_v54, %v1509_v3  ;;  %vm5115_vm13 = vmor %vm1159_vm12, %vm1160_vm11  ;;  %v1612_v61 = vsel %vm1196_vm1, %v4941_v46, 0  ;;  %vm1174_vm3 = vweird.f32 %v1123_v62 }
 0x321   :  { %v5110_v52 = vpop.eup %3811  ;;  %v1156_v41 = vsub.f32 1.0, %v1155_v2  ;;  %v1166_v2 = vor.u32 1.1754944e-38, %v1165_v5 }
 0x322   :  { %v1185_v17 = vpack.c.bf16 %v1153_v36, %v1153_v36  ;;  %v1528_v13 = vsel %vm1087_vm2, %v5110_v52, 0.0  ;;  %v1521_v31 = vmul.f32 1.442695, %v1515_v29 }
 0x323   :  { %v1157_v35 = vmul.f32 %v3810_v58, %v1156_v41  ;;  %1529 = vadd.xlane.f32.xlu0 %v1528_v13  ;;  %v1178_v13 = vand.u32 2147483647, %v1123_v62 }
 0x324   :  { %v1191_v43 = vunpack.c.l.b16 %v1185_v17  ;;  %3815 = vpow2.f32 %v1521_v31 }
 0x325   :  { %v3814_v20 = vpop.eup %3813  ;;  %v1158_v50 = vadd.f32 %v3810_v58, %v1157_v35  ;;  %v1180_v35 = vand.u32 2147483648, %v1123_v62  ;;  %vm1179_vm5 = vcmp.eq.f32.partialorder %v1178_v13, 8.507059e+37 }
 0x326   :  { %v1170_v54 = vmul.f32 %v3814_v20, %v1123_v62  ;;  %v1705_v42 = vpop.xlane.xlu2 %1704  ;;  %v1192_v34 = vpack.c.b16 %v1191_v43, %v1190_v30  ;;  %vm1175_vm15 = vweird.f32 %v3814_v20 }
 0x327   :  { %v1162_v63 = vsel %vm5115_vm13, %v3810_v58, %v1158_v50  ;;  %v1715_v3 = vsub.f32 %v4986_v49, %v1705_v42  ;;  %v1708_v10 = vpop.xlane.xlu0 %1707  ;;  %v1512_v36 = vpop.xlane.xlu1 %1511  ;;  %vm1176_vm4 = vmor %vm1174_vm3, %vm1175_vm15  ;;  %v1181_v43 = vor.u32 1.1754944e-38, %v1180_v35 }
 0x328   :  { %v1171_v8 = vsub.f32 1.0, %v1170_v54  ;;  %v1716_v41 = vsub.f32 %v4996_v55, %v1708_v10  ;;  %v1516_v29 = vsub.f32 %v5002_v59, %v1512_v36  ;;  %3491 = vmatmul.msk.bf16.vlgmr.msrb.gmra.mxu2 %vm1087_vm2, %v1192_v34  ;;  %v1167_v17 = vsel %vm1164_vm14, %v1166_v2, %v1162_v63 }
 0x329   :  { %v1719_v46 = vmul.f32 1.442695, %v1715_v3  ;;  %1621 = vmatpush.bf16.msrb.mxu2 %v1612_v61  ;;  %v1168_v30 = vmul.f32 %v4984_v48, %v1167_v17 }
 0x32a   :  { %v1172_v31 = vmul.f32 %v3814_v20, %v1171_v8  ;;  %v1721_v58 = vmul.f32 1.442695, %v1716_v41  ;;  %v1523_v5 = vmul.f32 1.442695, %v1516_v29  ;;  %v5127_v49 = vpop.eup %3815  ;;  %v1639_v29 = vsel %vm1196_vm1, %v4944_v6, 0 }
 0x32b   :  { %3817 = vpow2.f32 %v1719_v46  ;;  %v1531_v59 = vsel %vm1087_vm2, %v5127_v49, 0.0  ;;  %v1186_v54 = vpack.c.bf16 %v1168_v30, %v1168_v30 }
 0x32c   :  { %v1173_v55 = vadd.f32 %v3814_v20, %v1172_v31  ;;  %3819 = vpow2.f32 %v1721_v58  ;;  %1532 = vadd.xlane.f32.xlu2 %v1531_v59 }
 0x32d   :  { %3821 = vpow2.f32 %v1523_v5  ;;  %v1216_v10 = vunpack.c.l.b16 %v1186_v54 }
 0x32e   :  { %v1177_v44 = vsel %vm1176_vm4, %v3814_v20, %v1173_v55  ;;  %v1911_v8 = vpop.xlane.xlu2 %1910 }
 0x32f   :  { %v1182_v50 = vsel %vm1179_vm5, %v1181_v43, %v1177_v44  ;;  %v1711_v38 = vpop.xlane.xlu0 %1710 }
 0x330   :  { %v1183_v42 = vmul.f32 %v4992_v53, %v1182_v50  ;;  %v1717_v62 = vsub.f32 %v5012_v39, %v1711_v38 }
 0x331   :  { %v5134_v34 = vpop.eup %3817 }
 0x332   :  { %v5136_v48 = vpop.eup %3819  ;;  %v1187_v61 = vpack.c.bf16 %v1183_v42, %v1183_v42  ;;  %v1723_v63 = vmul.f32 1.442695, %v1717_v62  ;;  %v1727_v2 = vsel %vm1087_vm2, %v5134_v34, 0.0 }
 0x333   :  { %v5140_v3 = vpop.eup %3821  ;;  %1728 = vadd.xlane.f32.xlu1 %v1727_v2  ;;  %v1730_v20 = vsel %vm1087_vm2, %v5136_v48, 0.0 }
 0x334   :  { %v1217_v36 = vunpack.c.l.b16 %v1187_v61  ;;  %3823 = vpow2.f32 %v1723_v63  ;;  %v1534_v53 = vsel %vm1087_vm2, %v5140_v3, 0.0  ;;  %1731 = vadd.xlane.f32.xlu2 %v1730_v20 }
 0x335   :  { %1535 = vadd.xlane.f32.xlu0 %v1534_v53  ;;  %v1921_v53 = vsub.f32 %v5004_v60, %v1911_v8 }
 0x336   :  { %v1218_v39 = vpack.c.b16 %v1217_v36, %v1216_v10 }
 0x337   :  { %v1714_v41 = vpop.xlane.xlu1 %1713  ;;  %v1914_v17 = vpop.xlane.xlu0 %1913 }
 0x338   :  { %v1718_v13 = vsub.f32 %v5020_v0, %v1714_v41  ;;  %3492 = vmatmul.msk.bf16.vlgmr.msrb.gmra.mxu3 %vm1087_vm2, %v1218_v39  ;;  %v1922_v31 = vsub.f32 %v5014_v47, %v1914_v17 }
 0x339   :  { %1648 = vmatpush.bf16.msrb.mxu3 %v1639_v29  ;;  %v1925_v29 = vmul.f32 1.442695, %v1921_v53 }
 0x33a   :  { %v5150_v35 = vpop.eup %3823  ;;  %v1725_v46 = vmul.f32 1.442695, %v1718_v13  ;;  %v1927_v5 = vmul.f32 1.442695, %v1922_v31 }
 0x33b   :  { %v1733_v58 = vsel %vm1087_vm2, %v5150_v35, 0.0 }
 0x33c   :  { %1734 = vadd.xlane.f32.xlu1 %v1733_v58  ;;  %3825 = vpow2.f32 %v1725_v46 }
 0x33d   :  { %3827 = vpow2.f32 %v1927_v5 }
 0x33f   :  { %v1917_v30 = vpop.xlane.xlu2 %1916  ;;  %v2127_v62 = vpop.xlane.xlu1 %2126 }
 0x340   :  { %v1923_v31 = vsub.f32 %v5028_v4, %v1917_v30 }
 0x342   :  { %v5155_v55 = vpop.eup %3825  ;;  %v1929_v60 = vmul.f32 1.442695, %v1923_v31 }
 0x343   :  { %v1736_v6 = vsel %vm1087_vm2, %v5155_v55, 0.0  ;;  %v5160_v44 = vpop.eup %3827 }
 0x344   :  { %1737 = vadd.xlane.f32.xlu1 %v1736_v6  ;;  %v1936_v38 = vsel %vm1087_vm2, %v5160_v44, 0.0 }
 0x347   :  { %v1920_v0 = vpop.xlane.xlu0 %1919  ;;  %v2130_v43 = vpop.xlane.xlu2 %2129 }
 0x348   :  { %v1924_v59 = vsub.f32 %v5036_v26, %v1920_v0  ;;  %v2138_v50 = vsub.f32 %v5030_v9, %v2130_v43 }
 0x349   :  { %2253 = vrot.lane.b32.xlu0 %v4854_v12, %s3916_s20 }
 0x34a   :  { %v1931_v47 = vmul.f32 1.442695, %v1924_v59  ;;  %v2143_v54 = vmul.f32 1.442695, %v2138_v50 }
 0x34c   :  { %3829 = vpow2.f32 %v1931_v47  ;;  %2225 = vrot.lane.b32.xlu2 %v4852_v7, %s3916_s20  ;;  %1937 = vadd.xlane.f32.xlu1 %v1936_v38 }
 0x34d   :  { %3831 = vpow2.f32 %v2143_v54 }
 0x34f   :  { %v2133_v36 = vpop.xlane.xlu2 %2132 }
 0x352   :  { %v5169_v42 = vpop.eup %3829 }
 0x353   :  { %v1942_v26 = vsel %vm1087_vm2, %v5169_v42, 0.0  ;;  %v5174_v63 = vpop.eup %3831 }
 0x354   :  { %1943 = vadd.xlane.f32.xlu1 %v1942_v26  ;;  %v2152_v20 = vsel %vm1087_vm2, %v5174_v63, 0.0 }
 0x357   :  { %v2136_v61 = vpop.xlane.xlu0 %2135  ;;  %v5178_v10 = vpop.xlane.xlu1 %2566 }
 0x358   :  { %v2140_v9 = vsub.f32 %v5050_v27, %v2136_v61  ;;  %v2137_v27 = vsub.f32 %v5022_v1, %v2127_v62  ;;  %v2347_v58 = vpop.xlane.xlu2 %2346  ;;  %v2139_v1 = vsub.f32 %v5044_v19, %v2133_v36 }
 0x359   :  { %v2357_v5 = vsub.f32 %v5038_v11, %v2347_v58 }
 0x35a   :  { %v2147_v2 = vmul.f32 1.442695, %v2140_v9  ;;  %v2141_v46 = vmul.f32 1.442695, %v2137_v27  ;;  %v2145_v11 = vmul.f32 1.442695, %v2139_v1 }
 0x35b   :  { %v2361_v59 = vmul.f32 1.442695, %v2357_v5 }
 0x35c   :  { %3833 = vpow2.f32 %v2147_v2  ;;  %2153 = vadd.xlane.f32.xlu1 %v2152_v20 }
 0x35d   :  { %3835 = vpow2.f32 %v1925_v29 }
 0x35e   :  { %3837 = vpow2.f32 %v2141_v46 }
 0x35f   :  { %v2350_v17 = vpop.xlane.xlu0 %2349  ;;  %v2570_v13 = vpop.xlane.xlu1 %2569  ;;  %3839 = vpow2.f32 %v1929_v60 }
 0x360   :  { %3841 = vpow2.f32 %v2361_v59  ;;  %v2578_v4 = vsub.f32 %v5062_v15, %v2570_v13  ;;  %v2358_v38 = vsub.f32 %v5046_v21, %v2350_v17 }
 0x362   :  { %v5181_v39 = vpop.eup %3833  ;;  %v2583_v26 = vmul.f32 1.442695, %v2578_v4  ;;  %v2363_v61 = vmul.f32 1.442695, %v2358_v38 }
 0x363   :  { %v2158_v41 = vsel %vm1087_vm2, %v5181_v39, 0.0  ;;  %v5188_v8 = vpop.eup %3835 }
 0x364   :  { %2159 = vadd.xlane.f32.xlu1 %v2158_v41  ;;  %v5193_v43 = vpop.eup %3837  ;;  %v1933_v47 = vsel %vm1087_vm2, %v5188_v8, 0.0 }
 0x365   :  { %v2149_v30 = vsel %vm1087_vm2, %v5193_v43, 0.0  ;;  %v5200_v50 = vpop.eup %3839 }
 0x366   :  { %v5205_v62 = vpop.eup %3841  ;;  %v1939_v15 = vsel %vm1087_vm2, %v5200_v50, 0.0 }
 0x367   :  { %v2353_v6 = vpop.xlane.xlu0 %2352  ;;  %v2369_v9 = vsel %vm1087_vm2, %v5205_v62, 0.0  ;;  %v2356_v27 = vpop.xlane.xlu2 %2355 }
 0x368   :  { %v2359_v41 = vsub.f32 %v5060_v37, %v2353_v6  ;;  %v2360_v31 = vsub.f32 %v5068_v40, %v2356_v27 }
 0x36a   :  { %v2365_v5 = vmul.f32 1.442695, %v2359_v41  ;;  %v2367_v38 = vmul.f32 1.442695, %v2360_v31 }
 0x36f   :  { %v5190_v0 = vpop.xlane.xlu1 %2572 }
 0x373   :  { %1934 = vadd.xlane.f32.xlu0 %v1933_v47 }
 0x375   :  { %2150 = vadd.xlane.f32.xlu2 %v2149_v30 }
 0x377   :  { %v1319_v54 = vpop.xlane.xlu0 %1318  ;;  %v5203_v19 = vpop.xlane.xlu1 %2575 }
 0x378   :  { %3843 = vrcp.f32 %v1319_v54  ;;  %v1340_v59 = vand.u32 2147483648, %v1319_v54  ;;  %vm1334_vm7 = vweird.f32 %v1319_v54  ;;  %v1338_v47 = vand.u32 2147483647, %v1319_v54 }
 0x379   :  { %3845 = vpow2.f32 %v2145_v11 }
 0x37a   :  { %3847 = vpow2.f32 %v2583_v26  ;;  %vm1339_vm9 = vcmp.eq.f32.partialorder %v1338_v47, 8.507059e+37 }
 0x37b   :  { %1940 = vadd.xlane.f32.xlu0 %v1939_v15  ;;  %3849 = vpow2.f32 %v2363_v61  ;;  %v1341_v61 = vor.u32 1.1754944e-38, %v1340_v59 }
 0x37d   :  { %2445 = vrot.lane.b32.xlu1 %v4852_v7, %s3915_s9  ;;  %2370 = vadd.xlane.f32.xlu2 %v2369_v9 }
 0x37e   :  { %v3844_v2 = vpop.eup %3843 }
 0x37f   :  { %v5213_v21 = vpop.eup %3845  ;;  %v1330_v20 = vmul.f32 %v3844_v2, %v1319_v54  ;;  %v1322_v36 = vpop.xlane.xlu1 %1321  ;;  %vm1335_vm6 = vweird.f32 %v3844_v2 }
 0x380   :  { %3851 = vrcp.f32 %v1322_v36  ;;  %v5215_v53 = vpop.xlane.xlu0 %1324  ;;  %v5219_v17 = vpop.eup %3847  ;;  %v2155_v13 = vsel %vm1087_vm2, %v5213_v21, 0.0  ;;  %vm5230_vm8 = vmor %vm1334_vm7, %vm1335_vm6  ;;  %v1355_v9 = vand.u32 2147483648, %v1322_v36  ;;  %v1353_v27 = vand.u32 2147483647, %v1322_v36 }
 0x381   :  { %v1331_v29 = vsub.f32 1.0, %v1330_v20  ;;  %3853 = vrcp.f32 %v5215_v53  ;;  %v5224_v58 = vpop.eup %3849  ;;  %v2592_v37 = vsel %vm1087_vm2, %v5219_v17, 0.0  ;;  %vm1349_vm12 = vweird.f32 %v1322_v36 }
 0x382   :  { %v2372_v20 = vsel %vm1087_vm2, %v5224_v58, 0.0  ;;  %vm1364_vm14 = vweird.f32 %v5215_v53  ;;  %vm1354_vm15 = vcmp.eq.f32.partialorder %v1353_v27, 8.507059e+37 }
 0x383   :  { %v1332_v46 = vmul.f32 %v3844_v2, %v1331_v29  ;;  %2156 = vadd.xlane.f32.xlu0 %v2155_v13 }
 0x385   :  { %v1333_v60 = vadd.f32 %v3844_v2, %v1332_v46  ;;  %2593 = vadd.xlane.f32.xlu2 %v2592_v37  ;;  %v1370_v46 = vand.u32 2147483648, %v5215_v53  ;;  %v1356_v37 = vor.u32 1.1754944e-38, %v1355_v9 }
 0x386   :  { %v3852_v6 = vpop.eup %3851 }
 0x387   :  { %v3854_v1 = vpop.eup %3853  ;;  %v1345_v4 = vmul.f32 %v3852_v6, %v1322_v36  ;;  %v5228_v11 = vpop.xlane.xlu1 %1327  ;;  %v1337_v26 = vsel %vm5230_vm8, %v3844_v2, %v1333_v60  ;;  %vm1350_vm10 = vweird.f32 %v3852_v6  ;;  %v1368_v2 = vand.u32 2147483647, %v5215_v53 }
 0x388   :  { %v1360_v40 = vmul.f32 %v3854_v1, %v5215_v53  ;;  %3855 = vrcp.f32 %v5228_v11  ;;  %v1342_v29 = vsel %vm1339_vm9, %v1341_v61, %v1337_v26  ;;  %vm1365_vm11 = vweird.f32 %v3854_v1  ;;  %vm1351_vm13 = vmor %vm1349_vm12, %vm1350_vm10 }
 0x389   :  { %3857 = vpow2.f32 %v2365_v5  ;;  %v1346_v15 = vsub.f32 1.0, %v1345_v4  ;;  %v2577_v60 = vsub.f32 %v5052_v22, %v5178_v10  ;;  %v1343_v4 = vmul.f32 %v5081_v32, %v1342_v29  ;;  %vm1366_vm3 = vmor %vm1364_vm14, %vm1365_vm11 }
 0x38a   :  { %v1361_v54 = vsub.f32 1.0, %v1360_v40  ;;  %3859 = vpow2.f32 %v2367_v38  ;;  %vm1369_vm4 = vcmp.eq.f32.partialorder %v1368_v2, 8.507059e+37  ;;  %v1383_v32 = vand.u32 2147483647, %v5228_v11 }
 0x38b   :  { %v1347_v41 = vmul.f32 %v3852_v6, %v1346_v15  ;;  %2373 = vadd.xlane.f32.xlu0 %v2372_v20  ;;  %v1371_v15 = vor.u32 1.1754944e-38, %v1370_v46  ;;  %v1389_v38 = vpack.c.bf16 %v1343_v4, %v1343_v4  ;;  %v2581_v20 = vmul.f32 1.442695, %v2577_v60 }
 0x38c   :  { %v1362_v13 = vmul.f32 %v3854_v1, %v1361_v54  ;;  %vm1379_vm6 = vweird.f32 %v5228_v11  ;;  %vm1384_vm8 = vcmp.eq.f32.partialorder %v1383_v32, 8.507059e+37 }
 0x38d   :  { %v1348_v31 = vadd.f32 %v3852_v6, %v1347_v41 }
 0x38e   :  { %v3856_v5 = vpop.eup %3855  ;;  %v1363_v59 = vadd.f32 %v3854_v1, %v1362_v13  ;;  %v2580_v13 = vsub.f32 %v5083_v57, %v5203_v19 }
 0x38f   :  { %v5245_v47 = vpop.eup %3857  ;;  %v1352_v30 = vsel %vm1351_vm13, %v3852_v6, %v1348_v31  ;;  %v1375_v36 = vmul.f32 %v3856_v5, %v5228_v11  ;;  %v5250_v22 = vpop.xlane.xlu2 %1526  ;;  %v1385_v6 = vand.u32 2147483648, %v5228_v11  ;;  %vm1380_vm5 = vweird.f32 %v3856_v5 }
 0x390   :  { %v1357_v40 = vsel %vm1354_vm15, %v1356_v37, %v1352_v30  ;;  %v1367_v26 = vsel %vm1366_vm3, %v3854_v1, %v1363_v59  ;;  %3861 = vrcp.f32 %v5250_v22  ;;  %v2375_v9 = vsel %vm1087_vm2, %v5245_v47, 0.0  ;;  %v5260_v29 = vpop.eup %3859  ;;  %vm1381_vm7 = vmor %vm1379_vm6, %vm1380_vm5 }
 0x391   :  { %v1358_v10 = vmul.f32 %v5090_v18, %v1357_v40  ;;  %v1376_v53 = vsub.f32 1.0, %v1375_v36  ;;  %v1372_v61 = vsel %vm1369_vm4, %v1371_v15, %v1367_v26  ;;  %v1386_v46 = vor.u32 1.1754944e-38, %v1385_v6 }
 0x392   :  { %v1373_v18 = vmul.f32 %v5092_v45, %v1372_v61  ;;  %v1395_v37 = vunpack.c.l.b16 %v1389_v38  ;;  %v2579_v45 = vsub.f32 %v5075_v56, %v5190_v0  ;;  %v2587_v30 = vmul.f32 1.442695, %v2580_v13 }
 0x393   :  { %v1390_v54 = vpack.c.bf16 %v1358_v10, %v1358_v10  ;;  %v1377_v1 = vmul.f32 %v3856_v5, %v1376_v53  ;;  %2376 = vadd.xlane.f32.xlu0 %v2375_v9  ;;  %v2378_v40 = vsel %vm1087_vm2, %v5260_v29, 0.0  ;;  %v1548_v15 = vand.u32 2147483648, %v5250_v22 }
 0x394   :  { %v1391_v4 = vpack.c.bf16 %v1373_v18, %v1373_v18  ;;  %v2585_v56 = vmul.f32 1.442695, %v2579_v45  ;;  %v1546_v61 = vand.u32 2147483647, %v5250_v22  ;;  %vm1542_vm10 = vweird.f32 %v5250_v22 }
 0x395   :  { %v1396_v41 = vunpack.c.l.b16 %v1390_v54  ;;  %v1378_v27 = vadd.f32 %v3856_v5, %v1377_v1  ;;  %v1841_v9 = vsel %vm1196_vm1, %v4952_v16, 0  ;;  %v1549_v1 = vor.u32 1.1754944e-38, %v1548_v15 }
 0x396   :  { %v5264_v31 = vpop.xlane.xlu0 %1529  ;;  %v3862_v2 = vpop.eup %3861  ;;  %v1425_v10 = vunpack.c.l.b16 %v1391_v4  ;;  %vm1547_vm12 = vcmp.eq.f32.partialorder %v1546_v61, 8.507059e+37 }
 0x397   :  { %v1382_v59 = vsel %vm1381_vm7, %v3856_v5, %v1378_v27  ;;  %3863 = vrcp.f32 %v5264_v31  ;;  %v1538_v60 = vmul.f32 %v3862_v2, %v5250_v22  ;;  %v1397_v19 = vpack.c.b16 %v1396_v41, %v1395_v37 }
 0x398   :  { %3865 = vpow2.f32 %v2581_v20  ;;  %v1387_v11 = vsel %vm1384_vm8, %v1386_v46, %v1382_v59  ;;  %v1814_v5 = vsel %vm1196_vm1, %v4950_v14, 0  ;;  %vm1543_vm9 = vweird.f32 %v3862_v2 }
 0x399   :  { %v1388_v57 = vmul.f32 %v5099_v51, %v1387_v11  ;;  %v1539_v36 = vsub.f32 1.0, %v1538_v60  ;;  %3495 = vmatmul.msk.bf16.vlgmr.msra.gmra.mxu2 %vm1087_vm2, %v1397_v19  ;;  %3867 = vpow2.f32 %v2587_v30  ;;  %vm1544_vm11 = vmor %vm1542_vm10, %vm1543_vm9  ;;  %v1563_v18 = vand.u32 2147483648, %v5264_v31 }
 0x39a   :  { %1823 = vmatpush.bf16.msra.mxu2 %v1814_v5  ;;  %3869 = vpow2.f32 %v2585_v56  ;;  %v1561_v16 = vand.u32 2147483647, %v5264_v31  ;;  %vm1557_vm14 = vweird.f32 %v5264_v31 }
 0x39b   :  { %v1392_v26 = vpack.c.bf16 %v1388_v57, %v1388_v57  ;;  %2379 = vadd.xlane.f32.xlu0 %v2378_v40  ;;  %v1540_v0 = vmul.f32 %v3862_v2, %v1539_v36  ;;  %v1564_v59 = vor.u32 1.1754944e-38, %v1563_v18 }
 0x39c   :  { %vm1562_vm3 = vcmp.eq.f32.partialorder %v1561_v16, 8.507059e+37 }
 0x39d   :  { %v3864_v51 = vpop.eup %3863  ;;  %v1426_v53 = vunpack.c.l.b16 %v1392_v26  ;;  %v1541_v6 = vadd.f32 %v3862_v2, %v1540_v0  ;;  %2473 = vrot.lane.b32.xlu2 %v4854_v12, %s3915_s9  ;;  %v2009_v0 = vrot.slane %v4852_v7, 4 }
 0x39e   :  { %v5278_v32 = vpop.eup %3865  ;;  %v1553_v14 = vmul.f32 %v3864_v51, %v5264_v31  ;;  %vm1558_vm13 = vweird.f32 %v3864_v51 }
 0x39f   :  { %v1427_v38 = vpack.c.b16 %v1426_v53, %v1425_v10  ;;  %v1545_v54 = vsel %vm1544_vm11, %v3862_v2, %v1541_v6  ;;  %v1533_v41 = vpop.xlane.xlu2 %1532  ;;  %v2589_v22 = vsel %vm1087_vm2, %v5278_v32, 0.0  ;;  %v5291_v46 = vpop.eup %3867  ;;  %vm1559_vm15 = vmor %vm1557_vm14, %vm1558_vm13 }
 0x3a0   :  { %v1554_v20 = vsub.f32 1.0, %v1553_v14  ;;  %3871 = vrcp.f32 %v1533_v41  ;;  %v1550_v27 = vsel %vm1547_vm12, %v1549_v1, %v1545_v54  ;;  %v5295_v45 = vpop.eup %3869  ;;  %v2598_v19 = vsel %vm1087_vm2, %v5291_v46, 0.0 }
 0x3a1   :  { %3496 = vmatmul.msk.bf16.vlgmr.msra.gmra.mxu3 %vm1087_vm2, %v1427_v38  ;;  %v1551_v37 = vmul.f32 %v5104_v33, %v1550_v27  ;;  %v2595_v56 = vsel %vm1087_vm2, %v5295_v45, 0.0  ;;  %v1576_v15 = vand.u32 2147483647, %v1533_v41  ;;  %v1578_v10 = vand.u32 2147483648, %v1533_v41 }
 0x3a2   :  { %v1555_v13 = vmul.f32 %v3864_v51, %v1554_v20  ;;  %1850 = vmatpush.bf16.msra.mxu3 %v1841_v9  ;;  %v2019_v9 = vsel %vm1196_vm1, %v2009_v0, 0  ;;  %vm1572_vm5 = vweird.f32 %v1533_v41 }
 0x3a3   :  { %2590 = vadd.xlane.f32.xlu0 %v2589_v22  ;;  %v1597_v40 = vpack.c.bf16 %v1551_v37, %v1551_v37  ;;  %vm5312_vm6 = vcmp.eq.f32.partialorder %v1576_v15, 8.507059e+37  ;;  %v1579_v27 = vor.u32 1.1754944e-38, %v1578_v10 }
 0x3a4   :  { %v1556_v2 = vadd.f32 %v3864_v51, %v1555_v13 }
 0x3a5   :  { %2693 = vrot.lane.b32.xlu2 %v4854_v12, %s3917_s1  ;;  %v1603_v61 = vunpack.c.l.b16 %v1597_v40 }
 0x3a6   :  { %v1560_v11 = vsel %vm1559_vm15, %v3864_v51, %v1556_v2  ;;  %v1729_v60 = vpop.xlane.xlu1 %1728  ;;  %v3872_v4 = vpop.eup %3871 }
 0x3a7   :  { %v1565_v57 = vsel %vm1562_vm3, %v1564_v59, %v1560_v11  ;;  %3873 = vrcp.f32 %v1729_v60  ;;  %v1568_v30 = vmul.f32 %v3872_v4, %v1533_v41  ;;  %2599 = vadd.xlane.f32.xlu1 %v2598_v19  ;;  %v5304_v36 = vpop.xlane.xlu2 %1731  ;;  %vm1573_vm4 = vweird.f32 %v3872_v4 }
 0x3a8   :  { %v1566_v31 = vmul.f32 %v5110_v52, %v1565_v57  ;;  %v5302_v33 = vpop.xlane.xlu0 %1535  ;;  %v1748_v1 = vand.u32 2147483647, %v1729_v60  ;;  %vm5318_vm7 = vmor %vm1572_vm5, %vm1573_vm4  ;;  %vm1744_vm8 = vweird.f32 %v1729_v60  ;;  %v1750_v37 = vand.u32 2147483648, %v1729_v60 }
 0x3a9   :  { %3875 = vrcp.f32 %v5302_v33  ;;  %v1569_v26 = vsub.f32 1.0, %v1568_v30  ;;  %v1591_v59 = vand.u32 2147483647, %v5302_v33  ;;  %vm1587_vm11 = vweird.f32 %v5302_v33 }
 0x3aa   :  { %v1598_v5 = vpack.c.bf16 %v1566_v31, %v1566_v31  ;;  %3877 = vrcp.f32 %v5304_v36  ;;  %vm5329_vm10 = vcmp.eq.f32.partialorder %v1748_v1, 8.507059e+37  ;;  %v1763_v15 = vand.u32 2147483647, %v5304_v36 }
 0x3ab   :  { %2596 = vadd.xlane.f32.xlu0 %v2595_v56  ;;  %v1570_v51 = vmul.f32 %v3872_v4, %v1569_v26  ;;  %v1751_v56 = vor.u32 1.1754944e-38, %v1750_v37  ;;  %vm5338_vm14 = vcmp.eq.f32.partialorder %v1591_v59, 8.507059e+37  ;;  %vm1759_vm4 = vweird.f32 %v5304_v36 }
 0x3ac   :  { %v1604_v52 = vunpack.c.l.b16 %v1598_v5 }
 0x3ad   :  { %v3874_v53 = vpop.eup %3873  ;;  %v1571_v6 = vadd.f32 %v3872_v4, %v1570_v51 }
 0x3ae   :  { %v1740_v14 = vmul.f32 %v3874_v53, %v1729_v60  ;;  %v1605_v18 = vpack.c.b16 %v1604_v52, %v1603_v61  ;;  %vm1745_vm9 = vweird.f32 %v3874_v53  ;;  %v1765_v52 = vand.u32 2147483648, %v5304_v36 }
 0x3af   :  { %v3876_v38 = vpop.eup %3875  ;;  %v5316_v20 = vpop.xlane.xlu1 %1734  ;;  %v1575_v41 = vsel %vm5318_vm7, %v3872_v4, %v1571_v6  ;;  %v1593_v4 = vand.u32 2147483648, %v5302_v33  ;;  %vm1746_vm13 = vmor %vm1744_vm8, %vm1745_vm9 }
 0x3b0   :  { %v1741_v13 = vsub.f32 1.0, %v1740_v14  ;;  %v1583_v16 = vmul.f32 %v3876_v38, %v5302_v33  ;;  %v3878_v2 = vpop.eup %3877  ;;  %3879 = vrcp.f32 %v5316_v20  ;;  %3499 = vmatmul.msk.bf16.vlgmr.msrb.gmra.mxu2 %vm1087_vm2, %v1605_v18  ;;  %vm1588_vm12 = vweird.f32 %v3876_v38 }
 0x3b1   :  { %v1755_v19 = vmul.f32 %v3878_v2, %v5304_v36  ;;  %2028 = vmatpush.bf16.msrb.mxu2 %v2019_v9  ;;  %v1580_v30 = vsel %vm5312_vm6, %v1579_v27, %v1575_v41  ;;  %vm1760_vm15 = vweird.f32 %v3878_v2  ;;  %vm1589_vm3 = vmor %vm1587_vm11, %vm1588_vm12  ;;  %v1594_v9 = vor.u32 1.1754944e-38, %v1593_v4 }
 0x3b2   :  { %v1742_v11 = vmul.f32 %v3874_v53, %v1741_v13  ;;  %v1584_v57 = vsub.f32 1.0, %v1583_v16  ;;  %v1581_v14 = vmul.f32 %v5127_v49, %v1580_v30  ;;  %vm1761_vm5 = vmor %vm1759_vm4, %vm1760_vm15  ;;  %v1766_v27 = vor.u32 1.1754944e-38, %v1765_v52 }
 0x3b3   :  { %v1756_v26 = vsub.f32 1.0, %v1755_v19  ;;  %vm1764_vm6 = vcmp.eq.f32.partialorder %v1763_v15, 8.507059e+37  ;;  %vm1774_vm8 = vweird.f32 %v5316_v20 }
 0x3b4   :  { %v1743_v40 = vadd.f32 %v3874_v53, %v1742_v11  ;;  %v1585_v5 = vmul.f32 %v3876_v38, %v1584_v57  ;;  %v1599_v41 = vpack.c.bf16 %v1581_v14, %v1581_v14  ;;  %v1780_v11 = vand.u32 2147483648, %v5316_v20 }
 0x3b5   :  { %v1757_v61 = vmul.f32 %v3878_v2, %v1756_v26 }
 0x3b6   :  { %v1747_v51 = vsel %vm1746_vm13, %v3874_v53, %v1743_v40  ;;  %v1586_v10 = vadd.f32 %v3876_v38, %v1585_v5  ;;  %v3880_v6 = vpop.eup %3879  ;;  %v1630_v40 = vunpack.c.l.b16 %v1599_v41  ;;  %v1781_v0 = vor.u32 1.1754944e-38, %v1780_v11 }
 0x3b7   :  { %v1752_v60 = vsel %vm5329_vm10, %v1751_v56, %v1747_v51  ;;  %v1758_v53 = vadd.f32 %v3878_v2, %v1757_v61  ;;  %v1770_v18 = vmul.f32 %v3880_v6, %v5316_v20  ;;  %v1738_v22 = vpop.xlane.xlu1 %1737  ;;  %vm1775_vm7 = vweird.f32 %v3880_v6 }
 0x3b8   :  { %v1753_v54 = vmul.f32 %v5134_v34, %v1752_v60  ;;  %v1590_v1 = vsel %vm1589_vm3, %v3876_v38, %v1586_v10  ;;  %3881 = vrcp.f32 %v1738_v22  ;;  %vm1776_vm9 = vmor %vm1774_vm8, %vm1775_vm7  ;;  %v1793_v60 = vand.u32 2147483647, %v1738_v22 }
 0x3b9   :  { %v1595_v49 = vsel %vm5338_vm14, %v1594_v9, %v1590_v1  ;;  %v1762_v33 = vsel %vm1761_vm5, %v3878_v2, %v1758_v53  ;;  %v1771_v16 = vsub.f32 1.0, %v1770_v18  ;;  %v2226_v2 = vpop.permute.xlu2 %2225  ;;  %vm1789_vm12 = vweird.f32 %v1738_v22 }
 0x3ba   :  { %v1596_v13 = vmul.f32 %v5140_v3, %v1595_v49  ;;  %v1799_v36 = vpack.c.bf16 %v1753_v54, %v1753_v54  ;;  %v1767_v37 = vsel %vm1764_vm6, %v1766_v27, %v1762_v33  ;;  %v1778_v3 = vand.u32 2147483647, %v5316_v20 }
 0x3bb   :  { %v1768_v38 = vmul.f32 %v5136_v48, %v1767_v37  ;;  %v1772_v59 = vmul.f32 %v3880_v6, %v1771_v16  ;;  %v2035_v48 = vrot.slane %v4854_v12, 4  ;;  %v2227_v15 = vrot.slane %v2226_v2, 4  ;;  %v2254_v33 = vpop.permute.xlu0 %2253 }
 0x3bc   :  { %v1600_v34 = vpack.c.bf16 %v1596_v13, %v1596_v13  ;;  %v1805_v30 = vunpack.c.l.b16 %v1799_v36  ;;  %vm1779_vm10 = vcmp.eq.f32.partialorder %v1778_v3, 8.507059e+37  ;;  %v1795_v20 = vand.u32 2147483648, %v1738_v22 }
 0x3bd   :  { %v1800_v19 = vpack.c.bf16 %v1768_v38, %v1768_v38  ;;  %v1773_v31 = vadd.f32 %v3880_v6, %v1772_v59  ;;  %v2237_v12 = vsel %vm1196_vm1, %v2227_v15, 0  ;;  %vm1794_vm14 = vcmp.eq.f32.partialorder %v1793_v60, 8.507059e+37 }
 0x3be   :  { %v1631_v57 = vunpack.c.l.b16 %v1600_v34  ;;  %v3882_v4 = vpop.eup %3881  ;;  %v1796_v1 = vor.u32 1.1754944e-38, %v1795_v20  ;;  %v2255_v37 = vrot.slane %v2254_v33, 4 }
 0x3bf   :  { %2665 = vrot.lane.b32.xlu0 %v4852_v7, %s3917_s1  ;;  %v1806_v5 = vunpack.c.l.b16 %v1800_v19  ;;  %v1777_v26 = vsel %vm1776_vm9, %v3880_v6, %v1773_v31  ;;  %v1785_v56 = vmul.f32 %v3882_v4, %v1738_v22  ;;  %vm1790_vm11 = vweird.f32 %v3882_v4  ;;  %v1938_v9 = vpop.xlane.xlu1 %1937 }
 0x3c0   :  { %v1632_v51 = vpack.c.b16 %v1631_v57, %v1630_v40  ;;  %v1782_v10 = vsel %vm1779_vm10, %v1781_v0, %v1777_v26  ;;  %v2045_v7 = vsel %vm1196_vm1, %v2035_v48, 0  ;;  %vm1791_vm13 = vmor %vm1789_vm12, %vm1790_vm11  ;;  %3883 = vrcp.f32 %v1938_v9 }
 0x3c1   :  { %v1786_v52 = vsub.f32 1.0, %v1785_v56  ;;  %v1807_v61 = vpack.c.b16 %v1806_v5, %v1805_v30  ;;  %v1783_v6 = vmul.f32 %v5150_v35, %v1782_v10  ;;  %v2265_v35 = vsel %vm1196_vm1, %v2255_v37, 0 }
 0x3c2   :  { %3500 = vmatmul.msk.bf16.vlgmr.msrb.gmra.mxu3 %vm1087_vm2, %v1632_v51  ;;  %vm1965_vm3 = vweird.f32 %v1938_v9  ;;  %v1969_v40 = vand.u32 2147483647, %v1938_v9 }
 0x3c3   :  { %v1787_v14 = vmul.f32 %v3882_v4, %v1786_v52  ;;  %3503 = vmatmul.msk.bf16.vlgmr.msra.gmra.mxu2 %vm1087_vm2, %v1807_v61  ;;  %2054 = vmatpush.bf16.msrb.mxu3 %v2045_v7  ;;  %v1801_v49 = vpack.c.bf16 %v1783_v6, %v1783_v6 }
 0x3c4   :  { %2246 = vmatpush.bf16.msra.mxu2 %v2237_v12  ;;  %vm1970_vm6 = vcmp.eq.f32.partialorder %v1969_v40, 8.507059e+37 }
 0x3c5   :  { %v1788_v54 = vadd.f32 %v3882_v4, %v1787_v14  ;;  %v1832_v16 = vunpack.c.l.b16 %v1801_v49 }
 0x3c6   :  { %v3884_v22 = vpop.eup %3883 }
 0x3c7   :  { %v1792_v53 = vsel %vm1791_vm13, %v3882_v4, %v1788_v54  ;;  %v1944_v36 = vpop.xlane.xlu1 %1943  ;;  %v1961_v59 = vmul.f32 %v3884_v22, %v1938_v9  ;;  %vm1966_vm15 = vweird.f32 %v3884_v22  ;;  %v1971_v4 = vand.u32 2147483648, %v1938_v9 }
 0x3c8   :  { %v1797_v18 = vsel %vm1794_vm14, %v1796_v1, %v1792_v53  ;;  %3885 = vrcp.f32 %v1944_v36  ;;  %vm1967_vm4 = vmor %vm1965_vm3, %vm1966_vm15  ;;  %v2001_v51 = vand.u32 2147483648, %v1944_v36  ;;  %vm1995_vm7 = vweird.f32 %v1944_v36 }
 0x3c9   :  { %v1798_v27 = vmul.f32 %v5155_v55, %v1797_v18  ;;  %v1962_v55 = vsub.f32 1.0, %v1961_v59  ;;  %v1972_v0 = vor.u32 1.1754944e-38, %v1971_v4  ;;  %v1999_v20 = vand.u32 2147483647, %v1944_v36 }
 0x3ca   :  { %v2002_v54 = vor.u32 1.1754944e-38, %v2001_v51 }
 0x3cb   :  { %v1802_v13 = vpack.c.bf16 %v1798_v27, %v1798_v27  ;;  %v1963_v19 = vmul.f32 %v3884_v22, %v1962_v55  ;;  %vm2000_vm9 = vcmp.eq.f32.partialorder %v1999_v20, 8.507059e+37 }
 0x3cd   :  { %v1833_v41 = vunpack.c.l.b16 %v1802_v13  ;;  %v1964_v2 = vadd.f32 %v3884_v22, %v1963_v19 }
 0x3ce   :  { %v3886_v11 = vpop.eup %3885 }
 0x3cf   :  { %v1834_v34 = vpack.c.b16 %v1833_v41, %v1832_v16  ;;  %v5371_v38 = vpop.xlane.xlu1 %2153  ;;  %v1991_v57 = vmul.f32 %v3886_v11, %v1944_v36  ;;  %v1968_v26 = vsel %vm1967_vm4, %v3884_v22, %v1964_v2  ;;  %vm1996_vm5 = vweird.f32 %v3886_v11 }
 0x3d0   :  { %3887 = vrcp.f32 %v5371_v38  ;;  %v1973_v10 = vsel %vm1970_vm6, %v1972_v0, %v1968_v26  ;;  %vm1997_vm8 = vmor %vm1995_vm7, %vm1996_vm5  ;;  %v2187_v27 = vand.u32 2147483648, %v5371_v38  ;;  %vm2181_vm11 = vweird.f32 %v5371_v38 }
 0x3d1   :  { %v1992_v31 = vsub.f32 1.0, %v1991_v57  ;;  %v1974_v6 = vmul.f32 %v5160_v44, %v1973_v10 }
 0x3d2   :  { %3504 = vmatmul.msk.bf16.vlgmr.msra.gmra.mxu3 %vm1087_vm2, %v1834_v34  ;;  %v2185_v34 = vand.u32 2147483647, %v5371_v38  ;;  %v5404_v55 = vor.u32 1.1754944e-38, %v2187_v27 }
 0x3d3   :  { %2274 = vmatpush.bf16.msra.mxu3 %v2265_v35  ;;  %v1993_v30 = vmul.f32 %v3886_v11, %v1992_v31  ;;  %v2006_v37 = vpack.c.bf16 %v1974_v6, %v1974_v6 }
 0x3d4   :  { %vm5421_vm4 = vcmp.eq.f32.partialorder %v2185_v34, 8.507059e+37 }
 0x3d5   :  { %v1994_v15 = vadd.f32 %v3886_v11, %v1993_v30 }
 0x3d6   :  { %v5377_v5 = vpop.eup %3887 }
 0x3d7   :  { %v5373_v3 = vpop.xlane.xlu1 %2159  ;;  %v2177_v61 = vmul.f32 %v5377_v5, %v5371_v38  ;;  %v1998_v60 = vsel %vm1997_vm8, %v3886_v11, %v1994_v15  ;;  %vm2182_vm13 = vweird.f32 %v5377_v5 }
 0x3d8   :  { %3889 = vrcp.f32 %v5373_v3  ;;  %v2003_v49 = vsel %vm2000_vm9, %v2002_v54, %v1998_v60  ;;  %vm5431_vm6 = vmor %vm2181_vm11, %vm2182_vm13  ;;  %vm2211_vm7 = vweird.f32 %v5373_v3 }
 0x3d9   :  { %v2178_v53 = vsub.f32 1.0, %v2177_v61  ;;  %v2004_v35 = vmul.f32 %v5169_v42, %v2003_v49  ;;  %v2215_v42 = vand.u32 2147483647, %v5373_v3 }
 0x3db   :  { %v2179_v22 = vmul.f32 %v5377_v5, %v2178_v53  ;;  %v2008_v26 = vpack.c.bf16 %v2004_v35, %v2004_v35  ;;  %vm5436_vm8 = vcmp.eq.f32.partialorder %v2215_v42, 8.507059e+37 }
 0x3dd   :  { %v2180_v0 = vadd.f32 %v5377_v5, %v2179_v22 }
 0x3de   :  { %v5382_v52 = vpop.eup %3889 }
 0x3df   :  { %v2207_v9 = vmul.f32 %v5382_v52, %v5373_v3  ;;  %vm2212_vm3 = vweird.f32 %v5382_v52 }
 0x3e0   :  { %vm5444_vm9 = vmor %vm2211_vm7, %vm2212_vm3 }
 0x3e1   :  { %v2208_v41 = vsub.f32 1.0, %v2207_v9 }
 0x3e3   :  { %v2209_v31 = vmul.f32 %v5382_v52, %v2208_v41 }
 0x3e5   :  { %v2210_v60 = vadd.f32 %v5382_v52, %v2209_v31 }
 0x3e6   :  { %v1935_v48 = vpop.xlane.xlu0 %1934 }
 0x3e7   :  { %3891 = vrcp.f32 %v1935_v48  ;;  %v1956_v13 = vand.u32 2147483648, %v1935_v48  ;;  %v1954_v44 = vand.u32 2147483647, %v1935_v48  ;;  %vm1950_vm12 = vweird.f32 %v1935_v48 }
 0x3e8   :  { %v5379_v56 = vpop.xlane.xlu2 %2150 }
 0x3e9   :  { %3893 = vrcp.f32 %v5379_v56  ;;  %v1957_v57 = vor.u32 1.1754944e-38, %v1956_v13  ;;  %vm1955_vm15 = vcmp.eq.f32.partialorder %v1954_v44, 8.507059e+37  ;;  %v2172_v22 = vand.u32 2147483648, %v5379_v56 }
 0x3ed   :  { %v3892_v14 = vpop.eup %3891 }
 0x3ee   :  { %v1946_v7 = vmul.f32 %v3892_v14, %v1935_v48  ;;  %v5388_v12 = vpop.xlane.xlu0 %1940  ;;  %vm1951_vm10 = vweird.f32 %v3892_v14  ;;  %v2217_v48 = vand.u32 2147483648, %v5373_v3  ;;  %v2184_v3 = vsel %vm5431_vm6, %v5377_v5, %v2180_v0 }
 0x3ef   :  { %3895 = vrcp.f32 %v5388_v12  ;;  %v5392_v1 = vpop.eup %3893  ;;  %vm1952_vm14 = vmor %vm1950_vm12, %vm1951_vm10  ;;  %v1986_v20 = vand.u32 2147483648, %v5388_v12  ;;  %vm1980_vm10 = vweird.f32 %v5388_v12  ;;  %v2170_v5 = vand.u32 2147483647, %v5379_v56 }
 0x3f0   :  { %v1947_v18 = vsub.f32 1.0, %v1946_v7  ;;  %v2162_v33 = vmul.f32 %v5392_v1, %v5379_v56  ;;  %v5397_v16 = vpop.xlane.xlu2 %2370  ;;  %v2013_v7 = vunpack.c.l.b16 %v2006_v37  ;;  %v2218_v53 = vor.u32 1.1754944e-38, %v2217_v48  ;;  %v2446_v37 = vpop.permute.xlu1 %2445 }
 0x3f1   :  { %vm2167_vm11 = vweird.f32 %v5392_v1  ;;  %v1987_v41 = vor.u32 1.1754944e-38, %v1986_v20 }
 0x3f2   :  { %v1948_v36 = vmul.f32 %v3892_v14, %v1947_v18  ;;  %v2163_v19 = vsub.f32 1.0, %v2162_v33  ;;  %v5440_v18 = vunpack.c.l.b16 %v2008_v26 }
 0x3f4   :  { %v1949_v59 = vadd.f32 %v3892_v14, %v1948_v36  ;;  %v2164_v10 = vmul.f32 %v5392_v1, %v2163_v19  ;;  %v2214_v36 = vsel %vm5444_vm9, %v5382_v52, %v2210_v60 }
 0x3f5   :  { %v3896_v11 = vpop.eup %3895  ;;  %v2219_v0 = vsel %vm5436_vm8, %v2218_v53, %v2214_v36 }
 0x3f6   :  { %v1953_v2 = vsel %vm1952_vm14, %v3892_v14, %v1949_v59  ;;  %v1976_v4 = vmul.f32 %v3896_v11, %v5388_v12  ;;  %v5408_v30 = vpop.xlane.xlu0 %2156  ;;  %vm1981_vm5 = vweird.f32 %v3896_v11  ;;  %v2165_v33 = vadd.f32 %v5392_v1, %v2164_v10 }
 0x3f7   :  { %v1958_v40 = vsel %vm1955_vm15, %v1957_v57, %v1953_v2  ;;  %3897 = vrcp.f32 %v5408_v30  ;;  %vm1982_vm12 = vmor %vm1980_vm10, %vm1981_vm5  ;;  %vm2166_vm14 = vweird.f32 %v5379_v56  ;;  %v2447_v2 = vrot.slane %v2446_v37, 4 }
 0x3f8   :  { %v1959_v15 = vmul.f32 %v5188_v8, %v1958_v40  ;;  %v1977_v51 = vsub.f32 1.0, %v1976_v4  ;;  %3899 = vrcp.f32 %v5397_v16  ;;  %v5419_v61 = vpop.xlane.xlu2 %2593  ;;  %v1984_v8 = vand.u32 2147483647, %v5388_v12  ;;  %vm5468_vm15 = vmor %vm2166_vm14, %vm2167_vm11 }
 0x3f9   :  { %v2169_v31 = vsel %vm5468_vm15, %v5392_v1, %v2165_v33  ;;  %v2200_v56 = vand.u32 2147483647, %v5408_v30  ;;  %v2202_v4 = vand.u32 2147483648, %v5408_v30  ;;  %vm2171_vm5 = vcmp.eq.f32.partialorder %v2170_v5, 8.507059e+37 }
 0x3fa   :  { %v1978_v9 = vmul.f32 %v3896_v11, %v1977_v51  ;;  %v2005_v38 = vpack.c.bf16 %v1959_v15, %v1959_v15  ;;  %vm1985_vm13 = vcmp.eq.f32.partialorder %v1984_v8, 8.507059e+37  ;;  %v2173_v1 = vor.u32 1.1754944e-38, %v2172_v22 }
 0x3fb   :  { %vm2196_vm6 = vweird.f32 %v5408_v30  ;;  %v2457_v60 = vsel %vm1196_vm1, %v2447_v2, 0  ;;  %vm2386_vm11 = vweird.f32 %v5397_v16 }
 0x3fc   :  { %v1979_v27 = vadd.f32 %v3896_v11, %v1978_v9  ;;  %v2012_v57 = vunpack.c.l.b16 %v2005_v38  ;;  %v2174_v20 = vsel %vm2171_vm5, %v2173_v1, %v2169_v31  ;;  %v2203_v9 = vor.u32 1.1754944e-38, %v2202_v4 }
 0x3fd   :  { %v3898_v13 = vpop.eup %3897  ;;  %v2220_v38 = vmul.f32 %v5181_v39, %v2219_v0 }
 0x3fe   :  { %v1983_v44 = vsel %vm1982_vm12, %v3896_v11, %v1979_v27  ;;  %v2192_v12 = vmul.f32 %v3898_v13, %v5408_v30  ;;  %v5459_v34 = vpop.xlane.xlu0 %2373  ;;  %v5461_v35 = vpop.eup %3899  ;;  %vm2197_vm3 = vweird.f32 %v3898_v13  ;;  %v2014_v10 = vpack.c.b16 %v2013_v7, %v2012_v57 }
 0x3ff   :  { %v1988_v59 = vsel %vm1985_vm13, %v1987_v41, %v1983_v44  ;;  %3901 = vrcp.f32 %v5459_v34  ;;  %v2382_v48 = vmul.f32 %v5461_v35, %v5397_v16  ;;  %vm2198_vm7 = vmor %vm2196_vm6, %vm2197_vm3  ;;  %v2175_v27 = vmul.f32 %v5193_v43, %v2174_v20  ;;  %v5506_v41 = vpop.f32.mrf.mxu2 }
 0x400   :  { %v1989_v11 = vmul.f32 %v5200_v50, %v1988_v59  ;;  %v2193_v19 = vsub.f32 1.0, %v2192_v12  ;;  %v2474_v26 = vpop.permute.xlu2 %2473  ;;  %v2189_v50 = vsel %vm5421_vm4, %v5404_v55, %v2184_v3  ;;  %vm2201_vm4 = vcmp.eq.f32.partialorder %v2200_v56, 8.507059e+37  ;;  %3507 = vmatmul.msk.bf16.vlgmr.msrb.gmra.mxu2 %vm1087_vm2, %v2014_v10 }
 0x401   :  { %v2475_v8 = vrot.slane %v2474_v26, 4  ;;  %v2383_v14 = vsub.f32 1.0, %v2382_v48  ;;  %v2190_v30 = vmul.f32 %v5174_v63, %v2189_v50  ;;  %2466 = vmatpush.bf16.msrb.mxu2 %v2457_v60  ;;  %v2224_v43 = vpack.c.bf16 %v2220_v38, %v2220_v38  ;;  %v5537_v50 = vpop.f32.mrf.mxu3 }
 0x402   :  { %v2007_v42 = vpack.c.bf16 %v1989_v11, %v1989_v11  ;;  %v2194_v40 = vmul.f32 %v3898_v13, %v2193_v19  ;;  %v2221_v36 = vpack.c.bf16 %v2175_v27, %v2175_v27  ;;  %v2392_v44 = vand.u32 2147483648, %v5397_v16 }
 0x403   :  { %v2384_v63 = vmul.f32 %v5461_v35, %v2383_v14  ;;  %v2222_v39 = vpack.c.bf16 %v2190_v30, %v2190_v30  ;;  %vm2387_vm9 = vweird.f32 %v5461_v35  ;;  %vm2401_vm10 = vweird.f32 %v5459_v34 }
 0x404   :  { %v2038_v15 = vunpack.c.l.b16 %v2007_v42  ;;  %v2195_v51 = vadd.f32 %v3898_v13, %v2194_v40  ;;  %v2405_v52 = vand.u32 2147483647, %v5459_v34  ;;  %v2259_v31 = vunpack.c.l.b16 %v2224_v43  ;;  %vm5529_vm13 = vmor %vm2386_vm11, %vm2387_vm9 }
 0x405   :  { %v5488_v6 = vpop.eup %3901  ;;  %v2385_v5 = vadd.f32 %v5461_v35, %v2384_v63  ;;  %v2231_v19 = vunpack.c.l.b16 %v2222_v39  ;;  %v2230_v2 = vunpack.c.l.b16 %v2221_v36  ;;  %v2393_v42 = vor.u32 1.1754944e-38, %v2392_v44 }
 0x406   :  { %v2199_v55 = vsel %vm2198_vm7, %v3898_v13, %v2195_v51  ;;  %v5491_v54 = vpop.xlane.xlu0 %2376  ;;  %v2040_v53 = vpack.c.b16 %v5440_v18, %v2038_v15  ;;  %v2397_v49 = vmul.f32 %v5488_v6, %v5459_v34  ;;  %v2485_v13 = vsel %vm1196_vm1, %v2475_v8, 0 }
 0x407   :  { %v2204_v7 = vsel %vm2201_vm4, %v2203_v9, %v2199_v55  ;;  %3903 = vrcp.f32 %v5491_v54  ;;  %vm2402_vm8 = vweird.f32 %v5488_v6  ;;  %v2389_v0 = vsel %vm5529_vm13, %v5461_v35, %v2385_v5  ;;  %v5547_v35 = vpop.f32.mrf.mxu2 }
 0x408   :  { %3508 = vmatmul.msk.bf16.vlgmr.msrb.gmra.mxu3 %vm1087_vm2, %v2040_v53  ;;  %3905 = vrcp.f32 %v5419_v61  ;;  %v2398_v18 = vsub.f32 1.0, %v2397_v49  ;;  %v2205_v3 = vmul.f32 %v5213_v21, %v2204_v7  ;;  %v2407_v21 = vand.u32 2147483648, %v5459_v34  ;;  %vm5525_vm12 = vmor %vm2401_vm10, %vm2402_vm8  ;;  %v2694_v26 = vpop.permute.xlu2 %2693 }
 0x409   :  { %2494 = vmatpush.bf16.msrb.mxu3 %v2485_v13  ;;  %v2390_v34 = vand.u32 2147483647, %v5397_v16  ;;  %vm2406_vm14 = vcmp.eq.f32.partialorder %v2405_v52, 8.507059e+37  ;;  %v2422_v10 = vand.u32 2147483648, %v5491_v54  ;;  %v2232_v20 = vpack.c.b16 %v2231_v19, %v2230_v2 }
 0x40a   :  { %v2399_v33 = vmul.f32 %v5488_v6, %v2398_v18  ;;  %v2223_v22 = vpack.c.bf16 %v2205_v3, %v2205_v3  ;;  %v2408_v51 = vor.u32 1.1754944e-38, %v2407_v21  ;;  %v2420_v9 = vand.u32 2147483647, %v5491_v54 }
 0x40b   :  { %v2695_v8 = vrot.slane %v2694_v26, 4  ;;  %vm2391_vm3 = vcmp.eq.f32.partialorder %v2390_v34, 8.507059e+37  ;;  %vm2416_vm5 = vweird.f32 %v5491_v54  ;;  %v2423_v13 = vor.u32 1.1754944e-38, %v2422_v10 }
 0x40c   :  { %v2400_v37 = vadd.f32 %v5488_v6, %v2399_v33  ;;  %v2258_v1 = vunpack.c.l.b16 %v2223_v22  ;;  %v2394_v55 = vsel %vm2391_vm3, %v2393_v42, %v2389_v0  ;;  %vm2421_vm7 = vcmp.eq.f32.partialorder %v2420_v9, 8.507059e+37 }
 0x40d   :  { %v3904_v12 = vpop.eup %3903  ;;  %v2395_v63 = vmul.f32 %v5205_v62, %v2394_v55  ;;  %v2625_v21 = vand.u32 2147483647, %v5419_v61  ;;  %v2627_v52 = vand.u32 2147483648, %v5419_v61 }
 0x40e   :  { %v5514_v59 = vpop.xlane.xlu0 %2379  ;;  %v5516_v57 = vpop.eup %3905  ;;  %v2412_v11 = vmul.f32 %v3904_v12, %v5491_v54  ;;  %v2404_v48 = vsel %vm5525_vm12, %v5488_v6, %v2400_v37  ;;  %vm2417_vm15 = vweird.f32 %v3904_v12  ;;  %v2260_v53 = vpack.c.b16 %v2259_v31, %v2258_v1 }
 0x40f   :  { %3907 = vrcp.f32 %v5514_v59  ;;  %v2617_v15 = vmul.f32 %v5516_v57, %v5419_v61  ;;  %v2409_v60 = vsel %vm2406_vm14, %v2408_v51, %v2404_v48  ;;  %vm2418_vm6 = vmor %vm2416_vm5, %vm2417_vm15  ;;  %v2705_v54 = vsel %vm1196_vm1, %v2695_v8, 0  ;;  %v5563_v37 = vpop.f32.mrf.mxu3 }
 0x410   :  { %v2413_v40 = vsub.f32 1.0, %v2412_v11  ;;  %3511 = vmatmul.msk.bf16.vlgmr.msra.gmra.mxu2 %vm1087_vm2, %v2232_v20  ;;  %v2410_v38 = vmul.f32 %v5224_v58, %v2409_v60  ;;  %v2437_v33 = vand.u32 2147483648, %v5514_v59  ;;  %v2435_v58 = vand.u32 2147483647, %v5514_v59 }
 0x411   :  { %v2618_v30 = vsub.f32 1.0, %v2617_v15  ;;  %vm2431_vm8 = vweird.f32 %v5514_v59  ;;  %v2441_v22 = vpack.c.bf16 %v2395_v63, %v2395_v63  ;;  %vm2622_vm10 = vweird.f32 %v5516_v57 }
 0x412   :  { %v2414_v16 = vmul.f32 %v3904_v12, %v2413_v40  ;;  %v2442_v36 = vpack.c.bf16 %v2410_v38, %v2410_v38  ;;  %v2438_v11 = vor.u32 1.1754944e-38, %v2437_v33  ;;  %vm2436_vm11 = vcmp.eq.f32.partialorder %v2435_v58, 8.507059e+37 }
 0x413   :  { %v2619_v43 = vmul.f32 %v5516_v57, %v2618_v30  ;;  %v2450_v40 = vunpack.c.l.b16 %v2441_v22  ;;  %vm2621_vm12 = vweird.f32 %v5419_v61  ;;  %vm5586_vm14 = vcmp.eq.f32.partialorder %v2625_v21, 8.507059e+37 }
 0x414   :  { %v2415_v14 = vadd.f32 %v3904_v12, %v2414_v16  ;;  %v2451_v56 = vunpack.c.l.b16 %v2442_v36  ;;  %vm5582_vm13 = vmor %vm2621_vm12, %vm2622_vm10  ;;  %v2628_v10 = vor.u32 1.1754944e-38, %v2627_v52 }
 0x415   :  { %v3908_v6 = vpop.eup %3907 }
 0x416   :  { %v2427_v7 = vmul.f32 %v3908_v6, %v5514_v59  ;;  %v5551_v49 = vpop.xlane.xlu0 %2590  ;;  %v2419_v27 = vsel %vm2418_vm6, %v3904_v12, %v2415_v14  ;;  %vm2432_vm4 = vweird.f32 %v3908_v6  ;;  %v2620_v59 = vadd.f32 %v5516_v57, %v2619_v43 }
 0x417   :  { %3909 = vrcp.f32 %v5551_v49  ;;  %v2424_v3 = vsel %vm2421_vm7, %v2423_v13, %v2419_v27  ;;  %vm2433_vm9 = vmor %vm2431_vm8, %vm2432_vm4  ;;  %v2610_v26 = vand.u32 2147483647, %v5551_v49  ;;  %v2612_v0 = vand.u32 2147483648, %v5551_v49 }
 0x418   :  { %v2428_v18 = vsub.f32 1.0, %v2427_v7  ;;  %3512 = vmatmul.msk.bf16.vlgmr.msra.gmra.mxu3 %vm1087_vm2, %v2260_v53  ;;  %v2425_v12 = vmul.f32 %v5245_v47, %v2424_v3  ;;  %v2624_v61 = vsel %vm5582_vm13, %v5516_v57, %v2620_v59  ;;  %v2452_v20 = vpack.c.b16 %v2451_v56, %v2450_v40 }
 0x419   :  { %2714 = vmatpush.bf16.msra.mxu3 %v2705_v54  ;;  %vm2606_vm3 = vweird.f32 %v5551_v49  ;;  %vm2611_vm6 = vcmp.eq.f32.partialorder %v2610_v26, 8.507059e+37  ;;  %v2613_v53 = vor.u32 1.1754944e-38, %v2612_v0  ;;  %v2629_v3 = vsel %vm5586_vm14, %v2628_v10, %v2624_v61 }
 0x41a   :  { %v2429_v39 = vmul.f32 %v3908_v6, %v2428_v18  ;;  %v5561_v44 = vpop.xlane.xlu1 %2599  ;;  %v2443_v34 = vpack.c.bf16 %v2425_v12, %v2425_v12  ;;  %v2630_v22 = vmul.f32 %v5219_v17, %v2629_v3 }
 0x41b   :  { %3911 = vrcp.f32 %v5561_v44  ;;  %v2657_v7 = vand.u32 2147483648, %v5561_v44  ;;  %v2655_v57 = vand.u32 2147483647, %v5561_v44  ;;  %vm2651_vm4 = vweird.f32 %v5561_v44 }
 0x41c   :  { %v2430_v5 = vadd.f32 %v3908_v6, %v2429_v39  ;;  %v1418_v47 = vpop.f32.mrf.mxu2  ;;  %v2478_v9 = vunpack.c.l.b16 %v2443_v34  ;;  %v2662_v56 = vpack.c.bf16 %v2630_v22, %v2630_v22 }
 0x41d   :  { %v3910_v62 = vpop.eup %3909  ;;  %v2658_v58 = vor.u32 1.1754944e-38, %v2657_v7  ;;  %vm2656_vm10 = vcmp.eq.f32.partialorder %v2655_v57, 8.507059e+37 }
 0x41e   :  { %v2434_v19 = vsel %vm2433_vm9, %v3908_v6, %v2430_v5  ;;  %v2602_v31 = vmul.f32 %v3910_v62, %v5551_v49  ;;  %v5572_v2 = vpop.xlane.xlu0 %2596  ;;  %vm2607_vm15 = vweird.f32 %v3910_v62  ;;  %v2671_v40 = vunpack.c.l.b16 %v2662_v56  ;;  %v3714_v56 = vld [vmem:[%s5742_s10 + $0x78] sm:$0xff] }
 0x41f   :  { %v2439_v4 = vsel %vm2436_vm11, %v2438_v11, %v2434_v19  ;;  %3913 = vrcp.f32 %v5572_v2  ;;  %vm2608_vm5 = vmor %vm2606_vm3, %vm2607_vm15  ;;  %v2642_v43 = vand.u32 2147483648, %v5572_v2  ;;  %v2640_v5 = vand.u32 2147483647, %v5572_v2  ;;  %2994 = vmatpush.bf16.msra.mxu1 %v3714_v56 }
 0x420   :  { %v2440_v42 = vmul.f32 %v5260_v29, %v2439_v4  ;;  %v2603_v48 = vsub.f32 1.0, %v2602_v31  ;;  %3515 = vmatmul.msk.bf16.vlgmr.msrb.gmra.mxu2 %vm1087_vm2, %v2452_v20  ;;  %vm2636_vm11 = vweird.f32 %v5572_v2 }
 0x421   :  { %v3912_v1 = vpop.eup %3911  ;;  %v2643_v19 = vor.u32 1.1754944e-38, %v2642_v43  ;;  %vm2641_vm13 = vcmp.eq.f32.partialorder %v2640_v5, 8.507059e+37  ;;  %v3705_v43 = vld [vmem:[%s5742_s10 + $0x30] sm:$0xff]  ;;  %v3704_v5 = vld [vmem:[%s5742_s10 + $0x28] sm:$0xff] }
 0x422   :  { %v2444_v29 = vpack.c.bf16 %v2440_v42, %v2440_v42  ;;  %v2604_v16 = vmul.f32 %v3910_v62, %v2603_v48  ;;  %v2647_v60 = vmul.f32 %v3912_v1, %v5561_v44  ;;  %vm2652_vm7 = vweird.f32 %v3912_v1 }
 0x423   :  { %vm2653_vm8 = vmor %vm2651_vm4, %vm2652_vm7 }
 0x424   :  { %v2479_v8 = vunpack.c.l.b16 %v2444_v29  ;;  %v2605_v6 = vadd.f32 %v3910_v62, %v2604_v16  ;;  %v1448_v14 = vpop.f32.mrf.mxu3  ;;  %v2648_v30 = vsub.f32 1.0, %v2647_v60  ;;  %v1420_v54 = vpop.f32.mrf.mxu2 }
 0x425   :  { %v3914_v55 = vpop.eup %3913  ;;  %v3718_v49 = vpack.i.bf16 %v1420_v54, %v1418_v47 }
 0x426   :  { %v2480_v38 = vpack.c.b16 %v2479_v8, %v2478_v9  ;;  %v2609_v27 = vsel %vm2608_vm5, %v3910_v62, %v2605_v6  ;;  %v2632_v13 = vmul.f32 %v3914_v55, %v5572_v2  ;;  %v2649_v63 = vmul.f32 %v3912_v1, %v2648_v30 }
 0x427   :  { %v2614_v18 = vsel %vm2611_vm6, %v2613_v53, %v2609_v27  ;;  %3719 = vrot.lane.b32.xlu1 %v3718_v49, %s3917_s1  ;;  %vm2637_vm9 = vweird.f32 %v3914_v55 }
 0x428   :  { %v2633_v33 = vsub.f32 1.0, %v2632_v13  ;;  %3516 = vmatmul.msk.bf16.vlgmr.msrb.gmra.mxu3 %vm1087_vm2, %v2480_v38  ;;  %v2650_v39 = vadd.f32 %v3912_v1, %v2649_v63  ;;  %v2615_v36 = vmul.f32 %v5278_v32, %v2614_v18  ;;  %vm2638_vm12 = vmor %vm2636_vm11, %vm2637_vm9 }
 0x42a   :  { %v2634_v12 = vmul.f32 %v3914_v55, %v2633_v33  ;;  %v2654_v62 = vsel %vm2653_vm8, %v3912_v1, %v2650_v39  ;;  %v2661_v32 = vpack.c.bf16 %v2615_v36, %v2615_v36 }
 0x42b   :  { %v2659_v21 = vsel %vm2656_vm10, %v2658_v58, %v2654_v62  ;;  %v3706_v58 = vld [vmem:[%s5742_s10 + $0x38] sm:$0xff]  ;;  %v3703_v62 = vld [vmem:[%s5742_s10 + $0x20] sm:$0xff] }
 0x42c   :  { %v2635_v52 = vadd.f32 %v3914_v55, %v2634_v12  ;;  %v1450_v44 = vpop.f32.mrf.mxu3  ;;  %v2660_v11 = vmul.f32 %v5291_v46, %v2659_v21  ;;  %v2670_v42 = vunpack.c.l.b16 %v2661_v32  ;;  %2975 = vmatpush.bf16.msra.mxu0 %v3706_v58  ;;  %v3700_v32 = vld [vmem:[%s5742_s10 + $0x8] sm:$0xff] }
 0x42d   :  { %v3738_v31 = vpack.i.bf16 %v1450_v44, %v1448_v14 }
 0x42e   :  { %v2639_v47 = vsel %vm2638_vm12, %v3914_v55, %v2635_v52  ;;  %v2664_v4 = vpack.c.bf16 %v2660_v11, %v2660_v11  ;;  %v2672_v15 = vpack.c.b16 %v2671_v40, %v2670_v42  ;;  %v3702_v52 = vld [vmem:[%s5742_s10 + $0x18] sm:$0xff] }
 0x42f   :  { %v2644_v59 = vsel %vm2641_vm13, %v2643_v19, %v2639_v47  ;;  %3739 = vrot.lane.b32.xlu1 %v3738_v31, %s3917_s1  ;;  %v3701_v31 = vld [vmem:[%s5742_s10 + $0x10] sm:$0xff]  ;;  %v3699_v47 = vld [vmem:[%s5742_s10] sm:$0xff] }
 0x430   :  { %v2645_v34 = vmul.f32 %v5295_v45, %v2644_v59  ;;  %v2699_v26 = vunpack.c.l.b16 %v2664_v4  ;;  %2976 = vmatpush.bf16.msra.mxu0 %v3705_v43 }
 0x431   :  { %v2666_v17 = vpop.permute.xlu0 %2665 }
 0x432   :  { %v2663_v48 = vpack.c.bf16 %v2645_v34, %v2645_v34  ;;  %v2667_v2 = vrot.slane %v2666_v17, 4 }
 0x433   :  { %v1623_v1 = vpop.f32.mrf.mxu2 }
 0x434   :  { %v2698_v46 = vunpack.c.l.b16 %v2663_v48  ;;  %v2677_v0 = vsel %vm1196_vm1, %v2667_v2, 0  ;;  %2977 = vmatpush.bf16.msra.mxu0 %v3704_v5  ;;  %vm2821_vm1 = vcmask 523264  }
 0x435   :  { %2686 = vmatpush.bf16.msra.mxu2 %v2677_v0 }
 0x436   :  { %v2700_v51 = vpack.c.b16 %v2699_v26, %v2698_v46 }
 0x438   :  { %3519 = vmatmul.msk.bf16.vlgmr.msra.gmra.mxu2 %vm1087_vm2, %v2672_v15  ;;  %3520 = vmatmul.msk.bf16.vlgmr.msra.gmra.mxu3 %vm1087_vm2, %v2700_v51  ;;  %vm2826_vm2 = vcmask 785408  }
 0x439   :  { %2978 = vmatpush.bf16.msra.mxu0 %v3703_v62 }
 0x43b   :  { %v1625_v45 = vpop.f32.mrf.mxu2 }
 0x43c   :  { %v3723_v29 = vpack.i.bf16 %v1625_v45, %v1623_v1  ;;  %v3713_v45 = vld [vmem:[%s5742_s10 + $0x70] sm:$0xff] }
 0x43d   :  { %2979 = vmatpush.bf16.msra.mxu0 %v3702_v52  ;;  %2995 = vmatpush.bf16.msra.mxu1 %v3713_v45 }
 0x43e   :  { %3724 = vrot.lane.b32.xlu2 %v3723_v29, %s3915_s9 }
 0x441   :  { %2980 = vmatpush.bf16.msra.mxu0 %v3701_v31 }
 0x445   :  { %v1650_v16 = vpop.f32.mrf.mxu3  ;;  %2981 = vmatpush.bf16.msra.mxu0 %v3700_v32 }
 0x446   :  { %v1825_v20 = vpop.f32.mrf.mxu2 }
 0x449   :  { %2982 = vmatpush.bf16.msra.mxu0 %v3699_v47 }
 0x44d   :  { %v1652_v61 = vpop.f32.mrf.mxu3 }
 0x44e   :  { %v3758_v10 = vpack.i.bf16 %v1652_v61, %v1650_v16  ;;  %v1827_v9 = vpop.f32.mrf.mxu2  ;;  %v3712_v16 = vld [vmem:[%s5742_s10 + $0x68] sm:$0xff]  ;;  %v3711_v61 = vld [vmem:[%s5742_s10 + $0x60] sm:$0xff] }
 0x44f   :  { %v3733_v54 = vpack.i.bf16 %v1827_v9, %v1825_v20  ;;  %2996 = vmatpush.bf16.msra.mxu1 %v3712_v16  ;;  %v3709_v20 = vld [vmem:[%s5742_s10 + $0x50] sm:$0xff]  ;;  %v3707_v9 = vld [vmem:[%s5742_s10 + $0x40] sm:$0xff] }
 0x453   :  { %2997 = vmatpush.bf16.msra.mxu1 %v3711_v61 }
 0x455   :  { %v1852_v60 = vpop.f32.mrf.mxu3 }
 0x45d   :  { %v1854_v8 = vpop.f32.mrf.mxu3 }
 0x45e   :  { %v3768_v36 = vpack.i.bf16 %v1854_v8, %v1852_v60  ;;  %v3708_v60 = vld [vmem:[%s5742_s10 + $0x48] sm:$0xff] }
 0x483   :  { %v5616_v6 = vpop.f32.mrf.mxu2 }
 0x48b   :  { %v5618_v14 = vpop.f32.mrf.mxu3  ;;  %v5620_v55 = vpop.f32.mrf.mxu2 }
 0x493   :  { %v5622_v53 = vpop.f32.mrf.mxu3  ;;  %v2248_v30 = vpop.f32.mrf.mxu2 }
 0x498   :  { %v3725_v59 = vpop.permute.xlu2 %3724 }
 0x499   :  { %v3720_v4 = vpop.permute.xlu1 %3719  ;;  %v3727_v40 = vunpack.i.h.bf16 %v3725_v59  ;;  %v3726_v26 = vunpack.i.l.bf16 %v3725_v59 }
 0x49a   :  { %v3722_v17 = vunpack.i.h.bf16 %v3720_v4  ;;  %v3721_v42 = vunpack.i.l.bf16 %v3720_v4 }
 0x49b   :  { %v2276_v7 = vpop.f32.mrf.mxu3  ;;  %v2250_v38 = vpop.f32.mrf.mxu2 }
 0x49c   :  { %v3728_v27 = vpack.i.bf16 %v2250_v38, %v2248_v30  ;;  %v2818_v48 = vsel %vm1041_vm0, %v5547_v35, %v3722_v17  ;;  %v2817_v2 = vsel %vm1041_vm0, %v5506_v41, %v3721_v42 }
 0x49d   :  { %v2822_v15 = vsel %vm2821_vm1, %v2817_v2, %v3726_v26  ;;  %v2823_v51 = vsel %vm2821_vm1, %v2818_v48, %v3727_v40 }
 0x49e   :  { %3729 = vrot.lane.b32.xlu2 %v3728_v27, %s3917_s1 }
 0x4a3   :  { %v2278_v57 = vpop.f32.mrf.mxu3  ;;  %v2468_v13 = vpop.f32.mrf.mxu2 }
 0x4a4   :  { %v3743_v49 = vpack.i.bf16 %v2278_v57, %v2276_v7 }
 0x4a6   :  { %3734 = vrot.lane.b32.xlu2 %v3733_v54, %s3916_s20 }
 0x4ab   :  { %v2496_v18 = vpop.f32.mrf.mxu3  ;;  %v2470_v63 = vpop.f32.mrf.mxu2 }
 0x4ac   :  { %v3748_v3 = vpack.i.bf16 %v2470_v63, %v2468_v13 }
 0x4ae   :  { %3744 = vrot.lane.b32.xlu2 %v3743_v49, %s3917_s1  ;;  %3749 = vrot.lane.b32.xlu0 %v3748_v3, %s3915_s9 }
 0x4b3   :  { %v2498_v33 = vpop.f32.mrf.mxu3 }
 0x4b4   :  { %v3763_v39 = vpack.i.bf16 %v2498_v33, %v2496_v18 }
 0x4b6   :  { %3764 = vrot.lane.b32.xlu1 %v3763_v39, %s3915_s9  ;;  %3769 = vrot.lane.b32.xlu2 %v3768_v36, %s3916_s20  ;;  %v3740_v39 = vpop.permute.xlu1 %3739 }
 0x4b7   :  { %v3741_v5 = vunpack.i.l.bf16 %v3740_v39 }
 0x4b9   :  { %v2819_v52 = vsel %vm1041_vm0, %v5537_v50, %v3741_v5 }
 0x4bb   :  { %v2688_v12 = vpop.f32.mrf.mxu2  ;;  %v2716_v44 = vpop.f32.mrf.mxu3 }
 0x4c3   :  { %v2690_v22 = vpop.f32.mrf.mxu2  ;;  %v2718_v11 = vpop.f32.mrf.mxu3 }
 0x4c4   :  { %v3753_v21 = vpack.i.bf16 %v2690_v22, %v2688_v12  ;;  %v3773_v19 = vpack.i.bf16 %v2718_v11, %v2716_v44  ;;  %v3742_v12 = vunpack.i.h.bf16 %v3740_v39 }
 0x4c6   :  { %3754 = vrot.lane.b32.xlu0 %v3753_v21, %s3916_s20 }
 0x4ce   :  { %3759 = vrot.lane.b32.xlu0 %v3758_v10, %s3915_s9  ;;  %v3710_v10 = vld [vmem:[%s5742_s10 + $0x58] sm:$0xff] }
 0x4cf   :  { %2998 = vmatpush.bf16.msra.mxu1 %v3710_v10 }
 0x4d3   :  { %2999 = vmatpush.bf16.msra.mxu1 %v3709_v20 }
 0x4d6   :  { %3774 = vrot.lane.b32.xlu0 %v3773_v19, %s3916_s20 }
 0x4d7   :  { %3000 = vmatpush.bf16.msra.mxu1 %v3708_v60 }
 0x4db   :  { %3001 = vmatpush.bf16.msra.mxu1 %v3707_v9 }
 0x4f8   :  { %v3730_v34 = vpop.permute.xlu2 %3729 }
 0x4f9   :  { %v3732_v30 = vunpack.i.h.bf16 %v3730_v34  ;;  %v3731_v7 = vunpack.i.l.bf16 %v3730_v34 }
 0x4fb   :  { %v2832_v54 = vsel %vm1041_vm0, %v5620_v55, %v3732_v30  ;;  %v2831_v18 = vsel %vm1041_vm0, %v5616_v6, %v3731_v7  ;;  %v2820_v6 = vsel %vm1041_vm0, %v5563_v37, %v3742_v12 }
 0x500   :  { %v3735_v46 = vpop.permute.xlu2 %3734 }
 0x501   :  { %v3737_v0 = vunpack.i.h.bf16 %v3735_v46  ;;  %v3736_v1 = vunpack.i.l.bf16 %v3735_v46 }
 0x503   :  { %v2827_v35 = vsel %vm2826_vm2, %v2822_v15, %v3736_v1  ;;  %v2828_v29 = vsel %vm2826_vm2, %v2823_v51, %v3737_v0 }
 0x504   :  { %v2843_v41 = vpack.c.bf16 %v2828_v29, %v2827_v35 }
 0x506   :  { %2983 = vmatmul.bf16.vlgmr.msra.gmra.mxu0 %v2843_v41 }
 0x508   :  { %v3745_v38 = vpop.permute.xlu2 %3744 }
 0x509   :  { %v3747_v56 = vunpack.i.h.bf16 %v3745_v38  ;;  %v3746_v4 = vunpack.i.l.bf16 %v3745_v38 }
 0x50b   :  { %v2834_v50 = vsel %vm1041_vm0, %v5622_v53, %v3747_v56  ;;  %v2833_v48 = vsel %vm1041_vm0, %v5618_v14, %v3746_v4  ;;  %v3778_v53 = vld [vmem:[%s5743_s11] ss:$0 sm:$0xff] }
 0x510   :  { %v3770_v62 = vpop.permute.xlu2 %3769 }
 0x511   :  { %v3772_v44 = vunpack.i.h.bf16 %v3770_v62  ;;  %v3771_v11 = vunpack.i.l.bf16 %v3770_v62 }
 0x520   :  { %v3750_v8 = vpop.permute.xlu0 %3749 }
 0x521   :  { %v3752_v27 = vunpack.i.h.bf16 %v3750_v8  ;;  %v3751_v57 = vunpack.i.l.bf16 %v3750_v8 }
 0x523   :  { %v2835_v3 = vsel %vm2821_vm1, %v2831_v18, %v3751_v57  ;;  %v2836_v33 = vsel %vm2821_vm1, %v2832_v54, %v3752_v27 }
 0x528   :  { %v3765_v19 = vpop.permute.xlu1 %3764 }
 0x529   :  { %v3767_v17 = vunpack.i.h.bf16 %v3765_v19  ;;  %v3766_v42 = vunpack.i.l.bf16 %v3765_v19 }
 0x52b   :  { %v2837_v26 = vsel %vm2821_vm1, %v2833_v48, %v3766_v42  ;;  %v2838_v46 = vsel %vm2821_vm1, %v2834_v50, %v3767_v17 }
 0x538   :  { %v3755_v13 = vpop.permute.xlu0 %3754 }
 0x539   :  { %v3757_v63 = vunpack.i.h.bf16 %v3755_v13  ;;  %v3756_v49 = vunpack.i.l.bf16 %v3755_v13 }
 0x53b   :  { %v2839_v58 = vsel %vm2826_vm2, %v2835_v3, %v3756_v49  ;;  %v2840_v43 = vsel %vm2826_vm2, %v2836_v33, %v3757_v63 }
 0x53c   :  { %v2844_v36 = vpack.c.bf16 %v2840_v43, %v2839_v58 }
 0x53e   :  { %3002 = vmatmul.bf16.vlgmr.msra.gmra.mxu1 %v2844_v36 }
 0x540   :  { %v3760_v55 = vpop.permute.xlu0 %3759 }
 0x541   :  { %v3762_v22 = vunpack.i.h.bf16 %v3760_v55  ;;  %v3761_v21 = vunpack.i.l.bf16 %v3760_v55 }
 0x543   :  { %v2825_v31 = vsel %vm2821_vm1, %v2820_v6, %v3762_v22  ;;  %v2824_v32 = vsel %vm2821_vm1, %v2819_v52, %v3761_v21 }
 0x544   :  { %v2829_v47 = vsel %vm2826_vm2, %v2824_v32, %v3771_v11  ;;  %v2830_v59 = vsel %vm2826_vm2, %v2825_v31, %v3772_v44 }
 0x545   :  { %v2845_v34 = vpack.c.bf16 %v2830_v59, %v2829_v47 }
 0x547   :  { %2988 = vmatmul.bf16.gmra.mxu0 %v2845_v34 }
 0x548   :  { %v3775_v37 = vpop.permute.xlu0 %3774 }
 0x549   :  { %v3777_v2 = vunpack.i.h.bf16 %v3775_v37  ;;  %v3776_v40 = vunpack.i.l.bf16 %v3775_v37 }
 0x54b   :  { %v2841_v0 = vsel %vm2826_vm2, %v2837_v26, %v3776_v40  ;;  %v2842_v1 = vsel %vm2826_vm2, %v2838_v46, %v3777_v2 }
 0x54c   :  { %v2846_v15 = vpack.c.bf16 %v2842_v1, %v2841_v0 }
 0x54e   :  { %3007 = vmatmul.bf16.gmra.mxu1 %v2846_v15 }
 0x583   :  { %v2984_v51 = vpop.f32.mrf.mxu0 }
 0x58b   :  { %v2986_v41 = vpop.f32.mrf.mxu0 }
 0x5bb   :  { %v3003_v45 = vpop.f32.mrf.mxu1 }
 0x5bc   :  { %v3004_v35 = vadd.f32 %v3003_v45, %v2984_v51 }
 0x5be   :  { %v3013_v14 = vadd.f32 %v3004_v35, %v4574_v25 }
 0x5c0   :  { %v3021_v29 = vadd.f32 %v3778_v53, %v3013_v14 }
 0x5c2   :  { %3025 = vst [vmem:[%s5744_s12] sm:$0xff] %v3021_v29 }
 0x5c3   :  { %v3005_v16 = vpop.f32.mrf.mxu1 }
 0x5c4   :  { %v3006_v61 = vadd.f32 %v3005_v16, %v2986_v41  ;;  %v2989_v60 = vpop.f32.mrf.mxu0 }
 0x5c6   :  { %v3014_v10 = vadd.f32 %v3006_v61, %v4576_v28 }
 0x5c8   :  { %v3022_v20 = vadd.f32 %v3778_v53, %v3014_v10 }
 0x5ca   :  { %3026 = vst [vmem:[%s5744_s12 + $0x8] sm:$0xff] %v3022_v20 }
 0x5cb   :  { %v3008_v9 = vpop.f32.mrf.mxu1 }
 0x5cc   :  { %v3009_v8 = vadd.f32 %v3008_v9, %v2989_v60  ;;  %v2991_v7 = vpop.f32.mrf.mxu0 }
 0x5ce   :  { %v3015_v25 = vadd.f32 %v3009_v8, %v4685_v23 }
 0x5d0   :  { %v3023_v30 = vadd.f32 %v3778_v53, %v3015_v25 }
 0x5d2   :  { %3027 = vst [vmem:[%s5744_s12 + $0x10] sm:$0xff] %v3023_v30 }
 0x5d3   :  { %v3010_v38 = vpop.f32.mrf.mxu1 }
 0x5d4   :  { %v3011_v27 = vadd.f32 %v3010_v38, %v2991_v7 }
 0x5d6   :  { %v3016_v28 = vadd.f32 %v3011_v27, %v4687_v24 }
 0x5d8   :  { %v3024_v57 = vadd.f32 %v3778_v53, %v3016_v28 }
 0x5da   :  { %3028 = vst [vmem:[%s5744_s12 + $0x18] sm:$0xff] %v3024_v57 }

</bundles_post_ra>
